<compile_context>
chip_gen: v5e
topology: v5e:2x2
jax: 0.10.0
libtpu: 0.0.40
codegen_flags: <defaults>
</compile_context>

<pallas_src>
import functools
import math

import jax
import jax.numpy as jnp
import numpy as np
from jax import lax
from jax.experimental import pallas as pl
from jax.experimental.pallas import tpu as pltpu

EPS = 1e-5


# ----------------------------- fused Pallas kernel --------------------------

def _fog_kernel(xp_ref, dww_ref, dsh_ref, wqkv_ref, bqkv_ref,
                wo_ref, bo_ref, w1_ref, b1_ref, w2_ref, b2_ref,
                o_ref, *, h, w, c, nh, nb):
    # xp_ref  : (nb, h+2, w+2, c) zero-padded input (NHWC), f32
    # dww_ref : (9, c)   BN-scale-folded depthwise weights (tap = di*3+dj), f32
    # dsh_ref : (1, c)   folded conv-bias/BN shift, f32
    # wqkv_ref: (c, 3c)  [Wq^T*scale | Wk^T | Wv^T] bf16
    # bqkv_ref: (1, 3c)  [bq*scale | 0 | 0] f32 (bk dropped, bv folded into bo)
    # wo_ref  : (c, c)   out_w^T bf16 ; bo_ref: (1, c) f32 (includes bv @ out_w^T)
    # w1_ref  : (c//4, c) f32 ; b1_ref: (1, c//4) f32        (channel gate, VPU path)
    # w2_ref  : (c, c//4) f32 ; b2_ref: (1, c) f32
    # o_ref   : (nb, s, c) untransposed output tile, f32
    f32 = jnp.float32
    bf16 = jnp.bfloat16
    s = h * w
    hd = c // nh

    # ---- depthwise 3x3 conv (+ folded BatchNorm) + ReLU, register accumulation ----
    y_list, res_list = [], []
    for b in range(nb):
        acc = None
        for di in range(3):
            for dj in range(3):
                patch = xp_ref[b, di:di + h, dj:dj + w, :].reshape(s, c)
                if di == 1 and dj == 1:
                    res_list.append(patch)                 # un-padded input = residual
                t = di * 3 + dj
                term = patch * dww_ref[t:t + 1, :]         # per-channel multiply (VPU)
                acc = term if acc is None else acc + term
        y_list.append(jnp.maximum(acc + dsh_ref[...], 0.0))
    y = jnp.concatenate(y_list, axis=0)                    # (nb*s, c) f32
    res = jnp.concatenate(res_list, axis=0)                # (nb*s, c) f32
    yb = y.astype(bf16)

    # ---- fused QKV projection: one full-width MXU matmul ----
    qkv = jnp.dot(yb, wqkv_ref[...], preferred_element_type=f32) + bqkv_ref[...]
    qkv_b = qkv.astype(bf16)                               # (nb*s, 3c)

    # ---- per-(batch, head) attention; heads lane-concatenated, ONE out-projection ----
    batch_cat = []
    for b in range(nb):
        r0 = b * s
        head_cat = []
        for hh in range(nh):                               # nh small & static -> unrolled
            off = hh * hd
            q = qkv_b[r0:r0 + s, off:off + hd]                       # (s, hd) bf16
            k = qkv_b[r0:r0 + s, c + off:c + off + hd]
            v = qkv_b[r0:r0 + s, 2 * c + off:2 * c + off + hd]
            sc = lax.dot_general(q, k, (((1,), (1,)), ((), ())),
                                 preferred_element_type=f32)         # (s, s) f32
            m = jnp.max(sc, axis=-1, keepdims=True)
            e = jnp.exp(sc - m)
            p = e * pl.reciprocal(jnp.sum(e, axis=-1, keepdims=True), approx=True)
            head_cat.append(jnp.dot(p.astype(bf16), v,
                                    preferred_element_type=f32))     # (s, hd) f32
        batch_cat.append(jnp.concatenate(head_cat, axis=-1))         # (s, c)
    ao = jnp.concatenate(batch_cat, axis=0).astype(bf16)             # (nb*s, c) bf16
    attn = jnp.dot(ao, wo_ref[...], preferred_element_type=f32) + bo_ref[...]

    # ---- channel gate: global-avg-pool -> 1x1 -> ReLU -> 1x1 -> tanh (VPU/XLU) ----
    attn3 = attn.reshape(nb, s, c)
    pooled = jnp.sum(attn3, axis=1) * (1.0 / s)                      # (nb, c)
    z = jnp.maximum(jnp.sum(pooled[:, None, :] * w1_ref[...], axis=-1)
                    + b1_ref[...], 0.0)                              # (nb, c//4)
    gate = jnp.tanh(jnp.sum(z[:, None, :] * w2_ref[...], axis=-1)
                    + b2_ref[...])                                   # (nb, c)

    # ---- gating + residual; store the natural (nb, s, c) tile (no in-kernel transpose) ----
    o_ref[...] = res.reshape(nb, s, c) + attn3 * gate[:, None, :]


# ----------------------------- wrapper ---------------------------------------

def _images_per_step(n_batch):
    """Single-TC chips (v5e/v6e): merge the whole batch into one grid step (bigger M,
    half the per-step overhead). Multi-TC chips (v7x): one image per grid step so the
    'parallel' batch axis can be sharded across the two TensorCores."""
    try:
        kind = jax.devices()[0].device_kind.lower().replace(" ", "")
    except Exception:
        kind = ""
    multi_tc = ("v7" in kind) or ("7x" in kind)
    return 1 if (multi_tc and n_batch > 1) else n_batch


def fog_attention_pallas(x_nchw, p, heads=4):
    """x_nchw: (N, C, H, W) float32 -> (N, C, H, W) float32."""
    n, c, h, w = x_nchw.shape
    hd = c // heads
    c4 = c // 4
    s = h * w
    bf16 = jnp.bfloat16

    nb = _images_per_step(n)
    assert n % nb == 0

    # ---- fold BatchNorm (eval) into depthwise conv ----
    bsc = p["bn_g"] / jnp.sqrt(p["bn_v"] + EPS)
    dsh = ((p["dw_b"] - p["bn_m"]) * bsc + p["bn_b"])[None, :]                 # (1, C)
    dww = (p["dw_w"][:, 0] * bsc[:, None, None]).transpose(1, 2, 0).reshape(9, c)

    # ---- fused QKV weights (q pre-scaled); drop bk; fold bv into out-proj bias ----
    wq, wk, wv = jnp.split(p["in_w"], 3, axis=0)                               # (C, C) each
    bq, bk, bv = jnp.split(p["in_b"], 3, axis=0)
    scale = 1.0 / math.sqrt(hd)
    wqkv = jnp.concatenate([wq.T * scale, wk.T, wv.T], axis=1).astype(bf16)    # (C, 3C)
    bqkv = jnp.concatenate([bq * scale, jnp.zeros_like(bk),
                            jnp.zeros_like(bv)])[None, :]                      # (1, 3C)
    wo = p["out_w"].T.astype(bf16)                                             # (C, C)
    bo = (p["out_b"] + bv @ p["out_w"].T)[None, :]                             # (1, C)

    # channel-gate weights stay f32 (VPU path in the kernel, no transposes needed)
    w1 = p["fc1_w"][:, :, 0, 0]                                                # (C//4, C)
    b1 = p["fc1_b"][None, :]
    w2 = p["fc2_w"][:, :, 0, 0]                                                # (C, C//4)
    b2 = p["fc2_b"][None, :]

    # one NCHW->NHWC transpose + halo pad on the (small) input; everything else fused
    x_pad = jnp.pad(x_nchw.transpose(0, 2, 3, 1), ((0, 0), (1, 1), (1, 1), (0, 0)))

    kern = functools.partial(_fog_kernel, h=h, w=w, c=c, nh=heads, nb=nb)
    bs = pl.BlockSpec  # shorthand
    # NOTE: weight/bias inputs have constant index_maps; at C=64 their double-buffer
    # VMEM cost is negligible, so no explicit pipeline_mode override is needed.
    out = pl.pallas_call(
        kern,
        out_shape=jax.ShapeDtypeStruct((n, s, c), jnp.float32),
        grid_spec=pltpu.PrefetchScalarGridSpec(
            num_scalar_prefetch=0,
            grid=(n // nb,),
            in_specs=[
                bs((nb, h + 2, w + 2, c), lambda i: (i, 0, 0, 0)),
                bs((9, c), lambda i: (0, 0)),
                bs((1, c), lambda i: (0, 0)),
                bs((c, 3 * c), lambda i: (0, 0)),
                bs((1, 3 * c), lambda i: (0, 0)),
                bs((c, c), lambda i: (0, 0)),
                bs((1, c), lambda i: (0, 0)),
                bs((c4, c), lambda i: (0, 0)),
                bs((1, c4), lambda i: (0, 0)),
                bs((c, c4), lambda i: (0, 0)),
                bs((1, c), lambda i: (0, 0)),
            ],
            out_specs=pl.BlockSpec((nb, s, c), lambda i: (i, 0, 0)),
        ),
        compiler_params=pltpu.CompilerParams(dimension_semantics=("parallel",)),
    )(x_pad, dww, dsh, wqkv, bqkv, wo, bo, w1, b1, w2, b2)

    # kernel emits untransposed (n, s, c); tiny NCHW transpose + reshape in XLA
    return out.transpose(0, 2, 1).reshape(n, c, h, w)


# ----------------------------- reference (plain JAX, NCHW) -------------------

def _bn_eval(x, g, b, m, v):
    sc = g / jnp.sqrt(v + EPS)
    return (x - m[None, :, None, None]) * sc[None, :, None, None] + b[None, :, None, None]


def fog_attention_ref(x, p, heads=4):
    n, c, h, w = x.shape
    hd = c // heads
    # depthwise 3x3 conv + BN(eval) + ReLU
    y = jax.lax.conv_general_dilated(
        x, p["dw_w"], (1, 1), ((1, 1), (1, 1)),
        dimension_numbers=("NCHW", "OIHW", "NCHW"),
        feature_group_count=c) + p["dw_b"][None, :, None, None]
    y = jnp.maximum(_bn_eval(y, p["bn_g"], p["bn_b"], p["bn_m"], p["bn_v"]), 0.0)
    # multi-head self-attention (PyTorch nn.MultiheadAttention, batch_first)
    s = h * w
    xf = y.reshape(n, c, s).transpose(0, 2, 1)                          # (n, s, c)
    wq, wk, wv = jnp.split(p["in_w"], 3, axis=0)
    bq, bk, bv = jnp.split(p["in_b"], 3, axis=0)
    q = xf @ wq.T + bq
    k = xf @ wk.T + bk
    v = xf @ wv.T + bv

    def split_heads(t):
        return t.reshape(n, s, heads, hd).transpose(0, 2, 1, 3)         # (n, nh, s, hd)

    qh, kh, vh = split_heads(q), split_heads(k), split_heads(v)
    sc = jnp.einsum("bhqd,bhkd->bhqk", qh, kh) / math.sqrt(hd)
    pr = jax.nn.softmax(sc, axis=-1)
    oh = jnp.einsum("bhqk,bhkd->bhqd", pr, vh)
    o = oh.transpose(0, 2, 1, 3).reshape(n, s, c)
    o = o @ p["out_w"].T + p["out_b"]
    xa = o.transpose(0, 2, 1).reshape(n, c, h, w)
    # channel gate
    pooled = xa.mean(axis=(2, 3))                                       # (n, c)
    z = jnp.maximum(pooled @ p["fc1_w"][:, :, 0, 0].T + p["fc1_b"], 0.0)
    gate = jnp.tanh(z @ p["fc2_w"][:, :, 0, 0].T + p["fc2_b"])
    return x + xa * gate[:, :, None, None]


# ----------------------------- main -------------------------------------------

if __name__ == "__main__":
    DIM, HEADS = 64, 4          # module defaults: heads=4, channel_fc hidden = dim//4
    N, H, W = 2, 8, 8
    C4 = DIM // 4

    key = jax.random.PRNGKey(0)
    ks = jax.random.split(key, 16)

    params = {
        "dw_w": jax.random.normal(ks[0], (DIM, 1, 3, 3), jnp.float32) * 0.2,
        "dw_b": jax.random.normal(ks[1], (DIM,), jnp.float32) * 0.1,
        "bn_g": jax.random.uniform(ks[2], (DIM,), jnp.float32, 0.5, 1.5),
        "bn_b": jax.random.normal(ks[3], (DIM,), jnp.float32) * 0.1,
        "bn_m": jax.random.normal(ks[4], (DIM,), jnp.float32) * 0.1,
        "bn_v": jax.random.uniform(ks[5], (DIM,), jnp.float32, 0.5, 1.5),
        "in_w": jax.random.normal(ks[6], (3 * DIM, DIM), jnp.float32) * 0.1,
        "in_b": jax.random.normal(ks[7], (3 * DIM,), jnp.float32) * 0.1,
        "out_w": jax.random.normal(ks[8], (DIM, DIM), jnp.float32) * 0.1,
        "out_b": jax.random.normal(ks[9], (DIM,), jnp.float32) * 0.1,
        "fc1_w": jax.random.normal(ks[10], (C4, DIM, 1, 1), jnp.float32) * 0.2,
        "fc1_b": jax.random.normal(ks[11], (C4,), jnp.float32) * 0.1,
        "fc2_w": jax.random.normal(ks[12], (DIM, C4, 1, 1), jnp.float32) * 0.2,
        "fc2_b": jax.random.normal(ks[13], (DIM,), jnp.float32) * 0.1,
    }

    x = jax.random.normal(ks[14], (N, DIM, H, W), jnp.float32)   # NCHW, like PyTorch

    out = jax.block_until_ready(fog_attention_pallas(x, params, heads=HEADS))
    ref = jax.block_until_ready(fog_attention_ref(x, params, heads=HEADS))

    assert out.shape == (N, DIM, H, W), out.shape
    np.testing.assert_allclose(np.asarray(out), np.asarray(ref), rtol=1e-2, atol=1e-2)

    print("KERNEL_OK")
</pallas_src>

<mosaic_0001>
module attributes {stable_mosaic.version = 11 : i64} {
  func.func @_fog_kernel(%arg0: i32, %arg1: memref<2x10x10x64xf32, #tpu.memory_space<vmem>>, %arg2: memref<9x64xf32, #tpu.memory_space<vmem>>, %arg3: memref<1x64xf32, #tpu.memory_space<vmem>>, %arg4: memref<64x192xbf16, #tpu.memory_space<vmem>>, %arg5: memref<1x192xf32, #tpu.memory_space<vmem>>, %arg6: memref<64x64xbf16, #tpu.memory_space<vmem>>, %arg7: memref<1x64xf32, #tpu.memory_space<vmem>>, %arg8: memref<16x64xf32, #tpu.memory_space<vmem>>, %arg9: memref<1x16xf32, #tpu.memory_space<vmem>>, %arg10: memref<64x16xf32, #tpu.memory_space<vmem>>, %arg11: memref<1x64xf32, #tpu.memory_space<vmem>>, %arg12: memref<2x64x64xf32, #tpu.memory_space<vmem>>) attributes {dimension_semantics = [#tpu.dimension_semantics<parallel>], iteration_bounds = array<i64: 1>, scalar_prefetch = 0 : i64, scratch_operands = 0 : i64, tpu.core_type = #tpu.core_type<tc>, window_params = [{transform_indices = @transform_0, window_bounds = array<i64: 2, 10, 10, 64>}, {pipeline_mode = #tpu.pipeline_mode<synchronous>, transform_indices = @transform_1, window_bounds = array<i64: 9, 64>}, {pipeline_mode = #tpu.pipeline_mode<synchronous>, transform_indices = @transform_2, window_bounds = array<i64: 1, 64>}, {pipeline_mode = #tpu.pipeline_mode<synchronous>, transform_indices = @transform_3, window_bounds = array<i64: 64, 192>}, {pipeline_mode = #tpu.pipeline_mode<synchronous>, transform_indices = @transform_4, window_bounds = array<i64: 1, 192>}, {pipeline_mode = #tpu.pipeline_mode<synchronous>, transform_indices = @transform_5, window_bounds = array<i64: 64, 64>}, {pipeline_mode = #tpu.pipeline_mode<synchronous>, transform_indices = @transform_6, window_bounds = array<i64: 1, 64>}, {pipeline_mode = #tpu.pipeline_mode<synchronous>, transform_indices = @transform_7, window_bounds = array<i64: 16, 64>}, {pipeline_mode = #tpu.pipeline_mode<synchronous>, transform_indices = @transform_8, window_bounds = array<i64: 1, 16>}, {pipeline_mode = #tpu.pipeline_mode<synchronous>, transform_indices = @transform_9, window_bounds = array<i64: 64, 16>}, {pipeline_mode = #tpu.pipeline_mode<synchronous>, transform_indices = @transform_10, window_bounds = array<i64: 1, 64>}, {transform_indices = @transform_11, window_bounds = array<i64: 2, 64, 64>}]} {
    %c0 = arith.constant 0 : index
    %c0_0 = arith.constant 0 : index
    %c0_1 = arith.constant 0 : index
    %c0_2 = arith.constant 0 : index
    %0 = vector.load %arg1[%c0, %c0_0, %c0_1, %c0_2] : memref<2x10x10x64xf32, #tpu.memory_space<vmem>>, vector<1x8x8x64xf32>
    %1 = vector.shape_cast %0 : vector<1x8x8x64xf32> to vector<8x8x64xf32>
    %2 = vector.shape_cast %1 : vector<8x8x64xf32> to vector<64x64xf32>
    %c0_3 = arith.constant 0 : index
    %c0_4 = arith.constant 0 : index
    %3 = vector.load %arg2[%c0_3, %c0_4] : memref<9x64xf32, #tpu.memory_space<vmem>>, vector<1x64xf32>
    %4 = vector.broadcast %3 : vector<1x64xf32> to vector<64x64xf32>
    %5 = arith.mulf %2, %4 : vector<64x64xf32>
    %c0_5 = arith.constant 0 : index
    %c0_6 = arith.constant 0 : index
    %c1 = arith.constant 1 : index
    %c0_7 = arith.constant 0 : index
    %6 = vector.load %arg1[%c0_5, %c0_6, %c1, %c0_7] : memref<2x10x10x64xf32, #tpu.memory_space<vmem>>, vector<1x8x8x64xf32>
    %7 = vector.shape_cast %6 : vector<1x8x8x64xf32> to vector<8x8x64xf32>
    %8 = vector.shape_cast %7 : vector<8x8x64xf32> to vector<64x64xf32>
    %c1_8 = arith.constant 1 : index
    %c0_9 = arith.constant 0 : index
    %9 = vector.load %arg2[%c1_8, %c0_9] : memref<9x64xf32, #tpu.memory_space<vmem>>, vector<1x64xf32>
    %10 = vector.broadcast %9 : vector<1x64xf32> to vector<64x64xf32>
    %11 = arith.mulf %8, %10 : vector<64x64xf32>
    %12 = arith.addf %5, %11 : vector<64x64xf32>
    %c0_10 = arith.constant 0 : index
    %c0_11 = arith.constant 0 : index
    %c2 = arith.constant 2 : index
    %c0_12 = arith.constant 0 : index
    %13 = vector.load %arg1[%c0_10, %c0_11, %c2, %c0_12] : memref<2x10x10x64xf32, #tpu.memory_space<vmem>>, vector<1x8x8x64xf32>
    %14 = vector.shape_cast %13 : vector<1x8x8x64xf32> to vector<8x8x64xf32>
    %15 = vector.shape_cast %14 : vector<8x8x64xf32> to vector<64x64xf32>
    %c2_13 = arith.constant 2 : index
    %c0_14 = arith.constant 0 : index
    %16 = vector.load %arg2[%c2_13, %c0_14] : memref<9x64xf32, #tpu.memory_space<vmem>>, vector<1x64xf32>
    %17 = vector.broadcast %16 : vector<1x64xf32> to vector<64x64xf32>
    %18 = arith.mulf %15, %17 : vector<64x64xf32>
    %19 = arith.addf %12, %18 : vector<64x64xf32>
    %c0_15 = arith.constant 0 : index
    %c1_16 = arith.constant 1 : index
    %c0_17 = arith.constant 0 : index
    %c0_18 = arith.constant 0 : index
    %20 = vector.load %arg1[%c0_15, %c1_16, %c0_17, %c0_18] : memref<2x10x10x64xf32, #tpu.memory_space<vmem>>, vector<1x8x8x64xf32>
    %21 = vector.shape_cast %20 : vector<1x8x8x64xf32> to vector<8x8x64xf32>
    %22 = vector.shape_cast %21 : vector<8x8x64xf32> to vector<64x64xf32>
    %c3 = arith.constant 3 : index
    %c0_19 = arith.constant 0 : index
    %23 = vector.load %arg2[%c3, %c0_19] : memref<9x64xf32, #tpu.memory_space<vmem>>, vector<1x64xf32>
    %24 = vector.broadcast %23 : vector<1x64xf32> to vector<64x64xf32>
    %25 = arith.mulf %22, %24 : vector<64x64xf32>
    %26 = arith.addf %19, %25 : vector<64x64xf32>
    %c0_20 = arith.constant 0 : index
    %c1_21 = arith.constant 1 : index
    %c1_22 = arith.constant 1 : index
    %c0_23 = arith.constant 0 : index
    %27 = vector.load %arg1[%c0_20, %c1_21, %c1_22, %c0_23] : memref<2x10x10x64xf32, #tpu.memory_space<vmem>>, vector<1x8x8x64xf32>
    %28 = vector.shape_cast %27 : vector<1x8x8x64xf32> to vector<8x8x64xf32>
    %29 = vector.shape_cast %28 : vector<8x8x64xf32> to vector<64x64xf32>
    %c4 = arith.constant 4 : index
    %c0_24 = arith.constant 0 : index
    %30 = vector.load %arg2[%c4, %c0_24] : memref<9x64xf32, #tpu.memory_space<vmem>>, vector<1x64xf32>
    %31 = vector.broadcast %30 : vector<1x64xf32> to vector<64x64xf32>
    %32 = arith.mulf %29, %31 : vector<64x64xf32>
    %33 = arith.addf %26, %32 : vector<64x64xf32>
    %c0_25 = arith.constant 0 : index
    %c1_26 = arith.constant 1 : index
    %c2_27 = arith.constant 2 : index
    %c0_28 = arith.constant 0 : index
    %34 = vector.load %arg1[%c0_25, %c1_26, %c2_27, %c0_28] : memref<2x10x10x64xf32, #tpu.memory_space<vmem>>, vector<1x8x8x64xf32>
    %35 = vector.shape_cast %34 : vector<1x8x8x64xf32> to vector<8x8x64xf32>
    %36 = vector.shape_cast %35 : vector<8x8x64xf32> to vector<64x64xf32>
    %c5 = arith.constant 5 : index
    %c0_29 = arith.constant 0 : index
    %37 = vector.load %arg2[%c5, %c0_29] : memref<9x64xf32, #tpu.memory_space<vmem>>, vector<1x64xf32>
    %38 = vector.broadcast %37 : vector<1x64xf32> to vector<64x64xf32>
    %39 = arith.mulf %36, %38 : vector<64x64xf32>
    %40 = arith.addf %33, %39 : vector<64x64xf32>
    %c0_30 = arith.constant 0 : index
    %c2_31 = arith.constant 2 : index
    %c0_32 = arith.constant 0 : index
    %c0_33 = arith.constant 0 : index
    %41 = vector.load %arg1[%c0_30, %c2_31, %c0_32, %c0_33] : memref<2x10x10x64xf32, #tpu.memory_space<vmem>>, vector<1x8x8x64xf32>
    %42 = vector.shape_cast %41 : vector<1x8x8x64xf32> to vector<8x8x64xf32>
    %43 = vector.shape_cast %42 : vector<8x8x64xf32> to vector<64x64xf32>
    %c6 = arith.constant 6 : index
    %c0_34 = arith.constant 0 : index
    %44 = vector.load %arg2[%c6, %c0_34] : memref<9x64xf32, #tpu.memory_space<vmem>>, vector<1x64xf32>
    %45 = vector.broadcast %44 : vector<1x64xf32> to vector<64x64xf32>
    %46 = arith.mulf %43, %45 : vector<64x64xf32>
    %47 = arith.addf %40, %46 : vector<64x64xf32>
    %c0_35 = arith.constant 0 : index
    %c2_36 = arith.constant 2 : index
    %c1_37 = arith.constant 1 : index
    %c0_38 = arith.constant 0 : index
    %48 = vector.load %arg1[%c0_35, %c2_36, %c1_37, %c0_38] : memref<2x10x10x64xf32, #tpu.memory_space<vmem>>, vector<1x8x8x64xf32>
    %49 = vector.shape_cast %48 : vector<1x8x8x64xf32> to vector<8x8x64xf32>
    %50 = vector.shape_cast %49 : vector<8x8x64xf32> to vector<64x64xf32>
    %c7 = arith.constant 7 : index
    %c0_39 = arith.constant 0 : index
    %51 = vector.load %arg2[%c7, %c0_39] : memref<9x64xf32, #tpu.memory_space<vmem>>, vector<1x64xf32>
    %52 = vector.broadcast %51 : vector<1x64xf32> to vector<64x64xf32>
    %53 = arith.mulf %50, %52 : vector<64x64xf32>
    %54 = arith.addf %47, %53 : vector<64x64xf32>
    %c0_40 = arith.constant 0 : index
    %c2_41 = arith.constant 2 : index
    %c2_42 = arith.constant 2 : index
    %c0_43 = arith.constant 0 : index
    %55 = vector.load %arg1[%c0_40, %c2_41, %c2_42, %c0_43] : memref<2x10x10x64xf32, #tpu.memory_space<vmem>>, vector<1x8x8x64xf32>
    %56 = vector.shape_cast %55 : vector<1x8x8x64xf32> to vector<8x8x64xf32>
    %57 = vector.shape_cast %56 : vector<8x8x64xf32> to vector<64x64xf32>
    %c8 = arith.constant 8 : index
    %c0_44 = arith.constant 0 : index
    %58 = vector.load %arg2[%c8, %c0_44] : memref<9x64xf32, #tpu.memory_space<vmem>>, vector<1x64xf32>
    %59 = vector.broadcast %58 : vector<1x64xf32> to vector<64x64xf32>
    %60 = arith.mulf %57, %59 : vector<64x64xf32>
    %61 = arith.addf %54, %60 : vector<64x64xf32>
    %c0_45 = arith.constant 0 : index
    %c0_46 = arith.constant 0 : index
    %62 = vector.load %arg3[%c0_45, %c0_46] : memref<1x64xf32, #tpu.memory_space<vmem>>, vector<1x64xf32>
    %63 = vector.broadcast %62 : vector<1x64xf32> to vector<64x64xf32>
    %64 = arith.addf %61, %63 : vector<64x64xf32>
    %cst = arith.constant 0.000000e+00 : f32
    %65 = vector.broadcast %cst : f32 to vector<64x64xf32>
    %66 = arith.maximumf %64, %65 : vector<64x64xf32>
    %c1_47 = arith.constant 1 : index
    %c0_48 = arith.constant 0 : index
    %c0_49 = arith.constant 0 : index
    %c0_50 = arith.constant 0 : index
    %67 = vector.load %arg1[%c1_47, %c0_48, %c0_49, %c0_50] : memref<2x10x10x64xf32, #tpu.memory_space<vmem>>, vector<1x8x8x64xf32>
    %68 = vector.shape_cast %67 : vector<1x8x8x64xf32> to vector<8x8x64xf32>
    %69 = vector.shape_cast %68 : vector<8x8x64xf32> to vector<64x64xf32>
    %c0_51 = arith.constant 0 : index
    %c0_52 = arith.constant 0 : index
    %70 = vector.load %arg2[%c0_51, %c0_52] : memref<9x64xf32, #tpu.memory_space<vmem>>, vector<1x64xf32>
    %71 = vector.broadcast %70 : vector<1x64xf32> to vector<64x64xf32>
    %72 = arith.mulf %69, %71 : vector<64x64xf32>
    %c1_53 = arith.constant 1 : index
    %c0_54 = arith.constant 0 : index
    %c1_55 = arith.constant 1 : index
    %c0_56 = arith.constant 0 : index
    %73 = vector.load %arg1[%c1_53, %c0_54, %c1_55, %c0_56] : memref<2x10x10x64xf32, #tpu.memory_space<vmem>>, vector<1x8x8x64xf32>
    %74 = vector.shape_cast %73 : vector<1x8x8x64xf32> to vector<8x8x64xf32>
    %75 = vector.shape_cast %74 : vector<8x8x64xf32> to vector<64x64xf32>
    %c1_57 = arith.constant 1 : index
    %c0_58 = arith.constant 0 : index
    %76 = vector.load %arg2[%c1_57, %c0_58] : memref<9x64xf32, #tpu.memory_space<vmem>>, vector<1x64xf32>
    %77 = vector.broadcast %76 : vector<1x64xf32> to vector<64x64xf32>
    %78 = arith.mulf %75, %77 : vector<64x64xf32>
    %79 = arith.addf %72, %78 : vector<64x64xf32>
    %c1_59 = arith.constant 1 : index
    %c0_60 = arith.constant 0 : index
    %c2_61 = arith.constant 2 : index
    %c0_62 = arith.constant 0 : index
    %80 = vector.load %arg1[%c1_59, %c0_60, %c2_61, %c0_62] : memref<2x10x10x64xf32, #tpu.memory_space<vmem>>, vector<1x8x8x64xf32>
    %81 = vector.shape_cast %80 : vector<1x8x8x64xf32> to vector<8x8x64xf32>
    %82 = vector.shape_cast %81 : vector<8x8x64xf32> to vector<64x64xf32>
    %c2_63 = arith.constant 2 : index
    %c0_64 = arith.constant 0 : index
    %83 = vector.load %arg2[%c2_63, %c0_64] : memref<9x64xf32, #tpu.memory_space<vmem>>, vector<1x64xf32>
    %84 = vector.broadcast %83 : vector<1x64xf32> to vector<64x64xf32>
    %85 = arith.mulf %82, %84 : vector<64x64xf32>
    %86 = arith.addf %79, %85 : vector<64x64xf32>
    %c1_65 = arith.constant 1 : index
    %c1_66 = arith.constant 1 : index
    %c0_67 = arith.constant 0 : index
    %c0_68 = arith.constant 0 : index
    %87 = vector.load %arg1[%c1_65, %c1_66, %c0_67, %c0_68] : memref<2x10x10x64xf32, #tpu.memory_space<vmem>>, vector<1x8x8x64xf32>
    %88 = vector.shape_cast %87 : vector<1x8x8x64xf32> to vector<8x8x64xf32>
    %89 = vector.shape_cast %88 : vector<8x8x64xf32> to vector<64x64xf32>
    %c3_69 = arith.constant 3 : index
    %c0_70 = arith.constant 0 : index
    %90 = vector.load %arg2[%c3_69, %c0_70] : memref<9x64xf32, #tpu.memory_space<vmem>>, vector<1x64xf32>
    %91 = vector.broadcast %90 : vector<1x64xf32> to vector<64x64xf32>
    %92 = arith.mulf %89, %91 : vector<64x64xf32>
    %93 = arith.addf %86, %92 : vector<64x64xf32>
    %c1_71 = arith.constant 1 : index
    %c1_72 = arith.constant 1 : index
    %c1_73 = arith.constant 1 : index
    %c0_74 = arith.constant 0 : index
    %94 = vector.load %arg1[%c1_71, %c1_72, %c1_73, %c0_74] : memref<2x10x10x64xf32, #tpu.memory_space<vmem>>, vector<1x8x8x64xf32>
    %95 = vector.shape_cast %94 : vector<1x8x8x64xf32> to vector<8x8x64xf32>
    %96 = vector.shape_cast %95 : vector<8x8x64xf32> to vector<64x64xf32>
    %c4_75 = arith.constant 4 : index
    %c0_76 = arith.constant 0 : index
    %97 = vector.load %arg2[%c4_75, %c0_76] : memref<9x64xf32, #tpu.memory_space<vmem>>, vector<1x64xf32>
    %98 = vector.broadcast %97 : vector<1x64xf32> to vector<64x64xf32>
    %99 = arith.mulf %96, %98 : vector<64x64xf32>
    %100 = arith.addf %93, %99 : vector<64x64xf32>
    %c1_77 = arith.constant 1 : index
    %c1_78 = arith.constant 1 : index
    %c2_79 = arith.constant 2 : index
    %c0_80 = arith.constant 0 : index
    %101 = vector.load %arg1[%c1_77, %c1_78, %c2_79, %c0_80] : memref<2x10x10x64xf32, #tpu.memory_space<vmem>>, vector<1x8x8x64xf32>
    %102 = vector.shape_cast %101 : vector<1x8x8x64xf32> to vector<8x8x64xf32>
    %103 = vector.shape_cast %102 : vector<8x8x64xf32> to vector<64x64xf32>
    %c5_81 = arith.constant 5 : index
    %c0_82 = arith.constant 0 : index
    %104 = vector.load %arg2[%c5_81, %c0_82] : memref<9x64xf32, #tpu.memory_space<vmem>>, vector<1x64xf32>
    %105 = vector.broadcast %104 : vector<1x64xf32> to vector<64x64xf32>
    %106 = arith.mulf %103, %105 : vector<64x64xf32>
    %107 = arith.addf %100, %106 : vector<64x64xf32>
    %c1_83 = arith.constant 1 : index
    %c2_84 = arith.constant 2 : index
    %c0_85 = arith.constant 0 : index
    %c0_86 = arith.constant 0 : index
    %108 = vector.load %arg1[%c1_83, %c2_84, %c0_85, %c0_86] : memref<2x10x10x64xf32, #tpu.memory_space<vmem>>, vector<1x8x8x64xf32>
    %109 = vector.shape_cast %108 : vector<1x8x8x64xf32> to vector<8x8x64xf32>
    %110 = vector.shape_cast %109 : vector<8x8x64xf32> to vector<64x64xf32>
    %c6_87 = arith.constant 6 : index
    %c0_88 = arith.constant 0 : index
    %111 = vector.load %arg2[%c6_87, %c0_88] : memref<9x64xf32, #tpu.memory_space<vmem>>, vector<1x64xf32>
    %112 = vector.broadcast %111 : vector<1x64xf32> to vector<64x64xf32>
    %113 = arith.mulf %110, %112 : vector<64x64xf32>
    %114 = arith.addf %107, %113 : vector<64x64xf32>
    %c1_89 = arith.constant 1 : index
    %c2_90 = arith.constant 2 : index
    %c1_91 = arith.constant 1 : index
    %c0_92 = arith.constant 0 : index
    %115 = vector.load %arg1[%c1_89, %c2_90, %c1_91, %c0_92] : memref<2x10x10x64xf32, #tpu.memory_space<vmem>>, vector<1x8x8x64xf32>
    %116 = vector.shape_cast %115 : vector<1x8x8x64xf32> to vector<8x8x64xf32>
    %117 = vector.shape_cast %116 : vector<8x8x64xf32> to vector<64x64xf32>
    %c7_93 = arith.constant 7 : index
    %c0_94 = arith.constant 0 : index
    %118 = vector.load %arg2[%c7_93, %c0_94] : memref<9x64xf32, #tpu.memory_space<vmem>>, vector<1x64xf32>
    %119 = vector.broadcast %118 : vector<1x64xf32> to vector<64x64xf32>
    %120 = arith.mulf %117, %119 : vector<64x64xf32>
    %121 = arith.addf %114, %120 : vector<64x64xf32>
    %c1_95 = arith.constant 1 : index
    %c2_96 = arith.constant 2 : index
    %c2_97 = arith.constant 2 : index
    %c0_98 = arith.constant 0 : index
    %122 = vector.load %arg1[%c1_95, %c2_96, %c2_97, %c0_98] : memref<2x10x10x64xf32, #tpu.memory_space<vmem>>, vector<1x8x8x64xf32>
    %123 = vector.shape_cast %122 : vector<1x8x8x64xf32> to vector<8x8x64xf32>
    %124 = vector.shape_cast %123 : vector<8x8x64xf32> to vector<64x64xf32>
    %c8_99 = arith.constant 8 : index
    %c0_100 = arith.constant 0 : index
    %125 = vector.load %arg2[%c8_99, %c0_100] : memref<9x64xf32, #tpu.memory_space<vmem>>, vector<1x64xf32>
    %126 = vector.broadcast %125 : vector<1x64xf32> to vector<64x64xf32>
    %127 = arith.mulf %124, %126 : vector<64x64xf32>
    %128 = arith.addf %121, %127 : vector<64x64xf32>
    %c0_101 = arith.constant 0 : index
    %c0_102 = arith.constant 0 : index
    %129 = vector.load %arg3[%c0_101, %c0_102] : memref<1x64xf32, #tpu.memory_space<vmem>>, vector<1x64xf32>
    %130 = vector.broadcast %129 : vector<1x64xf32> to vector<64x64xf32>
    %131 = arith.addf %128, %130 : vector<64x64xf32>
    %cst_103 = arith.constant 0.000000e+00 : f32
    %132 = vector.broadcast %cst_103 : f32 to vector<64x64xf32>
    %133 = arith.maximumf %131, %132 : vector<64x64xf32>
    %134 = tpu.concatenate %66, %133 in 0 : vector<64x64xf32>, vector<64x64xf32> -> vector<128x64xf32>
    %135 = tpu.concatenate %29, %96 in 0 : vector<64x64xf32>, vector<64x64xf32> -> vector<128x64xf32>
    %136 = arith.truncf %134 : vector<128x64xf32> to vector<128x64xbf16>
    %c0_104 = arith.constant 0 : index
    %c0_105 = arith.constant 0 : index
    %137 = vector.load %arg4[%c0_104, %c0_105] : memref<64x192xbf16, #tpu.memory_space<vmem>>, vector<64x192xbf16>
    %cst_106 = arith.constant dense<0.000000e+00> : vector<128x192xf32>
    %138 = tpu.matmul %136, %137, %cst_106 {dimension_numbers = #tpu.dot_dimension_numbers<[1], [0], [0], [1], [0, 0, 1, 1], [], []>} : vector<128x64xbf16>, vector<64x192xbf16>, vector<128x192xf32> -> vector<128x192xf32>
    %c0_107 = arith.constant 0 : index
    %c0_108 = arith.constant 0 : index
    %139 = vector.load %arg5[%c0_107, %c0_108] : memref<1x192xf32, #tpu.memory_space<vmem>>, vector<1x192xf32>
    %140 = vector.broadcast %139 : vector<1x192xf32> to vector<128x192xf32>
    %141 = arith.addf %138, %140 : vector<128x192xf32>
    %142 = arith.truncf %141 : vector<128x192xf32> to vector<128x192xbf16>
    %143 = vector.extract_strided_slice %142 {offsets = [0, 0], sizes = [64, 16], strides = [1, 1]} : vector<128x192xbf16> to vector<64x16xbf16>
    %144 = vector.extract_strided_slice %142 {offsets = [0, 64], sizes = [64, 16], strides = [1, 1]} : vector<128x192xbf16> to vector<64x16xbf16>
    %145 = vector.extract_strided_slice %142 {offsets = [0, 128], sizes = [64, 16], strides = [1, 1]} : vector<128x192xbf16> to vector<64x16xbf16>
    %cst_109 = arith.constant dense<0.000000e+00> : vector<64x64xf32>
    %146 = tpu.matmul %143, %144, %cst_109 {dimension_numbers = #tpu.dot_dimension_numbers<[1], [1], [0], [0], [0, 0, 1, 0], [], []>} : vector<64x16xbf16>, vector<64x16xbf16>, vector<64x64xf32> -> vector<64x64xf32>
    %cst_110 = arith.constant dense<0xFF800000> : vector<64xf32>
    %147 = vector.multi_reduction <maximumf>, %146, %cst_110 [1] : vector<64x64xf32> to vector<64xf32>
    %148 = vector.shape_cast %147 : vector<64xf32> to vector<64x1xf32>
    %149 = vector.broadcast %148 : vector<64x1xf32> to vector<64x64xf32>
    %150 = arith.subf %146, %149 : vector<64x64xf32>
    %151 = math.exp %150 : vector<64x64xf32>
    %cst_111 = arith.constant dense<0.000000e+00> : vector<64xf32>
    %152 = vector.multi_reduction <add>, %151, %cst_111 [1] : vector<64x64xf32> to vector<64xf32>
    %153 = vector.shape_cast %152 : vector<64xf32> to vector<64x1xf32>
    %154 = tpu.reciprocal %153 {approx = true} : vector<64x1xf32> -> vector<64x1xf32>
    %155 = vector.broadcast %154 : vector<64x1xf32> to vector<64x64xf32>
    %156 = arith.mulf %151, %155 : vector<64x64xf32>
    %157 = arith.truncf %156 : vector<64x64xf32> to vector<64x64xbf16>
    %cst_112 = arith.constant dense<0.000000e+00> : vector<64x16xf32>
    %158 = tpu.matmul %157, %145, %cst_112 {dimension_numbers = #tpu.dot_dimension_numbers<[1], [0], [0], [1], [0, 0, 1, 1], [], []>} : vector<64x64xbf16>, vector<64x16xbf16>, vector<64x16xf32> -> vector<64x16xf32>
    %159 = vector.extract_strided_slice %142 {offsets = [0, 16], sizes = [64, 16], strides = [1, 1]} : vector<128x192xbf16> to vector<64x16xbf16>
    %160 = vector.extract_strided_slice %142 {offsets = [0, 80], sizes = [64, 16], strides = [1, 1]} : vector<128x192xbf16> to vector<64x16xbf16>
    %161 = vector.extract_strided_slice %142 {offsets = [0, 144], sizes = [64, 16], strides = [1, 1]} : vector<128x192xbf16> to vector<64x16xbf16>
    %cst_113 = arith.constant dense<0.000000e+00> : vector<64x64xf32>
    %162 = tpu.matmul %159, %160, %cst_113 {dimension_numbers = #tpu.dot_dimension_numbers<[1], [1], [0], [0], [0, 0, 1, 0], [], []>} : vector<64x16xbf16>, vector<64x16xbf16>, vector<64x64xf32> -> vector<64x64xf32>
    %cst_114 = arith.constant dense<0xFF800000> : vector<64xf32>
    %163 = vector.multi_reduction <maximumf>, %162, %cst_114 [1] : vector<64x64xf32> to vector<64xf32>
    %164 = vector.shape_cast %163 : vector<64xf32> to vector<64x1xf32>
    %165 = vector.broadcast %164 : vector<64x1xf32> to vector<64x64xf32>
    %166 = arith.subf %162, %165 : vector<64x64xf32>
    %167 = math.exp %166 : vector<64x64xf32>
    %cst_115 = arith.constant dense<0.000000e+00> : vector<64xf32>
    %168 = vector.multi_reduction <add>, %167, %cst_115 [1] : vector<64x64xf32> to vector<64xf32>
    %169 = vector.shape_cast %168 : vector<64xf32> to vector<64x1xf32>
    %170 = tpu.reciprocal %169 {approx = true} : vector<64x1xf32> -> vector<64x1xf32>
    %171 = vector.broadcast %170 : vector<64x1xf32> to vector<64x64xf32>
    %172 = arith.mulf %167, %171 : vector<64x64xf32>
    %173 = arith.truncf %172 : vector<64x64xf32> to vector<64x64xbf16>
    %cst_116 = arith.constant dense<0.000000e+00> : vector<64x16xf32>
    %174 = tpu.matmul %173, %161, %cst_116 {dimension_numbers = #tpu.dot_dimension_numbers<[1], [0], [0], [1], [0, 0, 1, 1], [], []>} : vector<64x64xbf16>, vector<64x16xbf16>, vector<64x16xf32> -> vector<64x16xf32>
    %175 = vector.extract_strided_slice %142 {offsets = [0, 32], sizes = [64, 16], strides = [1, 1]} : vector<128x192xbf16> to vector<64x16xbf16>
    %176 = vector.extract_strided_slice %142 {offsets = [0, 96], sizes = [64, 16], strides = [1, 1]} : vector<128x192xbf16> to vector<64x16xbf16>
    %177 = vector.extract_strided_slice %142 {offsets = [0, 160], sizes = [64, 16], strides = [1, 1]} : vector<128x192xbf16> to vector<64x16xbf16>
    %cst_117 = arith.constant dense<0.000000e+00> : vector<64x64xf32>
    %178 = tpu.matmul %175, %176, %cst_117 {dimension_numbers = #tpu.dot_dimension_numbers<[1], [1], [0], [0], [0, 0, 1, 0], [], []>} : vector<64x16xbf16>, vector<64x16xbf16>, vector<64x64xf32> -> vector<64x64xf32>
    %cst_118 = arith.constant dense<0xFF800000> : vector<64xf32>
    %179 = vector.multi_reduction <maximumf>, %178, %cst_118 [1] : vector<64x64xf32> to vector<64xf32>
    %180 = vector.shape_cast %179 : vector<64xf32> to vector<64x1xf32>
    %181 = vector.broadcast %180 : vector<64x1xf32> to vector<64x64xf32>
    %182 = arith.subf %178, %181 : vector<64x64xf32>
    %183 = math.exp %182 : vector<64x64xf32>
    %cst_119 = arith.constant dense<0.000000e+00> : vector<64xf32>
    %184 = vector.multi_reduction <add>, %183, %cst_119 [1] : vector<64x64xf32> to vector<64xf32>
    %185 = vector.shape_cast %184 : vector<64xf32> to vector<64x1xf32>
    %186 = tpu.reciprocal %185 {approx = true} : vector<64x1xf32> -> vector<64x1xf32>
    %187 = vector.broadcast %186 : vector<64x1xf32> to vector<64x64xf32>
    %188 = arith.mulf %183, %187 : vector<64x64xf32>
    %189 = arith.truncf %188 : vector<64x64xf32> to vector<64x64xbf16>
    %cst_120 = arith.constant dense<0.000000e+00> : vector<64x16xf32>
    %190 = tpu.matmul %189, %177, %cst_120 {dimension_numbers = #tpu.dot_dimension_numbers<[1], [0], [0], [1], [0, 0, 1, 1], [], []>} : vector<64x64xbf16>, vector<64x16xbf16>, vector<64x16xf32> -> vector<64x16xf32>
    %191 = vector.extract_strided_slice %142 {offsets = [0, 48], sizes = [64, 16], strides = [1, 1]} : vector<128x192xbf16> to vector<64x16xbf16>
    %192 = vector.extract_strided_slice %142 {offsets = [0, 112], sizes = [64, 16], strides = [1, 1]} : vector<128x192xbf16> to vector<64x16xbf16>
    %193 = vector.extract_strided_slice %142 {offsets = [0, 176], sizes = [64, 16], strides = [1, 1]} : vector<128x192xbf16> to vector<64x16xbf16>
    %cst_121 = arith.constant dense<0.000000e+00> : vector<64x64xf32>
    %194 = tpu.matmul %191, %192, %cst_121 {dimension_numbers = #tpu.dot_dimension_numbers<[1], [1], [0], [0], [0, 0, 1, 0], [], []>} : vector<64x16xbf16>, vector<64x16xbf16>, vector<64x64xf32> -> vector<64x64xf32>
    %cst_122 = arith.constant dense<0xFF800000> : vector<64xf32>
    %195 = vector.multi_reduction <maximumf>, %194, %cst_122 [1] : vector<64x64xf32> to vector<64xf32>
    %196 = vector.shape_cast %195 : vector<64xf32> to vector<64x1xf32>
    %197 = vector.broadcast %196 : vector<64x1xf32> to vector<64x64xf32>
    %198 = arith.subf %194, %197 : vector<64x64xf32>
    %199 = math.exp %198 : vector<64x64xf32>
    %cst_123 = arith.constant dense<0.000000e+00> : vector<64xf32>
    %200 = vector.multi_reduction <add>, %199, %cst_123 [1] : vector<64x64xf32> to vector<64xf32>
    %201 = vector.shape_cast %200 : vector<64xf32> to vector<64x1xf32>
    %202 = tpu.reciprocal %201 {approx = true} : vector<64x1xf32> -> vector<64x1xf32>
    %203 = vector.broadcast %202 : vector<64x1xf32> to vector<64x64xf32>
    %204 = arith.mulf %199, %203 : vector<64x64xf32>
    %205 = arith.truncf %204 : vector<64x64xf32> to vector<64x64xbf16>
    %cst_124 = arith.constant dense<0.000000e+00> : vector<64x16xf32>
    %206 = tpu.matmul %205, %193, %cst_124 {dimension_numbers = #tpu.dot_dimension_numbers<[1], [0], [0], [1], [0, 0, 1, 1], [], []>} : vector<64x64xbf16>, vector<64x16xbf16>, vector<64x16xf32> -> vector<64x16xf32>
    %207 = tpu.concatenate %158, %174, %190, %206 in 1 : vector<64x16xf32>, vector<64x16xf32>, vector<64x16xf32>, vector<64x16xf32> -> vector<64x64xf32>
    %208 = vector.extract_strided_slice %142 {offsets = [64, 0], sizes = [64, 16], strides = [1, 1]} : vector<128x192xbf16> to vector<64x16xbf16>
    %209 = vector.extract_strided_slice %142 {offsets = [64, 64], sizes = [64, 16], strides = [1, 1]} : vector<128x192xbf16> to vector<64x16xbf16>
    %210 = vector.extract_strided_slice %142 {offsets = [64, 128], sizes = [64, 16], strides = [1, 1]} : vector<128x192xbf16> to vector<64x16xbf16>
    %cst_125 = arith.constant dense<0.000000e+00> : vector<64x64xf32>
    %211 = tpu.matmul %208, %209, %cst_125 {dimension_numbers = #tpu.dot_dimension_numbers<[1], [1], [0], [0], [0, 0, 1, 0], [], []>} : vector<64x16xbf16>, vector<64x16xbf16>, vector<64x64xf32> -> vector<64x64xf32>
    %cst_126 = arith.constant dense<0xFF800000> : vector<64xf32>
    %212 = vector.multi_reduction <maximumf>, %211, %cst_126 [1] : vector<64x64xf32> to vector<64xf32>
    %213 = vector.shape_cast %212 : vector<64xf32> to vector<64x1xf32>
    %214 = vector.broadcast %213 : vector<64x1xf32> to vector<64x64xf32>
    %215 = arith.subf %211, %214 : vector<64x64xf32>
    %216 = math.exp %215 : vector<64x64xf32>
    %cst_127 = arith.constant dense<0.000000e+00> : vector<64xf32>
    %217 = vector.multi_reduction <add>, %216, %cst_127 [1] : vector<64x64xf32> to vector<64xf32>
    %218 = vector.shape_cast %217 : vector<64xf32> to vector<64x1xf32>
    %219 = tpu.reciprocal %218 {approx = true} : vector<64x1xf32> -> vector<64x1xf32>
    %220 = vector.broadcast %219 : vector<64x1xf32> to vector<64x64xf32>
    %221 = arith.mulf %216, %220 : vector<64x64xf32>
    %222 = arith.truncf %221 : vector<64x64xf32> to vector<64x64xbf16>
    %cst_128 = arith.constant dense<0.000000e+00> : vector<64x16xf32>
    %223 = tpu.matmul %222, %210, %cst_128 {dimension_numbers = #tpu.dot_dimension_numbers<[1], [0], [0], [1], [0, 0, 1, 1], [], []>} : vector<64x64xbf16>, vector<64x16xbf16>, vector<64x16xf32> -> vector<64x16xf32>
    %224 = vector.extract_strided_slice %142 {offsets = [64, 16], sizes = [64, 16], strides = [1, 1]} : vector<128x192xbf16> to vector<64x16xbf16>
    %225 = vector.extract_strided_slice %142 {offsets = [64, 80], sizes = [64, 16], strides = [1, 1]} : vector<128x192xbf16> to vector<64x16xbf16>
    %226 = vector.extract_strided_slice %142 {offsets = [64, 144], sizes = [64, 16], strides = [1, 1]} : vector<128x192xbf16> to vector<64x16xbf16>
    %cst_129 = arith.constant dense<0.000000e+00> : vector<64x64xf32>
    %227 = tpu.matmul %224, %225, %cst_129 {dimension_numbers = #tpu.dot_dimension_numbers<[1], [1], [0], [0], [0, 0, 1, 0], [], []>} : vector<64x16xbf16>, vector<64x16xbf16>, vector<64x64xf32> -> vector<64x64xf32>
    %cst_130 = arith.constant dense<0xFF800000> : vector<64xf32>
    %228 = vector.multi_reduction <maximumf>, %227, %cst_130 [1] : vector<64x64xf32> to vector<64xf32>
    %229 = vector.shape_cast %228 : vector<64xf32> to vector<64x1xf32>
    %230 = vector.broadcast %229 : vector<64x1xf32> to vector<64x64xf32>
    %231 = arith.subf %227, %230 : vector<64x64xf32>
    %232 = math.exp %231 : vector<64x64xf32>
    %cst_131 = arith.constant dense<0.000000e+00> : vector<64xf32>
    %233 = vector.multi_reduction <add>, %232, %cst_131 [1] : vector<64x64xf32> to vector<64xf32>
    %234 = vector.shape_cast %233 : vector<64xf32> to vector<64x1xf32>
    %235 = tpu.reciprocal %234 {approx = true} : vector<64x1xf32> -> vector<64x1xf32>
    %236 = vector.broadcast %235 : vector<64x1xf32> to vector<64x64xf32>
    %237 = arith.mulf %232, %236 : vector<64x64xf32>
    %238 = arith.truncf %237 : vector<64x64xf32> to vector<64x64xbf16>
    %cst_132 = arith.constant dense<0.000000e+00> : vector<64x16xf32>
    %239 = tpu.matmul %238, %226, %cst_132 {dimension_numbers = #tpu.dot_dimension_numbers<[1], [0], [0], [1], [0, 0, 1, 1], [], []>} : vector<64x64xbf16>, vector<64x16xbf16>, vector<64x16xf32> -> vector<64x16xf32>
    %240 = vector.extract_strided_slice %142 {offsets = [64, 32], sizes = [64, 16], strides = [1, 1]} : vector<128x192xbf16> to vector<64x16xbf16>
    %241 = vector.extract_strided_slice %142 {offsets = [64, 96], sizes = [64, 16], strides = [1, 1]} : vector<128x192xbf16> to vector<64x16xbf16>
    %242 = vector.extract_strided_slice %142 {offsets = [64, 160], sizes = [64, 16], strides = [1, 1]} : vector<128x192xbf16> to vector<64x16xbf16>
    %cst_133 = arith.constant dense<0.000000e+00> : vector<64x64xf32>
    %243 = tpu.matmul %240, %241, %cst_133 {dimension_numbers = #tpu.dot_dimension_numbers<[1], [1], [0], [0], [0, 0, 1, 0], [], []>} : vector<64x16xbf16>, vector<64x16xbf16>, vector<64x64xf32> -> vector<64x64xf32>
    %cst_134 = arith.constant dense<0xFF800000> : vector<64xf32>
    %244 = vector.multi_reduction <maximumf>, %243, %cst_134 [1] : vector<64x64xf32> to vector<64xf32>
    %245 = vector.shape_cast %244 : vector<64xf32> to vector<64x1xf32>
    %246 = vector.broadcast %245 : vector<64x1xf32> to vector<64x64xf32>
    %247 = arith.subf %243, %246 : vector<64x64xf32>
    %248 = math.exp %247 : vector<64x64xf32>
    %cst_135 = arith.constant dense<0.000000e+00> : vector<64xf32>
    %249 = vector.multi_reduction <add>, %248, %cst_135 [1] : vector<64x64xf32> to vector<64xf32>
    %250 = vector.shape_cast %249 : vector<64xf32> to vector<64x1xf32>
    %251 = tpu.reciprocal %250 {approx = true} : vector<64x1xf32> -> vector<64x1xf32>
    %252 = vector.broadcast %251 : vector<64x1xf32> to vector<64x64xf32>
    %253 = arith.mulf %248, %252 : vector<64x64xf32>
    %254 = arith.truncf %253 : vector<64x64xf32> to vector<64x64xbf16>
    %cst_136 = arith.constant dense<0.000000e+00> : vector<64x16xf32>
    %255 = tpu.matmul %254, %242, %cst_136 {dimension_numbers = #tpu.dot_dimension_numbers<[1], [0], [0], [1], [0, 0, 1, 1], [], []>} : vector<64x64xbf16>, vector<64x16xbf16>, vector<64x16xf32> -> vector<64x16xf32>
    %256 = vector.extract_strided_slice %142 {offsets = [64, 48], sizes = [64, 16], strides = [1, 1]} : vector<128x192xbf16> to vector<64x16xbf16>
    %257 = vector.extract_strided_slice %142 {offsets = [64, 112], sizes = [64, 16], strides = [1, 1]} : vector<128x192xbf16> to vector<64x16xbf16>
    %258 = vector.extract_strided_slice %142 {offsets = [64, 176], sizes = [64, 16], strides = [1, 1]} : vector<128x192xbf16> to vector<64x16xbf16>
    %cst_137 = arith.constant dense<0.000000e+00> : vector<64x64xf32>
    %259 = tpu.matmul %256, %257, %cst_137 {dimension_numbers = #tpu.dot_dimension_numbers<[1], [1], [0], [0], [0, 0, 1, 0], [], []>} : vector<64x16xbf16>, vector<64x16xbf16>, vector<64x64xf32> -> vector<64x64xf32>
    %cst_138 = arith.constant dense<0xFF800000> : vector<64xf32>
    %260 = vector.multi_reduction <maximumf>, %259, %cst_138 [1] : vector<64x64xf32> to vector<64xf32>
    %261 = vector.shape_cast %260 : vector<64xf32> to vector<64x1xf32>
    %262 = vector.broadcast %261 : vector<64x1xf32> to vector<64x64xf32>
    %263 = arith.subf %259, %262 : vector<64x64xf32>
    %264 = math.exp %263 : vector<64x64xf32>
    %cst_139 = arith.constant dense<0.000000e+00> : vector<64xf32>
    %265 = vector.multi_reduction <add>, %264, %cst_139 [1] : vector<64x64xf32> to vector<64xf32>
    %266 = vector.shape_cast %265 : vector<64xf32> to vector<64x1xf32>
    %267 = tpu.reciprocal %266 {approx = true} : vector<64x1xf32> -> vector<64x1xf32>
    %268 = vector.broadcast %267 : vector<64x1xf32> to vector<64x64xf32>
    %269 = arith.mulf %264, %268 : vector<64x64xf32>
    %270 = arith.truncf %269 : vector<64x64xf32> to vector<64x64xbf16>
    %cst_140 = arith.constant dense<0.000000e+00> : vector<64x16xf32>
    %271 = tpu.matmul %270, %258, %cst_140 {dimension_numbers = #tpu.dot_dimension_numbers<[1], [0], [0], [1], [0, 0, 1, 1], [], []>} : vector<64x64xbf16>, vector<64x16xbf16>, vector<64x16xf32> -> vector<64x16xf32>
    %272 = tpu.concatenate %223, %239, %255, %271 in 1 : vector<64x16xf32>, vector<64x16xf32>, vector<64x16xf32>, vector<64x16xf32> -> vector<64x64xf32>
    %273 = tpu.concatenate %207, %272 in 0 : vector<64x64xf32>, vector<64x64xf32> -> vector<128x64xf32>
    %274 = arith.truncf %273 : vector<128x64xf32> to vector<128x64xbf16>
    %c0_141 = arith.constant 0 : index
    %c0_142 = arith.constant 0 : index
    %275 = vector.load %arg6[%c0_141, %c0_142] : memref<64x64xbf16, #tpu.memory_space<vmem>>, vector<64x64xbf16>
    %cst_143 = arith.constant dense<0.000000e+00> : vector<128x64xf32>
    %276 = tpu.matmul %274, %275, %cst_143 {dimension_numbers = #tpu.dot_dimension_numbers<[1], [0], [0], [1], [0, 0, 1, 1], [], []>} : vector<128x64xbf16>, vector<64x64xbf16>, vector<128x64xf32> -> vector<128x64xf32>
    %c0_144 = arith.constant 0 : index
    %c0_145 = arith.constant 0 : index
    %277 = vector.load %arg7[%c0_144, %c0_145] : memref<1x64xf32, #tpu.memory_space<vmem>>, vector<1x64xf32>
    %278 = vector.broadcast %277 : vector<1x64xf32> to vector<128x64xf32>
    %279 = arith.addf %276, %278 : vector<128x64xf32>
    %280 = vector.shape_cast %279 : vector<128x64xf32> to vector<2x64x64xf32>
    %cst_146 = arith.constant dense<0.000000e+00> : vector<2x64xf32>
    %281 = vector.multi_reduction <add>, %280, %cst_146 [1] : vector<2x64x64xf32> to vector<2x64xf32>
    %cst_147 = arith.constant 1.562500e-02 : f32
    %282 = vector.broadcast %cst_147 : f32 to vector<2x64xf32>
    %283 = arith.mulf %281, %282 : vector<2x64xf32>
    %284 = vector.shape_cast %283 : vector<2x64xf32> to vector<2x1x64xf32>
    %c0_148 = arith.constant 0 : index
    %c0_149 = arith.constant 0 : index
    %285 = vector.load %arg8[%c0_148, %c0_149] : memref<16x64xf32, #tpu.memory_space<vmem>>, vector<16x64xf32>
    %286 = vector.shape_cast %285 : vector<16x64xf32> to vector<1x16x64xf32>
    %287 = vector.broadcast %284 : vector<2x1x64xf32> to vector<2x16x64xf32>
    %288 = vector.broadcast %286 : vector<1x16x64xf32> to vector<2x16x64xf32>
    %289 = arith.mulf %287, %288 : vector<2x16x64xf32>
    %cst_150 = arith.constant dense<0.000000e+00> : vector<2x16xf32>
    %290 = vector.multi_reduction <add>, %289, %cst_150 [2] : vector<2x16x64xf32> to vector<2x16xf32>
    %c0_151 = arith.constant 0 : index
    %c0_152 = arith.constant 0 : index
    %291 = vector.load %arg9[%c0_151, %c0_152] : memref<1x16xf32, #tpu.memory_space<vmem>>, vector<1x16xf32>
    %292 = vector.broadcast %291 : vector<1x16xf32> to vector<2x16xf32>
    %293 = arith.addf %290, %292 : vector<2x16xf32>
    %cst_153 = arith.constant 0.000000e+00 : f32
    %294 = vector.broadcast %cst_153 : f32 to vector<2x16xf32>
    %295 = arith.maximumf %293, %294 : vector<2x16xf32>
    %296 = vector.shape_cast %295 : vector<2x16xf32> to vector<2x1x16xf32>
    %c0_154 = arith.constant 0 : index
    %c0_155 = arith.constant 0 : index
    %297 = vector.load %arg10[%c0_154, %c0_155] : memref<64x16xf32, #tpu.memory_space<vmem>>, vector<64x16xf32>
    %298 = vector.shape_cast %297 : vector<64x16xf32> to vector<1x64x16xf32>
    %299 = vector.broadcast %296 : vector<2x1x16xf32> to vector<2x64x16xf32>
    %300 = vector.broadcast %298 : vector<1x64x16xf32> to vector<2x64x16xf32>
    %301 = arith.mulf %299, %300 : vector<2x64x16xf32>
    %cst_156 = arith.constant dense<0.000000e+00> : vector<2x64xf32>
    %302 = vector.multi_reduction <add>, %301, %cst_156 [2] : vector<2x64x16xf32> to vector<2x64xf32>
    %c0_157 = arith.constant 0 : index
    %c0_158 = arith.constant 0 : index
    %303 = vector.load %arg11[%c0_157, %c0_158] : memref<1x64xf32, #tpu.memory_space<vmem>>, vector<1x64xf32>
    %304 = vector.broadcast %303 : vector<1x64xf32> to vector<2x64xf32>
    %305 = arith.addf %302, %304 : vector<2x64xf32>
    %306 = math.tanh %305 : vector<2x64xf32>
    %307 = vector.shape_cast %135 : vector<128x64xf32> to vector<2x64x64xf32>
    %308 = vector.shape_cast %306 : vector<2x64xf32> to vector<2x1x64xf32>
    %309 = vector.broadcast %308 : vector<2x1x64xf32> to vector<2x64x64xf32>
    %310 = arith.mulf %280, %309 : vector<2x64x64xf32>
    %311 = arith.addf %307, %310 : vector<2x64x64xf32>
    %c0_159 = arith.constant 0 : index
    %c0_160 = arith.constant 0 : index
    %c0_161 = arith.constant 0 : index
    %312 = vector.load %arg12[%c0_159, %c0_160, %c0_161] : memref<2x64x64xf32, #tpu.memory_space<vmem>>, vector<2x64x64xf32>
    tpu.vector_store %arg12[%c0_159, %c0_160, %c0_161], %311 {strides = array<i32>} : memref<2x64x64xf32, #tpu.memory_space<vmem>>, vector<2x64x64xf32>,
    return
  }
  func.func @transform_0(%arg0: i32) -> (i32, i32, i32, i32) {
    %c0_i32 = arith.constant 0 : i32
    %c0_i32_0 = arith.constant 0 : i32
    %c0_i32_1 = arith.constant 0 : i32
    %c0_i32_2 = arith.constant 0 : i32
    return %arg0, %c0_i32, %c0_i32_0, %c0_i32_1 : i32, i32, i32, i32
  }
  func.func @transform_1(%arg0: i32) -> (i32, i32) {
    %c0_i32 = arith.constant 0 : i32
    %c0_i32_0 = arith.constant 0 : i32
    %c0_i32_1 = arith.constant 0 : i32
    return %c0_i32, %c0_i32_0 : i32, i32
  }
  func.func @transform_2(%arg0: i32) -> (i32, i32) {
    %c0_i32 = arith.constant 0 : i32
    %c0_i32_0 = arith.constant 0 : i32
    %c0_i32_1 = arith.constant 0 : i32
    return %c0_i32, %c0_i32_0 : i32, i32
  }
  func.func @transform_3(%arg0: i32) -> (i32, i32) {
    %c0_i32 = arith.constant 0 : i32
    %c0_i32_0 = arith.constant 0 : i32
    %c0_i32_1 = arith.constant 0 : i32
    return %c0_i32, %c0_i32_0 : i32, i32
  }
  func.func @transform_4(%arg0: i32) -> (i32, i32) {
    %c0_i32 = arith.constant 0 : i32
    %c0_i32_0 = arith.constant 0 : i32
    %c0_i32_1 = arith.constant 0 : i32
    return %c0_i32, %c0_i32_0 : i32, i32
  }
  func.func @transform_5(%arg0: i32) -> (i32, i32) {
    %c0_i32 = arith.constant 0 : i32
    %c0_i32_0 = arith.constant 0 : i32
    %c0_i32_1 = arith.constant 0 : i32
    return %c0_i32, %c0_i32_0 : i32, i32
  }
  func.func @transform_6(%arg0: i32) -> (i32, i32) {
    %c0_i32 = arith.constant 0 : i32
    %c0_i32_0 = arith.constant 0 : i32
    %c0_i32_1 = arith.constant 0 : i32
    return %c0_i32, %c0_i32_0 : i32, i32
  }
  func.func @transform_7(%arg0: i32) -> (i32, i32) {
    %c0_i32 = arith.constant 0 : i32
    %c0_i32_0 = arith.constant 0 : i32
    %c0_i32_1 = arith.constant 0 : i32
    return %c0_i32, %c0_i32_0 : i32, i32
  }
  func.func @transform_8(%arg0: i32) -> (i32, i32) {
    %c0_i32 = arith.constant 0 : i32
    %c0_i32_0 = arith.constant 0 : i32
    %c0_i32_1 = arith.constant 0 : i32
    return %c0_i32, %c0_i32_0 : i32, i32
  }
  func.func @transform_9(%arg0: i32) -> (i32, i32) {
    %c0_i32 = arith.constant 0 : i32
    %c0_i32_0 = arith.constant 0 : i32
    %c0_i32_1 = arith.constant 0 : i32
    return %c0_i32, %c0_i32_0 : i32, i32
  }
  func.func @transform_10(%arg0: i32) -> (i32, i32) {
    %c0_i32 = arith.constant 0 : i32
    %c0_i32_0 = arith.constant 0 : i32
    %c0_i32_1 = arith.constant 0 : i32
    return %c0_i32, %c0_i32_0 : i32, i32
  }
  func.func @transform_11(%arg0: i32) -> (i32, i32, i32) {
    %c0_i32 = arith.constant 0 : i32
    %c0_i32_0 = arith.constant 0 : i32
    %c0_i32_1 = arith.constant 0 : i32
    return %arg0, %c0_i32, %c0_i32_0 : i32, i32, i32
  }
}

</mosaic_0001>

<bundles_post_ra>
// kernel: tpu_custom_call.1
= control target key start
LH: loop header
LB: loop body
LE: loop exit
PB: predicated region body
PF: predicated region fallthrough
CT: control target
= control target key end

     0   :  { %s11325_s0 = inlined_call_operand.vmem [shape: f32[2,10,10,64], index: 0, kind: input, shape index: {}]   ;;  %s11326_s1 = inlined_call_operand.vmem [shape: f32[9,64], index: 1, kind: input, shape index: {}]   ;;  %s11327_s2 = inlined_call_operand.vmem [shape: f32[1,64], index: 2, kind: input, shape index: {}]   ;;  %s11328_s3 = inlined_call_operand.vmem [shape: bf16[64,192], index: 3, kind: input, shape index: {}]   ;;  %s11329_s4 = inlined_call_operand.vmem [shape: f32[1,192], index: 4, kind: input, shape index: {}]   ;;  %s11330_s5 = inlined_call_operand.vmem [shape: bf16[64,64], index: 5, kind: input, shape index: {}]   ;;  %s11331_s6 = inlined_call_operand.vmem [shape: f32[1,64], index: 6, kind: input, shape index: {}]   ;;  %s11332_s7 = inlined_call_operand.vmem [shape: f32[16,64], index: 7, kind: input, shape index: {}]   ;;  %s11333_s8 = inlined_call_operand.vmem [shape: f32[1,16], index: 8, kind: input, shape index: {}]   ;;  %s11334_s9 = inlined_call_operand.vmem [shape: f32[64,16], index: 9, kind: input, shape index: {}]   ;;  %s11335_s10 = inlined_call_operand.vmem [shape: f32[1,64], index: 10, kind: input, shape index: {}]   ;;  %s11336_s11 = inlined_call_operand.hbm [shape: f32[2,64,64], index: 11, kind: output, shape index: {}]  }
   0x1   :  { %v6157_v0 = vld [vmem:[%s11328_s3 + $0x30] sm:$0xf]  ;;  %v6274_v1 = vld [vmem:[%s11328_s3 + $0x34] sm:$0xf0]  ;;  %v6273_v2 = vld [vmem:[%s11328_s3 + $0x34] sm:$0xf] }
   0x2   :  { %v6158_v3 = vor.u32 %v6274_v1, %v6157_v0  ;;  %v6159_v4 = vld [vmem:[%s11328_s3 + $0x38] sm:$0xf0]  ;;  %v6149_v5 = vld [vmem:[%s11328_s3 + $0x20] sm:$0xf]  ;;  %v6272_v6 = vld [vmem:[%s11328_s3 + $0x24] sm:$0xf0] }
   0x3   :  { %v6162_v7 = vor.u32 %v6273_v2, %v6159_v4  ;;  %v6271_v8 = vld [vmem:[%s11328_s3 + $0x24] sm:$0xf]  ;;  %v6151_v9 = vld [vmem:[%s11328_s3 + $0x28] sm:$0xf0]  ;;  %v6150_v10 = vor.u32 %v6272_v6, %v6149_v5  ;;  %v6141_v11 = vld [vmem:[%s11328_s3 + $0x10] sm:$0xf] }
   0x4   :  { %606 = vmatpush.bf16.msra.mxu0 %v6158_v3  ;;  %v6154_v12 = vor.u32 %v6271_v8, %v6151_v9  ;;  %v6270_v13 = vld [vmem:[%s11328_s3 + $0x14] sm:$0xf0]  ;;  %v6269_v14 = vld [vmem:[%s11328_s3 + $0x14] sm:$0xf]  ;;  %v6143_v15 = vld [vmem:[%s11328_s3 + $0x18] sm:$0xf0] }
   0x5   :  { %655 = vmatpush.bf16.msra.mxu1 %v6162_v7  ;;  %6279 = vmatpush.bf16.msra.mxu2 %v6162_v7  ;;  %v6133_v16 = vld [vmem:[%s11328_s3] sm:$0xf]  ;;  %v6268_v17 = vld [vmem:[%s11328_s3 + $0x4] sm:$0xf0]  ;;  %v6267_v18 = vld [vmem:[%s11328_s3 + $0x4] sm:$0xf]  ;;  %v6142_v24 = vor.u32 %v6270_v13, %v6141_v11  ;;  %v6146_v27 = vor.u32 %v6269_v14, %v6143_v15 }
   0x6   :  { %v6135_v19 = vld [vmem:[%s11328_s3 + $0x8] sm:$0xf0]  ;;  %v40_v20 = vld [vmem:[%s11325_s0] sm:$0xff]  ;;  %v41_v21 = vld [vmem:[%s11325_s0 + $0x10] sm:$0xff]  ;;  %v6134_v36 = vor.u32 %v6268_v17, %v6133_v16 }
   0x7   :  { %v6958_v22 = vld [vmem:[%s11326_s1] ss:$0 sm:$0xff]  ;;  %v58_v23 = vld [vmem:[%s11325_s0 + $0x1] sm:$0xff]  ;;  %v59_v25 = vld [vmem:[%s11325_s0 + $0x11] sm:$0xff]  ;;  %v6138_v37 = vor.u32 %v6267_v18, %v6135_v19 }
   0x8   :  { %607 = vmatpush.bf16.msra.mxu0 %v6150_v10  ;;  %v6969_v26 = vld [vmem:[%s11326_s1 + $0x1] ss:$0 sm:$0xff]  ;;  %v50_v28 = vmul.f32 %v6958_v22, %v40_v20  ;;  %v51_v29 = vmul.f32 %v6958_v22, %v41_v21  ;;  %v84_v30 = vld [vmem:[%s11325_s0 + $0x2] sm:$0xff]  ;;  %v85_v31 = vld [vmem:[%s11325_s0 + $0x12] sm:$0xff] }
   0x9   :  { %656 = vmatpush.bf16.msra.mxu1 %v6154_v12  ;;  %6280 = vmatpush.bf16.msra.mxu2 %v6154_v12  ;;  %v68_v32 = vmul.f32 %v6969_v26, %v58_v23  ;;  %v69_v33 = vmul.f32 %v6969_v26, %v59_v25  ;;  %v6984_v34 = vld [vmem:[%s11326_s1 + $0x2] ss:$0 sm:$0xff]  ;;  %v6992_v38 = vld [vmem:[%s11326_s1 + $0x3] ss:$0 sm:$0xff]  ;;  %v7003_v45 = vld [vmem:[%s11326_s1 + $0x4] ss:$0 sm:$0xff] }
   0xa   :  { %v6012_v35 = vld [vmem:[%s11325_s0 + $0x20] sm:$0xff]  ;;  %v94_v43 = vmul.f32 %v6984_v34, %v84_v30  ;;  %v95_v44 = vmul.f32 %v6984_v34, %v85_v31  ;;  %v121_v47 = vmul.f32 %v6992_v38, %v41_v21  ;;  %v6036_v50 = vld [vmem:[%s11325_s0 + $0x30] sm:$0xff]  ;;  %v147_v55 = vmul.f32 %v7003_v45, %v59_v25  ;;  %v7047_v5 = vld [vmem:[%s11326_s1 + $0x8] ss:$0 sm:$0xff] }
   0xb   :  { %v6020_v39 = vld [vmem:[%s11325_s0 + $0x21] sm:$0xff]  ;;  %v52_v40 = vmul.f32 %v6958_v22, %v6012_v35  ;;  %v76_v41 = vadd.f32 %v68_v32, %v50_v28  ;;  %v77_v42 = vadd.f32 %v69_v33, %v51_v29  ;;  %v122_v48 = vmul.f32 %v6992_v38, %v6012_v35  ;;  %v6044_v58 = vld [vmem:[%s11325_s0 + $0x31] sm:$0xff] }
   0xc   :  { %608 = vmatpush.bf16.msra.mxu0 %v6142_v24  ;;  %v6028_v46 = vld [vmem:[%s11325_s0 + $0x22] sm:$0xff]  ;;  %v70_v51 = vmul.f32 %v6969_v26, %v6020_v39  ;;  %v148_v56 = vmul.f32 %v7003_v45, %v6020_v39  ;;  %v6052_v62 = vld [vmem:[%s11325_s0 + $0x32] sm:$0xff]  ;;  %v53_v63 = vmul.f32 %v6958_v22, %v6036_v50  ;;  %v71_v0 = vmul.f32 %v6969_v26, %v6044_v58 }
   0xd   :  { %657 = vmatpush.bf16.msra.mxu1 %v6146_v27  ;;  %v7013_v49 = vld [vmem:[%s11326_s1 + $0x5] ss:$0 sm:$0xff]  ;;  %v96_v52 = vmul.f32 %v6984_v34, %v6028_v46  ;;  %v102_v53 = vadd.f32 %v94_v43, %v76_v41  ;;  %v103_v54 = vadd.f32 %v95_v44, %v77_v42  ;;  %v7025_v57 = vld [vmem:[%s11326_s1 + $0x6] ss:$0 sm:$0xff]  ;;  %6281 = vmatpush.bf16.msra.mxu2 %v6146_v27  ;;  %v7035_v61 = vld [vmem:[%s11326_s1 + $0x7] ss:$0 sm:$0xff] }
   0xe   :  { %v173_v59 = vmul.f32 %v7013_v49, %v85_v31  ;;  %v174_v60 = vmul.f32 %v7013_v49, %v6028_v46  ;;  %v200_v3 = vmul.f32 %v7025_v57, %v6012_v35  ;;  %v201_v4 = vmul.f32 %v7025_v57, %v6036_v50  ;;  %v6014_v10 = vld [vmem:[%s11325_s0 + $0x40] sm:$0xff]  ;;  %v6038_v21 = vld [vmem:[%s11325_s0 + $0x50] sm:$0xff] }
   0xf   :  { %v129_v1 = vadd.f32 %v121_v47, %v102_v53  ;;  %v130_v2 = vadd.f32 %v122_v48, %v103_v54  ;;  %v226_v6 = vmul.f32 %v7035_v61, %v6020_v39  ;;  %v227_v7 = vmul.f32 %v7035_v61, %v6044_v58  ;;  %v6022_v11 = vld [vmem:[%s11325_s0 + $0x41] sm:$0xff]  ;;  %v6046_v28 = vld [vmem:[%s11325_s0 + $0x51] sm:$0xff] }
  0x10   :  { %609 = vmatpush.bf16.msra.mxu0 %v6134_v36  ;;  %v78_v8 = vadd.f32 %v70_v51, %v52_v40  ;;  %v79_v9 = vadd.f32 %v71_v0, %v53_v63  ;;  %v252_v14 = vmul.f32 %v7047_v5, %v6028_v46  ;;  %v253_v15 = vmul.f32 %v7047_v5, %v6052_v62  ;;  %v6030_v16 = vld [vmem:[%s11325_s0 + $0x42] sm:$0xff]  ;;  %v6054_v29 = vld [vmem:[%s11325_s0 + $0x52] sm:$0xff] }
  0x11   :  { %658 = vmatpush.bf16.msra.mxu1 %v6138_v37  ;;  %v155_v12 = vadd.f32 %v147_v55, %v129_v1  ;;  %v156_v13 = vadd.f32 %v148_v56, %v130_v2  ;;  %6282 = vmatpush.bf16.msra.mxu2 %v6138_v37  ;;  %v97_v17 = vmul.f32 %v6984_v34, %v6052_v62 }
  0x12   :  { %v104_v18 = vadd.f32 %v96_v52, %v78_v8  ;;  %v123_v19 = vmul.f32 %v6992_v38, %v6036_v50  ;;  %v124_v20 = vmul.f32 %v6992_v38, %v6014_v10  ;;  %v149_v25 = vmul.f32 %v7003_v45, %v6044_v58 }
  0x13   :  { %v181_v23 = vadd.f32 %v173_v59, %v155_v12  ;;  %v182_v24 = vadd.f32 %v174_v60, %v156_v13  ;;  %v150_v27 = vmul.f32 %v7003_v45, %v6022_v11  ;;  %v105_v30 = vadd.f32 %v97_v17, %v79_v9 }
  0x14   :  { %v131_v31 = vadd.f32 %v123_v19, %v104_v18  ;;  %v175_v32 = vmul.f32 %v7013_v49, %v6052_v62  ;;  %v176_v33 = vmul.f32 %v7013_v49, %v6030_v16  ;;  %v202_v37 = vmul.f32 %v7025_v57, %v6014_v10 }
  0x15   :  { %v208_v35 = vadd.f32 %v200_v3, %v181_v23  ;;  %v209_v36 = vadd.f32 %v201_v4, %v182_v24  ;;  %v203_v39 = vmul.f32 %v7025_v57, %v6038_v21 }
  0x16   :  { %16 = vsyncpa [#allocation3], 0  ;;  %v132_v40 = vadd.f32 %v124_v20, %v105_v30  ;;  %v157_v41 = vadd.f32 %v149_v25, %v131_v31  ;;  %v228_v42 = vmul.f32 %v7035_v61, %v6022_v11  ;;  %v229_v43 = vmul.f32 %v7035_v61, %v6046_v28  ;;  %v7085_v47 = vld [vmem:[%s11327_s2] ss:$0 sm:$0xff]  ;;  %v6032_v19 = vld [vmem:[%s11325_s0 + $0x62] sm:$0xff]  ;;  %s6831_s23 = smov 48  }
  0x17   :  { %v234_v44 = vadd.f32 %v226_v6, %v208_v35  ;;  %v235_v46 = vadd.f32 %v227_v7, %v209_v36  ;;  %v254_v48 = vmul.f32 %v7047_v5, %v6030_v16  ;;  %v255_v50 = vmul.f32 %v7047_v5, %v6054_v29  ;;  %v6016_v60 = vld [vmem:[%s11325_s0 + $0x60] sm:$0xff]  ;;  %v6040_v30 = vld [vmem:[%s11325_s0 + $0x70] sm:$0xff]  ;;  %s6832_s24 = smov 64   ;;  %s6833_s25 = smov 32  }
  0x18   :  { %v158_v51 = vadd.f32 %v150_v27, %v132_v40  ;;  %v183_v52 = vadd.f32 %v175_v32, %v157_v41  ;;  %v54_v53 = vmul.f32 %v6958_v22, %v6014_v10  ;;  %v55_v54 = vmul.f32 %v6958_v22, %v6038_v21  ;;  %v6024_v7 = vld [vmem:[%s11325_s0 + $0x61] sm:$0xff]  ;;  %s6834_s26 = smov 80   ;;  %s6835_s2 = smov 96  }
  0x19   :  { %v260_v55 = vadd.f32 %v252_v14, %v234_v44  ;;  %v261_v56 = vadd.f32 %v253_v15, %v235_v46  ;;  %v72_v58 = vmul.f32 %v6969_v26, %v6022_v11  ;;  %v73_v59 = vmul.f32 %v6969_v26, %v6046_v28  ;;  %v6056_v44 = vld [vmem:[%s11325_s0 + $0x72] sm:$0xff]  ;;  %s6836_s27 = smov 16   ;;  %s6838_s15 = smov [#allocation2]  }
  0x1a   :  { %v184_v62 = vadd.f32 %v176_v33, %v158_v51  ;;  %v210_v63 = vadd.f32 %v202_v37, %v183_v52  ;;  %v98_v0 = vmul.f32 %v6984_v34, %v6030_v16  ;;  %v99_v1 = vmul.f32 %v6984_v34, %v6054_v29  ;;  %v6018_v52 = vld [vmem:[%s11325_s0 + $0x80] sm:$0xff]  ;;  %s5999_s17 = sshll.u32 %s11336_s11, 4  ;;  %s6839_s11 = smov 128   ;;  %s6000_s17 = int_to_ptr.hbm [resolvable:$true] %s5999_s17 }
  0x1b   :  { %v272_v2 = vadd.f32 %v7085_v47, %v260_v55  ;;  %v273_v3 = vadd.f32 %v7085_v47, %v261_v56  ;;  %v80_v4 = vadd.f32 %v72_v58, %v54_v53  ;;  %v81_v6 = vadd.f32 %v73_v59, %v55_v54  ;;  %s6840_s21 = smov 8  }
  0x1c   :  { %v211_v8 = vadd.f32 %v203_v39, %v184_v62  ;;  %v236_v9 = vadd.f32 %v228_v42, %v210_v63  ;;  %v125_v10 = vmul.f32 %v6992_v38, %v6038_v21  ;;  %v126_v11 = vmul.f32 %v6992_v38, %v6016_v60 }
  0x1d   :  { %v280_v12 = vmax.f32 %v272_v2, 0.0  ;;  %v281_v13 = vmax.f32 %v273_v3, 0.0  ;;  %v106_v14 = vadd.f32 %v98_v0, %v80_v4  ;;  %v107_v15 = vadd.f32 %v99_v1, %v81_v6  ;;  %v6026_v2 = vld [vmem:[%s11325_s0 + $0x81] sm:$0xff] }
  0x1e   :  { %vm577_vm0 = vcmask 523264   ;;  %v237_v16 = vadd.f32 %v229_v43, %v211_v8  ;;  %v151_v17 = vmul.f32 %v7003_v45, %v6046_v28  ;;  %v152_v18 = vmul.f32 %v7003_v45, %v6024_v7 }
  0x1f   :  { %v515_v20 = vpack.c.bf16 %v281_v13, %v280_v12  ;;  %v262_v23 = vadd.f32 %v254_v48, %v236_v9  ;;  %v133_v24 = vadd.f32 %v125_v10, %v106_v14  ;;  %v134_v21 = vadd.f32 %v126_v11, %v107_v15  ;;  %v6034_v13 = vld [vmem:[%s11325_s0 + $0x82] sm:$0xff] }
  0x20   :  { %v263_v25 = vadd.f32 %v255_v50, %v237_v16  ;;  %v177_v27 = vmul.f32 %v7013_v49, %v6054_v29  ;;  %v178_v32 = vmul.f32 %v7013_v49, %v6032_v19  ;;  %v204_v35 = vmul.f32 %v7025_v57, %v6016_v60  ;;  %v6048_v29 = vld [vmem:[%s11325_s0 + $0x71] sm:$0xff] }
  0x21   :  { %6163 = vmatmul.msk.bf16.vlgmr.msra.gmra.mxu0 %vm577_vm0, %v515_v20  ;;  %6171 = vmatmul.msk.bf16.vlgmr.msra.gmra.mxu1 %vm577_vm0, %v515_v20  ;;  %v159_v28 = vadd.f32 %v151_v17, %v133_v24  ;;  %v160_v31 = vadd.f32 %v152_v18, %v134_v21  ;;  %v274_v33 = vadd.f32 %v7085_v47, %v262_v23  ;;  %v6042_v17 = vld [vmem:[%s11325_s0 + $0x90] sm:$0xff]  ;;  %v6059_v23 = vld [vmem:[%s11325_s0 + $0xa0] sm:$0xff]  ;;  %vm744_vm1 = vcmask 130048  }
  0x22   :  { %v205_v36 = vmul.f32 %v7025_v57, %v6040_v30  ;;  %v56_v39 = vmul.f32 %v6958_v22, %v6016_v60  ;;  %v57_v40 = vmul.f32 %v6958_v22, %v6040_v30  ;;  %v74_v41 = vmul.f32 %v6969_v26, %v6024_v7  ;;  %v6060_v24 = vld [vmem:[%s11325_s0 + $0xb0] sm:$0xff]  ;;  %v6067_v21 = vld [vmem:[%s11325_s0 + $0xa1] sm:$0xff] }
  0x23   :  { %v185_v37 = vadd.f32 %v177_v27, %v159_v28  ;;  %v275_v42 = vadd.f32 %v7085_v47, %v263_v25  ;;  %v186_v43 = vadd.f32 %v178_v32, %v160_v31  ;;  %v75_v46 = vmul.f32 %v6969_v26, %v6048_v29  ;;  %v6075_v31 = vld [vmem:[%s11325_s0 + $0xa2] sm:$0xff]  ;;  %v6076_v32 = vld [vmem:[%s11325_s0 + $0xb2] sm:$0xff] }
  0x24   :  { %v100_v48 = vmul.f32 %v6984_v34, %v6032_v19  ;;  %v82_v50 = vadd.f32 %v74_v41, %v56_v39  ;;  %v101_v51 = vmul.f32 %v6984_v34, %v6056_v44  ;;  %v282_v53 = vmax.f32 %v274_v33, 0.0  ;;  %v6084_v41 = vld [vmem:[%s11325_s0 + $0xc0] sm:$0xff] }
  0x25   :  { %v230_v54 = vmul.f32 %v7035_v61, %v6024_v7  ;;  %v83_v55 = vadd.f32 %v75_v46, %v57_v40  ;;  %v212_v56 = vadd.f32 %v204_v35, %v185_v37  ;;  %v231_v58 = vmul.f32 %v7035_v61, %v6048_v29 }
  0x26   :  { %v108_v59 = vadd.f32 %v100_v48, %v82_v50  ;;  %v127_v60 = vmul.f32 %v6992_v38, %v6040_v30  ;;  %v283_v62 = vmax.f32 %v275_v42, 0.0  ;;  %v213_v63 = vadd.f32 %v205_v36, %v186_v43  ;;  %v6068_v30 = vld [vmem:[%s11325_s0 + $0xb1] sm:$0xff] }
  0x27   :  { %v109_v0 = vadd.f32 %v101_v51, %v83_v55  ;;  %v128_v1 = vmul.f32 %v6992_v38, %v6018_v52  ;;  %v256_v3 = vmul.f32 %v7047_v5, %v6032_v19  ;;  %v238_v4 = vadd.f32 %v230_v54, %v212_v56  ;;  %v6050_v48 = vld [vmem:[%s11325_s0 + $0x91] sm:$0xff]  ;;  %v6092_v56 = vld [vmem:[%s11325_s0 + $0xc1] sm:$0xff] }
  0x28   :  { %v257_v6 = vmul.f32 %v7047_v5, %v6056_v44  ;;  %v135_v7 = vadd.f32 %v127_v60, %v108_v59  ;;  %v153_v8 = vmul.f32 %v7003_v45, %v6048_v29  ;;  %v516_v9 = vpack.c.bf16 %v283_v62, %v282_v53 }
  0x29   :  { %v239_v10 = vadd.f32 %v231_v58, %v213_v63  ;;  %v136_v11 = vadd.f32 %v128_v1, %v109_v0  ;;  %v154_v12 = vmul.f32 %v7003_v45, %v6026_v2  ;;  %v264_v14 = vadd.f32 %v256_v3, %v238_v4  ;;  %v6058_v63 = vld [vmem:[%s11325_s0 + $0x92] sm:$0xff] }
  0x2a   :  { %v161_v15 = vadd.f32 %v153_v8, %v135_v7  ;;  %v179_v16 = vmul.f32 %v7013_v49, %v6056_v44  ;;  %v180_v20 = vmul.f32 %v7013_v49, %v6034_v13  ;;  %v297_v25 = vmul.f32 %v6958_v22, %v6059_v23  ;;  %v6100_v7 = vld [vmem:[%s11325_s0 + $0xc2] sm:$0xff] }
  0x2b   :  { %v265_v18 = vadd.f32 %v257_v6, %v239_v10  ;;  %v162_v19 = vadd.f32 %v154_v12, %v136_v11  ;;  %v298_v27 = vmul.f32 %v6958_v22, %v6060_v24  ;;  %v313_v28 = vmul.f32 %v6969_v26, %v6067_v21 }
  0x2c   :  { %v314_v33 = vmul.f32 %v6969_v26, %v6068_v30  ;;  %v337_v35 = vmul.f32 %v6984_v34, %v6075_v31  ;;  %v338_v36 = vmul.f32 %v6984_v34, %v6076_v32  ;;  %v187_v37 = vadd.f32 %v179_v16, %v161_v15 }
  0x2d   :  { %v206_v29 = vmul.f32 %v7025_v57, %v6018_v52  ;;  %v207_v39 = vmul.f32 %v7025_v57, %v6042_v17  ;;  %v321_v40 = vadd.f32 %v313_v28, %v297_v25  ;;  %v276_v42 = vadd.f32 %v7085_v47, %v264_v14  ;;  %v6108_v17 = vld [vmem:[%s11325_s0 + $0xd0] sm:$0xff] }
  0x2e   :  { %v277_v43 = vadd.f32 %v7085_v47, %v265_v18  ;;  %v188_v44 = vadd.f32 %v180_v20, %v162_v19  ;;  %v322_v46 = vadd.f32 %v314_v33, %v298_v27  ;;  %v362_v51 = vmul.f32 %v6992_v38, %v6060_v24  ;;  %v6116_v18 = vld [vmem:[%s11325_s0 + $0xd1] sm:$0xff] }
  0x2f   :  { %v345_v50 = vadd.f32 %v337_v35, %v321_v40  ;;  %v363_v53 = vmul.f32 %v6992_v38, %v6084_v41  ;;  %v214_v54 = vadd.f32 %v206_v29, %v187_v37  ;;  %v232_v55 = vmul.f32 %v7035_v61, %v6026_v2  ;;  %v6124_v28 = vld [vmem:[%s11325_s0 + $0xd2] sm:$0xff]  ;;  %v6086_v29 = vld [vmem:[%s11325_s0 + $0xe0] sm:$0xff] }
  0x30   :  { %v346_v52 = vadd.f32 %v338_v36, %v322_v46  ;;  %v284_v58 = vmax.f32 %v276_v42, 0.0  ;;  %v285_v59 = vmax.f32 %v277_v43, 0.0  ;;  %v215_v60 = vadd.f32 %v207_v39, %v188_v44 }
  0x31   :  { %6164 = vmatmul.msk.bf16.gmra.mxu0 %vm577_vm0, %v516_v9  ;;  %6172 = vmatmul.msk.bf16.gmra.mxu1 %vm577_vm0, %v516_v9  ;;  %v233_v62 = vmul.f32 %v7035_v61, %v6050_v48  ;;  %v370_v0 = vadd.f32 %v362_v51, %v345_v50  ;;  %v386_v1 = vmul.f32 %v7003_v45, %v6068_v30  ;;  %vm1693_vm2 = vcmask 261120  }
  0x32   :  { %v371_v3 = vadd.f32 %v363_v53, %v346_v52  ;;  %v387_v4 = vmul.f32 %v7003_v45, %v6092_v56  ;;  %v240_v2 = vadd.f32 %v232_v55, %v214_v54  ;;  %v258_v6 = vmul.f32 %v7047_v5, %v6034_v13  ;;  %v6094_v52 = vld [vmem:[%s11325_s0 + $0xe1] sm:$0xff] }
  0x33   :  { %v517_v8 = vpack.c.bf16 %v285_v59, %v284_v58  ;;  %v241_v9 = vadd.f32 %v233_v62, %v215_v60  ;;  %v259_v10 = vmul.f32 %v7047_v5, %v6058_v63  ;;  %v394_v11 = vadd.f32 %v386_v1, %v370_v0  ;;  %v6102_v0 = vld [vmem:[%s11325_s0 + $0xe2] sm:$0xff] }
  0x34   :  { %v410_v12 = vmul.f32 %v7013_v49, %v6076_v32  ;;  %v395_v14 = vadd.f32 %v387_v4, %v371_v3  ;;  %v411_v15 = vmul.f32 %v7013_v49, %v6100_v7  ;;  %v266_v16 = vadd.f32 %v258_v6, %v240_v2  ;;  %v6110_v3 = vld [vmem:[%s11325_s0 + $0xf0] sm:$0xff] }
  0x35   :  { %v267_v13 = vadd.f32 %v259_v10, %v241_v9  ;;  %v299_v19 = vmul.f32 %v6958_v22, %v6084_v41  ;;  %v300_v20 = vmul.f32 %v6958_v22, %v6108_v17  ;;  %v435_v24 = vmul.f32 %v7025_v57, %v6084_v41  ;;  %v6118_v2 = vld [vmem:[%s11325_s0 + $0xf1] sm:$0xff] }
  0x36   :  { %v418_v23 = vadd.f32 %v410_v12, %v394_v11  ;;  %v315_v21 = vmul.f32 %v6969_v26, %v6092_v56  ;;  %v316_v25 = vmul.f32 %v6969_v26, %v6116_v18  ;;  %v419_v27 = vadd.f32 %v411_v15, %v395_v14  ;;  %v6126_v10 = vld [vmem:[%s11325_s0 + $0xf2] sm:$0xff]  ;;  %v7267_v15 = vld [vmem:[%s11325_s0 + $0x100] sm:$0xff] }
  0x37   :  { %v436_v30 = vmul.f32 %v7025_v57, %v6108_v17  ;;  %v339_v33 = vmul.f32 %v6984_v34, %v6100_v7  ;;  %v340_v35 = vmul.f32 %v6984_v34, %v6124_v28  ;;  %v278_v36 = vadd.f32 %v7085_v47, %v266_v16 }
  0x38   :  { %v323_v31 = vadd.f32 %v315_v21, %v299_v19  ;;  %v324_v32 = vadd.f32 %v316_v25, %v300_v20  ;;  %v279_v37 = vadd.f32 %v7085_v47, %v267_v13  ;;  %v443_v39 = vadd.f32 %v435_v24, %v418_v23  ;;  %v7278_v24 = vld [vmem:[%s11325_s0 + $0x101] sm:$0xff] }
  0x39   :  { %v459_v40 = vmul.f32 %v7035_v61, %v6092_v56  ;;  %v444_v41 = vadd.f32 %v436_v30, %v419_v27  ;;  %v460_v42 = vmul.f32 %v7035_v61, %v6116_v18  ;;  %v364_v46 = vmul.f32 %v6992_v38, %v6108_v17 }
  0x3a   :  { %v347_v43 = vadd.f32 %v339_v33, %v323_v31  ;;  %v348_v44 = vadd.f32 %v340_v35, %v324_v32  ;;  %v365_v48 = vmul.f32 %v6992_v38, %v6086_v29  ;;  %v286_v50 = vmax.f32 %v278_v36, 0.0  ;;  %v6104_v35 = vld [vmem:[%s11325_s0 + $0x102] sm:$0xff] }
  0x3b   :  { %v287_v51 = vmax.f32 %v279_v37, 0.0  ;;  %v467_v53 = vadd.f32 %v459_v40, %v443_v39  ;;  %v483_v54 = vmul.f32 %v7047_v5, %v6100_v7  ;;  %v468_v55 = vadd.f32 %v460_v42, %v444_v41  ;;  %v6112_v42 = vld [vmem:[%s11325_s0 + $0x110] sm:$0xff] }
  0x3c   :  { %v484_v56 = vmul.f32 %v7047_v5, %v6124_v28  ;;  %v372_v58 = vadd.f32 %v364_v46, %v347_v43  ;;  %v373_v59 = vadd.f32 %v365_v48, %v348_v44  ;;  %v388_v60 = vmul.f32 %v7003_v45, %v6116_v18 }
  0x3d   :  { %v389_v62 = vmul.f32 %v7003_v45, %v6094_v52  ;;  %v518_v63 = vpack.c.bf16 %v287_v51, %v286_v50  ;;  %v491_v1 = vadd.f32 %v483_v54, %v467_v53  ;;  %v413_v9 = vmul.f32 %v7013_v49, %v6102_v0 }
  0x3e   :  { %v492_v4 = vadd.f32 %v484_v56, %v468_v55  ;;  %v396_v6 = vadd.f32 %v388_v60, %v372_v58  ;;  %v301_v11 = vmul.f32 %v6958_v22, %v6086_v29  ;;  %v302_v12 = vmul.f32 %v6958_v22, %v6110_v3  ;;  %v6120_v55 = vld [vmem:[%s11325_s0 + $0x111] sm:$0xff] }
  0x3f   :  { %v397_v7 = vadd.f32 %v389_v62, %v373_v59  ;;  %v317_v14 = vmul.f32 %v6969_v26, %v6094_v52  ;;  %v499_v16 = vadd.f32 %v7085_v47, %v491_v1  ;;  %v318_v17 = vmul.f32 %v6969_v26, %v6118_v2  ;;  %v6128_v62 = vld [vmem:[%s11325_s0 + $0x112] sm:$0xff] }
  0x40   :  { %v341_v13 = vmul.f32 %v6984_v34, %v6102_v0  ;;  %v500_v18 = vadd.f32 %v7085_v47, %v492_v4  ;;  %v342_v20 = vmul.f32 %v6984_v34, %v6126_v10  ;;  %v366_v23 = vmul.f32 %v6992_v38, %v6110_v3 }
  0x41   :  { %6165 = vmatmul.msk.bf16.gmra.mxu0 %vm577_vm0, %v517_v8  ;;  %6173 = vmatmul.msk.bf16.gmra.mxu1 %vm577_vm0, %v517_v8  ;;  %v412_v8 = vmul.f32 %v7013_v49, %v6124_v28  ;;  %v325_v19 = vadd.f32 %v317_v14, %v301_v11  ;;  %v437_v21 = vmul.f32 %v7025_v57, %v6086_v29  ;;  %v507_v29 = vmax.f32 %v499_v16, 0.0 }
  0x42   :  { %v438_v25 = vmul.f32 %v7025_v57, %v6110_v3  ;;  %v326_v27 = vadd.f32 %v318_v17, %v302_v12  ;;  %v367_v30 = vmul.f32 %v6992_v38, %v7267_v15  ;;  %v421_v31 = vadd.f32 %v413_v9, %v397_v7 }
  0x43   :  { %v420_v28 = vadd.f32 %v412_v8, %v396_v6  ;;  %v349_v32 = vadd.f32 %v341_v13, %v325_v19  ;;  %v390_v33 = vmul.f32 %v7003_v45, %v6118_v2  ;;  %v391_v37 = vmul.f32 %v7003_v45, %v7278_v24 }
  0x44   :  { %v350_v36 = vadd.f32 %v342_v20, %v326_v27  ;;  %v508_v39 = vmax.f32 %v500_v18, 0.0  ;;  %v414_v41 = vmul.f32 %v7013_v49, %v6126_v10  ;;  %v461_v43 = vmul.f32 %v7035_v61, %v6094_v52 }
  0x45   :  { %v374_v40 = vadd.f32 %v366_v23, %v349_v32  ;;  %v462_v44 = vmul.f32 %v7035_v61, %v6118_v2  ;;  %v415_v48 = vmul.f32 %v7013_v49, %v6104_v35  ;;  %v445_v50 = vadd.f32 %v437_v21, %v420_v28 }
  0x46   :  { %v375_v46 = vadd.f32 %v367_v30, %v350_v36  ;;  %v446_v51 = vadd.f32 %v438_v25, %v421_v31  ;;  %v439_v54 = vmul.f32 %v7025_v57, %v7267_v15  ;;  %v440_v58 = vmul.f32 %v7025_v57, %v6112_v42 }
  0x47   :  { %v398_v53 = vadd.f32 %v390_v33, %v374_v40  ;;  %v485_v52 = vmul.f32 %v7047_v5, %v6102_v0  ;;  %v463_v60 = vmul.f32 %v7035_v61, %v7278_v24  ;;  %v486_v1 = vmul.f32 %v7047_v5, %v6126_v10 }
  0x48   :  { %v399_v56 = vadd.f32 %v391_v37, %v375_v46  ;;  %v464_v4 = vmul.f32 %v7035_v61, %v6120_v55  ;;  %v469_v2 = vadd.f32 %v461_v43, %v445_v50  ;;  %v470_v6 = vadd.f32 %v462_v44, %v446_v51 }
  0x49   :  { %v422_v59 = vadd.f32 %v414_v41, %v398_v53  ;;  %v487_v8 = vmul.f32 %v7047_v5, %v6104_v35  ;;  %v488_v9 = vmul.f32 %v7047_v5, %v6128_v62  ;;  %v303_v31 = vmul.f32 %v6958_v22, %v7267_v15  ;;  %v6090_v41 = vld [vmem:[%s11325_s0 + $0x120] sm:$0xff]  ;;  %v6114_v53 = vld [vmem:[%s11325_s0 + $0x130] sm:$0xff] }
  0x4a   :  { %v423_v3 = vadd.f32 %v415_v48, %v399_v56  ;;  %v493_v14 = vadd.f32 %v485_v52, %v469_v2  ;;  %v494_v16 = vadd.f32 %v486_v1, %v470_v6  ;;  %v304_v32 = vmul.f32 %v6958_v22, %v6112_v42  ;;  %v6106_v48 = vld [vmem:[%s11325_s0 + $0x122] sm:$0xff] }
  0x4b   :  { %v447_v7 = vadd.f32 %v439_v54, %v422_v59  ;;  %v319_v33 = vmul.f32 %v6969_v26, %v7278_v24  ;;  %v320_v36 = vmul.f32 %v6969_v26, %v6120_v55  ;;  %v344_v40 = vmul.f32 %v6984_v34, %v6128_v62  ;;  %v6098_v26 = vld [vmem:[%s11325_s0 + $0x121] sm:$0xff] }
  0x4c   :  { %v448_v0 = vadd.f32 %v440_v58, %v423_v3  ;;  %v501_v19 = vadd.f32 %v7085_v47, %v493_v14  ;;  %v502_v20 = vadd.f32 %v7085_v47, %v494_v16  ;;  %v368_v15 = vmul.f32 %v6992_v38, %v6112_v42  ;;  %v6122_v58 = vld [vmem:[%s11325_s0 + $0x131] sm:$0xff] }
  0x4d   :  { %v471_v11 = vadd.f32 %v463_v60, %v447_v7  ;;  %v327_v37 = vadd.f32 %v319_v33, %v303_v31  ;;  %v369_v22 = vmul.f32 %v6992_v38, %v6090_v41  ;;  %v416_v42 = vmul.f32 %v7013_v49, %v6128_v62  ;;  %v6130_v62 = vld [vmem:[%s11325_s0 + $0x132] sm:$0xff] }
  0x4e   :  { %v472_v12 = vadd.f32 %v464_v4, %v448_v0  ;;  %v509_v27 = vmax.f32 %v501_v19, 0.0  ;;  %v510_v30 = vmax.f32 %v502_v20, 0.0  ;;  %v417_v38 = vmul.f32 %v7013_v49, %v6106_v48 }
  0x4f   :  { %v495_v10 = vadd.f32 %v487_v8, %v471_v11  ;;  %v465_v59 = vmul.f32 %v7035_v61, %v6098_v26  ;;  %v466_v60 = vmul.f32 %v7035_v61, %v6122_v58  ;;  %v489_v1 = vmul.f32 %v7047_v5, %v6106_v48 }
  0x50   :  { %v496_v17 = vadd.f32 %v488_v9, %v472_v12  ;;  %v520_v28 = vpack.c.bf16 %v510_v30, %v509_v27  ;;  %v531_v9 = vld [vmem:[%s11329_s4] sm:$0x3]  ;;  %s6830_s4 = smov 112   ;;  %vm1702_vm3 = vcmask 392192   ;;  %vm5168_vm4 = vcmask 130112  }
  0x51   :  { %6166 = vmatmul.msk.bf16.gmra.mxu0 %vm577_vm0, %v518_v63  ;;  %6174 = vmatmul.msk.bf16.gmra.mxu1 %vm577_vm0, %v518_v63  ;;  %v519_v63 = vpack.c.bf16 %v508_v39, %v507_v29  ;;  %v503_v13 = vadd.f32 %v7085_v47, %v495_v10  ;;  %v328_v29 = vadd.f32 %v320_v36, %v304_v32  ;;  %v7368_v12 = vperm.slane %v531_v9, 0 }
  0x52   :  { %v504_v18 = vadd.f32 %v7085_v47, %v496_v17  ;;  %v343_v39 = vmul.f32 %v6984_v34, %v6104_v35  ;;  %v392_v35 = vmul.f32 %v7003_v45, %v6120_v55  ;;  %v393_v34 = vmul.f32 %v7003_v45, %v6098_v26 }
  0x53   :  { %v511_v23 = vmax.f32 %v503_v13, 0.0  ;;  %v352_v44 = vadd.f32 %v344_v40, %v328_v29  ;;  %v441_v55 = vmul.f32 %v7025_v57, %v6090_v41  ;;  %v442_v45 = vmul.f32 %v7025_v57, %v6114_v53 }
  0x54   :  { %v512_v21 = vmax.f32 %v504_v18, 0.0  ;;  %v351_v43 = vadd.f32 %v343_v39, %v327_v37  ;;  %v490_v57 = vmul.f32 %v7047_v5, %v6130_v62  ;;  %v7370_v14 = vperm.slane %v531_v9, 1 }
  0x55   :  { %v377_v46 = vadd.f32 %v369_v22, %v352_v44  ;;  %vm5551_vm5 = vcmask 1041409   ;;  %vm5553_vm6 = vcmask 1042434   ;;  %vm5555_vm7 = vcmask 1043459  }
  0x56   :  { %v521_v25 = vpack.c.bf16 %v512_v21, %v511_v23  ;;  %v376_v24 = vadd.f32 %v368_v15, %v351_v43  ;;  %vm5557_vm8 = vcmask 1044484   ;;  %vm5559_vm9 = vcmask 1045509  }
  0x57   :  { %v401_v51 = vadd.f32 %v393_v34, %v377_v46  ;;  %vm5561_vm10 = vcmask 1046534   ;;  %vm5563_vm11 = vcmask 1047559   ;;  %vm5894_vm12 = vcmask 195712  }
  0x58   :  { %6177 = vmatmul.msk.bf16.vlgmr.msra.gmra.mxu2 %vm577_vm0, %v521_v25  ;;  %v400_v50 = vadd.f32 %v392_v35, %v376_v24  ;;  %vm5898_vm13 = vcmask 261312   ;;  %vm5902_vm14 = vcmask 326912   ;;  %vm5906_vm15 = vcmask 392512  }
  0x59   :  { %v425_v56 = vadd.f32 %v417_v38, %v401_v51 }
  0x5a   :  { %v424_v54 = vadd.f32 %v416_v42, %v400_v50 }
  0x5b   :  { %v450_v49 = vadd.f32 %v442_v45, %v425_v56 }
  0x5c   :  { %v449_v52 = vadd.f32 %v441_v55, %v424_v54 }
  0x5d   :  { %v474_v3 = vadd.f32 %v466_v60, %v450_v49 }
  0x5f   :  { %v498_v2 = vadd.f32 %v490_v57, %v474_v3 }
  0x61   :  { %6167 = vmatmul.msk.bf16.gmra.mxu0 %vm577_vm0, %v519_v63  ;;  %6175 = vmatmul.msk.bf16.gmra.mxu1 %vm577_vm0, %v519_v63  ;;  %v473_v63 = vadd.f32 %v465_v59, %v449_v52  ;;  %v506_v7 = vadd.f32 %v7085_v47, %v498_v2 }
  0x63   :  { %v497_v4 = vadd.f32 %v489_v1, %v473_v63  ;;  %v514_v8 = vmax.f32 %v506_v7, 0.0 }
  0x65   :  { %v505_v6 = vadd.f32 %v7085_v47, %v497_v4 }
  0x67   :  { %v513_v61 = vmax.f32 %v505_v6, 0.0 }
  0x69   :  { %v522_v0 = vpack.c.bf16 %v514_v8, %v513_v61 }
  0x6b   :  { %6178 = vmatmul.msk.bf16.gmra.mxu2 %vm577_vm0, %v522_v0 }
  0x71   :  { %6168 = vmatmul.msk.bf16.gmra.mxu0 %vm577_vm0, %v520_v28  ;;  %6176 = vmatmul.msk.bf16.gmra.mxu1 %vm577_vm0, %v520_v28 }
  0x81   :  { %6169 = vmatmul.msk.bf16.gmra.mxu0 %vm577_vm0, %v521_v25 }
  0x91   :  { %6170 = vmatmul.msk.bf16.gmra.mxu0 %vm577_vm0, %v522_v0 }
  0x9e   :  { %v611_v11 = vpop.f32.mrf.mxu0  ;;  %v660_v5 = vpop.f32.mrf.mxu1 }
  0x9f   :  { %v612_v16 = vadd.f32 %v611_v11, %v7368_v12  ;;  %v661_v47 = vadd.f32 %v660_v5, %v7370_v14 }
  0xa1   :  { %v700_v13 = vpack.c.bf16 %v661_v47, %v612_v16 }
  0xa3   :  { %v724_v23 = vunpack.c.l.b16 %v700_v13  ;;  %v890_v21 = vunpack.c.h.b16 %v700_v13 }
  0xa6   :  { %v613_v10 = vpop.f32.mrf.mxu0  ;;  %v662_v17 = vpop.f32.mrf.mxu1 }
  0xa7   :  { %v614_v18 = vadd.f32 %v613_v10, %v7368_v12  ;;  %v663_v19 = vadd.f32 %v662_v17, %v7370_v14 }
  0xa9   :  { %v701_v20 = vpack.c.bf16 %v663_v19, %v614_v18 }
  0xab   :  { %v725_v25 = vunpack.c.l.b16 %v701_v20  ;;  %v891_v27 = vunpack.c.h.b16 %v701_v20 }
  0xad   :  { %v7376_v30 = vpack.c.b16 %v725_v25, %v724_v23  ;;  %v7378_v28 = vpack.c.b16 %v891_v27, %v890_v21 }
  0xae   :  { %v616_v31 = vpop.f32.mrf.mxu0  ;;  %v665_v32 = vpop.f32.mrf.mxu1 }
  0xaf   :  { %1108 = vrot.lane.b32.xlu2 %v7378_v28, %s6830_s4  ;;  %955 = vrot.lane.b32.xlu1 %v7376_v30, %s6831_s23  ;;  %v617_v33 = vadd.f32 %v616_v31, %v7368_v12  ;;  %v666_v36 = vadd.f32 %v665_v32, %v7370_v14 }
  0xb0   :  { %736 = vrot.lane.b32.xlu0 %v7376_v30, %s6832_s24 }
  0xb1   :  { %v702_v37 = vpack.c.bf16 %v666_v36, %v617_v33 }
  0xb3   :  { %v726_v43 = vunpack.c.l.b16 %v702_v37  ;;  %v892_v42 = vunpack.c.h.b16 %v702_v37 }
  0xb6   :  { %v618_v29 = vpop.f32.mrf.mxu0  ;;  %v667_v39 = vpop.f32.mrf.mxu1 }
  0xb7   :  { %v619_v40 = vadd.f32 %v618_v29, %v7368_v12  ;;  %v668_v41 = vadd.f32 %v667_v39, %v7370_v14  ;;  %1169 = vrot.lane.b32.xlu1 %v7376_v30, %s6833_s25 }
  0xb8   :  { %947 = vrot.lane.b32.xlu0 %v7376_v30, %s6830_s4 }
  0xb9   :  { %v703_v44 = vpack.c.bf16 %v668_v41, %v619_v40 }
  0xbb   :  { %v727_v15 = vunpack.c.l.b16 %v703_v44  ;;  %v893_v38 = vunpack.c.h.b16 %v703_v44 }
  0xbd   :  { %v7394_v22 = vpack.c.b16 %v727_v15, %v726_v43  ;;  %v899_v56 = vpack.c.b16 %v893_v38, %v892_v42 }
  0xbe   :  { %v621_v26 = vpop.f32.mrf.mxu0  ;;  %v670_v24 = vpop.f32.mrf.mxu1 }
  0xbf   :  { %1171 = vrot.lane.b32.xlu2 %v7394_v22, %s6833_s25  ;;  %1375 = vrot.lane.b32.xlu1 %v7376_v30, %s6834_s26  ;;  %v622_v46 = vadd.f32 %v621_v26, %v7368_v12  ;;  %v671_v48 = vadd.f32 %v670_v24, %v7370_v14 }
  0xc0   :  { %1161 = vrot.lane.b32.xlu0 %v7376_v30, %s6835_s2 }
  0xc1   :  { %v704_v53 = vpack.c.bf16 %v671_v48, %v622_v46 }
  0xc3   :  { %v728_v58 = vunpack.c.l.b16 %v704_v53  ;;  %v894_v6 = vunpack.c.h.b16 %v704_v53 }
  0xc6   :  { %v623_v35 = vpop.f32.mrf.mxu0  ;;  %v672_v34 = vpop.f32.mrf.mxu1 }
  0xc7   :  { %v624_v50 = vadd.f32 %v623_v35, %v7368_v12  ;;  %v673_v51 = vadd.f32 %v672_v34, %v7370_v14  ;;  %1385 = vrot.lane.b32.xlu2 %v7394_v22, %s6836_s27  ;;  %1536 = vrot.lane.b32.xlu1 %v7378_v28, %s6834_s26 }
  0xc8   :  { %1322 = vrot.lane.b32.xlu0 %v7378_v28, %s6835_s2 }
  0xc9   :  { %v705_v54 = vpack.c.bf16 %v673_v51, %v624_v50 }
  0xcb   :  { %v729_v52 = vunpack.c.l.b16 %v705_v54  ;;  %v895_v7 = vunpack.c.h.b16 %v705_v54 }
  0xcd   :  { %v7419_v49 = vpack.c.b16 %v729_v52, %v728_v58  ;;  %v900_v0 = vpack.c.b16 %v895_v7, %v894_v6 }
  0xce   :  { %v626_v55 = vpop.f32.mrf.mxu0  ;;  %v675_v45 = vpop.f32.mrf.mxu1 }
  0xcf   :  { %1538 = vrot.lane.b32.xlu2 %v899_v56, %s6834_s26  ;;  %949 = vrot.lane.b32.xlu1 %v7394_v22, %s6830_s4  ;;  %v627_v59 = vadd.f32 %v626_v55, %v7368_v12  ;;  %v676_v60 = vadd.f32 %v675_v45, %v7370_v14 }
  0xd0   :  { %1383 = vrot.lane.b32.xlu0 %v7376_v30, %s6836_s27 }
  0xd1   :  { %v706_v62 = vpack.c.bf16 %v676_v60, %v627_v59 }
  0xd3   :  { %v896_v4 = vunpack.c.h.b16 %v706_v62  ;;  %v730_v19 = vunpack.c.l.b16 %v706_v62 }
  0xd6   :  { %v628_v63 = vpop.f32.mrf.mxu0  ;;  %v677_v1 = vpop.f32.mrf.mxu1 }
  0xd7   :  { %v629_v57 = vadd.f32 %v628_v63, %v7368_v12  ;;  %v678_v3 = vadd.f32 %v677_v1, %v7370_v14  ;;  %951 = vrot.lane.b32.xlu2 %v7419_v49, %s6830_s4  ;;  %1110 = vrot.lane.b32.xlu1 %v899_v56, %s6830_s4 }
  0xd8   :  { %738 = vrot.lane.b32.xlu0 %v7394_v22, %s6832_s24 }
  0xd9   :  { %v707_v2 = vpack.c.bf16 %v678_v3, %v629_v57 }
  0xdb   :  { %v897_v61 = vunpack.c.h.b16 %v707_v2  ;;  %v731_v20 = vunpack.c.l.b16 %v707_v2  ;;  %v690_v29 = vpop.f32.mrf.mxu2 }
  0xdc   :  { %v691_v60 = vadd.f32 %v690_v29, %v7370_v14 }
  0xdd   :  { %v7428_v8 = vpack.c.b16 %v897_v61, %v896_v4  ;;  %v7457_v25 = vpack.c.b16 %v731_v20, %v730_v19 }
  0xde   :  { %v631_v9 = vpop.f32.mrf.mxu0  ;;  %v680_v11 = vpop.f32.mrf.mxu1 }
  0xdf   :  { %922 = vmatpush.bf16.msra.mxu3 %v7428_v8  ;;  %959 = vrot.lane.b32.xlu2 %v7419_v49, %s6831_s23  ;;  %v632_v47 = vadd.f32 %v631_v9, %v7368_v12  ;;  %v681_v10 = vadd.f32 %v680_v11, %v7370_v14 }
  0xe0   :  { %1163 = vrot.lane.b32.xlu1 %v7394_v22, %s6835_s2  ;;  %957 = vrot.lane.b32.xlu0 %v7394_v22, %s6831_s23 }
  0xe1   :  { %v708_v23 = vpack.c.bf16 %v681_v10, %v632_v47 }
  0xe3   :  { %923 = vmatpush.bf16.msra.mxu3 %v900_v0  ;;  %v1719_v27 = vunpack.c.l.b16 %v708_v23  ;;  %v1884_v34 = vunpack.c.h.b16 %v708_v23  ;;  %v692_v50 = vpop.f32.mrf.mxu2 }
  0xe4   :  { %v693_v1 = vadd.f32 %v692_v50, %v7370_v14 }
  0xe6   :  { %v633_v5 = vpop.f32.mrf.mxu0  ;;  %v682_v16 = vpop.f32.mrf.mxu1 }
  0xe7   :  { %924 = vmatpush.bf16.msra.mxu3 %v899_v56  ;;  %1165 = vrot.lane.b32.xlu2 %v7419_v49, %s6835_s2  ;;  %v634_v17 = vadd.f32 %v633_v5, %v7368_v12  ;;  %v683_v13 = vadd.f32 %v682_v16, %v7370_v14 }
  0xe8   :  { %1324 = vrot.lane.b32.xlu1 %v899_v56, %s6835_s2  ;;  %1377 = vrot.lane.b32.xlu0 %v7394_v22, %s6834_s26 }
  0xe9   :  { %v709_v21 = vpack.c.bf16 %v683_v13, %v634_v17 }
  0xeb   :  { %925 = vmatpush.bf16.msra.mxu3 %v7378_v28  ;;  %v1720_v28 = vunpack.c.l.b16 %v709_v21  ;;  %v1885_v48 = vunpack.c.h.b16 %v709_v21 }
  0xed   :  { %v7464_v33 = vpack.c.b16 %v1720_v28, %v1719_v27  ;;  %v7494_v38 = vpack.c.b16 %v1885_v48, %v1884_v34 }
  0xee   :  { %v636_v18 = vpop.f32.mrf.mxu0  ;;  %v685_v31 = vpop.f32.mrf.mxu1 }
  0xef   :  { %1326 = vrot.lane.b32.xlu2 %v900_v0, %s6835_s2  ;;  %v637_v39 = vadd.f32 %v636_v18, %v7368_v12  ;;  %v686_v40 = vadd.f32 %v685_v31, %v7370_v14  ;;  %v695_v52 = vpop.f32.mrf.mxu2 }
  0xf0   :  { %740 = vrot.lane.b32.xlu1 %v7419_v49, %s6832_s24  ;;  %1112 = vrot.lane.b32.xlu0 %v900_v0, %s6830_s4  ;;  %v696_v9 = vadd.f32 %v695_v52, %v7370_v14 }
  0xf1   :  { %v710_v15 = vpack.c.bf16 %v686_v40, %v637_v39 }
  0xf3   :  { %v1721_v46 = vunpack.c.l.b16 %v710_v15  ;;  %v1886_v53 = vunpack.c.h.b16 %v710_v15 }
  0xf6   :  { %v638_v32 = vpop.f32.mrf.mxu0  ;;  %v687_v36 = vpop.f32.mrf.mxu1 }
  0xf7   :  { %1379 = vrot.lane.b32.xlu2 %v7419_v49, %s6834_s26  ;;  %v639_v41 = vadd.f32 %v638_v32, %v7368_v12  ;;  %v688_v43 = vadd.f32 %v687_v36, %v7370_v14  ;;  %v697_v61 = vpop.f32.mrf.mxu2 }
  0xf8   :  { %1387 = vrot.lane.b32.xlu1 %v7419_v49, %s6836_s27  ;;  %1173 = vrot.lane.b32.xlu0 %v7419_v49, %s6833_s25 }
  0xf9   :  { %v711_v26 = vpack.c.bf16 %v688_v43, %v639_v41 }
  0xfb   :  { %v1722_v35 = vunpack.c.l.b16 %v711_v26  ;;  %v1887_v54 = vunpack.c.h.b16 %v711_v26 }
  0xfd   :  { %v7492_v42 = vpack.c.b16 %v1722_v35, %v1721_v46  ;;  %v7508_v59 = vpack.c.b16 %v1887_v54, %v1886_v53 }
  0xfe   :  { %v641_v37 = vpop.f32.mrf.mxu0 }
  0xff   :  { %1114 = vrot.lane.b32.xlu2 %v7428_v8, %s6830_s4  ;;  %v642_v62 = vadd.f32 %v641_v37, %v7368_v12 }
 0x100   :  { %742 = vrot.lane.b32.xlu1 %v7457_v25, %s6832_s24  ;;  %1540 = vrot.lane.b32.xlu0 %v900_v0, %s6834_s26 }
 0x101   :  { %v712_v2 = vpack.c.bf16 %v691_v60, %v642_v62 }
 0x103   :  { %v1723_v5 = vunpack.c.l.b16 %v712_v2  ;;  %v1888_v15 = vunpack.c.h.b16 %v712_v2 }
 0x106   :  { %v643_v24 = vpop.f32.mrf.mxu0 }
 0x107   :  { %1731 = vrot.lane.b32.xlu2 %v7464_v33, %s6832_s24  ;;  %v644_v63 = vadd.f32 %v643_v24, %v7368_v12 }
 0x108   :  { %961 = vrot.lane.b32.xlu1 %v7457_v25, %s6831_s23  ;;  %953 = vrot.lane.b32.xlu0 %v7457_v25, %s6830_s4 }
 0x109   :  { %v7482_v44 = vpop.permute.xlu2 %1108  ;;  %v713_v6 = vpack.c.bf16 %v693_v1, %v644_v63  ;;  %v11337_v63 = vlaneseq }
 0x10b   :  { %v1724_v16 = vunpack.c.l.b16 %v713_v6  ;;  %v1889_v26 = vunpack.c.h.b16 %v713_v6  ;;  %v7633_v1 = vshrl.u32 %v11337_v63, 7 }
 0x10d   :  { %v7542_v19 = vpack.c.b16 %v1724_v16, %v1723_v5  ;;  %v7594_v35 = vpack.c.b16 %v1889_v26, %v1888_v15  ;;  %11512 = vst [vmem:[#allocation11_spill] sm:$0xff] %v7633_v1  ;;  %6298 = vset.pattern.permute.xlu2 %v7633_v1  ;;  %6300 = vset.pattern.permute.xlu1 %v7633_v1  ;;  %v6496_v16 = vld [vmem:[%s11333_s8] ss:$0 sm:$0xff] }
 0x10e   :  { %v646_v56 = vpop.f32.mrf.mxu0  ;;  %v7673_v26 = vld [vmem:[%s11334_s9] sm:$0xff] }
 0x10f   :  { %1949 = vrot.lane.b32.xlu2 %v7464_v33, %s6831_s23  ;;  %v647_v0 = vadd.f32 %v646_v56, %v7368_v12  ;;  %11507 = vst [vmem:[#allocation6_spill] sm:$0xff] %v7542_v19 }
 0x110   :  { %1175 = vrot.lane.b32.xlu1 %v7457_v25, %s6833_s25  ;;  %1167 = vrot.lane.b32.xlu0 %v7457_v25, %s6835_s2  ;;  %11516 = vst [vmem:[#allocation15_spill] sm:$0xff] %v7673_v26 }
 0x111   :  { %v714_v13 = vpack.c.bf16 %v696_v9, %v647_v0 }
 0x113   :  { %v1890_v36 = vunpack.c.h.b16 %v714_v13 }
 0x116   :  { %v648_v7 = vpop.f32.mrf.mxu0 }
 0x117   :  { %2163 = vrot.lane.b32.xlu2 %v7464_v33, %s6833_s25  ;;  %v649_v11 = vadd.f32 %v648_v7, %v7368_v12  ;;  %v1725_v12 = vunpack.c.l.b16 %v714_v13  ;;  %v7658_v13 = vadd.s32 8, %v7633_v1 }
 0x118   :  { %1381 = vrot.lane.b32.xlu1 %v7457_v25, %s6834_s26  ;;  %1328 = vrot.lane.b32.xlu0 %v7428_v8, %s6835_s2 }
 0x119   :  { %v7490_v51 = vpop.permute.xlu2 %1171  ;;  %11514 = vst [vmem:[#allocation13_spill] sm:$0xff] %v7658_v13  ;;  %6299 = vset.pattern.permute.xlu0 %v7658_v13 }
 0x11f   :  { %1943 = vrot.lane.b32.xlu2 %v7492_v42, %s6830_s4 }
 0x120   :  { %2102 = vrot.lane.b32.xlu1 %v7494_v38, %s6830_s4  ;;  %1389 = vrot.lane.b32.xlu0 %v7457_v25, %s6836_s27 }
 0x121   :  { %v7502_v55 = vpop.permute.xlu2 %1385  ;;  %v7504_v45 = vpop.permute.xlu1 %955 }
 0x122   :  { %v7506_v58 = vpop.permute.xlu0 %736 }
 0x127   :  { %2104 = vrot.lane.b32.xlu2 %v7508_v59, %s6830_s4 }
 0x128   :  { %1733 = vrot.lane.b32.xlu1 %v7492_v42, %s6832_s24  ;;  %1542 = vrot.lane.b32.xlu0 %v7428_v8, %s6834_s26  ;;  %v698_v8 = vadd.f32 %v697_v61, %v7370_v14 }
 0x129   :  { %v7520_v57 = vpop.permute.xlu2 %1538  ;;  %v7522_v3 = vpop.permute.xlu1 %1169 }
 0x12a   :  { %v7524_v4 = vpop.permute.xlu0 %947  ;;  %v715_v18 = vpack.c.bf16 %v698_v8, %v649_v11 }
 0x12c   :  { %v1726_v14 = vunpack.c.l.b16 %v715_v18  ;;  %v1891_v37 = vunpack.c.h.b16 %v715_v18 }
 0x12e   :  { %v7556_v27 = vpack.c.b16 %v1726_v14, %v1725_v12  ;;  %v7580_v41 = vpack.c.b16 %v1891_v37, %v1890_v36 }
 0x12f   :  { %2157 = vrot.lane.b32.xlu2 %v7492_v42, %s6835_s2 }
 0x130   :  { %2165 = vrot.lane.b32.xlu1 %v7492_v42, %s6833_s25  ;;  %1941 = vrot.lane.b32.xlu0 %v7464_v33, %s6830_s4  ;;  %11508 = vst [vmem:[#allocation7_spill] sm:$0xff] %v7556_v27 }
 0x131   :  { %v7536_v47 = vpop.permute.xlu2 %951  ;;  %v7538_v10 = vpop.permute.xlu1 %1375 }
 0x132   :  { %11506 = vst [vmem:[#allocation5_spill] sm:$0xff] %v7538_v10  ;;  %v7540_v17 = vpop.permute.xlu0 %1161 }
 0x137   :  { %2318 = vrot.lane.b32.xlu2 %v7508_v59, %s6835_s2 }
 0x138   :  { %1945 = vrot.lane.b32.xlu1 %v7542_v19, %s6830_s4  ;;  %2155 = vrot.lane.b32.xlu0 %v7464_v33, %s6835_s2 }
 0x139   :  { %v7550_v20 = vpop.permute.xlu2 %959  ;;  %v7552_v23 = vpop.permute.xlu1 %1536 }
 0x13a   :  { %v7554_v21 = vpop.permute.xlu0 %1322  ;;  %v982_v37 = vsel %vm744_vm1, %v7550_v20, 0 }
 0x13f   :  { %1737 = vrot.lane.b32.xlu2 %v7556_v27, %s6832_s24 }
 0x140   :  { %1953 = vrot.lane.b32.xlu1 %v7542_v19, %s6831_s23  ;;  %2316 = vrot.lane.b32.xlu0 %v7494_v38, %s6835_s2 }
 0x141   :  { %v7564_v28 = vpop.permute.xlu2 %1165  ;;  %v7566_v31 = vpop.permute.xlu1 %949 }
 0x142   :  { %v7568_v32 = vpop.permute.xlu0 %1383 }
 0x147   :  { %1955 = vrot.lane.b32.xlu2 %v7556_v27, %s6831_s23 }
 0x148   :  { %2159 = vrot.lane.b32.xlu1 %v7542_v19, %s6835_s2  ;;  %1951 = vrot.lane.b32.xlu0 %v7492_v42, %s6831_s23 }
 0x149   :  { %v7576_v29 = vpop.permute.xlu2 %1326  ;;  %v7578_v39 = vpop.permute.xlu1 %1110 }
 0x14a   :  { %v739_v40 = vpop.permute.xlu0 %738 }
 0x14b   :  { %v761_v36 = vsel %vm744_vm1, %v739_v40, 0  ;;  %v2923_v40 = vperm.slane %v7673_v26, 0 }
 0x14f   :  { %2169 = vrot.lane.b32.xlu2 %v7556_v27, %s6833_s25 }
 0x150   :  { %2108 = vrot.lane.b32.xlu1 %v7580_v41, %s6830_s4  ;;  %1735 = vrot.lane.b32.xlu0 %v7542_v19, %s6832_s24 }
 0x151   :  { %v7588_v43 = vpop.permute.xlu2 %1379 }
 0x152   :  { %11509 = vst [vmem:[#allocation8_spill] sm:$0xff] %v7588_v43  ;;  %v7590_v24 = vpop.permute.xlu1 %1163  ;;  %v7592_v46 = vpop.permute.xlu0 %957 }
 0x157   :  { %2369 = vrot.lane.b32.xlu2 %v7464_v33, %s6834_s26 }
 0x158   :  { %2320 = vrot.lane.b32.xlu1 %v7594_v35, %s6835_s2  ;;  %2106 = vrot.lane.b32.xlu0 %v7594_v35, %s6830_s4 }
 0x159   :  { %v7602_v34 = vpop.permute.xlu2 %1114 }
 0x15a   :  { %v7604_v48 = vpop.permute.xlu1 %1324  ;;  %v7606_v50 = vpop.permute.xlu0 %1377 }
 0x15b   :  { %11510 = vst [vmem:[#allocation9_spill] sm:$0xff] %v7606_v50 }
 0x15f   :  { %2375 = vrot.lane.b32.xlu2 %v7556_v27, %s6834_s26 }
 0x160   :  { %2373 = vrot.lane.b32.xlu1 %v7542_v19, %s6834_s26  ;;  %2167 = vrot.lane.b32.xlu0 %v7542_v19, %s6833_s25 }
 0x161   :  { %v7614_v53 = vpop.permute.xlu2 %1731 }
 0x162   :  { %v741_v54 = vpop.permute.xlu1 %740  ;;  %v1113_v56 = vpop.permute.xlu0 %1112 }
 0x163   :  { %v764_v8 = vsel %vm744_vm1, %v741_v54, 0 }
 0x167   :  { %2381 = vrot.lane.b32.xlu2 %v7542_v19, %s6836_s27 }
 0x168   :  { %2379 = vrot.lane.b32.xlu1 %v7492_v42, %s6836_s27  ;;  %1947 = vrot.lane.b32.xlu0 %v7556_v27, %s6830_s4 }
 0x169   :  { %v7622_v52 = vpop.permute.xlu2 %1949 }
 0x16a   :  { %11511 = vst [vmem:[#allocation10_spill] sm:$0xff] %v7622_v52  ;;  %v7624_v60 = vpop.permute.xlu1 %1387  ;;  %v1174_v62 = vpop.permute.xlu0 %1173 }
 0x16f   :  { %2530 = vrot.lane.b32.xlu2 %v7494_v38, %s6834_s26 }
 0x170   :  { %2534 = vrot.lane.b32.xlu1 %v7594_v35, %s6834_s26  ;;  %2161 = vrot.lane.b32.xlu0 %v7556_v27, %s6835_s2 }
 0x171   :  { %v7635_v2 = vpop.permute.xlu2 %2163 }
 0x172   :  { %v743_v6 = vpop.permute.xlu1 %742  ;;  %v7637_v7 = vpop.permute.xlu0 %1540 }
 0x173   :  { %v767_v61 = vsel %vm744_vm1, %v743_v6, 0  ;;  %v758_v6 = vsel %vm744_vm1, %v7506_v58, 0 }
 0x174   :  { %773 = vmatpush.bf16.xpose.msrb.mxu2 %v767_v61  ;;  %v979_v61 = vsel %vm744_vm1, %v7592_v46, 0  ;;  %v976_v46 = vsel %vm744_vm1, %v7504_v45, 0 }
 0x177   :  { %2536 = vrot.lane.b32.xlu2 %v7580_v41, %s6834_s26 }
 0x178   :  { %2322 = vrot.lane.b32.xlu0 %v7580_v41, %s6835_s2  ;;  %2928 = vperm.xlu1 %6300, %v2923_v40  }
 0x179   :  { %v7646_v0 = vpop.permute.xlu2 %1943 }
 0x17a   :  { %11513 = vst [vmem:[#allocation12_spill] sm:$0xff] %v7646_v0  ;;  %v962_v9 = vpop.permute.xlu1 %961  ;;  %v7648_v11 = vpop.permute.xlu0 %953 }
 0x17b   :  { %v985_v5 = vsel %vm744_vm1, %v962_v9, 0  ;;  %v1196_v9 = vsel %vm744_vm1, %v1174_v62, 0 }
 0x17c   :  { %774 = vmatpush.bf16.xpose.msrb.mxu2 %v764_v8  ;;  %991 = vmatpush.bf16.xpose.msrb.mxu3 %v985_v5  ;;  %v2936_v8 = vperm.slane %v7673_v26, 1 }
 0x17f   :  { %2889 = vperm.xlu2 %6298, %v6496_v16  }
 0x180   :  { %2371 = vrot.lane.b32.xlu0 %v7492_v42, %s6834_s26  ;;  %2941 = vperm.xlu1 %6300, %v2936_v8  }
 0x181   :  { %v7660_v18 = vpop.permute.xlu2 %2104 }
 0x182   :  { %11515 = vst [vmem:[#allocation14_spill] sm:$0xff] %v7660_v18  ;;  %v1176_v12 = vpop.permute.xlu1 %1175  ;;  %v7662_v14 = vpop.permute.xlu0 %1167 }
 0x183   :  { %v1199_v15 = vsel %vm744_vm1, %v1176_v12, 0 }
 0x184   :  { %775 = vmatpush.bf16.xpose.msrb.mxu2 %v761_v36  ;;  %992 = vmatpush.bf16.xpose.msrb.mxu3 %v982_v37 }
 0x185   :  { %1205 = vmatpush.bf16.xpose.msrb.mxu1 %v1199_v15 }
 0x187   :  { %6301 = vset.pattern.permute.xlu2 %v7658_v13 }
 0x188   :  { %2377 = vrot.lane.b32.xlu0 %v7464_v33, %s6836_s27 }
 0x189   :  { %v7678_v54 = vpop.permute.xlu2 %2157 }
 0x18a   :  { %v1329_v20 = vpop.permute.xlu0 %1328 }
 0x18c   :  { %776 = vmatpush.bf16.xpose.msrb.mxu2 %v758_v6  ;;  %993 = vmatpush.bf16.xpose.msrb.mxu3 %v979_v61 }
 0x18d   :  { %1206 = vmatpush.bf16.xpose.msrb.mxu1 %v1196_v9 }
 0x18f   :  { %2934 = vperm.xlu2 %6301, %v2923_v40  }
 0x190   :  { %2383 = vrot.lane.b32.xlu0 %v7556_v27, %s6836_s27 }
 0x191   :  { %v7689_v5 = vpop.permute.xlu2 %2318 }
 0x192   :  { %v7691_v58 = vpop.permute.xlu0 %1389 }
 0x193   :  { %6179 = vmatmul.msk.bf16.vlgmr.msrb.gmra.mxu2 %vm744_vm1, %v7376_v30 }
 0x194   :  { %1136 = vmatpush.bf16.msra.mxu2 %v7602_v34  ;;  %994 = vmatpush.bf16.xpose.msrb.mxu3 %v976_v46  ;;  %v1193_v34 = vsel %vm744_vm1, %v7490_v51, 0  ;;  %v1190_v51 = vsel %vm744_vm1, %v7522_v3, 0 }
 0x195   :  { %1207 = vmatpush.bf16.xpose.msrb.mxu1 %v1193_v34 }
 0x197   :  { %2947 = vperm.xlu2 %6301, %v2936_v8  }
 0x198   :  { %1137 = vmatpush.bf16.msra.mxu2 %v1113_v56  ;;  %2532 = vrot.lane.b32.xlu0 %v7508_v59, %s6834_s26  ;;  %v2949_v56 = vperm.slane %v7673_v26, 2 }
 0x199   :  { %v1738_v62 = vpop.permute.xlu2 %1737 }
 0x19a   :  { %v1543_v30 = vpop.permute.xlu0 %1542  ;;  %v7705_v12 = vsel %vm744_vm1, %v1738_v62, 0  ;;  %2954 = vperm.xlu1 %6300, %v2949_v56  }
 0x19b   :  { %1767 = vmatpush.bf16.xpose.msrb.mxu0 %v7705_v12 }
 0x19c   :  { %1138 = vmatpush.bf16.msra.mxu2 %v7578_v39 }
 0x19d   :  { %1208 = vmatpush.bf16.xpose.msrb.mxu1 %v1190_v51 }
 0x19f   :  { %2960 = vperm.xlu2 %6301, %v2949_v56  }
 0x1a0   :  { %1139 = vmatpush.bf16.msra.mxu2 %v7482_v44  ;;  %2895 = vperm.xlu0 %6299, %v6496_v16  }
 0x1a1   :  { %v7755_v39 = vpop.permute.xlu2 %1955 }
 0x1a2   :  { %v7712_v44 = vpop.permute.xlu0 %1941  ;;  %6302 = vset.pattern.permute.xlu1 %v7658_v13  ;;  %11521 = vst [vmem:[#allocation20_spill] sm:$0xff] %v7755_v39 }
 0x1a3   :  { %11517 = vst [vmem:[#allocation16_spill] sm:$0xff] %v7712_v44  ;;  %6180 = vmatmul.msk.bf16.gmra.mxu2 %vm744_vm1, %v7394_v22  ;;  %v2975_v22 = vperm.slane %v7673_v26, 4 }
 0x1a4   :  { %1564 = vmatpush.bf16.msrb.mxu2 %v1543_v30  ;;  %6195 = vmatmul.msk.bf16.vlgmr.msrb.gmra.mxu1 %vm744_vm1, %v7540_v17  ;;  %v2988_v17 = vperm.slane %v7673_v26, 5 }
 0x1a5   :  { %1350 = vmatpush.bf16.msra.mxu1 %v1329_v20 }
 0x1a7   :  { %6303 = vset.pattern.permute.xlu2 %v7633_v1 }
 0x1a8   :  { %1565 = vmatpush.bf16.msrb.mxu2 %v7637_v7  ;;  %2999 = vperm.xlu0 %6299, %v2988_v17  }
 0x1a9   :  { %1351 = vmatpush.bf16.msra.mxu1 %v7576_v29 }
 0x1aa   :  { %v2156_v45 = vpop.permute.xlu0 %2155 }
 0x1ac   :  { %1566 = vmatpush.bf16.msrb.mxu2 %v7520_v57  ;;  %v7734_v57 = vpop.permute.xlu1 %1381 }
 0x1ad   :  { %1352 = vmatpush.bf16.msra.mxu1 %v7604_v48  ;;  %11518 = vst [vmem:[#allocation17_spill] sm:$0xff] %v7734_v57  ;;  %v7766_v48 = vsel %vm744_vm1, %v7614_v53, 0 }
 0x1af   :  { %2980 = vperm.xlu2 %6303, %v2975_v22  }
 0x1b0   :  { %1567 = vmatpush.bf16.msrb.mxu2 %v7552_v23 }
 0x1b1   :  { %1353 = vmatpush.bf16.msra.mxu1 %v7554_v21 }
 0x1b2   :  { %v7727_v3 = vpop.permute.xlu0 %2316 }
 0x1b3   :  { %6181 = vmatmul.msk.bf16.gmra.mxu2 %vm744_vm1, %v7419_v49 }
 0x1b4   :  { %6196 = vmatmul.msk.bf16.gmra.mxu1 %vm744_vm1, %v7590_v24  ;;  %v7740_v21 = vpop.permute.xlu1 %2102 }
 0x1b5   :  { %1916 = vmatpush.bf16.msrb.mxu1 %v7580_v41  ;;  %11520 = vst [vmem:[#allocation19_spill] sm:$0xff] %v7740_v21 }
 0x1b7   :  { %2993 = vperm.xlu2 %6303, %v2988_v17  }
 0x1b9   :  { %1917 = vmatpush.bf16.msrb.mxu1 %v7594_v35  ;;  %v2170_v35 = vpop.permute.xlu2 %2169 }
 0x1ba   :  { %v7738_v23 = vpop.permute.xlu0 %1951  ;;  %v2193_v7 = vsel %vm744_vm1, %v2170_v35, 0 }
 0x1bb   :  { %11519 = vst [vmem:[#allocation18_spill] sm:$0xff] %v7738_v23 }
 0x1bc   :  { %v1734_v41 = vpop.permute.xlu1 %1733 }
 0x1bd   :  { %1918 = vmatpush.bf16.msrb.mxu1 %v7508_v59  ;;  %v3001_v59 = vperm.slane %v7673_v26, 6 }
 0x1bf   :  { %6305 = vset.pattern.permute.xlu2 %v7658_v13 }
 0x1c1   :  { %1919 = vmatpush.bf16.msrb.mxu1 %v7494_v38  ;;  %v11338_v38 = vperm.slane %v7673_v26, 3 }
 0x1c2   :  { %v1736_v29 = vpop.permute.xlu0 %1735 }
 0x1c3   :  { %6182 = vmatmul.msk.bf16.gmra.mxu2 %vm744_vm1, %v7457_v25  ;;  %v7746_v49 = vsel %vm744_vm1, %v1736_v29, 0  ;;  %2973 = vperm.xlu1 %6302, %v11338_v38   ;;  %v7758_v25 = vsel %vm744_vm1, %v1734_v41, 0 }
 0x1c4   :  { %6197 = vmatmul.msk.bf16.gmra.mxu1 %vm744_vm1, %v7564_v28  ;;  %1768 = vmatpush.bf16.xpose.msrb.mxu0 %v7746_v49  ;;  %v3014_v28 = vperm.slane %v7673_v26, 7  ;;  %v2166_v53 = vpop.permute.xlu1 %2165 }
 0x1c5   :  { %v2187_v37 = vsel %vm744_vm1, %v2166_v53, 0 }
 0x1c7   :  { %3012 = vperm.xlu2 %6305, %v3001_v59  }
 0x1ca   :  { %v7761_v24 = vpop.permute.xlu0 %2106 }
 0x1cb   :  { %11522 = vst [vmem:[#allocation21_spill] sm:$0xff] %v7761_v24  ;;  %2986 = vperm.xlu1 %6302, %v2975_v22  }
 0x1cc   :  { %1769 = vmatpush.bf16.xpose.msrb.mxu0 %v7758_v25 }
 0x1cf   :  { %3025 = vperm.xlu2 %6305, %v3014_v28  }
 0x1d2   :  { %v2168_v16 = vpop.permute.xlu0 %2167 }
 0x1d3   :  { %6304 = vset.pattern.permute.xlu1 %v7633_v1  ;;  %v2190_v36 = vsel %vm744_vm1, %v2168_v16, 0 }
 0x1d4   :  { %6198 = vmatmul.msk.bf16.gmra.mxu1 %vm744_vm1, %v7662_v14  ;;  %1770 = vmatpush.bf16.xpose.msrb.mxu0 %v7766_v48  ;;  %v2184_v14 = vsel %vm744_vm1, %v7635_v2, 0 }
 0x1d7   :  { %6307 = vset.pattern.permute.xlu2 %v7633_v1 }
 0x1da   :  { %v7797_v6 = vpop.permute.xlu0 %1947 }
 0x1db   :  { %6211 = vmatmul.msk.bf16.vlgmr.msrb.gmra.mxu0 %vm744_vm1, %v7464_v33  ;;  %3006 = vperm.xlu1 %6304, %v3001_v59   ;;  %v7784_v33 = vpop.permute.xlu1 %1945  ;;  %11526 = vst [vmem:[#allocation25_spill] sm:$0xff] %v7797_v6 }
 0x1dc   :  { %2199 = vmatpush.bf16.xpose.msra.mxu0 %v2193_v7  ;;  %11523 = vst [vmem:[#allocation22_spill] sm:$0xff] %v7784_v33 }
 0x1e2   :  { %v2162_v62 = vpop.permute.xlu0 %2161 }
 0x1e3   :  { %3019 = vperm.xlu1 %6304, %v3014_v28   ;;  %v7788_v15 = vpop.permute.xlu1 %1953 }
 0x1e4   :  { %2200 = vmatpush.bf16.xpose.msra.mxu0 %v2190_v36  ;;  %11524 = vst [vmem:[#allocation23_spill] sm:$0xff] %v7788_v15 }
 0x1eb   :  { %6212 = vmatmul.msk.bf16.gmra.mxu0 %vm744_vm1, %v7492_v42  ;;  %6306 = vset.pattern.permute.xlu1 %v7658_v13  ;;  %v2160_v20 = vpop.permute.xlu1 %2159  ;;  %v7793_v42 = vpop.permute.xlu2 %2369 }
 0x1ec   :  { %2201 = vmatpush.bf16.xpose.msra.mxu0 %v2187_v37  ;;  %11525 = vst [vmem:[#allocation24_spill] sm:$0xff] %v7793_v42 }
 0x1f4   :  { %2202 = vmatpush.bf16.xpose.msra.mxu0 %v2184_v14 }
 0x1fb   :  { %6227 = vmatmul.msk.bf16.vlgmr.msra.gmra.mxu0 %vm744_vm1, %v2156_v45 }
 0x20b   :  { %6228 = vmatmul.msk.bf16.gmra.mxu0 %vm744_vm1, %v7678_v54  ;;  %v7803_v54 = vpop.permute.xlu2 %2375 }
 0x20c   :  { %11527 = vst [vmem:[#allocation26_spill] sm:$0xff] %v7803_v54 }
 0x213   :  { %v7814_v30 = vpop.permute.xlu2 %2381 }
 0x214   :  { %11528 = vst [vmem:[#allocation27_spill] sm:$0xff] %v7814_v30 }
 0x216   :  { %v7790_v40 = vpop.f32.mrf.mxu2 }
 0x217   :  { %v798_v34 = vsel %vm577_vm0, %v7790_v40, -inf }
 0x21b   :  { %6229 = vmatmul.msk.bf16.gmra.mxu0 %vm744_vm1, %v2160_v20  ;;  %v7828_v41 = vpop.permute.xlu2 %2530 }
 0x21c   :  { %11529 = vst [vmem:[#allocation28_spill] sm:$0xff] %v7828_v41 }
 0x21e   :  { %v7795_v2 = vpop.f32.mrf.mxu2 }
 0x21f   :  { %v801_v45 = vsel %vm577_vm0, %v7795_v2, -inf }
 0x221   :  { %v7799_v61 = vpop.f32.mrf.mxu1 }
 0x222   :  { %v1230_v9 = vsel %vm577_vm0, %v7799_v61, -inf }
 0x223   :  { %1231 = vmax.xlane.f32.xlu2 %v1230_v9  ;;  %v7842_v37 = vpop.permute.xlu2 %2536 }
 0x224   :  { %11530 = vst [vmem:[#allocation29_spill] sm:$0xff] %v7842_v37 }
 0x226   :  { %v7805_v8 = vpop.f32.mrf.mxu2 }
 0x227   :  { %v804_v22 = vsel %vm577_vm0, %v7805_v8, -inf }
 0x229   :  { %v7807_v46 = vpop.f32.mrf.mxu1 }
 0x22a   :  { %v1233_v56 = vsel %vm577_vm0, %v7807_v46, -inf }
 0x22b   :  { %799 = vmax.xlane.f32.xlu2 %v798_v34  ;;  %1234 = vmax.xlane.f32.xlu0 %v1233_v56  ;;  %v7852_v56 = vpop.permute.xlu2 %2889 }
 0x22c   :  { %6230 = vmatmul.msk.bf16.gmra.mxu0 %vm744_vm1, %v2162_v62  ;;  %11531 = vst [vmem:[#allocation30_spill] sm:$0xff] %v7852_v56  ;;  %v7854_v62 = vpop.permute.xlu1 %2108 }
 0x22d   :  { %11532 = vst [vmem:[#allocation31_spill] sm:$0xff] %v7854_v62 }
 0x22e   :  { %v7824_v29 = vpop.f32.mrf.mxu2 }
 0x22f   :  { %v807_v35 = vsel %vm577_vm0, %v7824_v29, -inf }
 0x231   :  { %v7816_v51 = vpop.f32.mrf.mxu1 }
 0x232   :  { %v1236_v17 = vsel %vm577_vm0, %v7816_v51, -inf }
 0x233   :  { %802 = vmax.xlane.f32.xlu2 %v801_v45  ;;  %805 = vmax.xlane.f32.xlu0 %v804_v22 }
 0x234   :  { %1237 = vmax.xlane.f32.xlu1 %v1236_v17  ;;  %v7874_v63 = vpop.permute.xlu1 %2320 }
 0x236   :  { %v7834_v7 = vpop.f32.mrf.mxu2 }
 0x237   :  { %v810_v36 = vsel %vm577_vm0, %v7834_v7, -inf }
 0x239   :  { %v7826_v59 = vpop.f32.mrf.mxu1 }
 0x23a   :  { %v1239_v28 = vsel %vm577_vm0, %v7826_v59, -inf }
 0x23b   :  { %1240 = vmax.xlane.f32.xlu2 %v1239_v28  ;;  %v7862_v28 = vpop.permute.xlu2 %2934 }
 0x23c   :  { %808 = vmax.xlane.f32.xlu1 %v807_v35  ;;  %11533 = vst [vmem:[#allocation32_spill] sm:$0xff] %v7862_v28  ;;  %v7886_v41 = vpop.permute.xlu1 %2373 }
 0x23d   :  { %11535 = vst [vmem:[#allocation34_spill] sm:$0xff] %v7886_v41  ;;  %v7919_v41 = vld [vmem:[%s11334_s9 + $0x8] sm:$0xff] }
 0x23e   :  { %v7844_v14 = vpop.f32.mrf.mxu2  ;;  %v11351_v44 = vperm.slane %v7919_v41, 0 }
 0x23f   :  { %v813_v9 = vsel %vm577_vm0, %v7844_v14, -inf }
 0x241   :  { %v7836_v16 = vpop.f32.mrf.mxu1 }
 0x242   :  { %v1242_v53 = vsel %vm577_vm0, %v7836_v16, -inf }
 0x243   :  { %811 = vmax.xlane.f32.xlu2 %v810_v36  ;;  %1243 = vmax.xlane.f32.xlu0 %v1242_v53  ;;  %v7878_v38 = vpop.permute.xlu2 %2947 }
 0x244   :  { %11534 = vst [vmem:[#allocation33_spill] sm:$0xff] %v7878_v38  ;;  %v7896_v37 = vpop.permute.xlu1 %2379 }
 0x245   :  { %11537 = vst [vmem:[#allocation36_spill] sm:$0xff] %v7896_v37 }
 0x246   :  { %v7860_v17 = vpop.f32.mrf.mxu2 }
 0x249   :  { %v7846_v20 = vpop.f32.mrf.mxu1 }
 0x24a   :  { %v1245_v34 = vsel %vm577_vm0, %v7846_v20, -inf }
 0x24b   :  { %814 = vmax.xlane.f32.xlu2 %v813_v9  ;;  %1246 = vmax.xlane.f32.xlu1 %v1245_v34  ;;  %v816_v9 = vsel %vm577_vm0, %v7860_v17, -inf  ;;  %v7894_v38 = vpop.permute.xlu2 %2960 }
 0x24c   :  { %11536 = vst [vmem:[#allocation35_spill] sm:$0xff] %v7894_v38  ;;  %v7908_v62 = vpop.permute.xlu1 %2534 }
 0x24d   :  { %11540 = vst [vmem:[#allocation39_spill] sm:$0xff] %v7908_v62 }
 0x251   :  { %v7856_v45 = vpop.f32.mrf.mxu1 }
 0x252   :  { %v1248_v22 = vsel %vm577_vm0, %v7856_v45, -inf }
 0x253   :  { %1249 = vmax.xlane.f32.xlu2 %v1248_v22  ;;  %v7876_v22 = vpop.f32.mrf.mxu2 }
 0x254   :  { %v819_v26 = vsel %vm577_vm0, %v7876_v22, -inf }
 0x258   :  { %v7864_v35 = vpop.f32.mrf.mxu0 }
 0x259   :  { %v7866_v36 = vpop.f32.mrf.mxu1  ;;  %v1792_v53 = vsel %vm577_vm0, %v7864_v35, -inf }
 0x25a   :  { %v1251_v34 = vsel %vm577_vm0, %v7866_v36, -inf  ;;  %1793 = vmax.xlane.f32.xlu1 %v1792_v53  ;;  %v7888_v53 = vpop.permute.xlu0 %2322 }
 0x25b   :  { %817 = vmax.xlane.f32.xlu2 %v816_v9  ;;  %1252 = vmax.xlane.f32.xlu0 %v1251_v34 }
 0x260   :  { %v7880_v56 = vpop.f32.mrf.mxu0 }
 0x261   :  { %v1795_v28 = vsel %vm577_vm0, %v7880_v56, -inf }
 0x262   :  { %v7898_v21 = vpop.permute.xlu0 %2371 }
 0x263   :  { %820 = vmax.xlane.f32.xlu2 %v819_v26  ;;  %1796 = vmax.xlane.f32.xlu0 %v1795_v28  ;;  %11538 = vst [vmem:[#allocation37_spill] sm:$0xff] %v7898_v21  ;;  %v7904_v28 = vpop.permute.xlu2 %2980  ;;  %v7924_v21 = vpop.permute.xlu1 %2928 }
 0x264   :  { %11539 = vst [vmem:[#allocation38_spill] sm:$0xff] %v7904_v28 }
 0x265   :  { %11543 = vst [vmem:[#allocation42_spill] sm:$0xff] %v7924_v21 }
 0x268   :  { %v7890_v9 = vpop.f32.mrf.mxu0 }
 0x269   :  { %v1798_v34 = vsel %vm577_vm0, %v7890_v9, -inf }
 0x26a   :  { %v7910_v54 = vpop.permute.xlu0 %2377 }
 0x26b   :  { %1799 = vmax.xlane.f32.xlu2 %v1798_v34  ;;  %11541 = vst [vmem:[#allocation40_spill] sm:$0xff] %v7910_v54  ;;  %v7914_v38 = vpop.permute.xlu2 %2993  ;;  %v7934_v6 = vpop.permute.xlu1 %2941 }
 0x26c   :  { %11542 = vst [vmem:[#allocation41_spill] sm:$0xff] %v7914_v38 }
 0x26d   :  { %11546 = vst [vmem:[#allocation45_spill] sm:$0xff] %v7934_v6 }
 0x270   :  { %v7900_v18 = vpop.f32.mrf.mxu0 }
 0x271   :  { %v1801_v26 = vsel %vm577_vm0, %v7900_v18, -inf }
 0x272   :  { %1802 = vmax.xlane.f32.xlu1 %v1801_v26  ;;  %v3040_v26 = vperm.slane %v7919_v41, 1  ;;  %v7928_v42 = vpop.permute.xlu0 %2383 }
 0x273   :  { %11544 = vst [vmem:[#allocation43_spill] sm:$0xff] %v7928_v42 }
 0x278   :  { %v7906_v24 = vpop.f32.mrf.mxu0 }
 0x279   :  { %v2224_v34 = vsel %vm577_vm0, %v7906_v24, -inf }
 0x27a   :  { %2225 = vmax.xlane.f32.xlu1 %v2224_v34  ;;  %v7930_v34 = vpop.permute.xlu2 %3012  ;;  %v7936_v33 = vpop.permute.xlu0 %2532 }
 0x27b   :  { %11545 = vst [vmem:[#allocation44_spill] sm:$0xff] %v7930_v34 }
 0x27c   :  { %11547 = vst [vmem:[#allocation46_spill] sm:$0xff] %v7936_v33 }
 0x280   :  { %v7922_v28 = vpop.f32.mrf.mxu0 }
 0x281   :  { %v2227_v62 = vsel %vm577_vm0, %v7922_v28, -inf }
 0x282   :  { %2228 = vmax.xlane.f32.xlu0 %v2227_v62  ;;  %v7938_v0 = vpop.permute.xlu2 %3025  ;;  %v7945_v62 = vpop.permute.xlu1 %2954 }
 0x283   :  { %3045 = vperm.xlu2 %6307, %v3040_v26   ;;  %11548 = vst [vmem:[#allocation47_spill] sm:$0xff] %v7938_v0  ;;  %v7947_v54 = vpop.permute.xlu0 %2895 }
 0x284   :  { %11549 = vst [vmem:[#allocation48_spill] sm:$0xff] %v7945_v62 }
 0x285   :  { %11550 = vst [vmem:[#allocation49_spill] sm:$0xff] %v7947_v54 }
 0x288   :  { %v7932_v38 = vpop.f32.mrf.mxu0 }
 0x28a   :  { %v7953_v0 = vpop.permute.xlu1 %2973 }
 0x28b   :  { %11552 = vst [vmem:[#allocation51_spill] sm:$0xff] %v7953_v0  ;;  %v7955_v27 = vpop.permute.xlu0 %2999 }
 0x28c   :  { %11553 = vst [vmem:[#allocation52_spill] sm:$0xff] %v7955_v27 }
 0x290   :  { %v7941_v21 = vpop.f32.mrf.mxu0 }
 0x292   :  { %v7959_v54 = vpop.permute.xlu1 %2986 }
 0x293   :  { %3038 = vperm.xlu1 %6306, %v11351_v44   ;;  %11554 = vst [vmem:[#allocation53_spill] sm:$0xff] %v7959_v54 }
 0x296   :  { %v1232_v34 = vpop.xlane.xlu2 %1231 }
 0x298   :  { %v7949_v37 = vpop.f32.mrf.mxu0 }
 0x299   :  { %11551 = vst [vmem:[#allocation50_spill] sm:$0xff] %v7949_v37  ;;  %v2236_v6 = vsel %vm577_vm0, %v7949_v37, -inf }
 0x29a   :  { %2237 = vmax.xlane.f32.xlu0 %v2236_v6  ;;  %v3053_v6 = vperm.slane %v7919_v41, 2  ;;  %v7965_v27 = vpop.permute.xlu1 %3006 }
 0x29b   :  { %3051 = vperm.xlu1 %6306, %v3040_v26   ;;  %v2230_v26 = vsel %vm577_vm0, %v7932_v38, -inf  ;;  %11555 = vst [vmem:[#allocation54_spill] sm:$0xff] %v7965_v27 }
 0x29e   :  { %v800_v33 = vpop.xlane.xlu2 %799  ;;  %v1235_v19 = vpop.xlane.xlu0 %1234 }
 0x29f   :  { %v822_v30 = vsub.f32 %v7790_v40, %v800_v33  ;;  %v1255_v42 = vsub.f32 %v7807_v46, %v1235_v19 }
 0x2a0   :  { %v7983_v57 = vpop.f32.mrf.mxu0 }
 0x2a1   :  { %v830_v44 = vmul.f32 1.442695, %v822_v30  ;;  %v1264_v0 = vmul.f32 1.442695, %v1255_v42 }
 0x2a2   :  { %v7975_v46 = vpop.permute.xlu1 %3019 }
 0x2a3   :  { %6308 = vset.pattern.permute.xlu1 %v7633_v1  ;;  %6499 = vpow2.f32 %v830_v44  ;;  %11556 = vst [vmem:[#allocation55_spill] sm:$0xff] %v7975_v46  ;;  %v2239_v46 = vsel %vm577_vm0, %v7983_v57, -inf }
 0x2a4   :  { %6501 = vpow2.f32 %v1264_v0 }
 0x2a6   :  { %v803_v62 = vpop.xlane.xlu2 %802 }
 0x2a7   :  { %v823_v42 = vsub.f32 %v7795_v2, %v803_v62  ;;  %v2233_v2 = vsel %vm577_vm0, %v7941_v21, -inf }
 0x2a9   :  { %v7969_v40 = vpop.eup %6499  ;;  %v832_v54 = vmul.f32 1.442695, %v823_v42  ;;  %v806_v42 = vpop.xlane.xlu0 %805 }
 0x2aa   :  { %v846_v44 = vsel %vm577_vm0, %v7969_v40, 0.0  ;;  %v7973_v19 = vpop.eup %6501 }
 0x2ab   :  { %v1281_v27 = vsel %vm577_vm0, %v7973_v19, 0.0  ;;  %6503 = vpow2.f32 %v832_v54 }
 0x2ac   :  { %2231 = vmax.xlane.f32.xlu2 %v2230_v26  ;;  %v1254_v26 = vsub.f32 %v7799_v61, %v1232_v34 }
 0x2ae   :  { %3064 = vperm.xlu0 %6299, %v3053_v6   ;;  %v7967_v33 = vpop.xlane.xlu2 %1240  ;;  %v1262_v0 = vmul.f32 1.442695, %v1254_v26 }
 0x2b0   :  { %6505 = vpow2.f32 %v1262_v0  ;;  %v824_v0 = vsub.f32 %v7805_v8, %v806_v42 }
 0x2b1   :  { %v7990_v34 = vpop.eup %6503 }
 0x2b2   :  { %v849_v54 = vsel %vm577_vm0, %v7990_v34, 0.0 }
 0x2b4   :  { %847 = vadd.xlane.f32.xlu2 %v846_v44  ;;  %v1238_v44 = vpop.xlane.xlu1 %1237 }
 0x2b5   :  { %v1256_v61 = vsub.f32 %v7816_v51, %v1238_v44  ;;  %v834_v51 = vmul.f32 1.442695, %v824_v0  ;;  %v3066_v0 = vperm.slane %v7919_v41, 3 }
 0x2b6   :  { %v7977_v30 = vpop.xlane.xlu2 %811 }
 0x2b7   :  { %v1266_v62 = vmul.f32 1.442695, %v1256_v61 }
 0x2b9   :  { %6507 = vpow2.f32 %v1266_v62 }
 0x2ba   :  { %6509 = vpow2.f32 %v834_v51 }
 0x2bc   :  { %1282 = vadd.xlane.f32.xlu2 %v1281_v27  ;;  %v7992_v27 = vpop.eup %6505  ;;  %v809_v44 = vpop.xlane.xlu1 %808 }
 0x2bd   :  { %v1278_v26 = vsel %vm577_vm0, %v7992_v27, 0.0 }
 0x2be   :  { %v815_v43 = vpop.xlane.xlu2 %814 }
 0x2c4   :  { %2240 = vmax.xlane.f32.xlu2 %v2239_v46  ;;  %v1247_v23 = vpop.xlane.xlu1 %1246 }
 0x2c5   :  { %2234 = vmax.xlane.f32.xlu1 %v2233_v2  ;;  %v8001_v2 = vpop.eup %6507  ;;  %v1259_v62 = vsub.f32 %v7846_v20, %v1247_v23 }
 0x2c6   :  { %v7998_v46 = vpop.xlane.xlu2 %1249  ;;  %v1284_v52 = vsel %vm577_vm0, %v8001_v2, 0.0  ;;  %v8009_v50 = vpop.eup %6509 }
 0x2c7   :  { %v852_v8 = vsel %vm577_vm0, %v8009_v50, 0.0 }
 0x2cc   :  { %850 = vadd.xlane.f32.xlu2 %v849_v54  ;;  %v8007_v54 = vpop.f32.mrf.mxu0 }
 0x2cd   :  { %1279 = vadd.xlane.f32.xlu1 %v1278_v26  ;;  %11557 = vst [vmem:[#allocation56_spill] sm:$0xff] %v8007_v54  ;;  %v1272_v26 = vmul.f32 1.442695, %v1259_v62 }
 0x2ce   :  { %v8003_v61 = vpop.xlane.xlu2 %817 }
 0x2cf   :  { %6511 = vpow2.f32 %v1272_v26 }
 0x2d4   :  { %v8017_v51 = vpop.f32.mrf.mxu0 }
 0x2d5   :  { %11558 = vst [vmem:[#allocation57_spill] sm:$0xff] %v8017_v51  ;;  %v2245_v15 = vsel %vm577_vm0, %v8017_v51, -inf  ;;  %v8022_v37 = vpop.eup %6511 }
 0x2d6   :  { %v8014_v42 = vpop.xlane.xlu2 %820 }
 0x2d8   :  { %1285 = vadd.xlane.f32.xlu0 %v1284_v52  ;;  %v827_v52 = vsub.f32 %v7844_v14, %v815_v43 }
 0x2da   :  { %v840_v23 = vmul.f32 1.442695, %v827_v52 }
 0x2dc   :  { %6513 = vpow2.f32 %v840_v23 }
 0x2de   :  { %v1800_v20 = vpop.xlane.xlu2 %1799 }
 0x2df   :  { %v1818_v62 = vsub.f32 %v7890_v9, %v1800_v20  ;;  %v826_v20 = vsub.f32 %v7834_v7, %v7977_v30  ;;  %v2242_v7 = vsel %vm577_vm0, %v8007_v54, -inf }
 0x2e0   :  { %853 = vadd.xlane.f32.xlu0 %v852_v8  ;;  %v1244_v8 = vpop.xlane.xlu0 %1243 }
 0x2e1   :  { %v1828_v43 = vmul.f32 1.442695, %v1818_v62  ;;  %v1258_v26 = vsub.f32 %v7836_v16, %v1244_v8  ;;  %v1257_v62 = vsub.f32 %v7826_v59, %v7967_v33  ;;  %v8043_v16 = vpop.xlane.xlu1 %1793  ;;  %v11361_v59 = vperm.slane %v7919_v41, 7 }
 0x2e2   :  { %v8028_v14 = vpop.eup %6513 }
 0x2e3   :  { %6515 = vpow2.f32 %v1828_v43  ;;  %v1270_v23 = vmul.f32 1.442695, %v1258_v26  ;;  %v825_v26 = vsub.f32 %v7824_v29, %v809_v44 }
 0x2e4   :  { %3058 = vperm.xlu2 %6307, %v3053_v6   ;;  %v1293_v6 = vsel %vm577_vm0, %v8022_v37, 0.0 }
 0x2e5   :  { %6517 = vpow2.f32 %v1270_v23  ;;  %v836_v30 = vmul.f32 1.442695, %v825_v26 }
 0x2e6   :  { %3071 = vperm.xlu1 %6308, %v3066_v0   ;;  %v8061_v44 = vpop.permute.xlu2 %3045 }
 0x2e7   :  { %11559 = vst [vmem:[#allocation58_spill] sm:$0xff] %v8061_v44 }
 0x2e8   :  { %2246 = vmax.xlane.f32.xlu0 %v2245_v15  ;;  %v861_v15 = vsel %vm577_vm0, %v8028_v14, 0.0 }
 0x2e9   :  { %v8033_v52 = vpop.eup %6515 }
 0x2ea   :  { %v1846_v9 = vsel %vm577_vm0, %v8033_v52, 0.0 }
 0x2eb   :  { %v8041_v43 = vpop.eup %6517 }
 0x2ec   :  { %6309 = vset.pattern.permute.xlu2 %v7658_v13  ;;  %v1290_v8 = vsel %vm577_vm0, %v8041_v43, 0.0 }
 0x2f0   :  { %1294 = vadd.xlane.f32.xlu0 %v1293_v6  ;;  %v838_v6 = vmul.f32 1.442695, %v826_v20 }
 0x2f2   :  { %6519 = vpow2.f32 %v838_v6 }
 0x2f8   :  { %862 = vadd.xlane.f32.xlu0 %v861_v15  ;;  %v1268_v15 = vmul.f32 1.442695, %v1257_v62  ;;  %v8051_v33 = vpop.eup %6519 }
 0x2f9   :  { %v858_v29 = vsel %vm577_vm0, %v8051_v33, 0.0 }
 0x2fa   :  { %6521 = vpow2.f32 %v1268_v15 }
 0x2fb   :  { %6523 = vpow2.f32 %v836_v30 }
 0x300   :  { %1847 = vadd.xlane.f32.xlu0 %v1846_v9  ;;  %v8053_v23 = vpop.eup %6521  ;;  %v8055_v9 = vpop.xlane.xlu1 %1802 }
 0x301   :  { %v1287_v20 = vsel %vm577_vm0, %v8053_v23, 0.0  ;;  %v8065_v62 = vpop.eup %6523 }
 0x308   :  { %v8067_v6 = vpop.xlane.xlu1 %2225 }
 0x30d   :  { %1291 = vadd.xlane.f32.xlu2 %v1290_v8  ;;  %v855_v8 = vsel %vm577_vm0, %v8065_v62, 0.0 }
 0x310   :  { %2243 = vmax.xlane.f32.xlu1 %v2242_v7  ;;  %v8071_v26 = vpop.permute.xlu1 %3038 }
 0x311   :  { %11560 = vst [vmem:[#allocation59_spill] sm:$0xff] %v8071_v26 }
 0x314   :  { %3129 = vperm.xlu0 %6299, %v11361_v59  }
 0x315   :  { %859 = vadd.xlane.f32.xlu2 %v858_v29 }
 0x318   :  { %1288 = vadd.xlane.f32.xlu1 %v1287_v20  ;;  %v8074_v44 = vpop.permute.xlu1 %3051  ;;  %v11366_v20 = vperm.slane %v7919_v41, 4 }
 0x319   :  { %11561 = vst [vmem:[#allocation60_spill] sm:$0xff] %v8074_v44 }
 0x31f   :  { %v2232_v15 = vpop.xlane.xlu2 %2231 }
 0x320   :  { %856 = vadd.xlane.f32.xlu1 %v855_v8  ;;  %v2250_v30 = vsub.f32 %v7932_v38, %v2232_v15  ;;  %v1253_v15 = vpop.xlane.xlu0 %1252 }
 0x322   :  { %v2260_v59 = vmul.f32 1.442695, %v2250_v30  ;;  %v1261_v30 = vsub.f32 %v7866_v36, %v1253_v15  ;;  %v1413_v36 = vsel %vm744_vm1, %v7691_v58, 0  ;;  %v829_v15 = vsub.f32 %v7876_v22, %v8014_v42  ;;  %v8113_v22 = vld [vmem:[%s11334_s9 + $0x10] sm:$0xff]  ;;  %v8135_v42 = vld [vmem:[%s11334_s9 + $0x18] sm:$0xff] }
 0x323   :  { %v1410_v58 = vsel %vm744_vm1, %v7624_v60, 0 }
 0x324   :  { %6525 = vpow2.f32 %v2260_v59 }
 0x327   :  { %v848_v7 = vpop.xlane.xlu2 %847 }
 0x328   :  { %v8121_v60 = vpop.xlane.xlu0 %1796 }
 0x32a   :  { %v8082_v8 = vpop.eup %6525 }
 0x32b   :  { %11562 = vst [vmem:[#allocation61_spill] sm:$0xff] %v8082_v8  ;;  %v2278_v38 = vsel %vm577_vm0, %v8082_v8, 0.0 }
 0x32d   :  { %3077 = vperm.xlu2 %6309, %v3066_v0  }
 0x32f   :  { %v1283_v29 = vpop.xlane.xlu2 %1282 }
 0x337   :  { %v2241_v51 = vpop.xlane.xlu2 %2240 }
 0x338   :  { %v2253_v54 = vsub.f32 %v7983_v57, %v2241_v51  ;;  %v8078_v10 = vpop.xlane.xlu1 %2234 }
 0x339   :  { %3084 = vperm.xlu1 %6308, %v11366_v20  }
 0x33a   :  { %v2266_v26 = vmul.f32 1.442695, %v2253_v54 }
 0x33c   :  { %6527 = vpow2.f32 %v2266_v26 }
 0x33d   :  { %6529 = vrcp.f32 %v848_v7 }
 0x33e   :  { %2279 = vadd.xlane.f32.xlu0 %v2278_v38  ;;  %6531 = vrcp.f32 %v1283_v29 }
 0x33f   :  { %v851_v0 = vpop.xlane.xlu2 %850 }
 0x340   :  { %6533 = vrcp.f32 %v851_v0  ;;  %v1280_v59 = vpop.xlane.xlu1 %1279  ;;  %v1276_v0 = vmul.f32 1.442695, %v1261_v30  ;;  %v3313_v30 = vperm.slane %v8135_v42, 6 }
 0x341   :  { %6535 = vrcp.f32 %v1280_v59  ;;  %6310 = vset.pattern.permute.xlu1 %v7658_v13 }
 0x342   :  { %v8087_v57 = vpop.eup %6527  ;;  %6537 = vpow2.f32 %v1276_v0  ;;  %v8176_v0 = vld [vmem:[%s11334_s9 + $0x28] sm:$0xff] }
 0x343   :  { %v6530_v51 = vpop.eup %6529  ;;  %v2287_v26 = vsel %vm577_vm0, %v8087_v57, 0.0 }
 0x344   :  { %v6532_v54 = vpop.eup %6531  ;;  %v878_v29 = vmul.f32 %v6530_v51, %v7969_v40  ;;  %v844_v40 = vmul.f32 1.442695, %v829_v15 }
 0x345   :  { %v1311_v59 = vmul.f32 %v6532_v54, %v7973_v19  ;;  %v1260_v19 = vsub.f32 %v7856_v45, %v7998_v46  ;;  %v3183_v45 = vperm.slane %v8113_v22, 4  ;;  %v828_v46 = vsub.f32 %v7860_v17, %v8003_v61 }
 0x346   :  { %v6534_v20 = vpop.eup %6533  ;;  %2288 = vadd.xlane.f32.xlu0 %v2287_v26  ;;  %6539 = vpow2.f32 %v844_v40  ;;  %v11565_v40 = vperm.slane %v7919_v41, 4 }
 0x347   :  { %v6536_v7 = vpop.eup %6535  ;;  %v879_v38 = vmul.f32 %v6534_v20, %v7990_v34 }
 0x348   :  { %v1310_v44 = vmul.f32 %v6536_v7, %v7992_v27  ;;  %v8106_v34 = vpop.eup %6537 }
 0x349   :  { %v886_v8 = vpack.c.bf16 %v879_v38, %v878_v29 }
 0x34a   :  { %v1318_v39 = vpack.c.bf16 %v1311_v59, %v1310_v44  ;;  %v8142_v44 = vpop.xlane.xlu0 %2228  ;;  %v11370_v59 = vperm.slane %v8176_v0, 0 }
 0x34b   :  { %6183 = vmatmul.msk.bf16.vlgmr.msra.gmra.mxu3 %vm577_vm0, %v886_v8  ;;  %v1404_v8 = vsel %vm744_vm1, %v7568_v32, 0  ;;  %v8166_v32 = vld [vmem:[%s11334_s9 + $0x20] sm:$0xff] }
 0x34c   :  { %1419 = vmatpush.bf16.xpose.msra.mxu3 %v1413_v36  ;;  %6199 = vmatmul.msk.bf16.vlgmr.msra.gmra.mxu1 %vm577_vm0, %v1318_v39  ;;  %v1816_v39 = vsub.f32 %v7864_v35, %v8043_v16  ;;  %v8126_v35 = vpop.eup %6539  ;;  %v842_v16 = vmul.f32 1.442695, %v828_v46  ;;  %v11371_v29 = vperm.slane %v8166_v32, 3 }
 0x34d   :  { %2344 = vmatpush.bf16.msra.mxu1 %v7888_v53  ;;  %v1274_v53 = vmul.f32 1.442695, %v1260_v19  ;;  %v867_v17 = vsel %vm577_vm0, %v8126_v35, 0.0  ;;  %v11369_v19 = vperm.slane %v7919_v41, 5 }
 0x34e   :  { %v1824_v27 = vmul.f32 1.442695, %v1816_v39 }
 0x34f   :  { %6541 = vpow2.f32 %v1274_v53  ;;  %v8191_v53 = vpop.permute.xlu2 %3058 }
 0x350   :  { %6543 = vpow2.f32 %v1824_v27  ;;  %11566 = vst [vmem:[#allocation64_spill] sm:$0xff] %v8191_v53 }
 0x351   :  { %2345 = vmatpush.bf16.msra.mxu1 %v7874_v63  ;;  %v1299_v63 = vsel %vm577_vm0, %v8106_v34, 0.0  ;;  %6545 = vpow2.f32 %v842_v16 }
 0x352   :  { %v8157_v26 = vpop.xlane.xlu0 %2237 }
 0x354   :  { %1420 = vmatpush.bf16.xpose.msra.mxu3 %v1410_v58 }
 0x355   :  { %2346 = vmatpush.bf16.msra.mxu1 %v7689_v5  ;;  %v1407_v5 = vsel %vm744_vm1, %v7502_v55, 0  ;;  %v8140_v61 = vpop.eup %6541 }
 0x356   :  { %1300 = vadd.xlane.f32.xlu2 %v1299_v63  ;;  %v8144_v55 = vpop.eup %6543  ;;  %v1296_v20 = vsel %vm577_vm0, %v8140_v61, 0.0  ;;  %v3105_v63 = vperm.slane %v7919_v41, 6 }
 0x357   :  { %v1840_v51 = vsel %vm577_vm0, %v8144_v55, 0.0  ;;  %v8155_v54 = vpop.eup %6545 }
 0x358   :  { %v864_v7 = vsel %vm577_vm0, %v8155_v54, 0.0  ;;  %v8181_v15 = vpop.permute.xlu1 %3071 }
 0x359   :  { %2347 = vmatpush.bf16.msra.mxu1 %v7727_v3  ;;  %v3248_v3 = vperm.slane %v8135_v42, 1  ;;  %11564 = vst [vmem:[#allocation63_spill] sm:$0xff] %v8181_v15 }
 0x35a   :  { %3194 = vperm.xlu0 %6299, %v3183_v45   ;;  %v8169_v38 = vpop.permute.xlu0 %3064 }
 0x35b   :  { %11563 = vst [vmem:[#allocation62_spill] sm:$0xff] %v8169_v38 }
 0x35c   :  { %1421 = vmatpush.bf16.xpose.msra.mxu3 %v1407_v5 }
 0x35e   :  { %868 = vadd.xlane.f32.xlu2 %v867_v17 }
 0x362   :  { %3259 = vperm.xlu0 %6299, %v3248_v3   ;;  %v1286_v36 = vpop.xlane.xlu0 %1285 }
 0x363   :  { %1297 = vadd.xlane.f32.xlu1 %v1296_v20  ;;  %6547 = vrcp.f32 %v1286_v36 }
 0x364   :  { %1422 = vmatpush.bf16.xpose.msra.mxu3 %v1404_v8 }
 0x366   :  { %1841 = vadd.xlane.f32.xlu2 %v1840_v51 }
 0x369   :  { %v6548_v5 = vpop.eup %6547 }
 0x36a   :  { %3324 = vperm.xlu0 %6299, %v3313_v30   ;;  %v854_v58 = vpop.xlane.xlu0 %853  ;;  %v1312_v8 = vmul.f32 %v6548_v5, %v8001_v2 }
 0x36b   :  { %865 = vadd.xlane.f32.xlu1 %v864_v7 }
 0x372   :  { %3389 = vperm.xlu0 %6299, %v11371_v29   ;;  %v8194_v27 = vpop.xlane.xlu0 %2246 }
 0x37a   :  { %3454 = vperm.xlu0 %6299, %v11370_v59   ;;  %v1295_v7 = vpop.xlane.xlu0 %1294 }
 0x37e   :  { %3090 = vperm.xlu2 %6309, %v11565_v40  }
 0x380   :  { %v1292_v17 = vpop.xlane.xlu2 %1291 }
 0x383   :  { %v8186_v39 = vpop.xlane.xlu1 %2243 }
 0x384   :  { %3103 = vperm.xlu1 %6310, %v11369_v19  }
 0x386   :  { %6311 = vset.pattern.permute.xlu2 %v7633_v1 }
 0x388   :  { %v860_v29 = vpop.xlane.xlu2 %859 }
 0x38b   :  { %v1289_v46 = vpop.xlane.xlu1 %1288 }
 0x38c   :  { %6549 = vrcp.f32 %v1289_v46 }
 0x38d   :  { %6551 = vrcp.f32 %v854_v58  ;;  %v1817_v58 = vsub.f32 %v7880_v56, %v8121_v60 }
 0x38e   :  { %3110 = vperm.xlu2 %6311, %v3105_v63  }
 0x392   :  { %v6550_v16 = vpop.eup %6549 }
 0x393   :  { %v857_v20 = vpop.xlane.xlu1 %856  ;;  %v1313_v51 = vmul.f32 %v6550_v16, %v8053_v23  ;;  %v6552_v36 = vpop.eup %6551 }
 0x394   :  { %6553 = vrcp.f32 %v857_v20  ;;  %v880_v46 = vmul.f32 %v6552_v36, %v8009_v50  ;;  %v863_v23 = vpop.xlane.xlu0 %862  ;;  %v1826_v20 = vmul.f32 1.442695, %v1817_v58  ;;  %v1819_v50 = vsub.f32 %v7900_v18, %v8055_v9 }
 0x395   :  { %v1319_v40 = vpack.c.bf16 %v1313_v51, %v1312_v8  ;;  %6555 = vrcp.f32 %v1292_v17 }
 0x396   :  { %6557 = vrcp.f32 %v1295_v7 }
 0x397   :  { %6200 = vmatmul.msk.bf16.gmra.mxu1 %vm577_vm0, %v1319_v40  ;;  %6559 = vrcp.f32 %v860_v29 }
 0x398   :  { %6561 = vrcp.f32 %v863_v23 }
 0x399   :  { %6563 = vpow2.f32 %v1826_v20 }
 0x39a   :  { %v6554_v19 = vpop.eup %6553 }
 0x39b   :  { %v881_v59 = vmul.f32 %v6554_v19, %v8065_v62  ;;  %v6556_v5 = vpop.eup %6555 }
 0x39c   :  { %v6558_v16 = vpop.eup %6557  ;;  %v1314_v17 = vmul.f32 %v6556_v5, %v8041_v43 }
 0x39d   :  { %v887_v2 = vpack.c.bf16 %v881_v59, %v880_v46  ;;  %v1315_v8 = vmul.f32 %v6558_v16, %v8022_v37  ;;  %v6560_v56 = vpop.eup %6559  ;;  %v1830_v59 = vmul.f32 1.442695, %v1819_v50  ;;  %v2248_v37 = vsub.f32 %v7906_v24, %v8067_v6  ;;  %v8226_v6 = vpop.permute.xlu2 %3077 }
 0x39e   :  { %v6562_v60 = vpop.eup %6561  ;;  %v882_v19 = vmul.f32 %v6560_v56, %v8051_v33  ;;  %11567 = vst [vmem:[#allocation65_spill] sm:$0xff] %v8226_v6  ;;  %v3131_v46 = vperm.slane %v8113_v22, 0 }
 0x39f   :  { %6184 = vmatmul.msk.bf16.gmra.mxu3 %vm577_vm0, %v887_v2  ;;  %v1320_v62 = vpack.c.bf16 %v1315_v8, %v1314_v17  ;;  %v8210_v51 = vpop.eup %6563  ;;  %v883_v29 = vmul.f32 %v6562_v60, %v8028_v14  ;;  %6565 = vpow2.f32 %v1830_v59  ;;  %v2256_v9 = vmul.f32 1.442695, %v2248_v37 }
 0x3a0   :  { %v1843_v43 = vsel %vm577_vm0, %v8210_v51, 0.0  ;;  %v11569_v2 = vperm.slane %v7919_v41, 7 }
 0x3a1   :  { %v888_v18 = vpack.c.bf16 %v883_v29, %v882_v19  ;;  %6567 = vpow2.f32 %v2256_v9 }
 0x3a5   :  { %v8218_v7 = vpop.eup %6565 }
 0x3a6   :  { %v1849_v33 = vsel %vm577_vm0, %v8218_v7, 0.0 }
 0x3a7   :  { %6201 = vmatmul.msk.bf16.gmra.mxu1 %vm577_vm0, %v1320_v62  ;;  %v8222_v14 = vpop.eup %6567 }
 0x3a8   :  { %v2272_v24 = vsel %vm577_vm0, %v8222_v14, 0.0 }
 0x3ab   :  { %v8228_v40 = vpop.permute.xlu1 %3084 }
 0x3ac   :  { %11568 = vst [vmem:[#allocation66_spill] sm:$0xff] %v8228_v40 }
 0x3ae   :  { %1844 = vadd.xlane.f32.xlu1 %v1843_v43 }
 0x3af   :  { %6185 = vmatmul.msk.bf16.gmra.mxu3 %vm577_vm0, %v888_v18  ;;  %v11375_v18 = vperm.slane %v8113_v22, 2 }
 0x3b7   :  { %1850 = vadd.xlane.f32.xlu2 %v1849_v33 }
 0x3bf   :  { %2273 = vadd.xlane.f32.xlu2 %v2272_v24  ;;  %v3170_v24 = vperm.slane %v8113_v22, 3 }
 0x3c7   :  { %3116 = vperm.xlu1 %6310, %v3105_v63   ;;  %v3144_v63 = vperm.slane %v8113_v22, 1 }
 0x3c9   :  { %v1301_v36 = vpop.xlane.xlu2 %1300  ;;  %v8250_v29 = vpop.f32.mrf.mxu1 }
 0x3ca   :  { %6569 = vrcp.f32 %v1301_v36 }
 0x3cf   :  { %6312 = vset.pattern.permute.xlu1 %v7633_v1 }
 0x3d0   :  { %v6570_v23 = vpop.eup %6569 }
 0x3d1   :  { %v869_v5 = vpop.xlane.xlu2 %868  ;;  %v1317_v20 = vmul.f32 %v6570_v23, %v8106_v34 }
 0x3d6   :  { %v1298_v58 = vpop.xlane.xlu1 %1297 }
 0x3d7   :  { %6571 = vrcp.f32 %v1298_v58  ;;  %3123 = vperm.xlu2 %6311, %v11569_v2   ;;  %3136 = vperm.xlu1 %6312, %v3131_v46  }
 0x3d8   :  { %6573 = vrcp.f32 %v869_v5  ;;  %v1848_v5 = vpop.xlane.xlu0 %1847 }
 0x3dd   :  { %v6572_v16 = vpop.eup %6571 }
 0x3de   :  { %v1316_v17 = vmul.f32 %v6572_v16, %v8140_v61  ;;  %v866_v8 = vpop.xlane.xlu1 %865  ;;  %v6574_v62 = vpop.eup %6573  ;;  %v2249_v61 = vsub.f32 %v7922_v28, %v8142_v44  ;;  %v11574_v16 = vld [vmem:[#allocation20_spill] sm:$0xff] }
 0x3df   :  { %6575 = vrcp.f32 %v866_v8  ;;  %6313 = vset.pattern.permute.xlu2 %v7658_v13  ;;  %3149 = vperm.xlu1 %6312, %v3144_v63   ;;  %v885_v59 = vmul.f32 %v6574_v62, %v8126_v35  ;;  %v11577_v62 = vld [vmem:[#allocation50_spill] sm:$0xff] }
 0x3e0   :  { %v1321_v50 = vpack.c.bf16 %v1317_v20, %v1316_v17  ;;  %v2258_v19 = vmul.f32 1.442695, %v2249_v61  ;;  %v1979_v20 = vsel %vm744_vm1, %v11574_v16, 0  ;;  %v11575_v17 = vld [vmem:[#allocation5_spill] sm:$0xff]  ;;  %v11581_v61 = vld [vmem:[#allocation18_spill] sm:$0xff]  ;;  %v11594_v16 = vld [vmem:[#allocation27_spill] sm:$0xff] }
 0x3e2   :  { %6202 = vmatmul.msk.bf16.gmra.mxu1 %vm577_vm0, %v1321_v50  ;;  %6577 = vpow2.f32 %v2258_v19  ;;  %v1973_v19 = vsel %vm744_vm1, %v11581_v61, 0 }
 0x3e5   :  { %v6576_v56 = vpop.eup %6575 }
 0x3e6   :  { %v884_v60 = vmul.f32 %v6576_v56, %v8155_v54  ;;  %v2251_v54 = vsub.f32 %v7941_v21, %v8078_v10  ;;  %v8262_v10 = vpop.f32.mrf.mxu1  ;;  %v2252_v56 = vsub.f32 %v11577_v62, %v8157_v26 }
 0x3e7   :  { %3142 = vperm.xlu2 %6313, %v3131_v46   ;;  %6314 = vset.pattern.permute.xlu1 %v7658_v13 }
 0x3e8   :  { %v889_v34 = vpack.c.bf16 %v885_v59, %v884_v60  ;;  %v2262_v35 = vmul.f32 1.442695, %v2251_v54  ;;  %v8253_v37 = vpop.eup %6577  ;;  %v11578_v60 = vld [vmem:[#allocation23_spill] sm:$0xff]  ;;  %v11582_v54 = vld [vmem:[#allocation56_spill] sm:$0xff] }
 0x3e9   :  { %v2275_v28 = vsel %vm577_vm0, %v8253_v37, 0.0 }
 0x3ea   :  { %6186 = vmatmul.msk.bf16.gmra.mxu3 %vm577_vm0, %v889_v34  ;;  %6579 = vpow2.f32 %v2262_v35  ;;  %v11580_v34 = vld [vmem:[#allocation9_spill] sm:$0xff]  ;;  %v2254_v35 = vsub.f32 %v11582_v54, %v8186_v39 }
 0x3f6   :  { %v8269_v43 = vpop.permute.xlu1 %3103 }
 0x3f7   :  { %11571 = vst [vmem:[#allocation68_spill] sm:$0xff] %v8269_v43 }
 0x3fa   :  { %6187 = vmatmul.msk.bf16.vlgmr.msrb.gmra.mxu3 %vm744_vm1, %v7524_v4  ;;  %v8260_v4 = vpop.eup %6579 }
 0x3fb   :  { %6283 = vmatpush.bf16.xpose.msrb.mxu3 %v7705_v12  ;;  %v1842_v12 = vpop.xlane.xlu2 %1841  ;;  %v2281_v21 = vsel %vm577_vm0, %v8260_v4, 0.0 }
 0x3fc   :  { %6581 = vrcp.f32 %v1842_v12  ;;  %v11584_v12 = vld [vmem:[#allocation10_spill] sm:$0xff] }
 0x402   :  { %v6582_v33 = vpop.eup %6581 }
 0x403   :  { %6284 = vmatpush.bf16.xpose.msrb.mxu3 %v7746_v49  ;;  %v8267_v44 = vpop.permute.xlu2 %3090 }
 0x404   :  { %11570 = vst [vmem:[#allocation67_spill] sm:$0xff] %v8267_v44  ;;  %v3469_v44 = vperm.slane %v8176_v0, 2 }
 0x409   :  { %2276 = vadd.xlane.f32.xlu1 %v2275_v28 }
 0x40a   :  { %6188 = vmatmul.msk.bf16.gmra.mxu3 %vm744_vm1, %v7566_v31 }
 0x40b   :  { %6285 = vmatpush.bf16.xpose.msrb.mxu3 %v7758_v25 }
 0x410   :  { %2282 = vadd.xlane.f32.xlu2 %v2281_v21  ;;  %v1970_v21 = vsel %vm744_vm1, %v11584_v12, 0 }
 0x413   :  { %6286 = vmatpush.bf16.xpose.msrb.mxu3 %v7766_v48  ;;  %v8277_v48 = vpop.permute.xlu2 %3110 }
 0x414   :  { %v1360_v49 = vpop.f32.mrf.mxu1  ;;  %11572 = vst [vmem:[#allocation69_spill] sm:$0xff] %v8277_v48 }
 0x41a   :  { %6189 = vmatmul.msk.bf16.gmra.mxu3 %vm744_vm1, %v7536_v47  ;;  %v1872_v47 = vmul.f32 %v6582_v33, %v8144_v55 }
 0x41c   :  { %v1362_v31 = vpop.f32.mrf.mxu1 }
 0x41d   :  { %v6339_v25 = vpack.i.bf16 %v1362_v31, %v1360_v49  ;;  %v2268_v49 = vmul.f32 1.442695, %v2254_v35  ;;  %v11599_v35 = vld [vmem:[#allocation16_spill] sm:$0xff] }
 0x41f   :  { %6340 = vrot.lane.b32.xlu0 %v6339_v25, %s6833_s25  ;;  %v11585_v25 = vld [vmem:[#allocation8_spill] sm:$0xff] }
 0x421   :  { %v1845_v9 = vpop.xlane.xlu1 %1844 }
 0x422   :  { %6583 = vrcp.f32 %v1845_v9  ;;  %3168 = vperm.xlu1 %6314, %v11375_v18   ;;  %v11616_v18 = vperm.slane %v8176_v0, 0 }
 0x428   :  { %v6584_v36 = vpop.eup %6583  ;;  %3155 = vperm.xlu2 %6313, %v3144_v63   ;;  %v8287_v63 = vpop.f32.mrf.mxu3 }
 0x429   :  { %v1873_v46 = vmul.f32 %v6584_v36, %v8210_v51  ;;  %11573 = vst [vmem:[#allocation70_spill] sm:$0xff] %v8287_v63  ;;  %v3196_v36 = vperm.slane %v8113_v22, 5 }
 0x42a   :  { %3181 = vperm.xlu1 %6314, %v3170_v24   ;;  %6190 = vmatmul.msk.bf16.gmra.mxu3 %vm744_vm1, %v7648_v11  ;;  %v1851_v2 = vpop.xlane.xlu2 %1850 }
 0x42b   :  { %v1880_v58 = vpack.c.bf16 %v1873_v46, %v1872_v47  ;;  %6585 = vrcp.f32 %v1851_v2  ;;  %v11589_v47 = vld [vmem:[#allocation17_spill] sm:$0xff] }
 0x42c   :  { %6587 = vrcp.f32 %v1848_v5  ;;  %v11592_v5 = vld [vmem:[#allocation43_spill] sm:$0xff] }
 0x42d   :  { %6215 = vmatmul.msk.bf16.vlgmr.msrb.gmra.mxu1 %vm577_vm0, %v1880_v58  ;;  %v3209_v58 = vperm.slane %v8113_v22, 6 }
 0x430   :  { %6315 = vset.pattern.permute.xlu2 %v7633_v1  ;;  %v8296_v50 = vpop.f32.mrf.mxu3 }
 0x431   :  { %v6586_v23 = vpop.eup %6585  ;;  %11576 = vst [vmem:[#allocation20_spill] sm:$0xff] %v8296_v50 }
 0x432   :  { %6316 = vset.pattern.permute.xlu1 %v7633_v1  ;;  %v6588_v55 = vpop.eup %6587  ;;  %v1875_v51 = vmul.f32 %v6586_v23, %v8218_v7  ;;  %v1976_v7 = vsel %vm744_vm1, %v11578_v60, 0  ;;  %v2407_v23 = vsel %vm744_vm1, %v11592_v5, 0  ;;  %v3261_v5 = vperm.slane %v8135_v42, 2 }
 0x433   :  { %v1874_v11 = vmul.f32 %v6588_v55, %v8033_v52  ;;  %v2264_v52 = vmul.f32 1.442695, %v2252_v56  ;;  %v11593_v55 = vld [vmem:[#allocation6_spill] sm:$0xff]  ;;  %v11597_v56 = vld [vmem:[#allocation57_spill] sm:$0xff] }
 0x434   :  { %v2255_v60 = vsub.f32 %v11597_v56, %v8194_v27  ;;  %v11604_v56 = vld [vmem:[#allocation24_spill] sm:$0xff] }
 0x435   :  { %v1881_v8 = vpack.c.bf16 %v1875_v51, %v1874_v11  ;;  %6589 = vpow2.f32 %v2264_v52 }
 0x436   :  { %6591 = vpow2.f32 %v2268_v49  ;;  %v2270_v52 = vmul.f32 1.442695, %v2255_v60 }
 0x438   :  { %3175 = vperm.xlu2 %6315, %v3170_v24   ;;  %v8302_v59 = vpop.f32.mrf.mxu3  ;;  %6593 = vpow2.f32 %v2270_v52  ;;  %v11372_v52 = vperm.slane %v8135_v42, 4 }
 0x439   :  { %11579 = vst [vmem:[#allocation5_spill] sm:$0xff] %v8302_v59 }
 0x43a   :  { %6203 = vmatmul.msk.bf16.vlgmr.msra.gmra.mxu3 %vm744_vm1, %v11575_v17  ;;  %v11595_v17 = vld [vmem:[#allocation7_spill] sm:$0xff] }
 0x43b   :  { %1985 = vmatpush.bf16.xpose.msra.mxu3 %v1979_v20  ;;  %v8310_v28 = vpop.eup %6589 }
 0x43c   :  { %v2284_v31 = vsel %vm577_vm0, %v8310_v28, 0.0  ;;  %v8322_v39 = vpop.eup %6591 }
 0x43d   :  { %6216 = vmatmul.msk.bf16.gmra.mxu1 %vm577_vm0, %v1881_v8  ;;  %11587 = vst [vmem:[#allocation9_spill] sm:$0xff] %v8322_v39  ;;  %v2290_v33 = vsel %vm577_vm0, %v8322_v39, 0.0  ;;  %v11596_v8 = vld [vmem:[#allocation36_spill] sm:$0xff] }
 0x43e   :  { %v2401_v62 = vsel %vm744_vm1, %v11596_v8, 0  ;;  %v8369_v27 = vpop.eup %6593  ;;  %v3300_v8 = vperm.slane %v8135_v42, 5 }
 0x43f   :  { %11600 = vst [vmem:[#allocation8_spill] sm:$0xff] %v8369_v27  ;;  %v2293_v49 = vsel %vm577_vm0, %v8369_v27, 0.0 }
 0x440   :  { %v8312_v26 = vpop.f32.mrf.mxu3 }
 0x441   :  { %11583 = vst [vmem:[#allocation50_spill] sm:$0xff] %v8312_v26 }
 0x443   :  { %1986 = vmatpush.bf16.xpose.msra.mxu3 %v1976_v7 }
 0x448   :  { %v8320_v9 = vpop.f32.mrf.mxu3 }
 0x449   :  { %11586 = vst [vmem:[#allocation23_spill] sm:$0xff] %v8320_v9 }
 0x44a   :  { %6204 = vmatmul.msk.bf16.gmra.mxu3 %vm744_vm1, %v11580_v34  ;;  %v11598_v34 = vld [vmem:[#allocation40_spill] sm:$0xff] }
 0x44b   :  { %1987 = vmatpush.bf16.xpose.msra.mxu3 %v1973_v19  ;;  %v2398_v61 = vsel %vm744_vm1, %v11598_v34, 0 }
 0x450   :  { %v8326_v24 = vpop.f32.mrf.mxu3 }
 0x451   :  { %11588 = vst [vmem:[#allocation18_spill] sm:$0xff] %v8326_v24 }
 0x453   :  { %1988 = vmatpush.bf16.xpose.msra.mxu3 %v1970_v21  ;;  %v3235_v21 = vperm.slane %v8135_v42, 0 }
 0x454   :  { %2285 = vadd.xlane.f32.xlu1 %v2284_v31 }
 0x45a   :  { %6205 = vmatmul.msk.bf16.gmra.mxu3 %vm744_vm1, %v11585_v25  ;;  %v11601_v25 = vld [vmem:[#allocation12_spill] sm:$0xff] }
 0x461   :  { %2291 = vadd.xlane.f32.xlu2 %v2290_v33 }
 0x46a   :  { %6206 = vmatmul.msk.bf16.gmra.mxu3 %vm744_vm1, %v11589_v47  ;;  %v11374_v47 = vperm.slane %v8113_v22, 7 }
 0x46d   :  { %3201 = vperm.xlu1 %6316, %v3196_v36   ;;  %v8331_v46 = vpop.f32.mrf.mxu3 }
 0x46e   :  { %11590 = vst [vmem:[#allocation56_spill] sm:$0xff] %v8331_v46 }
 0x475   :  { %3214 = vperm.xlu1 %6316, %v3209_v58   ;;  %v8334_v2 = vpop.f32.mrf.mxu3 }
 0x476   :  { %11591 = vst [vmem:[#allocation10_spill] sm:$0xff] %v8334_v2 }
 0x479   :  { %3188 = vperm.xlu2 %6315, %v3183_v45   ;;  %v2404_v45 = vsel %vm744_vm1, %v11594_v16, 0 }
 0x47a   :  { %6213 = vmatmul.msk.bf16.vlgmr.msrb.gmra.mxu3 %vm744_vm1, %v11593_v55  ;;  %v3274_v55 = vperm.slane %v8135_v42, 3 }
 0x47b   :  { %2413 = vmatpush.bf16.xpose.msrb.mxu3 %v2407_v23 }
 0x47d   :  { %v8342_v51 = vpop.f32.mrf.mxu3  ;;  %6318 = vset.pattern.permute.xlu1 %v7658_v13 }
 0x47e   :  { %v1016_v11 = vsel %vm577_vm0, %v8342_v51, -inf }
 0x47f   :  { %1017 = vmax.xlane.f32.xlu0 %v1016_v11  ;;  %v11376_v11 = vperm.slane %v8176_v0, 5 }
 0x481   :  { %6317 = vset.pattern.permute.xlu2 %v7658_v13 }
 0x483   :  { %2414 = vmatpush.bf16.xpose.msrb.mxu3 %v2404_v45  ;;  %v11603_v45 = vld [vmem:[#allocation25_spill] sm:$0xff] }
 0x485   :  { %v8350_v20 = vpop.f32.mrf.mxu3 }
 0x489   :  { %3207 = vperm.xlu2 %6317, %v3196_v36  }
 0x48a   :  { %6214 = vmatmul.msk.bf16.gmra.mxu3 %vm744_vm1, %v11595_v17 }
 0x48b   :  { %2415 = vmatpush.bf16.xpose.msrb.mxu3 %v2401_v62 }
 0x48d   :  { %v8358_v7 = vpop.f32.mrf.mxu3 }
 0x491   :  { %3220 = vperm.xlu2 %6317, %v3209_v58  }
 0x493   :  { %2416 = vmatpush.bf16.xpose.msrb.mxu3 %v2398_v61  ;;  %v3326_v61 = vperm.slane %v8135_v42, 7 }
 0x495   :  { %v8362_v19 = vpop.f32.mrf.mxu3 }
 0x496   :  { %v1025_v54 = vsel %vm577_vm0, %v8362_v19, -inf }
 0x497   :  { %1026 = vmax.xlane.f32.xlu0 %v1025_v54 }
 0x499   :  { %6319 = vset.pattern.permute.xlu2 %v7633_v1 }
 0x49a   :  { %6219 = vmatmul.msk.bf16.vlgmr.msra.gmra.mxu3 %vm744_vm1, %v11599_v35 }
 0x49d   :  { %v8371_v12 = vpop.f32.mrf.mxu3 }
 0x49f   :  { %2294 = vadd.xlane.f32.xlu1 %v2293_v49 }
 0x4a1   :  { %3240 = vperm.xlu2 %6319, %v3235_v21  }
 0x4a5   :  { %v8376_v31 = vpop.f32.mrf.mxu3 }
 0x4a9   :  { %3253 = vperm.xlu2 %6319, %v3248_v3   ;;  %v11602_v3 = vld [vmem:[#allocation22_spill] sm:$0xff] }
 0x4aa   :  { %6220 = vmatmul.msk.bf16.gmra.mxu3 %vm744_vm1, %v11601_v25 }
 0x4ad   :  { %v8382_v33 = vpop.f32.mrf.mxu3 }
 0x4ae   :  { %v1034_v36 = vsel %vm577_vm0, %v8382_v33, -inf }
 0x4af   :  { %1035 = vmax.xlane.f32.xlu0 %v1034_v36  ;;  %v11606_v36 = vld [vmem:[#allocation34_spill] sm:$0xff] }
 0x4b1   :  { %6321 = vset.pattern.permute.xlu2 %v7658_v13 }
 0x4b5   :  { %v8388_v58 = vpop.f32.mrf.mxu3 }
 0x4b8   :  { %3233 = vperm.xlu1 %6318, %v11374_v47  }
 0x4b9   :  { %3272 = vperm.xlu2 %6321, %v3261_v5  }
 0x4ba   :  { %6221 = vmatmul.msk.bf16.gmra.mxu3 %vm744_vm1, %v11602_v3 }
 0x4bd   :  { %v8395_v23 = vpop.f32.mrf.mxu3 }
 0x4c0   :  { %3246 = vperm.xlu1 %6318, %v3235_v21   ;;  %v3339_v21 = vperm.slane %v8166_v32, 0 }
 0x4c1   :  { %3285 = vperm.xlu2 %6321, %v3274_v55  }
 0x4c3   :  { %3519 = vperm.xlu0 %6299, %v11376_v11  }
 0x4c5   :  { %v8401_v16 = vpop.f32.mrf.mxu3 }
 0x4c8   :  { %6320 = vset.pattern.permute.xlu1 %v7633_v1 }
 0x4c9   :  { %6323 = vset.pattern.permute.xlu2 %v7633_v1 }
 0x4ca   :  { %6222 = vmatmul.msk.bf16.gmra.mxu3 %vm744_vm1, %v11603_v45 }
 0x4cd   :  { %v8407_v17 = vpop.f32.mrf.mxu3 }
 0x4ce   :  { %v1450_v54 = vsel %vm577_vm0, %v8407_v17, -inf }
 0x4d0   :  { %3266 = vperm.xlu1 %6320, %v3261_v5   ;;  %v8441_v5 = vpop.xlane.xlu2 %2273 }
 0x4d1   :  { %3305 = vperm.xlu2 %6323, %v3300_v8  }
 0x4d5   :  { %v8410_v62 = vpop.f32.mrf.mxu3 }
 0x4d8   :  { %3279 = vperm.xlu1 %6320, %v3274_v55   ;;  %v3365_v55 = vperm.slane %v8166_v32, 2 }
 0x4d9   :  { %3318 = vperm.xlu2 %6323, %v3313_v30   ;;  %v11605_v30 = vld [vmem:[#allocation37_spill] sm:$0xff] }
 0x4da   :  { %6235 = vmatmul.msk.bf16.vlgmr.msrb.gmra.mxu3 %vm744_vm1, %v11604_v56  ;;  %v11608_v56 = vperm.slane %v8166_v32, 3 }
 0x4dd   :  { %v8416_v60 = vpop.f32.mrf.mxu3 }
 0x4e0   :  { %6322 = vset.pattern.permute.xlu1 %v7658_v13 }
 0x4e1   :  { %6325 = vset.pattern.permute.xlu2 %v7658_v13 }
 0x4e5   :  { %v8421_v34 = vpop.f32.mrf.mxu3 }
 0x4e8   :  { %3298 = vperm.xlu1 %6322, %v11372_v52  }
 0x4e9   :  { %3337 = vperm.xlu2 %6325, %v3326_v61  }
 0x4ea   :  { %6236 = vmatmul.msk.bf16.gmra.mxu3 %vm744_vm1, %v11605_v30  ;;  %v11609_v30 = vld [vmem:[#allocation26_spill] sm:$0xff] }
 0x4ed   :  { %1451 = vmax.xlane.f32.xlu0 %v1450_v54  ;;  %v8430_v35 = vpop.f32.mrf.mxu3 }
 0x4ee   :  { %v1462_v49 = vsel %vm577_vm0, %v8430_v35, -inf }
 0x4f0   :  { %3311 = vperm.xlu1 %6322, %v3300_v8   ;;  %v8448_v8 = vpop.permute.xlu2 %3123 }
 0x4f1   :  { %3350 = vperm.xlu2 %6325, %v3339_v21   ;;  %11607 = vst [vmem:[#allocation17_spill] sm:$0xff] %v8448_v8 }
 0x4f5   :  { %1463 = vmax.xlane.f32.xlu0 %v1462_v49  ;;  %v8435_v25 = vpop.f32.mrf.mxu3  ;;  %v11373_v49 = vperm.slane %v8166_v32, 1 }
 0x4f8   :  { %6324 = vset.pattern.permute.xlu1 %v7633_v1  ;;  %v8455_v54 = vpop.permute.xlu2 %3142 }
 0x4f9   :  { %6327 = vset.pattern.permute.xlu2 %v7633_v1  ;;  %11610 = vst [vmem:[#allocation43_spill] sm:$0xff] %v8455_v54 }
 0x4fa   :  { %6237 = vmatmul.msk.bf16.gmra.mxu3 %vm744_vm1, %v11606_v36  ;;  %v3404_v36 = vperm.slane %v8166_v32, 5 }
 0x4fd   :  { %v8443_v3 = vpop.f32.mrf.mxu3 }
 0x4fe   :  { %v1804_v45 = vsel %vm577_vm0, %v8443_v3, -inf }
 0x4ff   :  { %1805 = vmax.xlane.f32.xlu0 %v1804_v45  ;;  %v8465_v45 = vpop.permute.xlu1 %3116 }
 0x500   :  { %3331 = vperm.xlu1 %6324, %v3326_v61   ;;  %v3391_v61 = vperm.slane %v8166_v32, 4  ;;  %11611 = vst [vmem:[#allocation6_spill] sm:$0xff] %v8465_v45 }
 0x501   :  { %3370 = vperm.xlu2 %6327, %v3365_v55  }
 0x508   :  { %3344 = vperm.xlu1 %6324, %v3339_v21   ;;  %v8462_v21 = vpop.xlane.xlu2 %2282 }
 0x509   :  { %3383 = vperm.xlu2 %6327, %v11608_v56  }
 0x50a   :  { %6238 = vmatmul.msk.bf16.gmra.mxu3 %vm744_vm1, %v11609_v30  ;;  %v8471_v30 = vpop.permute.xlu1 %3136 }
 0x50b   :  { %11613 = vst [vmem:[#allocation7_spill] sm:$0xff] %v8471_v30 }
 0x510   :  { %6326 = vset.pattern.permute.xlu1 %v7658_v13  ;;  %v8467_v56 = vpop.permute.xlu2 %3155 }
 0x511   :  { %6329 = vset.pattern.permute.xlu2 %v7658_v13  ;;  %11612 = vst [vmem:[#allocation27_spill] sm:$0xff] %v8467_v56 }
 0x512   :  { %v8476_v47 = vpop.permute.xlu1 %3149 }
 0x513   :  { %11615 = vst [vmem:[#allocation57_spill] sm:$0xff] %v8476_v47  ;;  %v3456_v47 = vperm.slane %v8176_v0, 1 }
 0x518   :  { %3363 = vperm.xlu1 %6326, %v11373_v49   ;;  %v8473_v52 = vpop.permute.xlu2 %3175  ;;  %v3430_v49 = vperm.slane %v8166_v32, 7 }
 0x519   :  { %3402 = vperm.xlu2 %6329, %v3391_v61   ;;  %11614 = vst [vmem:[#allocation36_spill] sm:$0xff] %v8473_v52  ;;  %v1365_v52 = vpop.f32.mrf.mxu1 }
 0x51a   :  { %v8482_v11 = vpop.xlane.xlu1 %2276 }
 0x520   :  { %3376 = vperm.xlu1 %6326, %v3365_v55   ;;  %v8478_v55 = vpop.xlane.xlu2 %2291 }
 0x521   :  { %3415 = vperm.xlu2 %6329, %v3404_v36  }
 0x522   :  { %v8489_v48 = vpop.permute.xlu1 %3168 }
 0x523   :  { %11618 = vst [vmem:[#allocation16_spill] sm:$0xff] %v8489_v48 }
 0x528   :  { %6328 = vset.pattern.permute.xlu1 %v7633_v1  ;;  %v8484_v54 = vpop.permute.xlu2 %3188 }
 0x529   :  { %6331 = vset.pattern.permute.xlu2 %v7633_v1  ;;  %11617 = vst [vmem:[#allocation40_spill] sm:$0xff] %v8484_v54  ;;  %v6332_v54 = vpack.i.bf16 %v8262_v10, %v8250_v29 }
 0x52a   :  { %v8498_v56 = vpop.permute.xlu1 %3181 }
 0x52b   :  { %11620 = vst [vmem:[#allocation22_spill] sm:$0xff] %v8498_v56 }
 0x530   :  { %3396 = vperm.xlu1 %6328, %v3391_v61   ;;  %v11387_v61 = vperm.slane %v8166_v32, 6 }
 0x531   :  { %3435 = vperm.xlu2 %6331, %v3430_v49  }
 0x532   :  { %v8505_v43 = vpop.xlane.xlu1 %2285 }
 0x538   :  { %3409 = vperm.xlu1 %6328, %v3404_v36   ;;  %v8494_v36 = vpop.permute.xlu2 %3207 }
 0x539   :  { %3448 = vperm.xlu2 %6331, %v11616_v18   ;;  %11619 = vst [vmem:[#allocation12_spill] sm:$0xff] %v8494_v36  ;;  %v1367_v18 = vpop.f32.mrf.mxu1 }
 0x53a   :  { %v6344_v8 = vpack.i.bf16 %v1367_v18, %v1365_v52  ;;  %v8509_v36 = vpop.permute.xlu1 %3201 }
 0x53b   :  { %11623 = vst [vmem:[#allocation37_spill] sm:$0xff] %v8509_v36  ;;  %v1028_v36 = vsel %vm577_vm0, %v8371_v12, -inf }
 0x540   :  { %6330 = vset.pattern.permute.xlu1 %v7658_v13  ;;  %v8502_v48 = vpop.permute.xlu2 %3220 }
 0x541   :  { %6338 = vset.pattern.permute.xlu2 %v7658_v13  ;;  %11621 = vst [vmem:[#allocation25_spill] sm:$0xff] %v8502_v48 }
 0x542   :  { %v8515_v10 = vpop.permute.xlu1 %3214 }
 0x543   :  { %11625 = vst [vmem:[#allocation26_spill] sm:$0xff] %v8515_v10 }
 0x548   :  { %3428 = vperm.xlu1 %6330, %v11387_v61   ;;  %v8507_v61 = vpop.permute.xlu2 %3240 }
 0x549   :  { %3467 = vperm.xlu2 %6338, %v3456_v47   ;;  %11622 = vst [vmem:[#allocation24_spill] sm:$0xff] %v8507_v61  ;;  %v11397_v61 = vperm.slane %v8176_v0, 3 }
 0x550   :  { %6333 = vrot.lane.b32.xlu1 %v6332_v54, %s6833_s25  ;;  %v8513_v29 = vpop.permute.xlu2 %3253 }
 0x551   :  { %6345 = vrot.lane.b32.xlu2 %v6344_v8, %s6833_s25  ;;  %11624 = vst [vmem:[#allocation34_spill] sm:$0xff] %v8513_v29  ;;  %v8519_v8 = vpop.xlane.xlu1 %2294 }
 0x558   :  { %3441 = vperm.xlu1 %6330, %v3430_v49   ;;  %v8517_v52 = vpop.permute.xlu2 %3272  ;;  %v1370_v49 = vpop.f32.mrf.mxu1 }
 0x559   :  { %3480 = vperm.xlu2 %6338, %v3469_v44   ;;  %11626 = vst [vmem:[#allocation71_spill] sm:$0xff] %v8517_v52  ;;  %v8524_v18 = vpop.permute.xlu1 %3233 }
 0x55a   :  { %11628 = vst [vmem:[#allocation73_spill] sm:$0xff] %v8524_v18 }
 0x560   :  { %6337 = vset.pattern.permute.xlu1 %v7633_v1  ;;  %v8521_v54 = vpop.permute.xlu2 %3285 }
 0x561   :  { %6355 = vset.pattern.permute.xlu2 %v7633_v1  ;;  %11627 = vst [vmem:[#allocation72_spill] sm:$0xff] %v8521_v54  ;;  %v8533_v52 = vpop.permute.xlu1 %3246 }
 0x562   :  { %11630 = vst [vmem:[#allocation75_spill] sm:$0xff] %v8533_v52 }
 0x568   :  { %3461 = vperm.xlu1 %6337, %v3456_v47   ;;  %v8527_v48 = vpop.permute.xlu2 %3305  ;;  %v1019_v47 = vsel %vm577_vm0, %v8350_v20, -inf }
 0x569   :  { %11629 = vst [vmem:[#allocation74_spill] sm:$0xff] %v8527_v48  ;;  %v8540_v48 = vpop.permute.xlu1 %3266 }
 0x56a   :  { %11632 = vst [vmem:[#allocation77_spill] sm:$0xff] %v8540_v48 }
 0x570   :  { %3474 = vperm.xlu1 %6337, %v3469_v44   ;;  %v1372_v44 = vpop.f32.mrf.mxu1  ;;  %v8536_v29 = vpop.permute.xlu2 %3318 }
 0x571   :  { %v6350_v54 = vpack.i.bf16 %v1372_v44, %v1370_v49  ;;  %11631 = vst [vmem:[#allocation76_spill] sm:$0xff] %v8536_v29  ;;  %v1444_v49 = vsel %vm577_vm0, %v8395_v23, -inf }
 0x578   :  { %6349 = vset.pattern.permute.xlu1 %v7658_v13  ;;  %v8542_v18 = vpop.permute.xlu2 %3337 }
 0x579   :  { %11633 = vst [vmem:[#allocation78_spill] sm:$0xff] %v8542_v18  ;;  %v8560_v18 = vpop.permute.xlu0 %3129 }
 0x57a   :  { %11640 = vst [vmem:[#allocation85_spill] sm:$0xff] %v8560_v18 }
 0x580   :  { %3493 = vperm.xlu1 %6349, %v11397_v61   ;;  %v1037_v61 = vsel %vm577_vm0, %v8388_v58, -inf }
 0x582   :  { %1020 = vmax.xlane.f32.xlu2 %v1019_v47  ;;  %v8546_v47 = vpop.permute.xlu1 %3279 }
 0x583   :  { %11634 = vst [vmem:[#allocation79_spill] sm:$0xff] %v8546_v47  ;;  %v1022_v47 = vsel %vm577_vm0, %v8358_v7, -inf }
 0x588   :  { %6351 = vrot.lane.b32.xlu1 %v6350_v54, %s6833_s25  ;;  %v8550_v54 = vpop.permute.xlu2 %3350 }
 0x589   :  { %11635 = vst [vmem:[#allocation80_spill] sm:$0xff] %v8550_v54  ;;  %v8569_v54 = vpop.xlane.xlu0 %2279 }
 0x58a   :  { %1029 = vmax.xlane.f32.xlu2 %v1028_v36  ;;  %v8552_v44 = vpop.permute.xlu1 %3298 }
 0x58b   :  { %11636 = vst [vmem:[#allocation81_spill] sm:$0xff] %v8552_v44  ;;  %v11644_v44 = vperm.slane %v8176_v0, 5 }
 0x590   :  { %v8554_v29 = vpop.permute.xlu2 %3370 }
 0x591   :  { %11637 = vst [vmem:[#allocation82_spill] sm:$0xff] %v8554_v29 }
 0x592   :  { %1038 = vmax.xlane.f32.xlu2 %v1037_v61  ;;  %v8556_v36 = vpop.permute.xlu1 %3311  ;;  %v3495_v61 = vperm.slane %v8176_v0, 4 }
 0x593   :  { %11638 = vst [vmem:[#allocation83_spill] sm:$0xff] %v8556_v36 }
 0x598   :  { %v8558_v48 = vpop.permute.xlu2 %3383 }
 0x599   :  { %11639 = vst [vmem:[#allocation84_spill] sm:$0xff] %v8558_v48  ;;  %v1031_v48 = vsel %vm577_vm0, %v8376_v31, -inf }
 0x59a   :  { %1445 = vmax.xlane.f32.xlu2 %v1444_v49  ;;  %v8563_v52 = vpop.permute.xlu1 %3331 }
 0x59b   :  { %11641 = vst [vmem:[#allocation86_spill] sm:$0xff] %v8563_v52  ;;  %v8579_v52 = vpop.xlane.xlu0 %2288 }
 0x5a0   :  { %v8567_v49 = vpop.permute.xlu2 %3402 }
 0x5a1   :  { %11642 = vst [vmem:[#allocation87_spill] sm:$0xff] %v8567_v49 }
 0x5a2   :  { %v8571_v29 = vpop.permute.xlu1 %3344 }
 0x5a3   :  { %11643 = vst [vmem:[#allocation88_spill] sm:$0xff] %v8571_v29  ;;  %v8586_v49 = vpop.permute.xlu0 %3194 }
 0x5a4   :  { %11648 = vst [vmem:[#allocation92_spill] sm:$0xff] %v8586_v49  ;;  %v8605_v49 = vpop.f32.mrf.mxu3 }
 0x5a5   :  { %v1807_v30 = vsel %vm577_vm0, %v8605_v49, -inf }
 0x5a8   :  { %v8577_v36 = vpop.permute.xlu2 %3415 }
 0x5a9   :  { %11645 = vst [vmem:[#allocation89_spill] sm:$0xff] %v8577_v36 }
 0x5aa   :  { %v8581_v56 = vpop.permute.xlu1 %3363 }
 0x5ab   :  { %11646 = vst [vmem:[#allocation90_spill] sm:$0xff] %v8581_v56  ;;  %v8592_v18 = vpop.permute.xlu0 %3259 }
 0x5ac   :  { %11651 = vst [vmem:[#allocation95_spill] sm:$0xff] %v8592_v18 }
 0x5b2   :  { %3500 = vperm.xlu2 %6355, %v3495_v61   ;;  %1023 = vmax.xlane.f32.xlu1 %v1022_v47  ;;  %v8584_v47 = vpop.permute.xlu2 %3435  ;;  %v8588_v29 = vpop.permute.xlu1 %3376 }
 0x5b3   :  { %11647 = vst [vmem:[#allocation91_spill] sm:$0xff] %v8584_v47  ;;  %v8599_v36 = vpop.permute.xlu0 %3324  ;;  %v1453_v47 = vsel %vm577_vm0, %v8410_v62, -inf }
 0x5b4   :  { %11649 = vst [vmem:[#allocation93_spill] sm:$0xff] %v8588_v29 }
 0x5b5   :  { %11654 = vst [vmem:[#allocation98_spill] sm:$0xff] %v8599_v36 }
 0x5ba   :  { %3513 = vperm.xlu2 %6355, %v11644_v44   ;;  %1032 = vmax.xlane.f32.xlu1 %v1031_v48  ;;  %v8590_v10 = vpop.permute.xlu2 %3448  ;;  %v8594_v44 = vpop.permute.xlu1 %3396 }
 0x5bb   :  { %11650 = vst [vmem:[#allocation94_spill] sm:$0xff] %v8590_v10 }
 0x5bc   :  { %11652 = vst [vmem:[#allocation96_spill] sm:$0xff] %v8594_v44  ;;  %v8611_v44 = vpop.permute.xlu0 %3389 }
 0x5bd   :  { %11658 = vst [vmem:[#allocation102_spill] sm:$0xff] %v8611_v44 }
 0x5c2   :  { %6357 = vset.pattern.permute.xlu2 %v7658_v13  ;;  %v8596_v48 = vpop.permute.xlu2 %3467  ;;  %v8601_v56 = vpop.permute.xlu1 %3409 }
 0x5c3   :  { %11653 = vst [vmem:[#allocation97_spill] sm:$0xff] %v8596_v48  ;;  %v8615_v48 = vpop.f32.mrf.mxu3 }
 0x5c4   :  { %11655 = vst [vmem:[#allocation99_spill] sm:$0xff] %v8601_v56  ;;  %v8621_v18 = vpop.permute.xlu0 %3454 }
 0x5c5   :  { %11661 = vst [vmem:[#allocation105_spill] sm:$0xff] %v8621_v18 }
 0x5ca   :  { %v8607_v29 = vpop.permute.xlu2 %6345  ;;  %v8609_v10 = vpop.permute.xlu1 %3428 }
 0x5cb   :  { %11656 = vst [vmem:[#allocation100_spill] sm:$0xff] %v8607_v29  ;;  %v8626_v44 = vpop.f32.mrf.mxu3 }
 0x5cc   :  { %11657 = vst [vmem:[#allocation101_spill] sm:$0xff] %v8609_v10  ;;  %v8628_v15 = vpop.permute.xlu0 %6340 }
 0x5cd   :  { %11662 = vst [vmem:[#allocation106_spill] sm:$0xff] %v8628_v15 }
 0x5d2   :  { %v8617_v36 = vpop.permute.xlu2 %3480  ;;  %v8619_v56 = vpop.permute.xlu1 %6333 }
 0x5d3   :  { %3506 = vperm.xlu1 %6349, %v3495_v61   ;;  %v1459_v61 = vsel %vm577_vm0, %v8421_v34, -inf  ;;  %11659 = vst [vmem:[#allocation103_spill] sm:$0xff] %v8617_v36  ;;  %v1447_v36 = vsel %vm577_vm0, %v8401_v16, -inf  ;;  %v8637_v6 = vpop.f32.mrf.mxu3 }
 0x5d4   :  { %11660 = vst [vmem:[#allocation104_spill] sm:$0xff] %v8619_v56  ;;  %v1018_v38 = vpop.xlane.xlu0 %1017 }
 0x5da   :  { %v8630_v40 = vpop.permute.xlu1 %3441 }
 0x5db   :  { %6356 = vset.pattern.permute.xlu1 %v7633_v1  ;;  %11663 = vst [vmem:[#allocation107_spill] sm:$0xff] %v8630_v40  ;;  %v1456_v40 = vsel %vm577_vm0, %v8416_v60, -inf }
 0x5e3   :  { %1454 = vmax.xlane.f32.xlu2 %v1453_v47 }
 0x5eb   :  { %1460 = vmax.xlane.f32.xlu2 %v1459_v61 }
 0x5f3   :  { %1808 = vmax.xlane.f32.xlu2 %v1807_v30 }
 0x5f5   :  { %v1021_v47 = vpop.xlane.xlu2 %1020 }
 0x5f6   :  { %v1041_v10 = vsub.f32 %v8350_v20, %v1021_v47  ;;  %v8639_v20 = vpop.permute.xlu1 %3461  ;;  %v1040_v47 = vsub.f32 %v8342_v51, %v1018_v38 }
 0x5f7   :  { %11664 = vst [vmem:[#allocation108_spill] sm:$0xff] %v8639_v20 }
 0x5f8   :  { %v1050_v61 = vmul.f32 1.442695, %v1041_v10 }
 0x5fa   :  { %6595 = vpow2.f32 %v1050_v61 }
 0x5fd   :  { %v1030_v45 = vpop.xlane.xlu2 %1029  ;;  %1448 = vmax.xlane.f32.xlu1 %v1447_v36  ;;  %v1048_v36 = vmul.f32 1.442695, %v1040_v47 }
 0x5fe   :  { %v1044_v30 = vsub.f32 %v8371_v12, %v1030_v45  ;;  %v1813_v12 = vsel %vm577_vm0, %v8626_v44, -inf  ;;  %v8648_v45 = vpop.f32.mrf.mxu3  ;;  %v8650_v20 = vpop.permute.xlu1 %3474 }
 0x5ff   :  { %11665 = vst [vmem:[#allocation109_spill] sm:$0xff] %v8650_v20 }
 0x600   :  { %v8634_v18 = vpop.eup %6595  ;;  %v1056_v61 = vmul.f32 1.442695, %v1044_v30  ;;  %v1027_v30 = vpop.xlane.xlu0 %1026 }
 0x601   :  { %v1067_v10 = vsel %vm577_vm0, %v8634_v18, 0.0 }
 0x602   :  { %1068 = vadd.xlane.f32.xlu0 %v1067_v10  ;;  %6597 = vpow2.f32 %v1056_v61  ;;  %v1465_v10 = vsel %vm577_vm0, %v8435_v25, -inf }
 0x603   :  { %6599 = vpow2.f32 %v1048_v36  ;;  %v1043_v36 = vsub.f32 %v8362_v19, %v1027_v30 }
 0x605   :  { %1457 = vmax.xlane.f32.xlu1 %v1456_v40  ;;  %v1039_v38 = vpop.xlane.xlu2 %1038  ;;  %v1054_v46 = vmul.f32 1.442695, %v1043_v36 }
 0x606   :  { %v1047_v40 = vsub.f32 %v8388_v58, %v1039_v38  ;;  %v2010_v58 = vsel %vm577_vm0, %v8637_v6, -inf  ;;  %v1810_v38 = vsel %vm577_vm0, %v8615_v48, -inf }
 0x608   :  { %v8654_v51 = vpop.eup %6597  ;;  %v1062_v20 = vmul.f32 1.442695, %v1047_v40 }
 0x609   :  { %v8657_v47 = vpop.eup %6599  ;;  %v1076_v61 = vsel %vm577_vm0, %v8654_v51, 0.0 }
 0x60a   :  { %1814 = vmax.xlane.f32.xlu0 %v1813_v12  ;;  %v8662_v12 = vpop.permute.xlu1 %3493  ;;  %v1064_v53 = vsel %vm577_vm0, %v8657_v47, 0.0  ;;  %6601 = vpow2.f32 %v1062_v20 }
 0x60b   :  { %11666 = vst [vmem:[#allocation110_spill] sm:$0xff] %v8662_v12  ;;  %6603 = vpow2.f32 %v1054_v46 }
 0x60d   :  { %1466 = vmax.xlane.f32.xlu1 %v1465_v10  ;;  %v8666_v10 = vpop.f32.mrf.mxu3 }
 0x610   :  { %v8674_v30 = vpop.eup %6601 }
 0x611   :  { %v8678_v12 = vpop.eup %6603 }
 0x612   :  { %1077 = vadd.xlane.f32.xlu0 %v1076_v61  ;;  %v8672_v19 = vpop.permute.xlu1 %6351  ;;  %v1036_v61 = vpop.xlane.xlu0 %1035  ;;  %v1073_v46 = vsel %vm577_vm0, %v8678_v12, 0.0 }
 0x613   :  { %11667 = vst [vmem:[#allocation111_spill] sm:$0xff] %v8672_v19  ;;  %v1046_v20 = vsub.f32 %v8382_v33, %v1036_v61  ;;  %v2013_v33 = vsel %vm577_vm0, %v8648_v45, -inf }
 0x615   :  { %1065 = vadd.xlane.f32.xlu1 %v1064_v53  ;;  %v8676_v40 = vpop.f32.mrf.mxu3  ;;  %v1085_v53 = vsel %vm577_vm0, %v8674_v30, 0.0 }
 0x616   :  { %v2019_v9 = vsel %vm577_vm0, %v8676_v40, -inf }
 0x61a   :  { %2011 = vmax.xlane.f32.xlu0 %v2010_v58  ;;  %v8686_v19 = vpop.permute.xlu0 %3519 }
 0x61b   :  { %11668 = vst [vmem:[#allocation112_spill] sm:$0xff] %v8686_v19 }
 0x61d   :  { %1811 = vmax.xlane.f32.xlu1 %v1810_v38  ;;  %v1060_v38 = vmul.f32 1.442695, %v1046_v20  ;;  %v8688_v29 = vpop.f32.mrf.mxu3 }
 0x622   :  { %1086 = vadd.xlane.f32.xlu0 %v1085_v53  ;;  %v1452_v20 = vpop.xlane.xlu0 %1451 }
 0x625   :  { %v1024_v36 = vpop.xlane.xlu1 %1023  ;;  %1074 = vadd.xlane.f32.xlu1 %v1073_v46 }
 0x626   :  { %v1042_v58 = vsub.f32 %v8358_v7, %v1024_v36 }
 0x628   :  { %v1052_v2 = vmul.f32 1.442695, %v1042_v58 }
 0x62a   :  { %6605 = vpow2.f32 %v1052_v2  ;;  %2020 = vmax.xlane.f32.xlu0 %v2019_v9  ;;  %v8701_v9 = vpop.f32.mrf.mxu3  ;;  %v1470_v2 = vsub.f32 %v8407_v17, %v1452_v20  ;;  %v1464_v59 = vpop.xlane.xlu0 %1463 }
 0x62b   :  { %6607 = vpow2.f32 %v1060_v38  ;;  %v1474_v15 = vsub.f32 %v8430_v35, %v1464_v59 }
 0x62d   :  { %v1033_v61 = vpop.xlane.xlu1 %1032  ;;  %2014 = vmax.xlane.f32.xlu1 %v2013_v33  ;;  %v1446_v33 = vpop.xlane.xlu2 %1445 }
 0x62e   :  { %v1045_v53 = vsub.f32 %v8376_v31, %v1033_v61  ;;  %v1480_v31 = vmul.f32 1.442695, %v1470_v2  ;;  %v2016_v2 = vsel %vm577_vm0, %v8666_v10, -inf }
 0x630   :  { %v8695_v7 = vpop.eup %6605  ;;  %v1058_v46 = vmul.f32 1.442695, %v1045_v53  ;;  %v1468_v53 = vsub.f32 %v8395_v23, %v1446_v33 }
 0x631   :  { %v8697_v36 = vpop.eup %6607  ;;  %v1070_v58 = vsel %vm577_vm0, %v8695_v7, 0.0 }
 0x632   :  { %6609 = vpow2.f32 %v1058_v46  ;;  %1071 = vadd.xlane.f32.xlu2 %v1070_v58  ;;  %v1082_v38 = vsel %vm577_vm0, %v8697_v36, 0.0  ;;  %v1476_v46 = vmul.f32 1.442695, %v1468_v53  ;;  %v2022_v58 = vsel %vm577_vm0, %v8688_v29, -inf  ;;  %v8713_v17 = vpop.f32.mrf.mxu3 }
 0x633   :  { %6611 = vpow2.f32 %v1480_v31 }
 0x634   :  { %6613 = vpow2.f32 %v1476_v46 }
 0x635   :  { %1083 = vadd.xlane.f32.xlu1 %v1082_v38  ;;  %v8719_v23 = vpop.permute.xlu2 %3500 }
 0x636   :  { %11669 = vst [vmem:[#allocation113_spill] sm:$0xff] %v8719_v23 }
 0x638   :  { %v8706_v61 = vpop.eup %6609 }
 0x639   :  { %v1079_v19 = vsel %vm577_vm0, %v8706_v61, 0.0  ;;  %v8715_v20 = vpop.eup %6611 }
 0x63a   :  { %1080 = vadd.xlane.f32.xlu2 %v1079_v19  ;;  %v1498_v19 = vsel %vm577_vm0, %v8715_v20, 0.0  ;;  %v8723_v38 = vpop.eup %6613  ;;  %v8725_v33 = vpop.f32.mrf.mxu3 }
 0x63b   :  { %v1492_v31 = vsel %vm577_vm0, %v8723_v38, 0.0  ;;  %v2031_v53 = vsel %vm577_vm0, %v8725_v33, -inf }
 0x63d   :  { %2023 = vmax.xlane.f32.xlu1 %v2022_v58  ;;  %v8731_v46 = vpop.permute.xlu2 %3513 }
 0x63e   :  { %11670 = vst [vmem:[#allocation114_spill] sm:$0xff] %v8731_v46 }
 0x642   :  { %2017 = vmax.xlane.f32.xlu2 %v2016_v2  ;;  %v8733_v58 = vpop.f32.mrf.mxu3  ;;  %v2025_v2 = vsel %vm577_vm0, %v8701_v9, -inf }
 0x645   :  { %1499 = vadd.xlane.f32.xlu1 %v1498_v19  ;;  %v2438_v19 = vsel %vm577_vm0, %v8733_v58, -inf }
 0x64a   :  { %1493 = vadd.xlane.f32.xlu2 %v1492_v31  ;;  %v8746_v50 = vpop.f32.mrf.mxu3 }
 0x64b   :  { %11671 = vst [vmem:[#allocation115_spill] sm:$0xff] %v8746_v50 }
 0x64d   :  { %2032 = vmax.xlane.f32.xlu1 %v2031_v53 }
 0x652   :  { %2026 = vmax.xlane.f32.xlu2 %v2025_v2 }
 0x655   :  { %2439 = vmax.xlane.f32.xlu1 %v2438_v19  ;;  %v1488_v19 = vmul.f32 1.442695, %v1474_v15 }
 0x656   :  { %v1455_v23 = vpop.xlane.xlu2 %1454 }
 0x657   :  { %v1471_v24 = vsub.f32 %v8410_v62, %v1455_v23  ;;  %v8748_v62 = vpop.permute.xlu1 %3506 }
 0x658   :  { %11672 = vst [vmem:[#allocation116_spill] sm:$0xff] %v8748_v62 }
 0x659   :  { %v1482_v31 = vmul.f32 1.442695, %v1471_v24 }
 0x65b   :  { %6615 = vpow2.f32 %v1482_v31 }
 0x65e   :  { %v1461_v26 = vpop.xlane.xlu2 %1460 }
 0x65f   :  { %v1473_v53 = vsub.f32 %v8421_v34, %v1461_v26  ;;  %v2441_v26 = vsel %vm577_vm0, %v8746_v50, -inf }
 0x661   :  { %v8741_v46 = vpop.eup %6615  ;;  %v1486_v63 = vmul.f32 1.442695, %v1473_v53 }
 0x662   :  { %v1501_v2 = vsel %vm577_vm0, %v8741_v46, 0.0 }
 0x663   :  { %6617 = vpow2.f32 %v1486_v63  ;;  %1502 = vadd.xlane.f32.xlu2 %v1501_v2 }
 0x664   :  { %6619 = vpow2.f32 %v1488_v19  ;;  %v1806_v19 = vpop.xlane.xlu0 %1805 }
 0x666   :  { %v1809_v39 = vpop.xlane.xlu2 %1808 }
 0x669   :  { %v8750_v24 = vpop.eup %6617 }
 0x66a   :  { %v1507_v59 = vsel %vm577_vm0, %v8750_v24, 0.0  ;;  %v8756_v34 = vpop.eup %6619 }
 0x66b   :  { %2442 = vmax.xlane.f32.xlu2 %v2441_v26  ;;  %1508 = vadd.xlane.f32.xlu1 %v1507_v59  ;;  %v1510_v35 = vsel %vm577_vm0, %v8756_v34, 0.0 }
 0x670   :  { %v1449_v63 = vpop.xlane.xlu1 %1448 }
 0x671   :  { %v1469_v15 = vsub.f32 %v8401_v16, %v1449_v63  ;;  %v8769_v16 = vld [vmem:[%s11334_s9 + $0x28] sm:$0xff] }
 0x672   :  { %v3521_v63 = vperm.slane %v8769_v16, 6 }
 0x673   :  { %v1478_v23 = vmul.f32 1.442695, %v1469_v15  ;;  %1511 = vadd.xlane.f32.xlu2 %v1510_v35 }
 0x675   :  { %6621 = vpow2.f32 %v1478_v23  ;;  %v1069_v15 = vpop.xlane.xlu0 %1068 }
 0x678   :  { %v1458_v31 = vpop.xlane.xlu1 %1457 }
 0x679   :  { %v1472_v2 = vsub.f32 %v8416_v60, %v1458_v31  ;;  %v2028_v60 = vsel %vm577_vm0, %v8713_v17, -inf  ;;  %v8776_v31 = vpop.f32.mrf.mxu3 }
 0x67b   :  { %v8761_v53 = vpop.eup %6621  ;;  %v1484_v59 = vmul.f32 1.442695, %v1472_v2 }
 0x67c   :  { %v1495_v26 = vsel %vm577_vm0, %v8761_v53, 0.0 }
 0x67d   :  { %1496 = vadd.xlane.f32.xlu0 %v1495_v26  ;;  %6623 = vpow2.f32 %v1484_v59 }
 0x67e   :  { %6625 = vrcp.f32 %v1069_v15 }
 0x680   :  { %v1467_v62 = vpop.xlane.xlu1 %1466 }
 0x681   :  { %v1475_v2 = vsub.f32 %v8435_v25, %v1467_v62  ;;  %v2444_v25 = vsel %vm577_vm0, %v8776_v31, -inf  ;;  %v8787_v62 = vpop.f32.mrf.mxu3 }
 0x683   :  { %v8774_v23 = vpop.eup %6623  ;;  %v1490_v50 = vmul.f32 1.442695, %v1475_v2 }
 0x684   :  { %3526 = vperm.xlu1 %6356, %v3521_v63   ;;  %v1504_v26 = vsel %vm577_vm0, %v8774_v23, 0.0  ;;  %v6626_v59 = vpop.eup %6625 }
 0x685   :  { %2029 = vmax.xlane.f32.xlu0 %v2028_v60  ;;  %v1097_v60 = vmul.f32 %v6626_v59, %v8634_v18  ;;  %v11677_v59 = vld [vmem:[#allocation19_spill] sm:$0xff] }
 0x688   :  { %v1066_v35 = vpop.xlane.xlu1 %1065 }
 0x689   :  { %6627 = vrcp.f32 %v1066_v35  ;;  %v1821_v35 = vsub.f32 %v8605_v49, %v1809_v39  ;;  %v11675_v39 = vld [vmem:[#allocation14_spill] sm:$0xff] }
 0x68a   :  { %6629 = vpow2.f32 %v1490_v50 }
 0x68b   :  { %3532 = vperm.xlu2 %6357, %v3521_v63   ;;  %v11673_v63 = vld [vmem:[#allocation31_spill] sm:$0xff]  ;;  %v1834_v2 = vmul.f32 1.442695, %v1821_v35 }
 0x68d   :  { %1505 = vadd.xlane.f32.xlu0 %v1504_v26  ;;  %6631 = vpow2.f32 %v1834_v2 }
 0x68f   :  { %v6628_v56 = vpop.eup %6627 }
 0x690   :  { %v1096_v15 = vmul.f32 %v6628_v56, %v8657_v47  ;;  %v8790_v26 = vpop.xlane.xlu1 %1811  ;;  %v8792_v18 = vpop.eup %6629  ;;  %v11674_v56 = vld [vmem:[#allocation21_spill] sm:$0xff] }
 0x691   :  { %v1513_v50 = vsel %vm577_vm0, %v8792_v18, 0.0 }
 0x692   :  { %v1104_v27 = vpack.c.bf16 %v1097_v60, %v1096_v15  ;;  %v8803_v60 = vpop.xlane.xlu0 %1814  ;;  %v1820_v15 = vsub.f32 %v8443_v3, %v1806_v19  ;;  %v2447_v3 = vsel %vm577_vm0, %v8787_v62, -inf }
 0x693   :  { %v8800_v49 = vpop.eup %6631 }
 0x694   :  { %6191 = vmatmul.msk.bf16.vlgmr.msra.gmra.mxu2 %vm577_vm0, %v1104_v27  ;;  %v8798_v27 = vpop.f32.mrf.mxu3  ;;  %v1855_v35 = vsel %vm577_vm0, %v8800_v49, 0.0 }
 0x695   :  { %2130 = vmatpush.bf16.msra.mxu2 %v11673_v63  ;;  %2445 = vmax.xlane.f32.xlu0 %v2444_v25  ;;  %11676 = vst [vmem:[#allocation31_spill] sm:$0xff] %v8798_v27  ;;  %v1832_v63 = vmul.f32 1.442695, %v1820_v15 }
 0x698   :  { %v1075_v47 = vpop.xlane.xlu1 %1074 }
 0x699   :  { %2131 = vmatpush.bf16.msra.mxu2 %v11674_v56  ;;  %6633 = vrcp.f32 %v1075_v47 }
 0x69c   :  { %v8808_v2 = vpop.f32.mrf.mxu3 }
 0x69d   :  { %2132 = vmatpush.bf16.msra.mxu2 %v11675_v39  ;;  %1514 = vadd.xlane.f32.xlu0 %v1513_v50  ;;  %11678 = vst [vmem:[#allocation21_spill] sm:$0xff] %v8808_v2  ;;  %v2453_v39 = vsel %vm577_vm0, %v8808_v2, -inf }
 0x69f   :  { %v6634_v56 = vpop.eup %6633 }
 0x6a0   :  { %v1099_v47 = vmul.f32 %v6634_v56, %v8678_v12 }
 0x6a1   :  { %2133 = vmatpush.bf16.msra.mxu2 %v11677_v59  ;;  %v1078_v59 = vpop.xlane.xlu0 %1077 }
 0x6a5   :  { %1856 = vadd.xlane.f32.xlu0 %v1855_v35  ;;  %v1072_v25 = vpop.xlane.xlu2 %1071 }
 0x6a6   :  { %6635 = vrcp.f32 %v1072_v25 }
 0x6a7   :  { %6637 = vpow2.f32 %v1832_v63  ;;  %v2450_v63 = vsel %vm577_vm0, %v8798_v27, -inf }
 0x6ac   :  { %v6636_v50 = vpop.eup %6635 }
 0x6ad   :  { %2454 = vmax.xlane.f32.xlu0 %v2453_v39  ;;  %v1098_v19 = vmul.f32 %v6636_v50, %v8695_v7  ;;  %v1081_v35 = vpop.xlane.xlu2 %1080  ;;  %v8817_v25 = vpop.eup %6637  ;;  %v8826_v50 = vld [vmem:[%s11334_s9 + $0x30] sm:$0xff] }
 0x6ae   :  { %2448 = vmax.xlane.f32.xlu1 %v2447_v3  ;;  %6639 = vrcp.f32 %v1081_v35  ;;  %v2015_v39 = vpop.xlane.xlu1 %2014  ;;  %v1852_v2 = vsel %vm577_vm0, %v8817_v25, 0.0  ;;  %v2012_v7 = vpop.xlane.xlu0 %2011 }
 0x6af   :  { %v1105_v15 = vpack.c.bf16 %v1099_v47, %v1098_v19  ;;  %6641 = vrcp.f32 %v1078_v59  ;;  %v3573_v19 = vperm.slane %v8826_v50, 2 }
 0x6b1   :  { %6192 = vmatmul.msk.bf16.gmra.mxu2 %vm577_vm0, %v1105_v15 }
 0x6b4   :  { %2451 = vmax.xlane.f32.xlu2 %v2450_v63  ;;  %v6640_v12 = vpop.eup %6639  ;;  %v3534_v63 = vperm.slane %v8769_v16, 7 }
 0x6b5   :  { %v6642_v56 = vpop.eup %6641  ;;  %v1101_v3 = vmul.f32 %v6640_v12, %v8706_v61 }
 0x6b6   :  { %1853 = vadd.xlane.f32.xlu1 %v1852_v2  ;;  %v1100_v59 = vmul.f32 %v6642_v56, %v8654_v51  ;;  %v1084_v47 = vpop.xlane.xlu1 %1083  ;;  %v1087_v15 = vpop.xlane.xlu0 %1086  ;;  %v2035_v56 = vsub.f32 %v8648_v45, %v2015_v39 }
 0x6b7   :  { %6643 = vrcp.f32 %v1084_v47  ;;  %v8841_v47 = vpop.xlane.xlu2 %2017 }
 0x6b8   :  { %v1106_v35 = vpack.c.bf16 %v1101_v3, %v1100_v59  ;;  %6645 = vrcp.f32 %v1087_v15  ;;  %v2044_v3 = vmul.f32 1.442695, %v2035_v56 }
 0x6ba   :  { %6647 = vpow2.f32 %v2044_v3  ;;  %v2034_v3 = vsub.f32 %v8637_v6, %v2012_v7 }
 0x6bd   :  { %v6644_v2 = vpop.eup %6643 }
 0x6be   :  { %v6646_v27 = vpop.eup %6645  ;;  %v1102_v61 = vmul.f32 %v6644_v2, %v8697_v36  ;;  %v2024_v59 = vpop.xlane.xlu1 %2023 }
 0x6bf   :  { %v1103_v12 = vmul.f32 %v6646_v27, %v8674_v30  ;;  %v2038_v36 = vsub.f32 %v8688_v29, %v2024_v59  ;;  %v1822_v30 = vsub.f32 %v8615_v48, %v8790_v26  ;;  %v8848_v15 = vpop.xlane.xlu0 %2020  ;;  %v1494_v2 = vpop.xlane.xlu2 %1493  ;;  %v1823_v29 = vsub.f32 %v8626_v44, %v8803_v60 }
 0x6c0   :  { %v8846_v27 = vpop.eup %6647  ;;  %v2042_v60 = vmul.f32 1.442695, %v2034_v3  ;;  %v11680_v3 = vld [vmem:[#allocation39_spill] sm:$0xff] }
 0x6c1   :  { %3584 = vperm.xlu0 %6299, %v3573_v19   ;;  %6193 = vmatmul.msk.bf16.gmra.mxu2 %vm577_vm0, %v1106_v35  ;;  %v1107_v51 = vpack.c.bf16 %v1103_v12, %v1102_v61  ;;  %v2050_v16 = vmul.f32 1.442695, %v2038_v36  ;;  %v1836_v35 = vmul.f32 1.442695, %v1822_v30  ;;  %v2061_v45 = vsel %vm577_vm0, %v8846_v27, 0.0 }
 0x6c2   :  { %v1838_v56 = vmul.f32 1.442695, %v1823_v29 }
 0x6c3   :  { %6649 = vpow2.f32 %v2050_v16 }
 0x6c4   :  { %6651 = vpow2.f32 %v1836_v35 }
 0x6c5   :  { %6653 = vrcp.f32 %v1494_v2 }
 0x6c6   :  { %v1500_v48 = vpop.xlane.xlu1 %1499 }
 0x6c7   :  { %v8860_v12 = vpop.xlane.xlu2 %2026 }
 0x6c9   :  { %v8852_v39 = vpop.eup %6649 }
 0x6ca   :  { %v8858_v61 = vpop.eup %6651 }
 0x6cb   :  { %v1858_v59 = vsel %vm577_vm0, %v8858_v61, 0.0  ;;  %v6654_v36 = vpop.eup %6653 }
 0x6cc   :  { %3545 = vperm.xlu2 %6357, %v3534_v63   ;;  %v1524_v30 = vmul.f32 %v6654_v36, %v8723_v38  ;;  %v11453_v36 = vperm.slane %v8826_v50, 7 }
 0x6ce   :  { %v2033_v6 = vpop.xlane.xlu1 %2032 }
 0x6cf   :  { %3539 = vperm.xlu1 %6356, %v3534_v63   ;;  %v8854_v63 = vpop.f32.mrf.mxu3 }
 0x6d0   :  { %v2456_v35 = vsel %vm577_vm0, %v8854_v63, -inf }
 0x6d1   :  { %6194 = vmatmul.msk.bf16.gmra.mxu2 %vm577_vm0, %v1107_v51  ;;  %v2070_v51 = vsel %vm577_vm0, %v8852_v39, 0.0 }
 0x6d4   :  { %6359 = vset.pattern.permute.xlu2 %v7633_v1 }
 0x6d6   :  { %v1503_v7 = vpop.xlane.xlu2 %1502 }
 0x6d7   :  { %6358 = vset.pattern.permute.xlu1 %v7658_v13  ;;  %v8871_v2 = vpop.f32.mrf.mxu3 }
 0x6d8   :  { %v2459_v29 = vsel %vm577_vm0, %v8871_v2, -inf }
 0x6eb   :  { %2062 = vadd.xlane.f32.xlu0 %v2061_v45 }
 0x6f0   :  { %v1497_v26 = vpop.xlane.xlu0 %1496 }
 0x6f1   :  { %6655 = vrcp.f32 %v1497_v26 }
 0x6f2   :  { %6657 = vpow2.f32 %v1838_v56 }
 0x6f3   :  { %2071 = vadd.xlane.f32.xlu0 %v2070_v51  ;;  %6659 = vpow2.f32 %v2042_v60 }
 0x6f4   :  { %6661 = vrcp.f32 %v1503_v7 }
 0x6f5   :  { %1859 = vadd.xlane.f32.xlu2 %v1858_v59  ;;  %6663 = vrcp.f32 %v1500_v48 }
 0x6f7   :  { %v6656_v44 = vpop.eup %6655 }
 0x6f8   :  { %v1525_v16 = vmul.f32 %v6656_v44, %v8761_v53  ;;  %v8875_v26 = vpop.xlane.xlu0 %2029  ;;  %v8878_v38 = vpop.eup %6657  ;;  %v11679_v53 = vld [vmem:[#allocation29_spill] sm:$0xff] }
 0x6f9   :  { %2457 = vmax.xlane.f32.xlu1 %v2456_v35  ;;  %v1861_v51 = vsel %vm577_vm0, %v8878_v38, 0.0  ;;  %v8883_v56 = vpop.eup %6659  ;;  %v2440_v44 = vpop.xlane.xlu1 %2439 }
 0x6fa   :  { %v1532_v45 = vpack.c.bf16 %v1525_v16, %v1524_v30  ;;  %v6662_v59 = vpop.eup %6661  ;;  %v2058_v60 = vsel %vm577_vm0, %v8883_v56, 0.0  ;;  %v11681_v16 = vld [vmem:[#allocation46_spill] sm:$0xff] }
 0x6fb   :  { %v6664_v30 = vpop.eup %6663  ;;  %v1527_v35 = vmul.f32 %v6662_v59, %v8741_v46  ;;  %v11455_v59 = vperm.slane %v8826_v50, 0 }
 0x6fc   :  { %6207 = vmatmul.msk.bf16.vlgmr.msrb.gmra.mxu2 %vm577_vm0, %v1532_v45  ;;  %v1526_v7 = vmul.f32 %v6664_v30, %v8715_v20  ;;  %v11682_v45 = vld [vmem:[#allocation28_spill] sm:$0xff] }
 0x6fd   :  { %2460 = vmax.xlane.f32.xlu2 %v2459_v29  ;;  %2558 = vmatpush.bf16.msrb.mxu2 %v11679_v53 }
 0x6fe   :  { %v1533_v29 = vpack.c.bf16 %v1527_v35, %v1526_v7  ;;  %v3560_v35 = vperm.slane %v8826_v50, 1 }
 0x700   :  { %v1506_v48 = vpop.xlane.xlu0 %1505 }
 0x701   :  { %1862 = vadd.xlane.f32.xlu1 %v1861_v51  ;;  %2559 = vmatpush.bf16.msrb.mxu2 %v11680_v3  ;;  %v1509_v53 = vpop.xlane.xlu1 %1508  ;;  %6665 = vrcp.f32 %v1506_v48  ;;  %v8898_v3 = vpop.xlane.xlu2 %2442 }
 0x702   :  { %6667 = vrcp.f32 %v1509_v53 }
 0x705   :  { %2059 = vadd.xlane.f32.xlu2 %v2058_v60  ;;  %2560 = vmatpush.bf16.msrb.mxu2 %v11681_v16 }
 0x707   :  { %3649 = vperm.xlu0 %6299, %v11453_v36   ;;  %v6666_v60 = vpop.eup %6665 }
 0x708   :  { %v8896_v51 = vpop.xlane.xlu0 %2445  ;;  %v6668_v16 = vpop.eup %6667  ;;  %v1528_v46 = vmul.f32 %v6666_v60, %v8774_v23  ;;  %v2041_v23 = vsub.f32 %v8725_v33, %v2033_v6 }
 0x709   :  { %2561 = vmatpush.bf16.msrb.mxu2 %v11682_v45  ;;  %v1529_v20 = vmul.f32 %v6668_v16, %v8750_v24  ;;  %v8903_v30 = vpop.permute.xlu1 %3526  ;;  %v1512_v45 = vpop.xlane.xlu2 %1511 }
 0x70a   :  { %11683 = vst [vmem:[#allocation14_spill] sm:$0xff] %v8903_v30  ;;  %v2056_v53 = vmul.f32 1.442695, %v2041_v23 }
 0x70b   :  { %v1534_v48 = vpack.c.bf16 %v1529_v20, %v1528_v46  ;;  %v2462_v46 = vsub.f32 %v8733_v58, %v2440_v44 }
 0x70c   :  { %6208 = vmatmul.msk.bf16.gmra.mxu2 %vm577_vm0, %v1533_v29 }
 0x70d   :  { %v2470_v6 = vmul.f32 1.442695, %v2462_v46 }
 0x710   :  { %v1515_v7 = vpop.xlane.xlu0 %1514 }
 0x711   :  { %6669 = vrcp.f32 %v1515_v7 }
 0x712   :  { %6671 = vrcp.f32 %v1512_v45 }
 0x713   :  { %6673 = vpow2.f32 %v2056_v53 }
 0x717   :  { %v6670_v24 = vpop.eup %6669 }
 0x718   :  { %v6672_v60 = vpop.eup %6671  ;;  %v1857_v16 = vpop.xlane.xlu0 %1856  ;;  %v1531_v36 = vmul.f32 %v6670_v24, %v8792_v18 }
 0x719   :  { %v1530_v20 = vmul.f32 %v6672_v60, %v8756_v34  ;;  %6675 = vrcp.f32 %v1857_v16 }
 0x71a   :  { %3558 = vperm.xlu1 %6358, %v11455_v59  }
 0x71b   :  { %v1535_v33 = vpack.c.bf16 %v1531_v36, %v1530_v20 }
 0x71c   :  { %6209 = vmatmul.msk.bf16.gmra.mxu2 %vm577_vm0, %v1534_v48  ;;  %v8925_v48 = vpop.f32.mrf.mxu2 }
 0x71d   :  { %3565 = vperm.xlu2 %6359, %v3560_v35  }
 0x721   :  { %v2449_v29 = vpop.xlane.xlu1 %2448 }
 0x722   :  { %3571 = vperm.xlu1 %6358, %v3560_v35   ;;  %v8917_v35 = vpop.eup %6673  ;;  %v2465_v18 = vsub.f32 %v8787_v62, %v2449_v29  ;;  %v2036_v29 = vsub.f32 %v8666_v10, %v8841_v47 }
 0x723   :  { %v2079_v34 = vsel %vm577_vm0, %v8917_v35, 0.0 }
 0x724   :  { %v2476_v45 = vmul.f32 1.442695, %v2465_v18  ;;  %v8938_v53 = vpop.f32.mrf.mxu2  ;;  %v2046_v60 = vmul.f32 1.442695, %v2036_v29 }
 0x725   :  { %3578 = vperm.xlu2 %6359, %v3573_v19   ;;  %v6676_v19 = vpop.eup %6675 }
 0x726   :  { %v1877_v44 = vmul.f32 %v6676_v19, %v8800_v49  ;;  %v2037_v49 = vsub.f32 %v8676_v40, %v8848_v15  ;;  %v8952_v15 = vpop.permute.xlu2 %3532 }
 0x727   :  { %11684 = vst [vmem:[#allocation19_spill] sm:$0xff] %v8952_v15 }
 0x728   :  { %v2048_v16 = vmul.f32 1.442695, %v2037_v49 }
 0x729   :  { %v1854_v7 = vpop.xlane.xlu1 %1853 }
 0x72a   :  { %6677 = vrcp.f32 %v1854_v7  ;;  %6360 = vset.pattern.permute.xlu1 %v7633_v1 }
 0x72b   :  { %6679 = vpow2.f32 %v2470_v6 }
 0x72c   :  { %6210 = vmatmul.msk.bf16.gmra.mxu2 %vm577_vm0, %v1535_v33  ;;  %6681 = vpow2.f32 %v2476_v45  ;;  %v8957_v33 = vld [vmem:[%s11334_s9 + $0x38] sm:$0xff]  ;;  %v8974_v45 = vpop.xlane.xlu0 %2454 }
 0x72d   :  { %6361 = vset.pattern.permute.xlu2 %v7658_v13  ;;  %6683 = vpow2.f32 %v2046_v60  ;;  %v11454_v19 = vperm.slane %v8957_v33, 4  ;;  %v3599_v60 = vperm.slane %v8826_v50, 4 }
 0x72e   :  { %6685 = vpow2.f32 %v2048_v16  ;;  %v8964_v18 = vpop.xlane.xlu2 %2451 }
 0x730   :  { %v6678_v58 = vpop.eup %6677 }
 0x731   :  { %v1876_v36 = vmul.f32 %v6678_v58, %v8817_v25  ;;  %2080 = vadd.xlane.f32.xlu0 %v2079_v34  ;;  %v8927_v24 = vpop.eup %6679 }
 0x732   :  { %v2486_v62 = vsel %vm577_vm0, %v8927_v24, 0.0  ;;  %v8936_v25 = vpop.eup %6681 }
 0x733   :  { %v1882_v23 = vpack.c.bf16 %v1877_v44, %v1876_v36  ;;  %v2495_v46 = vsel %vm577_vm0, %v8936_v25, 0.0  ;;  %v8944_v7 = vpop.eup %6683  ;;  %v3586_v44 = vperm.slane %v8826_v50, 3 }
 0x734   :  { %v8942_v20 = vpop.f32.mrf.mxu2  ;;  %v8946_v10 = vpop.eup %6685  ;;  %v2064_v40 = vsel %vm577_vm0, %v8944_v7, 0.0 }
 0x735   :  { %6217 = vmatmul.msk.bf16.gmra.mxu1 %vm577_vm0, %v1882_v23  ;;  %v2067_v47 = vsel %vm577_vm0, %v8946_v10, 0.0  ;;  %v8981_v16 = vpop.permute.xlu0 %3584 }
 0x736   :  { %v8969_v34 = vpop.permute.xlu2 %3545  ;;  %11689 = vst [vmem:[#allocation46_spill] sm:$0xff] %v8981_v16 }
 0x737   :  { %11685 = vst [vmem:[#allocation29_spill] sm:$0xff] %v8969_v34 }
 0x739   :  { %2487 = vadd.xlane.f32.xlu0 %v2486_v62  ;;  %v11687_v62 = vld [vmem:[#allocation15_spill] sm:$0xff] }
 0x73a   :  { %v11688_v29 = vperm.slane %v11687_v62, 3 }
 0x73c   :  { %v8959_v6 = vpop.f32.mrf.mxu2 }
 0x741   :  { %2496 = vadd.xlane.f32.xlu0 %v2495_v46  ;;  %v8976_v23 = vpop.permute.xlu1 %3539 }
 0x742   :  { %11686 = vst [vmem:[#allocation39_spill] sm:$0xff] %v8976_v23 }
 0x744   :  { %v8966_v58 = vpop.f32.mrf.mxu2 }
 0x74c   :  { %2065 = vadd.xlane.f32.xlu1 %v2064_v40  ;;  %v8972_v36 = vpop.f32.mrf.mxu2 }
 0x74e   :  { %2068 = vadd.xlane.f32.xlu2 %v2067_v47  ;;  %v11690_v47 = vperm.slane %v7919_v41, 0 }
 0x754   :  { %v8985_v40 = vpop.f32.mrf.mxu2 }
 0x755   :  { %3714 = vperm.xlu0 %6299, %v11454_v19  }
 0x75d   :  { %6368 = vset.pattern.permute.xlu0 %v7633_v1 }
 0x75e   :  { %v2063_v59 = vpop.xlane.xlu0 %2062 }
 0x765   :  { %3591 = vperm.xlu1 %6360, %v3586_v44   ;;  %2967 = vperm.xlu0 %6368, %v11688_v29   ;;  %v8995_v29 = vpop.f32.mrf.mxu2 }
 0x766   :  { %3597 = vperm.xlu2 %6361, %v3586_v44   ;;  %v11691_v44 = vperm.slane %v7919_v41, 5  ;;  %v11692_v41 = vperm.slane %v8113_v22, 2 }
 0x768   :  { %v1860_v49 = vpop.xlane.xlu2 %1859 }
 0x769   :  { %6687 = vrcp.f32 %v1860_v49 }
 0x76c   :  { %v8983_v46 = vpop.xlane.xlu1 %2457 }
 0x76d   :  { %3604 = vperm.xlu1 %6360, %v3599_v60   ;;  %3032 = vperm.xlu0 %6368, %v11690_v47  }
 0x76e   :  { %3610 = vperm.xlu2 %6361, %v3599_v60  }
 0x76f   :  { %v6688_v47 = vpop.eup %6687 }
 0x770   :  { %v8989_v19 = vpop.xlane.xlu2 %2460  ;;  %v1878_v15 = vmul.f32 %v6688_v47, %v8858_v61  ;;  %v2039_v61 = vsub.f32 %v8701_v9, %v8860_v12  ;;  %v11694_v9 = vperm.slane %v8135_v42, 4 }
 0x774   :  { %v1863_v62 = vpop.xlane.xlu1 %1862 }
 0x775   :  { %3097 = vperm.xlu0 %6368, %v11691_v44   ;;  %6362 = vset.pattern.permute.xlu1 %v7658_v13  ;;  %6689 = vrcp.f32 %v1863_v62 }
 0x776   :  { %6363 = vset.pattern.permute.xlu2 %v7633_v1  ;;  %6691 = vrcp.f32 %v2063_v59 }
 0x778   :  { %v2060_v23 = vpop.xlane.xlu2 %2059 }
 0x779   :  { %6693 = vrcp.f32 %v2060_v23 }
 0x77a   :  { %6695 = vrcp.f32 %v8482_v11 }
 0x77b   :  { %v6690_v60 = vpop.eup %6689  ;;  %6697 = vrcp.f32 %v8441_v5 }
 0x77c   :  { %v6692_v16 = vpop.eup %6691  ;;  %v1879_v49 = vmul.f32 %v6690_v60, %v8878_v38  ;;  %v2040_v38 = vsub.f32 %v8713_v17, %v8875_v26 }
 0x77d   :  { %3162 = vperm.xlu0 %6368, %v11692_v41   ;;  %v2091_v30 = vmul.f32 %v6692_v16, %v8846_v27  ;;  %v2052_v16 = vmul.f32 1.442695, %v2039_v61 }
 0x77e   :  { %v1883_v62 = vpack.c.bf16 %v1879_v49, %v1878_v15  ;;  %v11693_v15 = vperm.slane %v8113_v22, 7  ;;  %v2054_v47 = vmul.f32 1.442695, %v2040_v38  ;;  %v11698_v38 = vperm.slane %v8176_v0, 3 }
 0x77f   :  { %v6694_v44 = vpop.eup %6693  ;;  %v9001_v34 = vpop.f32.mrf.mxu2  ;;  %6699 = vpow2.f32 %v2052_v16 }
 0x780   :  { %v2090_v59 = vmul.f32 %v6694_v44, %v8883_v56  ;;  %6218 = vmatmul.msk.bf16.gmra.mxu1 %vm577_vm0, %v1883_v62  ;;  %v6696_v56 = vpop.eup %6695  ;;  %6701 = vpow2.f32 %v2054_v47  ;;  %v11696_v44 = vld [vmem:[#allocation61_spill] sm:$0xff]  ;;  %v3625_v47 = vperm.slane %v8826_v50, 6 }
 0x781   :  { %v6698_v11 = vpop.eup %6697  ;;  %6703 = vrcp.f32 %v8462_v21 }
 0x782   :  { %v2098_v23 = vpack.c.bf16 %v2091_v30, %v2090_v59  ;;  %v2305_v30 = vmul.f32 %v6696_v56, %v8253_v37  ;;  %v2304_v5 = vmul.f32 %v6698_v11, %v8222_v14  ;;  %6705 = vrcp.f32 %v8569_v54 }
 0x783   :  { %v11695_v37 = vperm.slane %v8166_v32, 1  ;;  %v11697_v59 = vperm.slane %v8166_v32, 6  ;;  %6707 = vrcp.f32 %v8505_v43  ;;  %v3612_v11 = vperm.slane %v8826_v50, 5 }
 0x784   :  { %6223 = vmatmul.msk.bf16.vlgmr.msra.gmra.mxu2 %vm577_vm0, %v2098_v23  ;;  %v2312_v12 = vpack.c.bf16 %v2305_v30, %v2304_v5  ;;  %6709 = vrcp.f32 %v8579_v52  ;;  %v11699_v52 = vperm.slane %v8826_v50, 0  ;;  %v9063_v30 = vpop.permute.xlu2 %3565 }
 0x785   :  { %3227 = vperm.xlu0 %6368, %v11693_v15   ;;  %v9024_v22 = vpop.eup %6699  ;;  %11700 = vst [vmem:[#allocation28_spill] sm:$0xff] %v9063_v30  ;;  %6711 = vrcp.f32 %v8519_v8 }
 0x786   :  { %v9027_v26 = vpop.eup %6701  ;;  %v2073_v42 = vsel %vm577_vm0, %v9024_v22, 0.0  ;;  %6713 = vrcp.f32 %v8478_v55 }
 0x787   :  { %v9015_v27 = vpop.f32.mrf.mxu2  ;;  %v2076_v14 = vsel %vm577_vm0, %v9027_v26, 0.0  ;;  %v6704_v49 = vpop.eup %6703 }
 0x788   :  { %v6706_v41 = vpop.eup %6705  ;;  %v2307_v54 = vmul.f32 %v6704_v49, %v8260_v4 }
 0x789   :  { %v2306_v62 = vmul.f32 %v6706_v41, %v11696_v44  ;;  %v6708_v4 = vpop.eup %6707  ;;  %v11703_v41 = vld [vmem:[#allocation9_spill] sm:$0xff]  ;;  %v3651_v44 = vperm.slane %v8957_v33, 0 }
 0x78a   :  { %v6710_v32 = vpop.eup %6709  ;;  %v2308_v16 = vmul.f32 %v6708_v4, %v8310_v28 }
 0x78b   :  { %v2313_v61 = vpack.c.bf16 %v2307_v54, %v2306_v62  ;;  %v2309_v43 = vmul.f32 %v6710_v32, %v8087_v57  ;;  %v11701_v57 = vperm.slane %v8826_v50, 7 }
 0x78c   :  { %v9061_v0 = vpop.permute.xlu1 %3558 }
 0x78d   :  { %3292 = vperm.xlu0 %6368, %v11694_v9   ;;  %v2314_v5 = vpack.c.bf16 %v2309_v43, %v2308_v16  ;;  %v9072_v9 = vpop.permute.xlu2 %3578 }
 0x78f   :  { %v9021_v17 = vpop.f32.mrf.mxu2 }
 0x790   :  { %6231 = vmatmul.msk.bf16.vlgmr.msra.gmra.mxu1 %vm577_vm0, %v2312_v12  ;;  %v6712_v12 = vpop.eup %6711 }
 0x794   :  { %v9068_v28 = vpop.permute.xlu1 %3571 }
 0x795   :  { %3357 = vperm.xlu0 %6368, %v11695_v37   ;;  %v3677_v37 = vperm.slane %v8957_v33, 2 }
 0x797   :  { %2074 = vadd.xlane.f32.xlu1 %v2073_v42  ;;  %2077 = vadd.xlane.f32.xlu2 %v2076_v14  ;;  %v9036_v60 = vpop.f32.mrf.mxu2  ;;  %v6714_v42 = vpop.eup %6713  ;;  %v11702_v14 = vld [vmem:[#allocation8_spill] sm:$0xff] }
 0x798   :  { %v2311_v49 = vmul.f32 %v6712_v12, %v11702_v14  ;;  %v2310_v54 = vmul.f32 %v6714_v42, %v11703_v41  ;;  %v11461_v41 = vperm.slane %v8957_v33, 7 }
 0x79a   :  { %v2315_v8 = vpack.c.bf16 %v2311_v49, %v2310_v54 }
 0x79d   :  { %3422 = vperm.xlu0 %6368, %v11697_v59   ;;  %v9083_v59 = vpop.f32.mrf.mxu1 }
 0x79f   :  { %v9044_v23 = vpop.f32.mrf.mxu2 }
 0x7a0   :  { %6232 = vmatmul.msk.bf16.gmra.mxu1 %vm577_vm0, %v2313_v61 }
 0x7a5   :  { %3487 = vperm.xlu0 %6368, %v11698_v38   ;;  %v9088_v16 = vpop.f32.mrf.mxu1 }
 0x7a7   :  { %v9051_v15 = vpop.f32.mrf.mxu2 }
 0x7ad   :  { %3552 = vperm.xlu0 %6368, %v11699_v52   ;;  %v9092_v43 = vpop.f32.mrf.mxu1  ;;  %v2464_v52 = vsub.f32 %v8776_v31, %v8896_v51 }
 0x7af   :  { %3630 = vperm.xlu2 %6363, %v3625_v47  }
 0x7b0   :  { %3623 = vperm.xlu1 %6362, %v3612_v11   ;;  %6233 = vmatmul.msk.bf16.gmra.mxu1 %vm577_vm0, %v2314_v5  ;;  %v11704_v5 = vld [vmem:[#allocation115_spill] sm:$0xff] }
 0x7b5   :  { %3617 = vperm.xlu0 %6368, %v3612_v11   ;;  %v9100_v12 = vpop.f32.mrf.mxu1 }
 0x7b7   :  { %3643 = vperm.xlu2 %6363, %v11701_v57   ;;  %v2474_v57 = vmul.f32 1.442695, %v2464_v52 }
 0x7b8   :  { %3636 = vperm.xlu1 %6362, %v3625_v47   ;;  %v2468_v47 = vsub.f32 %v8854_v63, %v8983_v46 }
 0x7ba   :  { %v2482_v11 = vmul.f32 1.442695, %v2468_v47 }
 0x7bd   :  { %3682 = vperm.xlu0 %6368, %v3677_v37   ;;  %v9106_v14 = vpop.f32.mrf.mxu1 }
 0x7bf   :  { %v2066_v55 = vpop.xlane.xlu1 %2065  ;;  %6365 = vset.pattern.permute.xlu2 %v7658_v13 }
 0x7c0   :  { %6715 = vrcp.f32 %v2066_v55  ;;  %6364 = vset.pattern.permute.xlu1 %v7633_v1  ;;  %6234 = vmatmul.msk.bf16.gmra.mxu1 %vm577_vm0, %v2315_v8  ;;  %v1584_v55 = vpop.f32.mrf.mxu2  ;;  %v2072_v8 = vpop.xlane.xlu0 %2071 }
 0x7c1   :  { %v2069_v50 = vpop.xlane.xlu2 %2068 }
 0x7c2   :  { %6717 = vrcp.f32 %v2069_v50 }
 0x7c3   :  { %6719 = vpow2.f32 %v2482_v11  ;;  %v6392_v11 = vpack.i.bf16 %v9015_v27, %v9001_v34 }
 0x7c4   :  { %6721 = vpow2.f32 %v2474_v57 }
 0x7c5   :  { %v9114_v49 = vpop.f32.mrf.mxu1 }
 0x7c6   :  { %v6716_v62 = vpop.eup %6715 }
 0x7c7   :  { %3662 = vperm.xlu2 %6365, %v3651_v44   ;;  %v2092_v38 = vmul.f32 %v6716_v62, %v8944_v7  ;;  %v2463_v7 = vsub.f32 %v11704_v5, %v8898_v3  ;;  %v6382_v62 = vpack.i.bf16 %v8972_v36, %v8966_v58 }
 0x7c8   :  { %v6718_v61 = vpop.eup %6717  ;;  %3656 = vperm.xlu1 %6364, %v3651_v44  }
 0x7c9   :  { %v2093_v4 = vmul.f32 %v6718_v61, %v8946_v10  ;;  %v9098_v10 = vpop.eup %6719  ;;  %v2472_v42 = vmul.f32 1.442695, %v2463_v7  ;;  %v9123_v44 = vpop.permute.xlu2 %3597 }
 0x7ca   :  { %v2504_v63 = vsel %vm577_vm0, %v9098_v10, 0.0  ;;  %v9104_v46 = vpop.eup %6721 }
 0x7cb   :  { %v2099_v32 = vpack.c.bf16 %v2093_v4, %v2092_v38  ;;  %6723 = vpow2.f32 %v2472_v42  ;;  %v2492_v51 = vsel %vm577_vm0, %v9104_v46, 0.0  ;;  %v9129_v38 = vpop.permute.xlu0 %3649  ;;  %v1586_v4 = vpop.f32.mrf.mxu2 }
 0x7cc   :  { %6725 = vrcp.f32 %v2072_v8  ;;  %v3690_v8 = vperm.slane %v8957_v33, 3 }
 0x7cd   :  { %6224 = vmatmul.msk.bf16.gmra.mxu2 %vm577_vm0, %v2099_v32  ;;  %v3664_v32 = vperm.slane %v8957_v33, 1 }
 0x7d1   :  { %v9108_v31 = vpop.eup %6723  ;;  %v9137_v52 = vpop.permute.xlu2 %3610 }
 0x7d2   :  { %v2489_v3 = vsel %vm577_vm0, %v9108_v31, 0.0  ;;  %v6726_v57 = vpop.eup %6725 }
 0x7d3   :  { %v2081_v58 = vpop.xlane.xlu0 %2080 }
 0x7d7   :  { %v9117_v54 = vpop.permute.xlu1 %3591 }
 0x7df   :  { %v9127_v61 = vpop.permute.xlu1 %3604 }
 0x7e0   :  { %11705 = vst [vmem:[#allocation15_spill] sm:$0xff] %v9127_v61 }
 0x7e7   :  { %2505 = vadd.xlane.f32.xlu0 %v2504_v63  ;;  %v6407_v63 = vpack.i.bf16 %v1586_v4, %v1584_v55 }
 0x7f0   :  { %2493 = vadd.xlane.f32.xlu2 %v2492_v51  ;;  %v2094_v51 = vmul.f32 %v6726_v57, %v8852_v39 }
 0x7f2   :  { %2490 = vadd.xlane.f32.xlu1 %v2489_v3 }
 0x7fb   :  { %3747 = vperm.xlu0 %6368, %v11461_v41  }
 0x7fd   :  { %v9121_v50 = vpop.f32.mrf.mxu1 }
 0x803   :  { %6383 = vrot.lane.b32.xlu0 %v6382_v62, %s6836_s27  ;;  %v2488_v62 = vpop.xlane.xlu0 %2487 }
 0x805   :  { %v9133_v47 = vpop.f32.mrf.mxu1 }
 0x807   :  { %v2135_v36 = vpop.f32.mrf.mxu2 }
 0x808   :  { %3675 = vperm.xlu2 %6365, %v3664_v32  }
 0x80a   :  { %v2075_v5 = vpop.xlane.xlu1 %2074  ;;  %v2078_v27 = vpop.xlane.xlu2 %2077 }
 0x80b   :  { %6727 = vrcp.f32 %v2075_v5  ;;  %3669 = vperm.xlu1 %6364, %v3664_v32   ;;  %6393 = vrot.lane.b32.xlu0 %v6392_v11, %s6831_s23  ;;  %v2497_v57 = vpop.xlane.xlu0 %2496 }
 0x80c   :  { %6729 = vrcp.f32 %v2078_v27 }
 0x80d   :  { %v9140_v7 = vpop.f32.mrf.mxu1  ;;  %6731 = vrcp.f32 %v2081_v58 }
 0x80f   :  { %v2137_v32 = vpop.f32.mrf.mxu2 }
 0x810   :  { %6367 = vset.pattern.permute.xlu2 %v7633_v1 }
 0x811   :  { %v6728_v42 = vpop.eup %6727 }
 0x812   :  { %v2095_v34 = vmul.f32 %v6728_v42, %v9024_v22  ;;  %v6417_v22 = vpack.i.bf16 %v2137_v32, %v2135_v36  ;;  %v6730_v55 = vpop.eup %6729  ;;  %v11707_v36 = vld [vmem:[#allocation21_spill] sm:$0xff] }
 0x813   :  { %6366 = vset.pattern.permute.xlu1 %v7658_v13  ;;  %6408 = vrot.lane.b32.xlu0 %v6407_v63, %s6831_s23  ;;  %v6732_v5 = vpop.eup %6731  ;;  %v2096_v42 = vmul.f32 %v6730_v55, %v9027_v26  ;;  %v9159_v58 = vpop.permute.xlu0 %3714  ;;  %v11708_v26 = vld [vmem:[#allocation31_spill] sm:$0xff] }
 0x814   :  { %v2100_v3 = vpack.c.bf16 %v2095_v34, %v2094_v51  ;;  %v2097_v63 = vmul.f32 %v6732_v5, %v8917_v35  ;;  %11706 = vst [vmem:[#allocation61_spill] sm:$0xff] %v9159_v58  ;;  %v2466_v35 = vsub.f32 %v11708_v26, %v8964_v18 }
 0x815   :  { %v9148_v11 = vpop.f32.mrf.mxu1 }
 0x816   :  { %6225 = vmatmul.msk.bf16.gmra.mxu2 %vm577_vm0, %v2100_v3  ;;  %v2101_v51 = vpack.c.bf16 %v2097_v63, %v2096_v42  ;;  %v2467_v3 = vsub.f32 %v11707_v36, %v8974_v45  ;;  %v2478_v5 = vmul.f32 1.442695, %v2466_v35  ;;  %v11715_v35 = vperm.slane %v8957_v33, 4 }
 0x818   :  { %3695 = vperm.xlu2 %6367, %v3690_v8  }
 0x81b   :  { %3688 = vperm.xlu1 %6366, %v3677_v37   ;;  %6418 = vrot.lane.b32.xlu0 %v6417_v22, %s6836_s27  ;;  %v9166_v32 = vpop.permute.xlu0 %2967  ;;  %v2480_v22 = vmul.f32 1.442695, %v2467_v3  ;;  %v9190_v3 = vpop.permute.xlu2 %3630 }
 0x81d   :  { %v2354_v4 = vpop.f32.mrf.mxu1  ;;  %6733 = vpow2.f32 %v2480_v22 }
 0x81e   :  { %6735 = vpow2.f32 %v2478_v5 }
 0x81f   :  { %6737 = vrcp.f32 %v2488_v62  ;;  %v3729_v62 = vperm.slane %v8957_v33, 6 }
 0x823   :  { %v9174_v42 = vpop.permute.xlu0 %3032  ;;  %v9176_v63 = vpop.eup %6733 }
 0x824   :  { %11709 = vst [vmem:[#allocation8_spill] sm:$0xff] %v9174_v42  ;;  %v2501_v45 = vsel %vm577_vm0, %v9176_v63, 0.0  ;;  %v9198_v5 = vpop.permute.xlu2 %3643 }
 0x825   :  { %v2356_v34 = vpop.f32.mrf.mxu1  ;;  %11716 = vst [vmem:[#allocation118_spill] sm:$0xff] %v9198_v5 }
 0x826   :  { %6226 = vmatmul.msk.bf16.gmra.mxu2 %vm577_vm0, %v2101_v51  ;;  %v6422_v27 = vpack.i.bf16 %v2356_v34, %v2354_v4  ;;  %v9180_v51 = vpop.eup %6735 }
 0x827   :  { %v2498_v18 = vsel %vm577_vm0, %v9180_v51, 0.0  ;;  %v6738_v39 = vpop.eup %6737 }
 0x828   :  { %6423 = vrot.lane.b32.xlu0 %v6422_v27, %s6833_s25  ;;  %v9186_v27 = vpop.permute.xlu1 %3623 }
 0x829   :  { %11711 = vst [vmem:[#allocation115_spill] sm:$0xff] %v9186_v27 }
 0x82b   :  { %v9182_v34 = vpop.permute.xlu0 %3097 }
 0x82c   :  { %11710 = vst [vmem:[#allocation9_spill] sm:$0xff] %v9182_v34  ;;  %v9208_v56 = vpop.permute.xlu2 %3662 }
 0x82d   :  { %v9162_v37 = vpop.f32.mrf.mxu1  ;;  %11719 = vst [vmem:[#allocation121_spill] sm:$0xff] %v9208_v56 }
 0x830   :  { %v9192_v22 = vpop.permute.xlu1 %3636 }
 0x831   :  { %11713 = vst [vmem:[#allocation31_spill] sm:$0xff] %v9192_v22 }
 0x833   :  { %v9188_v36 = vpop.permute.xlu0 %3162 }
 0x834   :  { %11712 = vst [vmem:[#allocation21_spill] sm:$0xff] %v9188_v36 }
 0x835   :  { %v9170_v55 = vpop.f32.mrf.mxu1 }
 0x83b   :  { %v9194_v26 = vpop.permute.xlu0 %3227 }
 0x83c   :  { %11714 = vst [vmem:[#allocation117_spill] sm:$0xff] %v9194_v26 }
 0x841   :  { %2502 = vadd.xlane.f32.xlu2 %v2501_v45  ;;  %v9200_v45 = vpop.permute.xlu1 %3656 }
 0x842   :  { %11717 = vst [vmem:[#allocation119_spill] sm:$0xff] %v9200_v45  ;;  %v6387_v45 = vpack.i.bf16 %v8995_v29, %v8985_v40  ;;  %v2469_v40 = vsub.f32 %v8871_v2, %v8989_v19 }
 0x843   :  { %v9205_v4 = vpop.permute.xlu0 %3292 }
 0x844   :  { %11718 = vst [vmem:[#allocation120_spill] sm:$0xff] %v9205_v4  ;;  %v2484_v29 = vmul.f32 1.442695, %v2469_v40  ;;  %v6275_v40 = vld [vmem:[%s11330_s5] sm:$0xff] }
 0x845   :  { %2499 = vadd.xlane.f32.xlu1 %v2498_v18  ;;  %v6370_v18 = vpack.i.bf16 %v8938_v53, %v8925_v48  ;;  %v2518_v48 = vmul.f32 %v6738_v39, %v8927_v24 }
 0x84b   :  { %v9212_v21 = vpop.permute.xlu0 %3357 }
 0x84c   :  { %11720 = vst [vmem:[#allocation122_spill] sm:$0xff] %v9212_v21 }
 0x859   :  { %3708 = vperm.xlu2 %6367, %v11715_v35   ;;  %v3716_v35 = vperm.slane %v8957_v33, 5 }
 0x85e   :  { %3701 = vperm.xlu1 %6366, %v3690_v8  }
 0x861   :  { %6375 = vset.pattern.permute.xlu2 %v7658_v13 }
 0x862   :  { %6371 = vrot.lane.b32.xlu2 %v6370_v18, %s6836_s27 }
 0x863   :  { %v2494_v18 = vpop.xlane.xlu2 %2493 }
 0x865   :  { %v2491_v41 = vpop.xlane.xlu1 %2490 }
 0x866   :  { %6739 = vrcp.f32 %v2491_v41  ;;  %6369 = vset.pattern.permute.xlu1 %v7633_v1  ;;  %v9218_v41 = vpop.permute.xlu0 %3422 }
 0x867   :  { %6741 = vrcp.f32 %v2494_v18  ;;  %11721 = vst [vmem:[#allocation123_spill] sm:$0xff] %v9218_v41 }
 0x868   :  { %6743 = vrcp.f32 %v2497_v57  ;;  %v11723_v57 = vpack.i.bf16 %v9036_v60, %v9021_v17 }
 0x869   :  { %6745 = vpow2.f32 %v2484_v29 }
 0x86a   :  { %3727 = vperm.xlu2 %6375, %v3716_v35  }
 0x86c   :  { %v6740_v8 = vpop.eup %6739 }
 0x86d   :  { %v2519_v53 = vmul.f32 %v6740_v8, %v9108_v31  ;;  %v6742_v1 = vpop.eup %6741 }
 0x86e   :  { %3721 = vperm.xlu1 %6369, %v3716_v35   ;;  %v6744_v22 = vpop.eup %6743  ;;  %v2520_v24 = vmul.f32 %v6742_v1, %v9104_v46  ;;  %v9225_v35 = vpop.permute.xlu0 %3487  ;;  %v11724_v1 = vpack.i.bf16 %v9148_v11, %v9140_v7  ;;  %v6278_v7 = vld [vmem:[%s11330_s5 + $0x18] sm:$0xff] }
 0x86f   :  { %v2526_v58 = vpack.c.bf16 %v2519_v53, %v2518_v48  ;;  %v2521_v31 = vmul.f32 %v6744_v22, %v8936_v25  ;;  %11722 = vst [vmem:[#allocation124_spill] sm:$0xff] %v9225_v35  ;;  %v2364_v25 = vpop.f32.mrf.mxu1  ;;  %v9241_v17 = vpop.eup %6745  ;;  %2775 = vmatpush.bf16.msrb.mxu0 %v6278_v7  ;;  %v6277_v53 = vld [vmem:[%s11330_s5 + $0x10] sm:$0xff] }
 0x870   :  { %v2507_v2 = vsel %vm577_vm0, %v9241_v17, 0.0 }
 0x871   :  { %6239 = vmatmul.msk.bf16.vlgmr.msrb.gmra.mxu2 %vm577_vm0, %v2526_v58  ;;  %v2527_v39 = vpack.c.bf16 %v2521_v31, %v2520_v24  ;;  %v2140_v58 = vpop.f32.mrf.mxu2  ;;  %v9256_v31 = vpop.permute.xlu2 %3675 }
 0x872   :  { %3740 = vperm.xlu2 %6375, %v3729_v62  }
 0x873   :  { %2776 = vmatpush.bf16.msrb.mxu0 %v6277_v53 }
 0x877   :  { %v2366_v8 = vpop.f32.mrf.mxu1 }
 0x878   :  { %v6442_v19 = vpack.i.bf16 %v2366_v8, %v2364_v25 }
 0x879   :  { %v2142_v46 = vpop.f32.mrf.mxu2  ;;  %v9267_v29 = vpop.permute.xlu2 %3695 }
 0x87a   :  { %6388 = vrot.lane.b32.xlu2 %v6387_v45, %s6836_s27  ;;  %v9234_v45 = vpop.permute.xlu0 %3552  ;;  %v6427_v22 = vpack.i.bf16 %v2142_v46, %v2140_v58 }
 0x87d   :  { %v9262_v58 = vpop.permute.xlu1 %3669 }
 0x881   :  { %6240 = vmatmul.msk.bf16.gmra.mxu2 %vm577_vm0, %v2527_v39  ;;  %v6276_v39 = vld [vmem:[%s11330_s5 + $0x8] sm:$0xff] }
 0x882   :  { %6398 = vrot.lane.b32.xlu2 %v11723_v57, %s6831_s23  ;;  %v9243_v60 = vpop.permute.xlu0 %3617  ;;  %2777 = vmatpush.bf16.msrb.mxu0 %v6276_v39 }
 0x886   :  { %2778 = vmatpush.bf16.msrb.mxu0 %v6275_v40 }
 0x88a   :  { %6413 = vrot.lane.b32.xlu2 %v11724_v1, %s6833_s25  ;;  %v9251_v11 = vpop.permute.xlu0 %3682  ;;  %v6376_v1 = vpack.i.bf16 %v8959_v6, %v8942_v20 }
 0x88b   :  { %11725 = vst [vmem:[#allocation125_spill] sm:$0xff] %v9251_v11 }
 0x88d   :  { %v9273_v46 = vpop.permute.xlu1 %3688 }
 0x88e   :  { %11727 = vst [vmem:[#allocation127_spill] sm:$0xff] %v9273_v46 }
 0x892   :  { %6428 = vrot.lane.b32.xlu2 %v6427_v22, %s6836_s27  ;;  %v2506_v57 = vpop.xlane.xlu0 %2505 }
 0x898   :  { %2508 = vadd.xlane.f32.xlu1 %v2507_v2 }
 0x899   :  { %v2145_v48 = vpop.f32.mrf.mxu2 }
 0x89a   :  { %6443 = vrot.lane.b32.xlu2 %v6442_v19, %s6833_s25  ;;  %v9271_v25 = vpop.permute.xlu0 %3747 }
 0x89b   :  { %11726 = vst [vmem:[#allocation126_spill] sm:$0xff] %v9271_v25 }
 0x8a1   :  { %v2147_v18 = vpop.f32.mrf.mxu2 }
 0x8a2   :  { %v6437_v24 = vpack.i.bf16 %v2147_v18, %v2145_v48  ;;  %v9276_v2 = vpop.permute.xlu0 %6383 }
 0x8a4   :  { %6438 = vrot.lane.b32.xlu0 %v6437_v24, %s6836_s27 }
 0x8aa   :  { %v6394_v18 = vpop.permute.xlu0 %6393 }
 0x8ab   :  { %v6395_v25 = vunpack.i.l.bf16 %v6394_v18 }
 0x8b1   :  { %6377 = vrot.lane.b32.xlu1 %v6376_v1, %s6836_s27 }
 0x8b4   :  { %v2503_v22 = vpop.xlane.xlu2 %2502 }
 0x8b5   :  { %6747 = vrcp.f32 %v2503_v22 }
 0x8b8   :  { %v2500_v8 = vpop.xlane.xlu1 %2499 }
 0x8b9   :  { %6749 = vrcp.f32 %v2500_v8  ;;  %3734 = vperm.xlu1 %6369, %v3729_v62   ;;  %v11728_v62 = vld [vmem:[#allocation104_spill] sm:$0xff]  ;;  %v6396_v8 = vunpack.i.h.bf16 %v6394_v18  ;;  %v11732_v18 = vpack.i.bf16 %v9051_v15, %v9044_v23 }
 0x8ba   :  { %v6336_v1 = vunpack.i.h.bf16 %v11728_v62  ;;  %v6335_v22 = vunpack.i.l.bf16 %v11728_v62  ;;  %v11731_v62 = vperm.slane %v8957_v33, 7  ;;  %6751 = vrcp.f32 %v2506_v57 }
 0x8bb   :  { %v6748_v48 = vpop.eup %6747 }
 0x8bc   :  { %v9278_v19 = vpop.permute.xlu2 %3708  ;;  %v2523_v53 = vmul.f32 %v6748_v48, %v9176_v63  ;;  %v11729_v63 = vld [vmem:[#allocation20_spill] sm:$0xff]  ;;  %v11730_v48 = vld [vmem:[#allocation70_spill] sm:$0xff] }
 0x8bf   :  { %v6750_v7 = vpop.eup %6749 }
 0x8c0   :  { %v2522_v20 = vmul.f32 %v6750_v7, %v9180_v51 }
 0x8c1   :  { %6381 = vset.pattern.permute.xlu1 %v7658_v13 }
 0x8c2   :  { %v2528_v6 = vpack.c.bf16 %v2523_v53, %v2522_v20 }
 0x8c4   :  { %v6372_v24 = vpop.permute.xlu2 %6371  ;;  %6241 = vmatmul.msk.bf16.gmra.mxu2 %vm577_vm0, %v2528_v6 }
 0x8c5   :  { %v6374_v39 = vunpack.i.h.bf16 %v6372_v24  ;;  %v6373_v40 = vunpack.i.l.bf16 %v6372_v24 }
 0x8c7   :  { %v1686_v51 = vsel %vm744_vm1, %v11729_v63, %v6374_v39  ;;  %v1685_v7 = vsel %vm744_vm1, %v11730_v48, %v6373_v40  ;;  %v2150_v39 = vpop.f32.mrf.mxu2  ;;  %v11733_v40 = vpack.i.bf16 %v9170_v55, %v9162_v37 }
 0x8c8   :  { %v1695_v53 = vsel %vm1693_vm2, %v1686_v51, %v6336_v1  ;;  %v1694_v20 = vsel %vm1693_vm2, %v1685_v7, %v6335_v22  ;;  %v6752_v7 = vpop.eup %6751 }
 0x8c9   :  { %v1703_v6 = vsel %vm1702_vm3, %v1694_v20, %v6395_v25  ;;  %v1704_v24 = vsel %vm1702_vm3, %v1695_v53, %v6396_v8  ;;  %3753 = vperm.xlu1 %6381, %v11731_v62   ;;  %v2524_v20 = vmul.f32 %v6752_v7, %v9098_v10  ;;  %v11738_v10 = vld [vmem:[#allocation5_spill] sm:$0xff] }
 0x8ca   :  { %v2703_v13 = vpack.c.bf16 %v1704_v24, %v1703_v6 }
 0x8cc   :  { %6259 = vmatmul.msk.bf16.vlgmr.msrb.gmra.mxu0 %vm577_vm0, %v2703_v13  ;;  %v9311_v15 = vpop.permute.xlu2 %3727 }
 0x8cf   :  { %v2152_v25 = vpop.f32.mrf.mxu2 }
 0x8d0   :  { %v6447_v1 = vpack.i.bf16 %v2152_v25, %v2150_v39  ;;  %v9306_v22 = vpop.permute.xlu1 %3701  ;;  %v11736_v25 = vld [vmem:[#allocation106_spill] sm:$0xff] }
 0x8d1   :  { %6403 = vrot.lane.b32.xlu1 %v11732_v18, %s6831_s23  ;;  %11734 = vst [vmem:[#allocation104_spill] sm:$0xff] %v9306_v22 }
 0x8d4   :  { %v9313_v48 = vpop.permute.xlu2 %3740 }
 0x8d9   :  { %6433 = vrot.lane.b32.xlu1 %v11733_v40, %s6833_s25 }
 0x8dc   :  { %v6389_v62 = vpop.permute.xlu2 %6388 }
 0x8e0   :  { %v9309_v63 = vpop.permute.xlu1 %3721 }
 0x8e1   :  { %6448 = vrot.lane.b32.xlu1 %v6447_v1, %s6836_s27  ;;  %11735 = vst [vmem:[#allocation20_spill] sm:$0xff] %v9309_v63  ;;  %v6343_v1 = vunpack.i.h.bf16 %v11736_v25 }
 0x8e4   :  { %v6399_v18 = vpop.permute.xlu2 %6398 }
 0x8f4   :  { %v2563_v33 = vpop.f32.mrf.mxu2 }
 0x8fc   :  { %v2565_v8 = vpop.f32.mrf.mxu2 }
 0x8fd   :  { %v6452_v13 = vpack.i.bf16 %v2565_v8, %v2563_v33  ;;  %v6342_v33 = vunpack.i.l.bf16 %v11736_v25  ;;  %v6401_v8 = vunpack.i.h.bf16 %v6399_v18  ;;  %v11740_v25 = vld [vmem:[#allocation23_spill] sm:$0xff] }
 0x8ff   :  { %6453 = vrot.lane.b32.xlu0 %v6452_v13, %s6831_s23  ;;  %v6400_v13 = vunpack.i.l.bf16 %v6399_v18  ;;  %v6386_v18 = vunpack.i.h.bf16 %v9276_v2 }
 0x904   :  { %v2568_v23 = vpop.f32.mrf.mxu2 }
 0x90b   :  { %v2509_v51 = vpop.xlane.xlu1 %2508 }
 0x90c   :  { %6753 = vrcp.f32 %v2509_v51  ;;  %v2570_v37 = vpop.f32.mrf.mxu2 }
 0x90d   :  { %v6457_v55 = vpack.i.bf16 %v2570_v37, %v2568_v23  ;;  %v11737_v23 = vld [vmem:[#allocation50_spill] sm:$0xff] }
 0x90f   :  { %6458 = vrot.lane.b32.xlu1 %v6457_v55, %s6831_s23 }
 0x912   :  { %v6754_v53 = vpop.eup %6753 }
 0x913   :  { %v2525_v6 = vmul.f32 %v6754_v53, %v9241_v17 }
 0x915   :  { %v2529_v24 = vpack.c.bf16 %v2525_v6, %v2524_v20 }
 0x917   :  { %6242 = vmatmul.msk.bf16.gmra.mxu2 %vm577_vm0, %v2529_v24 }
 0x923   :  { %v6378_v57 = vpop.permute.xlu1 %6377 }
 0x924   :  { %v6380_v39 = vunpack.i.h.bf16 %v6378_v57  ;;  %v6379_v40 = vunpack.i.l.bf16 %v6378_v57  ;;  %v6385_v57 = vunpack.i.l.bf16 %v9276_v2 }
 0x926   :  { %v1688_v51 = vsel %vm744_vm1, %v11737_v23, %v6380_v39  ;;  %v1687_v17 = vsel %vm744_vm1, %v11738_v10, %v6379_v40  ;;  %v11739_v39 = vld [vmem:[#allocation18_spill] sm:$0xff] }
 0x927   :  { %v1696_v37 = vsel %vm1693_vm2, %v1687_v17, %v6342_v33  ;;  %v1697_v55 = vsel %vm1693_vm2, %v1688_v51, %v6343_v1  ;;  %v1690_v40 = vsel %vm744_vm1, %v11739_v39, %v6386_v18  ;;  %v1689_v1 = vsel %vm744_vm1, %v11740_v25, %v6385_v57  ;;  %v11741_v33 = vld [vmem:[#allocation100_spill] sm:$0xff]  ;;  %v11742_v57 = vld [vmem:[#allocation10_spill] sm:$0xff] }
 0x928   :  { %v1705_v7 = vsel %vm1702_vm3, %v1696_v37, %v6400_v13  ;;  %v1706_v53 = vsel %vm1702_vm3, %v1697_v55, %v6401_v8  ;;  %v6348_v13 = vunpack.i.h.bf16 %v11741_v33  ;;  %v6347_v8 = vunpack.i.l.bf16 %v11741_v33  ;;  %v11743_v25 = vld [vmem:[#allocation56_spill] sm:$0xff] }
 0x929   :  { %v2704_v20 = vpack.c.bf16 %v1706_v53, %v1705_v7  ;;  %v6390_v18 = vunpack.i.l.bf16 %v6389_v62 }
 0x92a   :  { %v1698_v17 = vsel %vm1693_vm2, %v1689_v1, %v6347_v8  ;;  %v1699_v37 = vsel %vm1693_vm2, %v1690_v40, %v6348_v13  ;;  %v6409_v13 = vpop.permute.xlu0 %6408 }
 0x92b   :  { %6260 = vmatmul.msk.bf16.gmra.mxu0 %vm577_vm0, %v2704_v20  ;;  %v9330_v6 = vpop.permute.xlu1 %3734  ;;  %v6391_v20 = vunpack.i.h.bf16 %v6389_v62  ;;  %v1691_v33 = vsel %vm744_vm1, %v11743_v25, %v6390_v18  ;;  %v6414_v25 = vpop.permute.xlu2 %6413 }
 0x92d   :  { %v1692_v39 = vsel %vm744_vm1, %v11742_v57, %v6391_v20 }
 0x932   :  { %v6419_v20 = vpop.permute.xlu0 %6418 }
 0x93a   :  { %v6424_v18 = vpop.permute.xlu0 %6423 }
 0x93b   :  { %v9332_v24 = vpop.permute.xlu1 %3753 }
 0x942   :  { %v6439_v57 = vpop.permute.xlu0 %6438 }
 0x943   :  { %v6404_v23 = vpop.permute.xlu1 %6403 }
 0x944   :  { %v6406_v51 = vunpack.i.h.bf16 %v6404_v23  ;;  %v6405_v10 = vunpack.i.l.bf16 %v6404_v23  ;;  %v11744_v23 = vld [vmem:[#allocation111_spill] sm:$0xff] }
 0x945   :  { %v6354_v1 = vunpack.i.h.bf16 %v11744_v23  ;;  %v6353_v40 = vunpack.i.l.bf16 %v11744_v23  ;;  %v6420_v23 = vunpack.i.l.bf16 %v6419_v20 }
 0x946   :  { %v1707_v55 = vsel %vm1702_vm3, %v1698_v17, %v6405_v10  ;;  %v1708_v2 = vsel %vm1702_vm3, %v1699_v37, %v6406_v51  ;;  %v6411_v37 = vunpack.i.h.bf16 %v6409_v13 }
 0x947   :  { %v2573_v7 = vpop.f32.mrf.mxu2  ;;  %v2705_v53 = vpack.c.bf16 %v1708_v2, %v1707_v55  ;;  %v1701_v51 = vsel %vm1693_vm2, %v1692_v39, %v6354_v1  ;;  %v1700_v17 = vsel %vm1693_vm2, %v1691_v33, %v6353_v40  ;;  %v6410_v55 = vunpack.i.l.bf16 %v6409_v13 }
 0x948   :  { %v1710_v2 = vsel %vm1702_vm3, %v1701_v51, %v6411_v37  ;;  %v6416_v39 = vunpack.i.h.bf16 %v6414_v25  ;;  %v6415_v1 = vunpack.i.l.bf16 %v6414_v25 }
 0x949   :  { %6261 = vmatmul.msk.bf16.gmra.mxu0 %vm577_vm0, %v2705_v53  ;;  %v1709_v62 = vsel %vm1702_vm3, %v1700_v17, %v6410_v55 }
 0x94a   :  { %v2706_v53 = vpack.c.bf16 %v1710_v2, %v1709_v62 }
 0x94b   :  { %v6434_v33 = vpop.permute.xlu1 %6433 }
 0x94f   :  { %v2575_v8 = vpop.f32.mrf.mxu2 }
 0x950   :  { %v6462_v10 = vpack.i.bf16 %v2575_v8, %v2573_v7  ;;  %v6421_v7 = vunpack.i.h.bf16 %v6419_v20  ;;  %v2679_v8 = vsel %vm744_vm1, %v9083_v59, %v6420_v23  ;;  %v6426_v23 = vunpack.i.h.bf16 %v6424_v18 }
 0x951   :  { %v2687_v17 = vsel %vm1693_vm2, %v2679_v8, %v6415_v1 }
 0x952   :  { %6463 = vrot.lane.b32.xlu2 %v6462_v10, %s6831_s23  ;;  %v2680_v13 = vsel %vm744_vm1, %v9088_v16, %v6421_v7 }
 0x953   :  { %v2688_v37 = vsel %vm1693_vm2, %v2680_v13, %v6416_v39  ;;  %v9368_v20 = vpop.permute.xlu1 %6448  ;;  %v6425_v39 = vunpack.i.l.bf16 %v6424_v18  ;;  %v6441_v18 = vunpack.i.h.bf16 %v6439_v57 }
 0x959   :  { %6262 = vmatmul.msk.bf16.gmra.mxu0 %vm577_vm0, %v2706_v53  ;;  %v6429_v53 = vpop.permute.xlu2 %6428 }
 0x95a   :  { %v6431_v16 = vunpack.i.h.bf16 %v6429_v53  ;;  %v6430_v25 = vunpack.i.l.bf16 %v6429_v53  ;;  %v6440_v53 = vunpack.i.l.bf16 %v6439_v57 }
 0x95c   :  { %v2682_v59 = vsel %vm744_vm1, %v9100_v12, %v6431_v16  ;;  %v2681_v7 = vsel %vm744_vm1, %v9092_v43, %v6430_v25  ;;  %v6436_v16 = vunpack.i.h.bf16 %v6434_v33  ;;  %v6435_v25 = vunpack.i.l.bf16 %v6434_v33 }
 0x95d   :  { %v2689_v8 = vsel %vm1693_vm2, %v2681_v7, %v6425_v39  ;;  %v2683_v39 = vsel %vm744_vm1, %v9106_v14, %v6440_v53  ;;  %v9394_v14 = vld [vmem:[%s11331_s6] ss:$0 sm:$0xff] }
 0x971   :  { %v6454_v40 = vpop.permute.xlu0 %6453 }
 0x972   :  { %v6456_v10 = vunpack.i.h.bf16 %v6454_v40  ;;  %v6455_v51 = vunpack.i.l.bf16 %v6454_v40 }
 0x974   :  { %v2695_v55 = vsel %vm1702_vm3, %v2687_v17, %v6455_v51  ;;  %v2696_v62 = vsel %vm1702_vm3, %v2688_v37, %v6456_v10  ;;  %v2690_v10 = vsel %vm1693_vm2, %v2682_v59, %v6426_v23  ;;  %v2684_v23 = vsel %vm744_vm1, %v9114_v49, %v6441_v18 }
 0x975   :  { %v2707_v2 = vpack.c.bf16 %v2696_v62, %v2695_v55  ;;  %v2780_v55 = vpop.f32.mrf.mxu0 }
 0x977   :  { %6263 = vmatmul.msk.bf16.gmra.mxu0 %vm577_vm0, %v2707_v2  ;;  %v9379_v2 = vpop.permute.xlu2 %6443 }
 0x97d   :  { %v2782_v59 = vpop.f32.mrf.mxu0 }
 0x981   :  { %v6459_v1 = vpop.permute.xlu1 %6458 }
 0x982   :  { %v6461_v40 = vunpack.i.h.bf16 %v6459_v1  ;;  %v6460_v13 = vunpack.i.l.bf16 %v6459_v1 }
 0x984   :  { %v2697_v51 = vsel %vm1702_vm3, %v2689_v8, %v6460_v13  ;;  %v2698_v17 = vsel %vm1702_vm3, %v2690_v10, %v6461_v40  ;;  %v2691_v13 = vsel %vm1693_vm2, %v2683_v39, %v6435_v25  ;;  %v2692_v8 = vsel %vm1693_vm2, %v2684_v23, %v6436_v16 }
 0x985   :  { %v2708_v37 = vpack.c.bf16 %v2698_v17, %v2697_v51 }
 0x987   :  { %6264 = vmatmul.msk.bf16.gmra.mxu0 %vm577_vm0, %v2708_v37 }
 0x99a   :  { %v2578_v12 = vpop.f32.mrf.mxu2 }
 0x9a2   :  { %v2580_v62 = vpop.f32.mrf.mxu2 }
 0x9a3   :  { %v6467_v43 = vpack.i.bf16 %v2580_v62, %v2578_v12  ;;  %v9397_v12 = vadd.f32 %v9394_v14, %v2782_v59  ;;  %v9400_v62 = vadd.f32 %v9394_v14, %v2780_v55 }
 0x9a5   :  { %6468 = vrot.lane.b32.xlu0 %v6467_v43, %s6831_s23  ;;  %11745 = vst [vmem:[#allocation70_spill] sm:$0xff] %v9397_v12  ;;  %v2821_v18 = vsel %vm577_vm0, %v9397_v12, 0.0  ;;  %v2820_v16 = vsel %vm577_vm0, %v9400_v62, 0.0  ;;  %v11768_v12 = vld [vmem:[#allocation41_spill] sm:$0xff] }
 0x9a6   :  { %11746 = vst [vmem:[#allocation106_spill] sm:$0xff] %v9400_v62  ;;  %v2822_v55 = vadd.f32 %v2821_v18, %v2820_v16 }
 0x9a8   :  { %v2785_v33 = vpop.f32.mrf.mxu0 }
 0x9a9   :  { %v9403_v43 = vadd.f32 %v9394_v14, %v2785_v33 }
 0x9ab   :  { %11747 = vst [vmem:[#allocation50_spill] sm:$0xff] %v9403_v43  ;;  %v2823_v25 = vsel %vm577_vm0, %v9403_v43, 0.0  ;;  %v11766_v43 = vld [vmem:[#allocation59_spill] sm:$0xff] }
 0x9ac   :  { %v6464_v7 = vpop.permute.xlu2 %6463 }
 0x9ad   :  { %v6466_v1 = vunpack.i.h.bf16 %v6464_v7  ;;  %v6465_v40 = vunpack.i.l.bf16 %v6464_v7 }
 0x9af   :  { %v2699_v10 = vsel %vm1702_vm3, %v2691_v13, %v6465_v40  ;;  %v2700_v57 = vsel %vm1702_vm3, %v2692_v8, %v6466_v1  ;;  %v2824_v1 = vadd.f32 %v2823_v25, %v2822_v55 }
 0x9b0   :  { %v2709_v51 = vpack.c.bf16 %v2700_v57, %v2699_v10  ;;  %v2787_v17 = vpop.f32.mrf.mxu0 }
 0x9b1   :  { %v9408_v53 = vadd.f32 %v9394_v14, %v2787_v17 }
 0x9b2   :  { %6265 = vmatmul.msk.bf16.gmra.mxu0 %vm577_vm0, %v2709_v51 }
 0x9b3   :  { %11748 = vst [vmem:[#allocation5_spill] sm:$0xff] %v9408_v53  ;;  %v2825_v23 = vsel %vm577_vm0, %v9408_v53, 0.0 }
 0x9b4   :  { %v2826_v8 = vadd.f32 %v2825_v23, %v2824_v1 }
 0x9c6   :  { %v2790_v37 = vpop.f32.mrf.mxu0 }
 0x9c7   :  { %v9415_v59 = vadd.f32 %v9394_v14, %v2790_v37 }
 0x9c9   :  { %11749 = vst [vmem:[#allocation18_spill] sm:$0xff] %v9415_v59  ;;  %v2827_v40 = vsel %vm577_vm0, %v9415_v59, 0.0  ;;  %v11765_v59 = vld [vmem:[#allocation51_spill] sm:$0xff] }
 0x9ca   :  { %v2828_v57 = vadd.f32 %v2827_v40, %v2826_v8  ;;  %v9439_v40 = vld [vmem:[%s11332_s7 + $0x8] sm:$0xff]  ;;  %v9444_v8 = vld [vmem:[%s11332_s7] sm:$0xff] }
 0x9ce   :  { %v2792_v49 = vpop.f32.mrf.mxu0 }
 0x9cf   :  { %v9420_v39 = vadd.f32 %v9394_v14, %v2792_v49 }
 0x9d1   :  { %11750 = vst [vmem:[#allocation23_spill] sm:$0xff] %v9420_v39  ;;  %v2829_v10 = vsel %vm577_vm0, %v9420_v39, 0.0 }
 0x9d2   :  { %v2830_v33 = vadd.f32 %v2829_v10, %v2828_v57 }
 0x9d6   :  { %v2795_v7 = vpop.f32.mrf.mxu0 }
 0x9d7   :  { %v9425_v13 = vadd.f32 %v9394_v14, %v2795_v7 }
 0x9d9   :  { %11751 = vst [vmem:[#allocation100_spill] sm:$0xff] %v9425_v13  ;;  %v2831_v51 = vsel %vm577_vm0, %v9425_v13, 0.0  ;;  %v11763_v13 = vld [vmem:[#allocation55_spill] sm:$0xff] }
 0x9da   :  { %v2832_v49 = vadd.f32 %v2831_v51, %v2830_v33 }
 0x9de   :  { %v2797_v17 = vpop.f32.mrf.mxu0 }
 0x9df   :  { %v9432_v37 = vadd.f32 %v9394_v14, %v2797_v17 }
 0x9e1   :  { %11752 = vst [vmem:[#allocation10_spill] sm:$0xff] %v9432_v37  ;;  %v2833_v18 = vsel %vm577_vm0, %v9432_v37, 0.0 }
 0x9e2   :  { %v2834_v16 = vadd.f32 %v2833_v18, %v2832_v49  ;;  %v6451_v49 = vunpack.i.h.bf16 %v9368_v20  ;;  %v6450_v18 = vunpack.i.l.bf16 %v9368_v20 }
 0x9e4   :  { %v2835_v25 = vrot.slane %v2834_v16, 4 }
 0x9e6   :  { %v2836_v55 = vadd.f32 %v2835_v25, %v2834_v16  ;;  %v2686_v16 = vsel %vm744_vm1, %v9133_v47, %v6451_v49  ;;  %v6446_v25 = vunpack.i.h.bf16 %v9379_v2 }
 0x9e8   :  { %v2837_v7 = vrot.slane %v2836_v55, 2 }
 0x9ea   :  { %v2838_v23 = vadd.f32 %v2837_v7, %v2836_v55  ;;  %v6445_v55 = vunpack.i.l.bf16 %v9379_v2  ;;  %v11754_v2 = vld [vmem:[#allocation32_spill] sm:$0xff] }
 0x9ec   :  { %v2839_v1 = vrot.slane %v2838_v23, 1 }
 0x9ee   :  { %v2840_v39 = vadd.f32 %v2839_v1, %v2838_v23 }
 0x9f0   :  { %v2862_v10 = vmul.f32 0.015625, %v2840_v39  ;;  %v2685_v39 = vsel %vm744_vm1, %v9121_v50, %v6450_v18  ;;  %v11753_v50 = vld [vmem:[#allocation49_spill] sm:$0xff] }
 0x9f2   :  { %v2867_v57 = vmul.f32 %v9439_v40, %v2862_v10  ;;  %v2866_v51 = vmul.f32 %v9444_v8, %v2862_v10  ;;  %v2693_v10 = vsel %vm1693_vm2, %v2685_v39, %v6445_v55  ;;  %v11470_v55 = vmov 0  }
 0x9f3   :  { %6474 = vset.pattern.permute.xlu0 %v11470_v55  ;;  %6473 = vset.pattern.permute.xlu1 %v11470_v55 }
 0x9f4   :  { %v2873_v33 = vsel %vm577_vm0, %v2867_v57, 0.0  ;;  %v2870_v17 = vsel %vm577_vm0, %v2866_v51, 0.0  ;;  %v2694_v57 = vsel %vm1693_vm2, %v2686_v16, %v6446_v25  ;;  %6472 = vset.pattern.permute.xlu2 %v11470_v55  ;;  %v11756_v25 = vld [vmem:[#allocation30_spill] sm:$0xff]  ;;  %v11762_v55 = vld [vmem:[#allocation35_spill] sm:$0xff]  ;;  %vm5914_vm2 = vcmask 523712  }
 0x9f5   :  { %2874 = vadd.xlane.f32.xlu2 %v2873_v33  ;;  %2871 = vadd.xlane.f32.xlu1 %v2870_v17 }
 0xa17   :  { %v6469_v7 = vpop.permute.xlu0 %6468 }
 0xa18   :  { %v6471_v23 = vunpack.i.h.bf16 %v6469_v7  ;;  %v6470_v1 = vunpack.i.l.bf16 %v6469_v7  ;;  %v11755_v7 = vld [vmem:[#allocation33_spill] sm:$0xff] }
 0xa1a   :  { %v2702_v51 = vsel %vm1702_vm3, %v2694_v57, %v6471_v23  ;;  %v2701_v20 = vsel %vm1702_vm3, %v2693_v10, %v6470_v1  ;;  %v11757_v10 = vld [vmem:[#allocation42_spill] sm:$0xff] }
 0xa1b   :  { %v2710_v33 = vpack.c.bf16 %v2702_v51, %v2701_v20  ;;  %v11758_v51 = vld [vmem:[#allocation38_spill] sm:$0xff] }
 0xa1d   :  { %6266 = vmatmul.msk.bf16.gmra.mxu0 %vm577_vm0, %v2710_v33  ;;  %v11759_v33 = vld [vmem:[#allocation48_spill] sm:$0xff] }
 0xa68   :  { %v2875_v47 = vpop.xlane.xlu2 %2874  ;;  %v2872_v16 = vpop.xlane.xlu1 %2871 }
 0xa69   :  { %v2900_v17 = vadd.f32 %v11753_v50, %v2875_v47  ;;  %v2899_v23 = vadd.f32 %v11756_v25, %v2872_v16 }
 0xa6b   :  { %v9464_v49 = vmax.f32 %v2900_v17, 0.0  ;;  %v9474_v1 = vmax.f32 %v2899_v23, 0.0  ;;  %v11760_v17 = vld [vmem:[#allocation45_spill] sm:$0xff] }
 0xa6d   :  { %v3884_v18 = vmul.f32 %v11754_v2, %v9464_v49  ;;  %v3886_v39 = vmul.f32 %v11755_v7, %v9464_v49  ;;  %v3883_v57 = vmul.f32 %v11757_v10, %v9474_v1  ;;  %v3891_v20 = vmul.f32 %v11758_v51, %v9474_v1 }
 0xa6e   :  { %v3887_v47 = vmul.f32 %v11759_v33, %v9474_v1  ;;  %v3889_v23 = vmul.f32 %v9166_v32, %v9474_v1  ;;  %v3888_v37 = vmul.f32 %v11762_v55, %v9464_v49  ;;  %v3890_v53 = vmul.f32 %v11765_v59, %v9464_v49 }
 0xa6f   :  { %4405 = vperm.xlu0 %6474, %v3886_v39   ;;  %4399 = vperm.xlu1 %6473, %v3884_v18   ;;  %v3885_v18 = vmul.f32 %v11760_v17, %v9474_v1  ;;  %v11761_v39 = vld [vmem:[#allocation52_spill] sm:$0xff]  ;;  %v3893_v62 = vmul.f32 %v11768_v12, %v9474_v1 }
 0xa70   :  { %4396 = vperm.xlu2 %6472, %v3883_v57   ;;  %v3894_v16 = vmul.f32 %v11761_v39, %v9464_v49  ;;  %v3897_v57 = vmul.f32 %v11763_v13, %v9474_v1  ;;  %v11769_v13 = vld [vmem:[#allocation64_spill] sm:$0xff] }
 0xa77   :  { %4420 = vperm.xlu0 %6474, %v3891_v20   ;;  %4408 = vperm.xlu1 %6473, %v3887_v47   ;;  %v11764_v20 = vld [vmem:[#allocation53_spill] sm:$0xff] }
 0xa78   :  { %4402 = vperm.xlu2 %6472, %v3885_v18   ;;  %v3892_v47 = vmul.f32 %v11764_v20, %v9464_v49  ;;  %v3900_v18 = vmul.f32 %v11766_v43, %v9464_v49  ;;  %v11771_v43 = vld [vmem:[#allocation44_spill] sm:$0xff] }
 0xa79   :  { %v3896_v59 = vmul.f32 %v11771_v43, %v9464_v49 }
 0xa7f   :  { %4429 = vperm.xlu0 %6474, %v3894_v16   ;;  %4414 = vperm.xlu1 %6473, %v3889_v23   ;;  %v11767_v16 = vld [vmem:[#allocation54_spill] sm:$0xff] }
 0xa80   :  { %4411 = vperm.xlu2 %6472, %v3888_v37   ;;  %v3895_v23 = vmul.f32 %v11767_v16, %v9474_v1  ;;  %v3903_v37 = vmul.f32 %v11769_v13, %v9474_v1  ;;  %v11772_v16 = vld [vmem:[#allocation65_spill] sm:$0xff]  ;;  %v3899_v13 = vmul.f32 %v9174_v42, %v9474_v1 }
 0xa87   :  { %4438 = vperm.xlu0 %6474, %v3897_v57   ;;  %4423 = vperm.xlu1 %6473, %v3892_v47   ;;  %v11770_v57 = vld [vmem:[#allocation47_spill] sm:$0xff] }
 0xa88   :  { %4417 = vperm.xlu2 %6472, %v3890_v53   ;;  %v3898_v47 = vmul.f32 %v11770_v57, %v9464_v49  ;;  %v3906_v53 = vmul.f32 %v11772_v16, %v9464_v49  ;;  %v11775_v16 = vld [vmem:[#allocation60_spill] sm:$0xff] }
 0xa89   :  { %v3902_v43 = vmul.f32 %v11775_v16, %v9464_v49 }
 0xa8f   :  { %4447 = vperm.xlu0 %6474, %v3900_v18   ;;  %4432 = vperm.xlu1 %6473, %v3895_v23   ;;  %v11773_v18 = vld [vmem:[#allocation58_spill] sm:$0xff] }
 0xa90   :  { %4426 = vperm.xlu2 %6472, %v3893_v62   ;;  %v3901_v23 = vmul.f32 %v11773_v18, %v9474_v1  ;;  %v3909_v62 = vmul.f32 %v9182_v34, %v9474_v1  ;;  %v11776_v18 = vld [vmem:[#allocation6_spill] sm:$0xff]  ;;  %v11778_v34 = vld [vmem:[#allocation63_spill] sm:$0xff] }
 0xa91   :  { %v3905_v42 = vmul.f32 %v11778_v34, %v9474_v1 }
 0xa97   :  { %4456 = vperm.xlu0 %6474, %v3903_v37   ;;  %4441 = vperm.xlu1 %6473, %v3898_v47   ;;  %v11774_v37 = vld [vmem:[#allocation62_spill] sm:$0xff] }
 0xa98   :  { %4435 = vperm.xlu2 %6472, %v3896_v59   ;;  %v3904_v47 = vmul.f32 %v11774_v37, %v9464_v49  ;;  %v3912_v59 = vmul.f32 %v11776_v18, %v9464_v49  ;;  %v11779_v37 = vld [vmem:[#allocation7_spill] sm:$0xff] }
 0xa99   :  { %v11781_v18 = vld [vmem:[#allocation67_spill] sm:$0xff] }
 0xa9a   :  { %v3908_v16 = vmul.f32 %v11781_v18, %v9464_v49 }
 0xa9f   :  { %4465 = vperm.xlu0 %6474, %v3906_v53   ;;  %4450 = vperm.xlu1 %6473, %v3901_v23   ;;  %v11777_v53 = vld [vmem:[#allocation66_spill] sm:$0xff] }
 0xaa0   :  { %4444 = vperm.xlu2 %6472, %v3899_v13   ;;  %v3907_v23 = vmul.f32 %v11777_v53, %v9474_v1  ;;  %v3915_v13 = vmul.f32 %v11779_v37, %v9474_v1  ;;  %v11782_v53 = vld [vmem:[#allocation27_spill] sm:$0xff]  ;;  %v11784_v37 = vld [vmem:[#allocation69_spill] sm:$0xff] }
 0xaa1   :  { %v3911_v34 = vmul.f32 %v11784_v37, %v9474_v1 }
 0xaa7   :  { %4474 = vperm.xlu0 %6474, %v3909_v62   ;;  %4459 = vperm.xlu1 %6473, %v3904_v47   ;;  %v11780_v62 = vld [vmem:[#allocation68_spill] sm:$0xff] }
 0xaa8   :  { %4453 = vperm.xlu2 %6472, %v3902_v43   ;;  %v3910_v47 = vmul.f32 %v11780_v62, %v9464_v49  ;;  %v3918_v43 = vmul.f32 %v11782_v53, %v9464_v49  ;;  %v11785_v62 = vld [vmem:[#allocation36_spill] sm:$0xff]  ;;  %v11787_v53 = vld [vmem:[#allocation85_spill] sm:$0xff] }
 0xaa9   :  { %v3914_v18 = vmul.f32 %v11787_v53, %v9464_v49 }
 0xaaf   :  { %4483 = vperm.xlu0 %6474, %v3912_v59   ;;  %4468 = vperm.xlu1 %6473, %v3907_v23   ;;  %v11783_v59 = vld [vmem:[#allocation17_spill] sm:$0xff] }
 0xab0   :  { %4462 = vperm.xlu2 %6472, %v3905_v42   ;;  %v3913_v23 = vmul.f32 %v11783_v59, %v9474_v1  ;;  %v3921_v42 = vmul.f32 %v11785_v62, %v9474_v1  ;;  %v11788_v59 = vld [vmem:[#allocation92_spill] sm:$0xff] }
 0xab7   :  { %4492 = vperm.xlu0 %6474, %v3915_v13   ;;  %4477 = vperm.xlu1 %6473, %v3910_v47   ;;  %v11786_v13 = vld [vmem:[#allocation43_spill] sm:$0xff] }
 0xab8   :  { %4471 = vperm.xlu2 %6472, %v3908_v16   ;;  %v3916_v47 = vmul.f32 %v11786_v13, %v9464_v49  ;;  %v3924_v16 = vmul.f32 %v11788_v59, %v9464_v49  ;;  %v11790_v13 = vld [vmem:[#allocation26_spill] sm:$0xff]  ;;  %v11792_v59 = vld [vmem:[#allocation16_spill] sm:$0xff] }
 0xab9   :  { %v3920_v53 = vmul.f32 %v11792_v59, %v9464_v49  ;;  %v11799_v59 = vld [vmem:[#allocation25_spill] sm:$0xff] }
 0xaba   :  { %v3928_v37 = vmul.f32 %v11799_v59, %v9464_v49 }
 0xabf   :  { %4501 = vperm.xlu0 %6474, %v3918_v43   ;;  %4486 = vperm.xlu1 %6473, %v3913_v23   ;;  %v3919_v43 = vmul.f32 %v9188_v36, %v9474_v1  ;;  %v11789_v23 = vld [vmem:[#allocation57_spill] sm:$0xff] }
 0xac0   :  { %4480 = vperm.xlu2 %6472, %v3911_v34   ;;  %v3917_v62 = vmul.f32 %v11789_v23, %v9474_v1  ;;  %v3927_v34 = vmul.f32 %v11790_v13, %v9474_v1  ;;  %v11793_v36 = vld [vmem:[#allocation73_spill] sm:$0xff] }
 0xac7   :  { %4510 = vperm.xlu0 %6474, %v3921_v42   ;;  %4495 = vperm.xlu1 %6473, %v3916_v47   ;;  %v11791_v42 = vld [vmem:[#allocation22_spill] sm:$0xff] }
 0xac8   :  { %4489 = vperm.xlu2 %6472, %v3914_v18   ;;  %v3922_v47 = vmul.f32 %v11791_v42, %v9464_v49  ;;  %v3930_v18 = vmul.f32 %v11793_v36, %v9464_v49 }
 0xacf   :  { %4519 = vperm.xlu0 %6474, %v3924_v16   ;;  %4504 = vperm.xlu1 %6473, %v3919_v43   ;;  %v11794_v16 = vld [vmem:[#allocation37_spill] sm:$0xff] }
 0xad0   :  { %4498 = vperm.xlu2 %6472, %v3917_v62   ;;  %v3925_v43 = vmul.f32 %v11794_v16, %v9474_v1  ;;  %v11797_v62 = vld [vmem:[#allocation40_spill] sm:$0xff] }
 0xad7   :  { %4528 = vperm.xlu0 %6474, %v3927_v34   ;;  %4513 = vperm.xlu1 %6473, %v3922_v47   ;;  %v3923_v34 = vmul.f32 %v11797_v62, %v9474_v1  ;;  %v11798_v47 = vld [vmem:[#allocation34_spill] sm:$0xff]  ;;  %v11804_v62 = vld [vmem:[#allocation24_spill] sm:$0xff] }
 0xad8   :  { %4507 = vperm.xlu2 %6472, %v3920_v53   ;;  %v3933_v42 = vmul.f32 %v11798_v47, %v9474_v1  ;;  %v3931_v16 = vmul.f32 %v11804_v62, %v9474_v1 }
 0xadf   :  { %4537 = vperm.xlu0 %6474, %v3930_v18   ;;  %4522 = vperm.xlu1 %6473, %v3925_v43   ;;  %v11802_v18 = vld [vmem:[#allocation12_spill] sm:$0xff] }
 0xae0   :  { %4516 = vperm.xlu2 %6472, %v3923_v34   ;;  %v3926_v43 = vmul.f32 %v11802_v18, %v9464_v49  ;;  %v3939_v34 = vmul.f32 %v9205_v4, %v9474_v1 }
 0xae1   :  { %v9560_v23 = vpop.permute.xlu0 %4405  ;;  %v9562_v13 = vpop.permute.xlu1 %4399 }
 0xae2   :  { %11795 = vst [vmem:[#allocation56_spill] sm:$0xff] %v9560_v23 }
 0xae3   :  { %11796 = vst [vmem:[#allocation111_spill] sm:$0xff] %v9562_v13  ;;  %v11803_v13 = vld [vmem:[#allocation71_spill] sm:$0xff] }
 0xae4   :  { %v3936_v23 = vmul.f32 %v11803_v13, %v9464_v49 }
 0xae7   :  { %4546 = vperm.xlu0 %6474, %v3933_v42   ;;  %4531 = vperm.xlu1 %6473, %v3928_v37   ;;  %v3929_v37 = vmul.f32 %v9194_v26, %v9474_v1  ;;  %v11812_v26 = vld [vmem:[#allocation79_spill] sm:$0xff] }
 0xae8   :  { %4525 = vperm.xlu2 %6472, %v3926_v43   ;;  %v3937_v62 = vmul.f32 %v11812_v26, %v9474_v1 }
 0xae9   :  { %v9570_v36 = vpop.permute.xlu0 %4420  ;;  %v9572_v53 = vpop.permute.xlu1 %4408 }
 0xaea   :  { %11800 = vst [vmem:[#allocation49_spill] sm:$0xff] %v9570_v36  ;;  %v11807_v36 = vld [vmem:[#allocation95_spill] sm:$0xff] }
 0xaeb   :  { %11801 = vst [vmem:[#allocation32_spill] sm:$0xff] %v9572_v53  ;;  %v3934_v53 = vmul.f32 %v11807_v36, %v9464_v49 }
 0xaef   :  { %4555 = vperm.xlu0 %6474, %v3936_v23   ;;  %4540 = vperm.xlu1 %6473, %v3931_v16   ;;  %v11810_v16 = vld [vmem:[#allocation75_spill] sm:$0xff] }
 0xaf0   :  { %4534 = vperm.xlu2 %6472, %v3929_v37   ;;  %v3932_v43 = vmul.f32 %v11810_v16, %v9464_v49 }
 0xaf1   :  { %v9580_v47 = vpop.permute.xlu0 %4429  ;;  %v9582_v42 = vpop.permute.xlu1 %4414 }
 0xaf2   :  { %11805 = vst [vmem:[#allocation33_spill] sm:$0xff] %v9580_v47  ;;  %v11811_v47 = vld [vmem:[#allocation83_spill] sm:$0xff] }
 0xaf3   :  { %11806 = vst [vmem:[#allocation30_spill] sm:$0xff] %v9582_v42  ;;  %v3942_v42 = vmul.f32 %v11811_v47, %v9464_v49  ;;  %v11818_v47 = vld [vmem:[#allocation81_spill] sm:$0xff] }
 0xaf4   :  { %v3940_v36 = vmul.f32 %v11818_v47, %v9464_v49 }
 0xaf7   :  { %4564 = vperm.xlu0 %6474, %v3939_v34   ;;  %4549 = vperm.xlu1 %6473, %v3934_v53   ;;  %v9604_v53 = vpop.permute.xlu2 %4396  ;;  %v11816_v34 = vld [vmem:[#allocation77_spill] sm:$0xff] }
 0xaf8   :  { %4543 = vperm.xlu2 %6472, %v3932_v43   ;;  %11815 = vst [vmem:[#allocation52_spill] sm:$0xff] %v9604_v53  ;;  %v11821_v43 = vld [vmem:[#allocation72_spill] sm:$0xff] }
 0xaf9   :  { %v9590_v13 = vpop.permute.xlu0 %4438  ;;  %v9592_v23 = vpop.permute.xlu1 %4423 }
 0xafa   :  { %11808 = vst [vmem:[#allocation42_spill] sm:$0xff] %v9590_v13  ;;  %v3935_v13 = vmul.f32 %v11816_v34, %v9474_v1 }
 0xafb   :  { %11809 = vst [vmem:[#allocation38_spill] sm:$0xff] %v9592_v23  ;;  %v11817_v23 = vld [vmem:[#allocation86_spill] sm:$0xff] }
 0xafc   :  { %v3945_v16 = vmul.f32 %v11817_v23, %v9474_v1  ;;  %v11824_v23 = vld [vmem:[#allocation76_spill] sm:$0xff] }
 0xafd   :  { %v3943_v26 = vmul.f32 %v11824_v23, %v9474_v1 }
 0xaff   :  { %4573 = vperm.xlu0 %6474, %v3942_v42   ;;  %4558 = vperm.xlu1 %6473, %v3937_v62   ;;  %v9620_v34 = vpop.permute.xlu2 %4402 }
 0xb00   :  { %4552 = vperm.xlu2 %6472, %v3935_v13   ;;  %11823 = vst [vmem:[#allocation41_spill] sm:$0xff] %v9620_v34 }
 0xb01   :  { %v9600_v4 = vpop.permute.xlu0 %4447  ;;  %v9602_v37 = vpop.permute.xlu1 %4432 }
 0xb02   :  { %11813 = vst [vmem:[#allocation48_spill] sm:$0xff] %v9600_v4  ;;  %v11822_v4 = vld [vmem:[#allocation80_spill] sm:$0xff] }
 0xb03   :  { %11814 = vst [vmem:[#allocation45_spill] sm:$0xff] %v9602_v37  ;;  %v3938_v37 = vmul.f32 %v11821_v43, %v9464_v49  ;;  %v3948_v53 = vmul.f32 %v11822_v4, %v9464_v49  ;;  %v11829_v4 = vld [vmem:[#allocation78_spill] sm:$0xff] }
 0xb04   :  { %v3946_v47 = vmul.f32 %v11829_v4, %v9464_v49 }
 0xb07   :  { %4582 = vperm.xlu0 %6474, %v3945_v16   ;;  %4567 = vperm.xlu1 %6473, %v3940_v36   ;;  %v11827_v16 = vld [vmem:[#allocation74_spill] sm:$0xff]  ;;  %v9634_v34 = vpop.permute.xlu2 %4411 }
 0xb08   :  { %4561 = vperm.xlu2 %6472, %v3938_v37   ;;  %11830 = vst [vmem:[#allocation12_spill] sm:$0xff] %v9634_v34  ;;  %v11839_v34 = vld [vmem:[#allocation99_spill] sm:$0xff] }
 0xb09   :  { %v9612_v42 = vpop.permute.xlu0 %4456  ;;  %v9614_v62 = vpop.permute.xlu1 %4441 }
 0xb0a   :  { %11819 = vst [vmem:[#allocation35_spill] sm:$0xff] %v9612_v42  ;;  %v11828_v42 = vld [vmem:[#allocation82_spill] sm:$0xff] }
 0xb0b   :  { %11820 = vst [vmem:[#allocation53_spill] sm:$0xff] %v9614_v62  ;;  %v3941_v62 = vmul.f32 %v11827_v16, %v9474_v1  ;;  %v3951_v43 = vmul.f32 %v11828_v42, %v9474_v1  ;;  %v3949_v42 = vmul.f32 %v9212_v21, %v9474_v1 }
 0xb0f   :  { %4591 = vperm.xlu0 %6474, %v3948_v53   ;;  %4576 = vperm.xlu1 %6473, %v3943_v26   ;;  %v11833_v53 = vld [vmem:[#allocation98_spill] sm:$0xff] }
 0xb10   :  { %4570 = vperm.xlu2 %6472, %v3941_v62   ;;  %v9646_v62 = vpop.permute.xlu2 %4417 }
 0xb11   :  { %v9624_v13 = vpop.permute.xlu0 %4465  ;;  %v9626_v36 = vpop.permute.xlu1 %4450  ;;  %11835 = vst [vmem:[#allocation129_spill] sm:$0xff] %v9646_v62  ;;  %v11845_v62 = vld [vmem:[#allocation101_spill] sm:$0xff] }
 0xb12   :  { %11825 = vst [vmem:[#allocation47_spill] sm:$0xff] %v9624_v13  ;;  %v3944_v13 = vmul.f32 %v11833_v53, %v9464_v49  ;;  %v3957_v53 = vmul.f32 %v11839_v34, %v9474_v1  ;;  %v11846_v34 = vld [vmem:[#allocation96_spill] sm:$0xff] }
 0xb13   :  { %11826 = vst [vmem:[#allocation25_spill] sm:$0xff] %v9626_v36  ;;  %v11834_v36 = vld [vmem:[#allocation102_spill] sm:$0xff]  ;;  %v3955_v21 = vmul.f32 %v11846_v34, %v9474_v1 }
 0xb14   :  { %v3954_v16 = vmul.f32 %v11834_v36, %v9464_v49  ;;  %v11840_v36 = vld [vmem:[#allocation93_spill] sm:$0xff] }
 0xb15   :  { %v3952_v4 = vmul.f32 %v11840_v36, %v9464_v49 }
 0xb17   :  { %4600 = vperm.xlu0 %6474, %v3951_v43   ;;  %4585 = vperm.xlu1 %6473, %v3946_v47  }
 0xb18   :  { %4579 = vperm.xlu2 %6472, %v3944_v13  }
 0xb19   :  { %v9636_v37 = vpop.permute.xlu0 %4474  ;;  %v9638_v26 = vpop.permute.xlu1 %4459 }
 0xb1a   :  { %11831 = vst [vmem:[#allocation76_spill] sm:$0xff] %v9636_v37  ;;  %v11838_v37 = vld [vmem:[#allocation88_spill] sm:$0xff] }
 0xb1b   :  { %11832 = vst [vmem:[#allocation128_spill] sm:$0xff] %v9638_v26  ;;  %v3947_v26 = vmul.f32 %v11838_v37, %v9474_v1  ;;  %v3960_v37 = vmul.f32 %v11845_v62, %v9464_v49  ;;  %v11852_v62 = vld [vmem:[#allocation89_spill] sm:$0xff] }
 0xb1c   :  { %v3958_v36 = vmul.f32 %v11852_v62, %v9464_v49 }
 0xb1f   :  { %4609 = vperm.xlu0 %6474, %v3954_v16   ;;  %4594 = vperm.xlu1 %6473, %v3949_v42   ;;  %v9662_v16 = vpop.permute.xlu2 %4426 }
 0xb20   :  { %4588 = vperm.xlu2 %6472, %v3947_v26   ;;  %11843 = vst [vmem:[#allocation134_spill] sm:$0xff] %v9662_v16 }
 0xb21   :  { %v9648_v43 = vpop.permute.xlu0 %4483  ;;  %v9650_v47 = vpop.permute.xlu1 %4468 }
 0xb22   :  { %11836 = vst [vmem:[#allocation130_spill] sm:$0xff] %v9648_v43  ;;  %v11844_v43 = vld [vmem:[#allocation90_spill] sm:$0xff] }
 0xb23   :  { %11837 = vst [vmem:[#allocation131_spill] sm:$0xff] %v9650_v47  ;;  %v3950_v47 = vmul.f32 %v11844_v43, %v9464_v49 }
 0xb27   :  { %4618 = vperm.xlu0 %6474, %v3957_v53   ;;  %4603 = vperm.xlu1 %6473, %v3952_v4   ;;  %v11849_v53 = vld [vmem:[#allocation84_spill] sm:$0xff]  ;;  %v9678_v43 = vpop.permute.xlu2 %4435 }
 0xb28   :  { %4597 = vperm.xlu2 %6472, %v3950_v47   ;;  %11851 = vst [vmem:[#allocation137_spill] sm:$0xff] %v9678_v43  ;;  %v11855_v47 = vld [vmem:[#allocation87_spill] sm:$0xff] }
 0xb29   :  { %v9658_v13 = vpop.permute.xlu0 %4492  ;;  %v9660_v42 = vpop.permute.xlu1 %4477 }
 0xb2a   :  { %11841 = vst [vmem:[#allocation132_spill] sm:$0xff] %v9658_v13  ;;  %v11850_v13 = vld [vmem:[#allocation94_spill] sm:$0xff] }
 0xb2b   :  { %11842 = vst [vmem:[#allocation133_spill] sm:$0xff] %v9660_v42  ;;  %v3953_v42 = vmul.f32 %v11849_v53, %v9474_v1  ;;  %v3963_v16 = vmul.f32 %v11850_v13, %v9474_v1  ;;  %v11857_v13 = vld [vmem:[#allocation91_spill] sm:$0xff] }
 0xb2c   :  { %v3961_v34 = vmul.f32 %v11857_v13, %v9474_v1 }
 0xb2f   :  { %4627 = vperm.xlu0 %6474, %v3960_v37   ;;  %4612 = vperm.xlu1 %6473, %v3955_v21   ;;  %v9692_v43 = vpop.permute.xlu2 %4444 }
 0xb30   :  { %4606 = vperm.xlu2 %6472, %v3953_v42   ;;  %11858 = vst [vmem:[#allocation87_spill] sm:$0xff] %v9692_v43  ;;  %v11866_v43 = vld [vmem:[#allocation116_spill] sm:$0xff] }
 0xb31   :  { %v9670_v26 = vpop.permute.xlu0 %4501  ;;  %v9672_v4 = vpop.permute.xlu1 %4486 }
 0xb32   :  { %11847 = vst [vmem:[#allocation135_spill] sm:$0xff] %v9670_v26  ;;  %v11856_v26 = vld [vmem:[#allocation97_spill] sm:$0xff] }
 0xb33   :  { %11848 = vst [vmem:[#allocation136_spill] sm:$0xff] %v9672_v4  ;;  %v3956_v4 = vmul.f32 %v11855_v47, %v9464_v49  ;;  %v3966_v53 = vmul.f32 %v11856_v26, %v9464_v49 }
 0xb37   :  { %4636 = vperm.xlu0 %6474, %v3963_v16   ;;  %4621 = vperm.xlu1 %6473, %v3958_v36   ;;  %v3959_v16 = vmul.f32 %v9218_v41, %v9474_v1  ;;  %v3972_v41 = vmul.f32 %v11866_v43, %v9464_v49  ;;  %v11873_v43 = vld [vmem:[#allocation110_spill] sm:$0xff] }
 0xb38   :  { %4615 = vperm.xlu2 %6472, %v3956_v4   ;;  %v9704_v4 = vpop.permute.xlu2 %4453 }
 0xb39   :  { %v9682_v37 = vpop.permute.xlu0 %4510  ;;  %v9684_v21 = vpop.permute.xlu1 %4495  ;;  %11862 = vst [vmem:[#allocation141_spill] sm:$0xff] %v9704_v4  ;;  %v11872_v4 = vld [vmem:[#allocation14_spill] sm:$0xff] }
 0xb3a   :  { %11853 = vst [vmem:[#allocation89_spill] sm:$0xff] %v9682_v37  ;;  %v3969_v37 = vmul.f32 %v9225_v35, %v9474_v1  ;;  %v11867_v35 = vld [vmem:[#allocation109_spill] sm:$0xff] }
 0xb3b   :  { %11854 = vst [vmem:[#allocation138_spill] sm:$0xff] %v9684_v21  ;;  %v11861_v21 = vld [vmem:[#allocation105_spill] sm:$0xff]  ;;  %v3967_v13 = vmul.f32 %v11867_v35, %v9474_v1 }
 0xb3c   :  { %v3964_v26 = vmul.f32 %v11861_v21, %v9464_v49  ;;  %v3970_v21 = vmul.f32 %v11873_v43, %v9464_v49 }
 0xb3f   :  { %4645 = vperm.xlu0 %6474, %v3966_v53   ;;  %4630 = vperm.xlu1 %6473, %v3961_v34  }
 0xb40   :  { %4624 = vperm.xlu2 %6472, %v3959_v16   ;;  %v9720_v16 = vpop.permute.xlu2 %4462 }
 0xb41   :  { %v9694_v42 = vpop.permute.xlu0 %4519  ;;  %v9696_v36 = vpop.permute.xlu1 %4504  ;;  %11870 = vst [vmem:[#allocation146_spill] sm:$0xff] %v9720_v16 }
 0xb42   :  { %11859 = vst [vmem:[#allocation139_spill] sm:$0xff] %v9694_v42  ;;  %v11865_v42 = vld [vmem:[#allocation107_spill] sm:$0xff] }
 0xb43   :  { %11860 = vst [vmem:[#allocation140_spill] sm:$0xff] %v9696_v36  ;;  %v3962_v36 = vmul.f32 %v11865_v42, %v9464_v49  ;;  %v3975_v42 = vmul.f32 %v11872_v4, %v9474_v1  ;;  %v11879_v4 = vld [vmem:[#allocation114_spill] sm:$0xff] }
 0xb44   :  { %v3973_v35 = vmul.f32 %v11879_v4, %v9474_v1 }
 0xb47   :  { %4654 = vperm.xlu0 %6474, %v3969_v37   ;;  %4639 = vperm.xlu1 %6473, %v3964_v26  }
 0xb48   :  { %4633 = vperm.xlu2 %6472, %v3962_v36   ;;  %v11876_v36 = vld [vmem:[#allocation103_spill] sm:$0xff] }
 0xb49   :  { %v9706_v53 = vpop.permute.xlu0 %4528  ;;  %v9708_v34 = vpop.permute.xlu1 %4513 }
 0xb4a   :  { %11863 = vst [vmem:[#allocation142_spill] sm:$0xff] %v9706_v53  ;;  %v11871_v53 = vld [vmem:[#allocation108_spill] sm:$0xff] }
 0xb4b   :  { %11864 = vst [vmem:[#allocation143_spill] sm:$0xff] %v9708_v34  ;;  %v3965_v34 = vmul.f32 %v11871_v53, %v9474_v1  ;;  %v9736_v53 = vpop.permute.xlu2 %4471 }
 0xb4c   :  { %11878 = vst [vmem:[#allocation148_spill] sm:$0xff] %v9736_v53 }
 0xb4f   :  { %4663 = vperm.xlu0 %6474, %v3972_v41   ;;  %4648 = vperm.xlu1 %6473, %v3967_v13  }
 0xb50   :  { %4642 = vperm.xlu2 %6472, %v3965_v34   ;;  %v11882_v34 = vld [vmem:[#allocation113_spill] sm:$0xff] }
 0xb51   :  { %v9716_v37 = vpop.permute.xlu0 %4537  ;;  %v9718_v26 = vpop.permute.xlu1 %4522 }
 0xb52   :  { %11868 = vst [vmem:[#allocation144_spill] sm:$0xff] %v9716_v37  ;;  %v3968_v37 = vmul.f32 %v11876_v36, %v9464_v49 }
 0xb53   :  { %11869 = vst [vmem:[#allocation145_spill] sm:$0xff] %v9718_v26  ;;  %v11877_v26 = vld [vmem:[#allocation29_spill] sm:$0xff]  ;;  %v9750_v53 = vpop.permute.xlu2 %4480 }
 0xb54   :  { %v3978_v16 = vmul.f32 %v11877_v26, %v9464_v49  ;;  %v11883_v26 = vld [vmem:[#allocation19_spill] sm:$0xff]  ;;  %11884 = vst [vmem:[#allocation150_spill] sm:$0xff] %v9750_v53 }
 0xb55   :  { %v3976_v36 = vmul.f32 %v11883_v26, %v9464_v49  ;;  %v3979_v26 = vmul.f32 %v9234_v45, %v9474_v1 }
 0xb57   :  { %4672 = vperm.xlu0 %6474, %v3975_v42   ;;  %4657 = vperm.xlu1 %6473, %v3970_v21  }
 0xb58   :  { %4651 = vperm.xlu2 %6472, %v3968_v37   ;;  %v9752_v37 = vpop.f32.mrf.mxu0 }
 0xb59   :  { %v9728_v41 = vpop.permute.xlu0 %4546  ;;  %v9730_v13 = vpop.permute.xlu1 %4531 }
 0xb5a   :  { %11874 = vst [vmem:[#allocation110_spill] sm:$0xff] %v9728_v41  ;;  %v3981_v41 = vmul.f32 %v9063_v30, %v9474_v1 }
 0xb5b   :  { %11875 = vst [vmem:[#allocation147_spill] sm:$0xff] %v9730_v13  ;;  %v3971_v13 = vmul.f32 %v11882_v34, %v9474_v1  ;;  %v11888_v34 = vld [vmem:[#allocation46_spill] sm:$0xff] }
 0xb5c   :  { %v3984_v30 = vmul.f32 %v11888_v34, %v9464_v49  ;;  %v3982_v34 = vmul.f32 %v9068_v28, %v9464_v49 }
 0xb5f   :  { %4681 = vperm.xlu0 %6474, %v3978_v16   ;;  %4666 = vperm.xlu1 %6473, %v3973_v35  }
 0xb60   :  { %4660 = vperm.xlu2 %6472, %v3971_v13  }
 0xb61   :  { %v9740_v42 = vpop.permute.xlu0 %4555  ;;  %v9742_v21 = vpop.permute.xlu1 %4540 }
 0xb62   :  { %11880 = vst [vmem:[#allocation114_spill] sm:$0xff] %v9740_v42  ;;  %v11887_v42 = vld [vmem:[#allocation112_spill] sm:$0xff] }
 0xb63   :  { %11881 = vst [vmem:[#allocation149_spill] sm:$0xff] %v9742_v21  ;;  %v3974_v21 = vmul.f32 %v11887_v42, %v9464_v49  ;;  %v3987_v42 = vmul.f32 %v9127_v61, %v9474_v1  ;;  %v3985_v61 = vmul.f32 %v9117_v54, %v9474_v1 }
 0xb67   :  { %4690 = vperm.xlu0 %6474, %v3981_v41   ;;  %4675 = vperm.xlu1 %6473, %v3976_v36   ;;  %v9764_v41 = vpop.permute.xlu2 %4489  ;;  %v2802_v36 = vpop.f32.mrf.mxu0 }
 0xb68   :  { %4669 = vperm.xlu2 %6472, %v3974_v21   ;;  %11889 = vst [vmem:[#allocation153_spill] sm:$0xff] %v9764_v41  ;;  %v3990_v41 = vmul.f32 %v9186_v27, %v9464_v49  ;;  %v3988_v27 = vmul.f32 %v9137_v52, %v9464_v49 }
 0xb69   :  { %v9754_v35 = vpop.permute.xlu0 %4564  ;;  %v9756_v16 = vpop.permute.xlu1 %4549 }
 0xb6a   :  { %11885 = vst [vmem:[#allocation151_spill] sm:$0xff] %v9754_v35 }
 0xb6b   :  { %11886 = vst [vmem:[#allocation152_spill] sm:$0xff] %v9756_v16  ;;  %v11892_v16 = vld [vmem:[#allocation39_spill] sm:$0xff] }
 0xb6c   :  { %v3977_v53 = vmul.f32 %v11892_v16, %v9474_v1 }
 0xb6f   :  { %4699 = vperm.xlu0 %6474, %v3984_v30   ;;  %4684 = vperm.xlu1 %6473, %v3979_v26   ;;  %v9780_v21 = vpop.permute.xlu2 %4498 }
 0xb70   :  { %4678 = vperm.xlu2 %6472, %v3977_v53   ;;  %11895 = vst [vmem:[#allocation157_spill] sm:$0xff] %v9780_v21 }
 0xb71   :  { %v9766_v13 = vpop.permute.xlu0 %4573  ;;  %v9768_v35 = vpop.permute.xlu1 %4558 }
 0xb72   :  { %11890 = vst [vmem:[#allocation154_spill] sm:$0xff] %v9766_v13  ;;  %v2805_v13 = vpop.f32.mrf.mxu0 }
 0xb73   :  { %11891 = vst [vmem:[#allocation155_spill] sm:$0xff] %v9768_v35  ;;  %v3980_v35 = vmul.f32 %v9061_v0, %v9464_v49 }
 0xb77   :  { %4708 = vperm.xlu0 %6474, %v3987_v42   ;;  %4693 = vperm.xlu1 %6473, %v3982_v34   ;;  %v3983_v34 = vmul.f32 %v9072_v9, %v9474_v1 }
 0xb78   :  { %4687 = vperm.xlu2 %6472, %v3980_v35  }
 0xb79   :  { %v9776_v30 = vpop.permute.xlu0 %4582  ;;  %v9778_v26 = vpop.permute.xlu1 %4567 }
 0xb7a   :  { %11893 = vst [vmem:[#allocation39_spill] sm:$0xff] %v9776_v30  ;;  %v3993_v30 = vmul.f32 %v9198_v5, %v9474_v1  ;;  %v2807_v21 = vpop.f32.mrf.mxu0 }
 0xb7b   :  { %11894 = vst [vmem:[#allocation156_spill] sm:$0xff] %v9778_v26  ;;  %v9796_v26 = vpop.permute.xlu2 %4507 }
 0xb7c   :  { %11898 = vst [vmem:[#allocation160_spill] sm:$0xff] %v9796_v26  ;;  %v3991_v26 = vmul.f32 %v9190_v3, %v9474_v1 }
 0xb7f   :  { %4717 = vperm.xlu0 %6474, %v3990_v41   ;;  %4702 = vperm.xlu1 %6473, %v3985_v61   ;;  %v3986_v41 = vmul.f32 %v9123_v44, %v9464_v49 }
 0xb80   :  { %4696 = vperm.xlu2 %6472, %v3983_v34   ;;  %v3989_v34 = vmul.f32 %v9243_v60, %v9474_v1 }
 0xb81   :  { %v9788_v53 = vpop.permute.xlu0 %4591  ;;  %v9790_v42 = vpop.permute.xlu1 %4576 }
 0xb82   :  { %11896 = vst [vmem:[#allocation158_spill] sm:$0xff] %v9788_v53  ;;  %v2810_v53 = vpop.f32.mrf.mxu0 }
 0xb83   :  { %11897 = vst [vmem:[#allocation159_spill] sm:$0xff] %v9790_v42  ;;  %v3996_v42 = vmul.f32 %v9208_v56, %v9464_v49  ;;  %v9810_v5 = vpop.permute.xlu2 %4516  ;;  %v4002_v56 = vmul.f32 %v9306_v22, %v9464_v49  ;;  %v11913_v22 = vld [vmem:[#allocation119_spill] sm:$0xff] }
 0xb84   :  { %11901 = vst [vmem:[#allocation163_spill] sm:$0xff] %v9810_v5 }
 0xb87   :  { %4726 = vperm.xlu0 %6474, %v3993_v30   ;;  %4711 = vperm.xlu1 %6473, %v3988_v27  }
 0xb88   :  { %4705 = vperm.xlu2 %6472, %v3986_v41  }
 0xb89   :  { %v9800_v61 = vpop.permute.xlu0 %4600  ;;  %v9802_v35 = vpop.permute.xlu1 %4585 }
 0xb8a   :  { %11899 = vst [vmem:[#allocation161_spill] sm:$0xff] %v9800_v61  ;;  %v3994_v61 = vmul.f32 %v9129_v38, %v9464_v49  ;;  %v2812_v41 = vpop.f32.mrf.mxu0 }
 0xb8b   :  { %11900 = vst [vmem:[#allocation162_spill] sm:$0xff] %v9802_v35  ;;  %v3999_v35 = vmul.f32 %v9251_v11, %v9474_v1  ;;  %v9822_v5 = vpop.permute.xlu2 %4525  ;;  %v3997_v11 = vmul.f32 %v9262_v58, %v9474_v1 }
 0xb8c   :  { %11904 = vst [vmem:[#allocation166_spill] sm:$0xff] %v9822_v5 }
 0xb8f   :  { %4735 = vperm.xlu0 %6474, %v3996_v42   ;;  %4720 = vperm.xlu1 %6473, %v3991_v26  }
 0xb90   :  { %4714 = vperm.xlu2 %6472, %v3989_v34  }
 0xb91   :  { %v9812_v27 = vpop.permute.xlu0 %4609  ;;  %v9814_v30 = vpop.permute.xlu1 %4594 }
 0xb92   :  { %11902 = vst [vmem:[#allocation164_spill] sm:$0xff] %v9812_v27  ;;  %v11907_v27 = vld [vmem:[#allocation31_spill] sm:$0xff] }
 0xb93   :  { %11903 = vst [vmem:[#allocation165_spill] sm:$0xff] %v9814_v30  ;;  %v3992_v30 = vmul.f32 %v11907_v27, %v9464_v49  ;;  %v9846_v5 = vpop.permute.xlu2 %4534 }
 0xb94   :  { %11912 = vst [vmem:[#allocation172_spill] sm:$0xff] %v9846_v5 }
 0xb97   :  { %4744 = vperm.xlu0 %6474, %v3999_v35   ;;  %4729 = vperm.xlu1 %6473, %v3994_v61   ;;  %v2815_v35 = vpop.f32.mrf.mxu0  ;;  %v9835_v61 = vadd.f32 %v9394_v14, %v2802_v36  ;;  %v9855_v36 = vadd.f32 %v9394_v14, %v2807_v21 }
 0xb98   :  { %4723 = vperm.xlu2 %6472, %v3992_v30   ;;  %v3995_v30 = vmul.f32 %v11913_v22, %v9474_v1  ;;  %v9876_v22 = vadd.f32 %v9394_v14, %v2815_v35 }
 0xb99   :  { %v9824_v26 = vpop.permute.xlu0 %4618  ;;  %v9826_v42 = vpop.permute.xlu1 %4603  ;;  %11908 = vst [vmem:[#allocation31_spill] sm:$0xff] %v9835_v61  ;;  %v2846_v21 = vsel %vm577_vm0, %v9855_v36, 0.0 }
 0xb9a   :  { %11905 = vst [vmem:[#allocation167_spill] sm:$0xff] %v9824_v26  ;;  %v9841_v26 = vadd.f32 %v9394_v14, %v9752_v37  ;;  %v4005_v37 = vmul.f32 %v9309_v63, %v9474_v1  ;;  %v9871_v63 = vadd.f32 %v9394_v14, %v2812_v41  ;;  %v4008_v41 = vmul.f32 %v9313_v48, %v9464_v49 }
 0xb9b   :  { %11906 = vst [vmem:[#allocation168_spill] sm:$0xff] %v9826_v42  ;;  %v9844_v42 = vadd.f32 %v9394_v14, %v2805_v13  ;;  %v4000_v13 = vmul.f32 %v9273_v46, %v9464_v49 }
 0xb9c   :  { %11910 = vst [vmem:[#allocation170_spill] sm:$0xff] %v9841_v26 }
 0xb9d   :  { %11911 = vst [vmem:[#allocation171_spill] sm:$0xff] %v9844_v42  ;;  %v2844_v5 = vsel %vm577_vm0, %v9844_v42, 0.0 }
 0xb9e   :  { %11915 = vst [vmem:[#allocation174_spill] sm:$0xff] %v9855_v36  ;;  %v4007_v36 = vmul.f32 %v9330_v6, %v9474_v1 }
 0xb9f   :  { %4753 = vperm.xlu0 %6474, %v4002_v56   ;;  %4738 = vperm.xlu1 %6473, %v3997_v11   ;;  %v2842_v11 = vsel %vm577_vm0, %v9835_v61, 0.0  ;;  %11917 = vst [vmem:[#allocation176_spill] sm:$0xff] %v9871_v63 }
 0xba0   :  { %4732 = vperm.xlu2 %6472, %v3995_v30   ;;  %v2817_v30 = vpop.f32.mrf.mxu0  ;;  %11918 = vst [vmem:[#allocation177_spill] sm:$0xff] %v9876_v22 }
 0xba1   :  { %v9837_v34 = vpop.permute.xlu1 %4612  ;;  %v9850_v56 = vpop.permute.xlu0 %4627 }
 0xba2   :  { %11909 = vst [vmem:[#allocation169_spill] sm:$0xff] %v9837_v34  ;;  %v2841_v34 = vsel %vm577_vm0, %v9841_v26, 0.0 }
 0xba3   :  { %11914 = vst [vmem:[#allocation173_spill] sm:$0xff] %v9850_v56  ;;  %v9866_v56 = vadd.f32 %v9394_v14, %v2810_v53  ;;  %v2843_v61 = vadd.f32 %v2842_v11, %v2841_v34  ;;  %v3998_v53 = vmul.f32 %v9256_v31, %v9464_v49  ;;  %v2850_v11 = vsel %vm577_vm0, %v9871_v63, 0.0 }
 0xba5   :  { %11916 = vst [vmem:[#allocation175_spill] sm:$0xff] %v9866_v56  ;;  %v2845_v46 = vadd.f32 %v2844_v5, %v2843_v61  ;;  %v2848_v26 = vsel %vm577_vm0, %v9866_v56, 0.0  ;;  %v9887_v5 = vadd.f32 %v9394_v14, %v2817_v30  ;;  %v9889_v61 = vpop.permute.xlu2 %4543  ;;  %v4001_v30 = vmul.f32 %v9267_v29, %v9474_v1 }
 0xba7   :  { %4762 = vperm.xlu0 %6474, %v4005_v37   ;;  %4747 = vperm.xlu1 %6473, %v4000_v13   ;;  %v2847_v42 = vadd.f32 %v2846_v21, %v2845_v46  ;;  %11919 = vst [vmem:[#allocation178_spill] sm:$0xff] %v9887_v5  ;;  %v4003_v46 = vmul.f32 %v9278_v19, %v9474_v1  ;;  %v2852_v13 = vsel %vm577_vm0, %v9876_v22, 0.0  ;;  %v2854_v63 = vsel %vm577_vm0, %v9887_v5, 0.0 }
 0xba8   :  { %4741 = vperm.xlu2 %6472, %v3998_v53  }
 0xba9   :  { %v9880_v34 = vpop.permute.xlu1 %4621  ;;  %v2849_v37 = vadd.f32 %v2848_v26, %v2847_v42  ;;  %v9893_v35 = vpop.permute.xlu0 %4636  ;;  %v4006_v42 = vmul.f32 %v9311_v15, %v9464_v49 }
 0xbaa   :  { %11920 = vst [vmem:[#allocation179_spill] sm:$0xff] %v9893_v35 }
 0xbab   :  { %v2851_v21 = vadd.f32 %v2850_v11, %v2849_v37  ;;  %v11923_v11 = vld [vmem:[#allocation61_spill] sm:$0xff] }
 0xbac   :  { %v4004_v37 = vmul.f32 %v11923_v11, %v9464_v49 }
 0xbad   :  { %v2853_v14 = vadd.f32 %v2852_v13, %v2851_v21  ;;  %v9905_v56 = vpop.permute.xlu2 %4552  ;;  %v11924_v13 = vld [vmem:[#allocation126_spill] sm:$0xff] }
 0xbae   :  { %v4009_v21 = vmul.f32 %v11924_v13, %v9474_v1 }
 0xbaf   :  { %4771 = vperm.xlu0 %6474, %v4008_v41   ;;  %4756 = vperm.xlu1 %6473, %v4003_v46   ;;  %v2855_v26 = vadd.f32 %v2854_v63, %v2853_v14 }
 0xbb0   :  { %4750 = vperm.xlu2 %6472, %v4001_v30  }
 0xbb1   :  { %v9903_v53 = vpop.permute.xlu1 %4630  ;;  %v2856_v22 = vrot.slane %v2855_v26, 4  ;;  %v9907_v41 = vpop.permute.xlu0 %4645 }
 0xbb2   :  { %11921 = vst [vmem:[#allocation180_spill] sm:$0xff] %v9903_v53 }
 0xbb3   :  { %11922 = vst [vmem:[#allocation181_spill] sm:$0xff] %v9907_v41  ;;  %v2857_v46 = vadd.f32 %v2856_v22, %v2855_v26  ;;  %v4010_v26 = vmul.f32 %v9332_v24, %v9464_v49 }
 0xbb5   :  { %v2858_v63 = vrot.slane %v2857_v46, 2  ;;  %v9915_v30 = vpop.permute.xlu2 %4561 }
 0xbb7   :  { %4765 = vperm.xlu1 %6473, %v4006_v42   ;;  %v2859_v42 = vadd.f32 %v2858_v63, %v2857_v46 }
 0xbb8   :  { %4759 = vperm.xlu2 %6472, %v4004_v37  }
 0xbb9   :  { %v9913_v14 = vpop.permute.xlu1 %4639  ;;  %v9917_v5 = vpop.permute.xlu0 %4654  ;;  %v2860_v35 = vrot.slane %v2859_v42, 1 }
 0xbba   :  { %11925 = vst [vmem:[#allocation61_spill] sm:$0xff] %v9913_v14 }
 0xbbb   :  { %11926 = vst [vmem:[#allocation126_spill] sm:$0xff] %v9917_v5 }
 0xbbd   :  { %v9923_v22 = vpop.permute.xlu2 %4570 }
 0xbbf   :  { %4774 = vperm.xlu1 %6473, %v4009_v21   ;;  %v2861_v21 = vadd.f32 %v2860_v35, %v2859_v42 }
 0xbc0   :  { %4768 = vperm.xlu2 %6472, %v4007_v36  }
 0xbc1   :  { %v9921_v41 = vpop.permute.xlu1 %4648  ;;  %v9927_v37 = vpop.permute.xlu0 %4663  ;;  %v2863_v14 = vmul.f32 0.015625, %v2861_v21 }
 0xbc2   :  { %11927 = vst [vmem:[#allocation182_spill] sm:$0xff] %v9921_v41 }
 0xbc3   :  { %11928 = vst [vmem:[#allocation183_spill] sm:$0xff] %v9927_v37  ;;  %v2868_v5 = vmul.f32 %v9444_v8, %v2863_v14  ;;  %v2869_v35 = vmul.f32 %v9439_v40, %v2863_v14 }
 0xbc5   :  { %v9932_v1 = vpop.permute.xlu2 %4579  ;;  %v2876_v46 = vsel %vm577_vm0, %v2868_v5, 0.0  ;;  %v2879_v8 = vsel %vm577_vm0, %v2869_v35, 0.0 }
 0xbc8   :  { %4777 = vperm.xlu2 %6472, %v4010_v26  }
 0xbc9   :  { %v9929_v53 = vpop.permute.xlu1 %4657  ;;  %v9934_v36 = vpop.permute.xlu0 %4672 }
 0xbca   :  { %11929 = vst [vmem:[#allocation184_spill] sm:$0xff] %v9929_v53 }
 0xbcb   :  { %11930 = vst [vmem:[#allocation185_spill] sm:$0xff] %v9934_v36 }
 0xbcd   :  { %v9939_v41 = vpop.permute.xlu2 %4588 }
 0xbd1   :  { %v9937_v63 = vpop.permute.xlu1 %4666  ;;  %v9941_v49 = vpop.permute.xlu0 %4681 }
 0xbd2   :  { %11931 = vst [vmem:[#allocation186_spill] sm:$0xff] %v9937_v63 }
 0xbd3   :  { %11932 = vst [vmem:[#allocation187_spill] sm:$0xff] %v9941_v49 }
 0xbd5   :  { %v9946_v26 = vpop.permute.xlu2 %4597 }
 0xbd9   :  { %2877 = vadd.xlane.f32.xlu0 %v2876_v46  ;;  %v9944_v42 = vpop.permute.xlu1 %4675  ;;  %v9949_v21 = vpop.permute.xlu0 %4690 }
 0xbda   :  { %11933 = vst [vmem:[#allocation188_spill] sm:$0xff] %v9944_v42 }
 0xbdb   :  { %11934 = vst [vmem:[#allocation189_spill] sm:$0xff] %v9949_v21 }
 0xbdd   :  { %v9953_v5 = vpop.permute.xlu2 %4606 }
 0xbe1   :  { %v9951_v36 = vpop.permute.xlu1 %4684  ;;  %v9955_v46 = vpop.permute.xlu0 %4699 }
 0xbe2   :  { %11935 = vst [vmem:[#allocation190_spill] sm:$0xff] %v9951_v36 }
 0xbe3   :  { %11936 = vst [vmem:[#allocation191_spill] sm:$0xff] %v9955_v46 }
 0xbe5   :  { %v9959_v49 = vpop.permute.xlu2 %4615 }
 0xbe9   :  { %2880 = vadd.xlane.f32.xlu1 %v2879_v8  ;;  %v9957_v63 = vpop.permute.xlu1 %4693  ;;  %v9961_v40 = vpop.permute.xlu0 %4708 }
 0xbea   :  { %11937 = vst [vmem:[#allocation192_spill] sm:$0xff] %v9957_v63 }
 0xbeb   :  { %11938 = vst [vmem:[#allocation193_spill] sm:$0xff] %v9961_v40 }
 0xbed   :  { %v9965_v42 = vpop.permute.xlu2 %4624 }
 0xbee   :  { %11940 = vst [vmem:[#allocation195_spill] sm:$0xff] %v9965_v42 }
 0xbf1   :  { %v9963_v14 = vpop.permute.xlu1 %4702  ;;  %v9967_v35 = vpop.permute.xlu0 %4717 }
 0xbf2   :  { %11939 = vst [vmem:[#allocation194_spill] sm:$0xff] %v9963_v14 }
 0xbf3   :  { %11941 = vst [vmem:[#allocation196_spill] sm:$0xff] %v9967_v35 }
 0xbf5   :  { %v9971_v8 = vpop.permute.xlu2 %4633 }
 0xbf6   :  { %11943 = vst [vmem:[#allocation198_spill] sm:$0xff] %v9971_v8 }
 0xbf9   :  { %v9969_v37 = vpop.permute.xlu1 %4711  ;;  %v9973_v36 = vpop.permute.xlu0 %4726 }
 0xbfa   :  { %11942 = vst [vmem:[#allocation197_spill] sm:$0xff] %v9969_v37 }
 0xbfb   :  { %11944 = vst [vmem:[#allocation199_spill] sm:$0xff] %v9973_v36 }
 0xbfd   :  { %v9977_v46 = vpop.permute.xlu2 %4642 }
 0xbfe   :  { %11946 = vst [vmem:[#allocation201_spill] sm:$0xff] %v9977_v46 }
 0xc01   :  { %v9975_v21 = vpop.permute.xlu1 %4720  ;;  %v9979_v53 = vpop.permute.xlu0 %4735 }
 0xc02   :  { %11945 = vst [vmem:[#allocation200_spill] sm:$0xff] %v9975_v21 }
 0xc03   :  { %11947 = vst [vmem:[#allocation202_spill] sm:$0xff] %v9979_v53 }
 0xc05   :  { %v9983_v40 = vpop.permute.xlu2 %4651 }
 0xc06   :  { %11949 = vst [vmem:[#allocation204_spill] sm:$0xff] %v9983_v40 }
 0xc09   :  { %v9981_v63 = vpop.permute.xlu1 %4729  ;;  %v9985_v14 = vpop.permute.xlu0 %4744 }
 0xc0a   :  { %11948 = vst [vmem:[#allocation203_spill] sm:$0xff] %v9981_v63 }
 0xc0b   :  { %11950 = vst [vmem:[#allocation205_spill] sm:$0xff] %v9985_v14 }
 0xc0d   :  { %v9989_v35 = vpop.permute.xlu2 %4660 }
 0xc0e   :  { %11952 = vst [vmem:[#allocation207_spill] sm:$0xff] %v9989_v35 }
 0xc11   :  { %v9987_v42 = vpop.permute.xlu1 %4738  ;;  %v9991_v37 = vpop.permute.xlu0 %4753 }
 0xc12   :  { %11951 = vst [vmem:[#allocation206_spill] sm:$0xff] %v9987_v42 }
 0xc13   :  { %11953 = vst [vmem:[#allocation208_spill] sm:$0xff] %v9991_v37 }
 0xc15   :  { %v9995_v36 = vpop.permute.xlu2 %4669 }
 0xc16   :  { %11955 = vst [vmem:[#allocation210_spill] sm:$0xff] %v9995_v36 }
 0xc19   :  { %v9993_v8 = vpop.permute.xlu1 %4747  ;;  %v9997_v21 = vpop.permute.xlu0 %4762 }
 0xc1a   :  { %11954 = vst [vmem:[#allocation209_spill] sm:$0xff] %v9993_v8 }
 0xc1b   :  { %11956 = vst [vmem:[#allocation211_spill] sm:$0xff] %v9997_v21 }
 0xc1d   :  { %v10001_v53 = vpop.permute.xlu2 %4678 }
 0xc1e   :  { %11958 = vst [vmem:[#allocation213_spill] sm:$0xff] %v10001_v53 }
 0xc21   :  { %v9999_v46 = vpop.permute.xlu1 %4756  ;;  %v10003_v63 = vpop.permute.xlu0 %4771 }
 0xc22   :  { %11957 = vst [vmem:[#allocation212_spill] sm:$0xff] %v9999_v46 }
 0xc23   :  { %11959 = vst [vmem:[#allocation214_spill] sm:$0xff] %v10003_v63 }
 0xc25   :  { %v10007_v42 = vpop.permute.xlu2 %4687 }
 0xc29   :  { %v10005_v40 = vpop.permute.xlu1 %4765 }
 0xc2a   :  { %11960 = vst [vmem:[#allocation215_spill] sm:$0xff] %v10005_v40 }
 0xc2d   :  { %v10018_v63 = vpop.permute.xlu2 %4696 }
 0xc31   :  { %v10016_v46 = vpop.permute.xlu1 %4774 }
 0xc32   :  { %11961 = vst [vmem:[#allocation216_spill] sm:$0xff] %v10016_v46 }
 0xc35   :  { %v10020_v53 = vpop.permute.xlu2 %4705 }
 0xc4c   :  { %v2878_v14 = vpop.xlane.xlu0 %2877 }
 0xc4d   :  { %v2901_v35 = vadd.f32 %v11756_v25, %v2878_v14 }
 0xc4f   :  { %v10010_v37 = vmax.f32 %v2901_v35, 0.0 }
 0xc51   :  { %v4011_v8 = vmul.f32 %v11757_v10, %v10010_v37  ;;  %v4013_v21 = vmul.f32 %v11760_v17, %v10010_v37  ;;  %v4019_v35 = vmul.f32 %v11758_v51, %v10010_v37 }
 0xc53   :  { %4780 = vperm.xlu0 %6474, %v4011_v8   ;;  %4786 = vperm.xlu2 %6472, %v4013_v21   ;;  %v10031_v21 = vpop.permute.xlu2 %4714  ;;  %v11966_v8 = vld [vmem:[#allocation54_spill] sm:$0xff] }
 0xc54   :  { %11962 = vst [vmem:[#allocation217_spill] sm:$0xff] %v10031_v21 }
 0xc5c   :  { %v2881_v40 = vpop.xlane.xlu1 %2880 }
 0xc5d   :  { %v2902_v36 = vadd.f32 %v11753_v50, %v2881_v40  ;;  %v4017_v50 = vmul.f32 %v9166_v32, %v10010_v37  ;;  %v11964_v40 = vld [vmem:[#allocation51_spill] sm:$0xff] }
 0xc5e   :  { %v11965_v32 = vld [vmem:[#allocation55_spill] sm:$0xff] }
 0xc5f   :  { %v10023_v25 = vmax.f32 %v2902_v36, 0.0 }
 0xc61   :  { %v4012_v14 = vmul.f32 %v11754_v2, %v10023_v25  ;;  %v4014_v10 = vmul.f32 %v11755_v7, %v10023_v25  ;;  %v4016_v17 = vmul.f32 %v11762_v55, %v10023_v25  ;;  %v4015_v2 = vmul.f32 %v11759_v33, %v10010_v37  ;;  %v10039_v7 = vpop.permute.xlu2 %4723 }
 0xc62   :  { %11963 = vst [vmem:[#allocation218_spill] sm:$0xff] %v10039_v7  ;;  %v4022_v55 = vmul.f32 %v11761_v39, %v10023_v25  ;;  %v4020_v36 = vmul.f32 %v11764_v20, %v10023_v25  ;;  %v4018_v51 = vmul.f32 %v11964_v40, %v10023_v25  ;;  %v4025_v33 = vmul.f32 %v11965_v32, %v10010_v37  ;;  %v11968_v20 = vld [vmem:[#allocation59_spill] sm:$0xff]  ;;  %v11972_v40 = vld [vmem:[#allocation58_spill] sm:$0xff]  ;;  %v11973_v32 = vld [vmem:[#allocation8_spill] sm:$0xff] }
 0xc63   :  { %4795 = vperm.xlu2 %6472, %v4016_v17   ;;  %4789 = vperm.xlu0 %6474, %v4014_v10   ;;  %v4021_v39 = vmul.f32 %v11768_v12, %v10010_v37  ;;  %v4028_v17 = vmul.f32 %v11968_v20, %v10023_v25 }
 0xc64   :  { %4783 = vperm.xlu1 %6473, %v4012_v14   ;;  %v4023_v14 = vmul.f32 %v11966_v8, %v10010_v37  ;;  %v11975_v8 = vld [vmem:[#allocation65_spill] sm:$0xff] }
 0xc69   :  { %v10051_v10 = vpop.permute.xlu2 %4732 }
 0xc6a   :  { %11967 = vst [vmem:[#allocation51_spill] sm:$0xff] %v10051_v10 }
 0xc6b   :  { %4804 = vperm.xlu2 %6472, %v4019_v35   ;;  %4798 = vperm.xlu0 %6474, %v4017_v50   ;;  %v4026_v35 = vmul.f32 %v11770_v57, %v10023_v25  ;;  %v11969_v50 = vld [vmem:[#allocation44_spill] sm:$0xff] }
 0xc6c   :  { %4792 = vperm.xlu1 %6473, %v4015_v2   ;;  %v4024_v2 = vmul.f32 %v11969_v50, %v10023_v25 }
 0xc73   :  { %4813 = vperm.xlu2 %6472, %v4022_v55   ;;  %4807 = vperm.xlu0 %6474, %v4020_v36   ;;  %v10061_v55 = vpop.permute.xlu2 %4741  ;;  %v11971_v36 = vld [vmem:[#allocation64_spill] sm:$0xff] }
 0xc74   :  { %4801 = vperm.xlu1 %6473, %v4018_v51   ;;  %11970 = vst [vmem:[#allocation55_spill] sm:$0xff] %v10061_v55  ;;  %v4031_v12 = vmul.f32 %v11971_v36, %v10010_v37  ;;  %v4029_v51 = vmul.f32 %v11972_v40, %v10010_v37 }
 0xc7b   :  { %4822 = vperm.xlu2 %6472, %v4025_v33   ;;  %4816 = vperm.xlu0 %6474, %v4023_v14   ;;  %v4027_v33 = vmul.f32 %v11973_v32, %v10010_v37  ;;  %v10069_v57 = vpop.permute.xlu2 %4750  ;;  %v4034_v14 = vmul.f32 %v11975_v8, %v10023_v25 }
 0xc7c   :  { %4810 = vperm.xlu1 %6473, %v4021_v39   ;;  %11974 = vst [vmem:[#allocation54_spill] sm:$0xff] %v10069_v57  ;;  %v11976_v39 = vld [vmem:[#allocation62_spill] sm:$0xff] }
 0xc7d   :  { %v4032_v20 = vmul.f32 %v11976_v39, %v10023_v25 }
 0xc83   :  { %4831 = vperm.xlu2 %6472, %v4028_v17   ;;  %4825 = vperm.xlu0 %6474, %v4026_v35   ;;  %v11977_v17 = vld [vmem:[#allocation60_spill] sm:$0xff]  ;;  %v10077_v50 = vpop.permute.xlu2 %4759 }
 0xc84   :  { %4819 = vperm.xlu1 %6473, %v4024_v2   ;;  %v4030_v35 = vmul.f32 %v11977_v17, %v10023_v25  ;;  %11978 = vst [vmem:[#allocation59_spill] sm:$0xff] %v10077_v50  ;;  %v11979_v2 = vld [vmem:[#allocation9_spill] sm:$0xff]  ;;  %v11985_v17 = vld [vmem:[#allocation67_spill] sm:$0xff] }
 0xc85   :  { %v4037_v36 = vmul.f32 %v11979_v2, %v10010_v37  ;;  %v11986_v2 = vld [vmem:[#allocation7_spill] sm:$0xff] }
 0xc8b   :  { %4840 = vperm.xlu2 %6472, %v4031_v12   ;;  %4834 = vperm.xlu0 %6474, %v4029_v51   ;;  %v11980_v12 = vld [vmem:[#allocation66_spill] sm:$0xff]  ;;  %v11981_v51 = vld [vmem:[#allocation63_spill] sm:$0xff] }
 0xc8c   :  { %4828 = vperm.xlu1 %6473, %v4027_v33   ;;  %v4035_v40 = vmul.f32 %v11980_v12, %v10010_v37  ;;  %v4033_v32 = vmul.f32 %v11981_v51, %v10010_v37  ;;  %v11982_v33 = vld [vmem:[#allocation6_spill] sm:$0xff]  ;;  %v4043_v12 = vmul.f32 %v11986_v2, %v10010_v37  ;;  %v11988_v51 = vld [vmem:[#allocation69_spill] sm:$0xff] }
 0xc8d   :  { %v4040_v8 = vmul.f32 %v11982_v33, %v10023_v25 }
 0xc93   :  { %4849 = vperm.xlu2 %6472, %v4034_v14   ;;  %4843 = vperm.xlu0 %6474, %v4032_v20   ;;  %v11983_v14 = vld [vmem:[#allocation68_spill] sm:$0xff]  ;;  %v10089_v20 = vpop.permute.xlu2 %4768 }
 0xc94   :  { %4837 = vperm.xlu1 %6473, %v4030_v35   ;;  %v4038_v39 = vmul.f32 %v11983_v14, %v10023_v25  ;;  %11984 = vst [vmem:[#allocation44_spill] sm:$0xff] %v10089_v20  ;;  %v4036_v35 = vmul.f32 %v11985_v17, %v10023_v25  ;;  %v11990_v14 = vld [vmem:[#allocation27_spill] sm:$0xff]  ;;  %v11996_v20 = vld [vmem:[#allocation57_spill] sm:$0xff] }
 0xc95   :  { %v4046_v17 = vmul.f32 %v11990_v14, %v10023_v25  ;;  %v4045_v14 = vmul.f32 %v11996_v20, %v10010_v37  ;;  %v12002_v20 = vld [vmem:[#allocation26_spill] sm:$0xff] }
 0xc9b   :  { %4858 = vperm.xlu2 %6472, %v4037_v36   ;;  %4852 = vperm.xlu0 %6474, %v4035_v40   ;;  %v11987_v36 = vld [vmem:[#allocation17_spill] sm:$0xff]  ;;  %v10099_v33 = vpop.permute.xlu2 %4777 }
 0xc9c   :  { %4846 = vperm.xlu1 %6473, %v4033_v32   ;;  %v4041_v40 = vmul.f32 %v11987_v36, %v10010_v37  ;;  %v4039_v32 = vmul.f32 %v11988_v51, %v10010_v37  ;;  %11989 = vst [vmem:[#allocation64_spill] sm:$0xff] %v10099_v33  ;;  %v11995_v51 = vld [vmem:[#allocation21_spill] sm:$0xff] }
 0xca3   :  { %4867 = vperm.xlu2 %6472, %v4040_v8   ;;  %4861 = vperm.xlu0 %6474, %v4038_v39   ;;  %v11991_v8 = vld [vmem:[#allocation43_spill] sm:$0xff] }
 0xca4   :  { %4855 = vperm.xlu1 %6473, %v4036_v35   ;;  %v4044_v39 = vmul.f32 %v11991_v8, %v10023_v25  ;;  %v11992_v35 = vld [vmem:[#allocation85_spill] sm:$0xff] }
 0xca5   :  { %v4042_v2 = vmul.f32 %v11992_v35, %v10023_v25  ;;  %v11999_v35 = vld [vmem:[#allocation22_spill] sm:$0xff] }
 0xcab   :  { %4876 = vperm.xlu2 %6472, %v4043_v12   ;;  %4870 = vperm.xlu0 %6474, %v4041_v40   ;;  %v11994_v12 = vld [vmem:[#allocation36_spill] sm:$0xff] }
 0xcac   :  { %4864 = vperm.xlu1 %6473, %v4039_v32   ;;  %v4049_v40 = vmul.f32 %v11994_v12, %v10010_v37  ;;  %v4047_v32 = vmul.f32 %v11995_v51, %v10010_v37 }
 0xcad   :  { %v10107_v36 = vpop.permute.xlu2 %4786 }
 0xcae   :  { %11993 = vst [vmem:[#allocation58_spill] sm:$0xff] %v10107_v36  ;;  %v12000_v36 = vld [vmem:[#allocation16_spill] sm:$0xff] }
 0xcaf   :  { %v4048_v12 = vmul.f32 %v12000_v36, %v10023_v25 }
 0xcb3   :  { %4885 = vperm.xlu2 %6472, %v4046_v17   ;;  %4879 = vperm.xlu0 %6474, %v4044_v39   ;;  %v11998_v17 = vld [vmem:[#allocation92_spill] sm:$0xff] }
 0xcb4   :  { %4873 = vperm.xlu1 %6473, %v4042_v2   ;;  %v4052_v39 = vmul.f32 %v11998_v17, %v10023_v25  ;;  %v4050_v2 = vmul.f32 %v11999_v35, %v10023_v25 }
 0xcbb   :  { %4894 = vperm.xlu2 %6472, %v4049_v40   ;;  %4888 = vperm.xlu0 %6474, %v4047_v32   ;;  %v4055_v40 = vmul.f32 %v12002_v20, %v10010_v37  ;;  %v12003_v32 = vld [vmem:[#allocation37_spill] sm:$0xff]  ;;  %v4054_v20 = vmul.f32 %v11802_v18, %v10023_v25 }
 0xcbc   :  { %4882 = vperm.xlu1 %6473, %v4045_v14   ;;  %v4053_v14 = vmul.f32 %v12003_v32, %v10010_v37 }
 0xcbd   :  { %v10115_v8 = vpop.permute.xlu2 %4795 }
 0xcbe   :  { %11997 = vst [vmem:[#allocation8_spill] sm:$0xff] %v10115_v8  ;;  %v12004_v8 = vld [vmem:[#allocation40_spill] sm:$0xff] }
 0xcbf   :  { %v4051_v17 = vmul.f32 %v12004_v8, %v10010_v37 }
 0xcc3   :  { %4903 = vperm.xlu2 %6472, %v4052_v39   ;;  %4897 = vperm.xlu0 %6474, %v4050_v2   ;;  %v12007_v39 = vld [vmem:[#allocation73_spill] sm:$0xff] }
 0xcc4   :  { %4891 = vperm.xlu1 %6473, %v4048_v12   ;;  %v4058_v2 = vmul.f32 %v12007_v39, %v10023_v25  ;;  %v4056_v12 = vmul.f32 %v11799_v59, %v10023_v25  ;;  %v12012_v39 = vld [vmem:[#allocation24_spill] sm:$0xff]  ;;  %v12013_v59 = vld [vmem:[#allocation117_spill] sm:$0xff] }
 0xcc5   :  { %v10123_v51 = vpop.permute.xlu2 %4804  ;;  %v10133_v36 = vpop.permute.xlu0 %4780 }
 0xcc6   :  { %12001 = vst [vmem:[#allocation65_spill] sm:$0xff] %v10123_v51  ;;  %v4057_v51 = vmul.f32 %v12013_v59, %v10010_v37  ;;  %v12021_v59 = vld [vmem:[#allocation120_spill] sm:$0xff] }
 0xcc7   :  { %12006 = vst [vmem:[#allocation60_spill] sm:$0xff] %v10133_v36 }
 0xccb   :  { %4912 = vperm.xlu2 %6472, %v4055_v40   ;;  %4906 = vperm.xlu0 %6474, %v4053_v14   ;;  %v12011_v14 = vld [vmem:[#allocation34_spill] sm:$0xff] }
 0xccc   :  { %4900 = vperm.xlu1 %6473, %v4051_v17   ;;  %v4061_v17 = vmul.f32 %v12011_v14, %v10010_v37  ;;  %v12017_v14 = vld [vmem:[#allocation95_spill] sm:$0xff] }
 0xccd   :  { %v10131_v35 = vpop.permute.xlu2 %4813  ;;  %v4062_v36 = vmul.f32 %v12017_v14, %v10023_v25 }
 0xcce   :  { %12005 = vst [vmem:[#allocation62_spill] sm:$0xff] %v10131_v35  ;;  %v4059_v35 = vmul.f32 %v12012_v39, %v10010_v37  ;;  %v12018_v39 = vld [vmem:[#allocation75_spill] sm:$0xff] }
 0xccf   :  { %v4060_v33 = vmul.f32 %v12018_v39, %v10023_v25  ;;  %v12026_v39 = vld [vmem:[#allocation83_spill] sm:$0xff] }
 0xcd3   :  { %4921 = vperm.xlu2 %6472, %v4058_v2   ;;  %4915 = vperm.xlu0 %6474, %v4056_v12  }
 0xcd4   :  { %4909 = vperm.xlu1 %6473, %v4054_v20   ;;  %v12016_v20 = vld [vmem:[#allocation71_spill] sm:$0xff] }
 0xcd5   :  { %v10141_v8 = vpop.permute.xlu2 %4822  ;;  %v10143_v40 = vpop.permute.xlu0 %4789 }
 0xcd6   :  { %12008 = vst [vmem:[#allocation9_spill] sm:$0xff] %v10141_v8  ;;  %v10145_v32 = vpop.permute.xlu1 %4783  ;;  %v4064_v8 = vmul.f32 %v12016_v20, %v10023_v25 }
 0xcd7   :  { %12009 = vst [vmem:[#allocation66_spill] sm:$0xff] %v10143_v40 }
 0xcd8   :  { %12010 = vst [vmem:[#allocation63_spill] sm:$0xff] %v10145_v32  ;;  %v12023_v32 = vld [vmem:[#allocation77_spill] sm:$0xff] }
 0xcd9   :  { %v4063_v14 = vmul.f32 %v12023_v32, %v10010_v37 }
 0xcdb   :  { %4930 = vperm.xlu2 %6472, %v4061_v17   ;;  %4924 = vperm.xlu0 %6474, %v4059_v35  }
 0xcdc   :  { %4918 = vperm.xlu1 %6473, %v4057_v51  }
 0xcdd   :  { %v10153_v18 = vpop.permute.xlu2 %4831  ;;  %v10155_v2 = vpop.permute.xlu0 %4798 }
 0xcde   :  { %12014 = vst [vmem:[#allocation6_spill] sm:$0xff] %v10155_v2  ;;  %v10157_v12 = vpop.permute.xlu1 %4792  ;;  %v4067_v2 = vmul.f32 %v12021_v59, %v10010_v37  ;;  %v12027_v59 = vld [vmem:[#allocation81_spill] sm:$0xff] }
 0xcdf   :  { %12015 = vst [vmem:[#allocation68_spill] sm:$0xff] %v10157_v12  ;;  %v12022_v12 = vld [vmem:[#allocation79_spill] sm:$0xff] }
 0xce0   :  { %v4065_v20 = vmul.f32 %v12022_v12, %v10010_v37  ;;  %v12028_v12 = vld [vmem:[#allocation72_spill] sm:$0xff] }
 0xce1   :  { %v4066_v40 = vmul.f32 %v12028_v12, %v10023_v25  ;;  %v12033_v12 = vld [vmem:[#allocation80_spill] sm:$0xff] }
 0xce3   :  { %4939 = vperm.xlu2 %6472, %v4064_v8   ;;  %4933 = vperm.xlu0 %6474, %v4062_v36  }
 0xce4   :  { %4927 = vperm.xlu1 %6473, %v4060_v33  }
 0xce5   :  { %v4841_v35 = vpop.permute.xlu2 %4840  ;;  %v10165_v51 = vpop.permute.xlu0 %4807 }
 0xce6   :  { %12019 = vst [vmem:[#allocation67_spill] sm:$0xff] %v10165_v51  ;;  %v10167_v17 = vpop.permute.xlu1 %4801  ;;  %v4070_v51 = vmul.f32 %v12026_v39, %v10023_v25  ;;  %v4071_v39 = vmul.f32 %v11824_v23, %v10010_v37  ;;  %v12036_v23 = vld [vmem:[#allocation98_spill] sm:$0xff] }
 0xce7   :  { %12020 = vst [vmem:[#allocation7_spill] sm:$0xff] %v10167_v17  ;;  %v4068_v17 = vmul.f32 %v12027_v59, %v10023_v25  ;;  %v12032_v59 = vld [vmem:[#allocation74_spill] sm:$0xff]  ;;  %v4072_v50 = vmul.f32 %v12036_v23, %v10023_v25 }
 0xceb   :  { %4948 = vperm.xlu2 %6472, %v4067_v2   ;;  %4942 = vperm.xlu0 %6474, %v4065_v20  }
 0xcec   :  { %4936 = vperm.xlu1 %6473, %v4063_v14   ;;  %v12031_v14 = vld [vmem:[#allocation86_spill] sm:$0xff] }
 0xced   :  { %v10175_v8 = vpop.permute.xlu2 %4849  ;;  %v10177_v33 = vpop.permute.xlu0 %4816 }
 0xcee   :  { %12024 = vst [vmem:[#allocation17_spill] sm:$0xff] %v10177_v33  ;;  %v10179_v36 = vpop.permute.xlu1 %4810  ;;  %v4073_v33 = vmul.f32 %v12031_v14, %v10010_v37  ;;  %v12035_v14 = vlaneseq }
 0xcef   :  { %12025 = vst [vmem:[#allocation69_spill] sm:$0xff] %v10179_v36  ;;  %v4069_v36 = vmul.f32 %v12032_v59, %v10010_v37 }
 0xcf0   :  { %v10206_v57 = vand.u32 127, %v12035_v14 }
 0xcf3   :  { %4957 = vperm.xlu2 %6472, %v4070_v51   ;;  %4951 = vperm.xlu0 %6474, %v4068_v17  }
 0xcf4   :  { %4945 = vperm.xlu1 %6473, %v4066_v40  }
 0xcf5   :  { %v10187_v32 = vpop.permute.xlu2 %4858  ;;  %v10189_v2 = vpop.permute.xlu0 %4825 }
 0xcf6   :  { %12029 = vst [vmem:[#allocation27_spill] sm:$0xff] %v10189_v2  ;;  %v10191_v20 = vpop.permute.xlu1 %4819  ;;  %v4076_v2 = vmul.f32 %v12033_v12, %v10023_v25  ;;  %v5389_v12 = vperm.slane %v4841_v35, %v10206_v57 }
 0xcf7   :  { %12030 = vst [vmem:[#allocation43_spill] sm:$0xff] %v10191_v20  ;;  %v12034_v20 = vld [vmem:[#allocation78_spill] sm:$0xff] }
 0xcf8   :  { %v4074_v46 = vmul.f32 %v12034_v20, %v10023_v25 }
 0xcfb   :  { %4966 = vperm.xlu2 %6472, %v4073_v33   ;;  %4960 = vperm.xlu0 %6474, %v4071_v39   ;;  %v10211_v33 = vadd.s32 4294967288, %v10206_v57 }
 0xcfc   :  { %4954 = vperm.xlu1 %6473, %v4069_v36  }
 0xcfd   :  { %v10199_v51 = vpop.permute.xlu2 %4867  ;;  %v4835_v40 = vpop.permute.xlu0 %4834  ;;  %v5384_v23 = vperm.slane %v10153_v18, %v10211_v33  ;;  %v12039_v18 = vld [vmem:[#allocation88_spill] sm:$0xff] }
 0xcfe   :  { %v4829_v17 = vpop.permute.xlu1 %4828  ;;  %v4075_v7 = vmul.f32 %v12039_v18, %v10010_v37 }
 0xcff   :  { %v5383_v39 = vperm.slane %v4829_v17, %v10206_v57  ;;  %v12038_v17 = vld [vmem:[#allocation122_spill] sm:$0xff] }
 0xd00   :  { %v4077_v35 = vmul.f32 %v12038_v17, %v10010_v37  ;;  %v12040_v17 = vld [vmem:[#allocation102_spill] sm:$0xff] }
 0xd03   :  { %4975 = vperm.xlu2 %6472, %v4076_v2   ;;  %4969 = vperm.xlu0 %6474, %v4074_v46   ;;  %v5386_v46 = vperm.slane %v4835_v40, %v10206_v57 }
 0xd04   :  { %4963 = vperm.xlu1 %6473, %v4072_v50   ;;  %v12037_v50 = vld [vmem:[#allocation82_spill] sm:$0xff] }
 0xd05   :  { %v10213_v36 = vpop.permute.xlu2 %4876  ;;  %v4844_v59 = vpop.permute.xlu0 %4843  ;;  %v4079_v10 = vmul.f32 %v12037_v50, %v10010_v37 }
 0xd06   :  { %v5390_v20 = vperm.slane %v4844_v59, %v10211_v33  ;;  %v4838_v14 = vpop.permute.xlu1 %4837  ;;  %v5385_v59 = vsel %vm5168_vm4, %v5384_v23, %v5383_v39  ;;  %v4082_v39 = vmul.f32 %v12040_v17, %v10023_v25  ;;  %v12041_v23 = vld [vmem:[#allocation93_spill] sm:$0xff] }
 0xd07   :  { %v5387_v2 = vperm.slane %v4838_v14, %v10211_v33 }
 0xd08   :  { %v5391_v55 = vsel %vm5168_vm4, %v5390_v20, %v5389_v12 }
 0xd09   :  { %v5388_v21 = vsel %vm5168_vm4, %v5387_v2, %v5386_v46  ;;  %v4080_v46 = vmul.f32 %v12041_v23, %v10023_v25  ;;  %v12042_v2 = vld [vmem:[#allocation90_spill] sm:$0xff] }
 0xd0a   :  { %v5621_v40 = vsel %vm5551_vm5, %v5388_v21, %v5385_v59  ;;  %v4078_v18 = vmul.f32 %v12042_v2, %v10023_v25  ;;  %v12044_v2 = vld [vmem:[#allocation96_spill] sm:$0xff] }
 0xd0b   :  { %4984 = vperm.xlu2 %6472, %v4079_v10   ;;  %4978 = vperm.xlu0 %6474, %v4077_v35   ;;  %v5622_v14 = vsel %vm5553_vm6, %v5391_v55, %v5621_v40  ;;  %v5398_v35 = vperm.slane %v10187_v32, %v10206_v57 }
 0xd0c   :  { %4972 = vperm.xlu1 %6473, %v4075_v7   ;;  %v5393_v7 = vperm.slane %v10175_v8, %v10211_v33 }
 0xd0d   :  { %v10233_v12 = vpop.permute.xlu2 %4885  ;;  %v4853_v20 = vpop.permute.xlu0 %4852 }
 0xd0e   :  { %v4847_v50 = vpop.permute.xlu1 %4846  ;;  %v5395_v23 = vperm.slane %v4853_v20, %v10206_v57 }
 0xd0f   :  { %v5392_v21 = vperm.slane %v4847_v50, %v10206_v57 }
 0xd11   :  { %v5394_v59 = vsel %vm5168_vm4, %v5393_v7, %v5392_v21  ;;  %v12045_v7 = vld [vmem:[#allocation84_spill] sm:$0xff] }
 0xd12   :  { %v5623_v32 = vsel %vm5555_vm7, %v5394_v59, %v5622_v14  ;;  %v5402_v14 = vperm.slane %v10199_v51, %v10211_v33 }
 0xd13   :  { %4993 = vperm.xlu2 %6472, %v4082_v39   ;;  %4987 = vperm.xlu0 %6474, %v4080_v46   ;;  %v12043_v39 = vld [vmem:[#allocation99_spill] sm:$0xff] }
 0xd14   :  { %4981 = vperm.xlu1 %6473, %v4078_v18   ;;  %v4085_v8 = vmul.f32 %v12043_v39, %v10010_v37  ;;  %v4083_v18 = vmul.f32 %v12044_v2, %v10010_v37 }
 0xd15   :  { %v10244_v10 = vpop.permute.xlu2 %4894  ;;  %v4862_v55 = vpop.permute.xlu0 %4861 }
 0xd16   :  { %v5399_v40 = vperm.slane %v4862_v55, %v10211_v33  ;;  %v4856_v17 = vpop.permute.xlu1 %4855  ;;  %v4081_v55 = vmul.f32 %v12045_v7, %v10010_v37 }
 0xd17   :  { %v5396_v50 = vperm.slane %v4856_v17, %v10211_v33 }
 0xd18   :  { %v5400_v46 = vsel %vm5168_vm4, %v5399_v40, %v5398_v35 }
 0xd19   :  { %v5397_v21 = vsel %vm5168_vm4, %v5396_v50, %v5395_v23  ;;  %v12046_v23 = vld [vmem:[#allocation101_spill] sm:$0xff] }
 0xd1a   :  { %v5624_v20 = vsel %vm5557_vm8, %v5397_v21, %v5623_v32  ;;  %v4088_v50 = vmul.f32 %v12046_v23, %v10023_v25  ;;  %v5407_v21 = vperm.slane %v10213_v36, %v10206_v57  ;;  %v12049_v36 = vld [vmem:[#allocation123_spill] sm:$0xff] }
 0xd1b   :  { %5002 = vperm.xlu2 %6472, %v4085_v8   ;;  %4996 = vperm.xlu0 %6474, %v4083_v18   ;;  %v5625_v17 = vsel %vm5559_vm9, %v5400_v46, %v5624_v20  ;;  %v4086_v8 = vmul.f32 %v11852_v62, %v10023_v25  ;;  %v4084_v46 = vmul.f32 %v11855_v47, %v10023_v25  ;;  %v12047_v47 = vld [vmem:[#allocation94_spill] sm:$0xff] }
 0xd1c   :  { %4990 = vperm.xlu1 %6473, %v4081_v55  }
 0xd1d   :  { %v10263_v35 = vpop.permute.xlu2 %4903  ;;  %v4871_v40 = vpop.permute.xlu0 %4870 }
 0xd1e   :  { %v4865_v39 = vpop.permute.xlu1 %4864  ;;  %v5404_v55 = vperm.slane %v4871_v40, %v10206_v57 }
 0xd1f   :  { %v5401_v59 = vperm.slane %v4865_v39, %v10206_v57  ;;  %v4091_v39 = vmul.f32 %v12047_v47, %v10010_v37  ;;  %v12052_v47 = vld [vmem:[#allocation107_spill] sm:$0xff] }
 0xd21   :  { %v5403_v2 = vsel %vm5168_vm4, %v5402_v14, %v5401_v59  ;;  %v12048_v14 = vld [vmem:[#allocation91_spill] sm:$0xff] }
 0xd22   :  { %v5626_v18 = vsel %vm5561_vm10, %v5403_v2, %v5625_v17  ;;  %v4089_v59 = vmul.f32 %v12048_v14, %v10010_v37 }
 0xd23   :  { %5011 = vperm.xlu2 %6472, %v4088_v50   ;;  %5005 = vperm.xlu0 %6474, %v4086_v8   ;;  %v4087_v50 = vmul.f32 %v12049_v36, %v10010_v37 }
 0xd24   :  { %4999 = vperm.xlu1 %6473, %v4084_v46  }
 0xd25   :  { %v10276_v51 = vpop.permute.xlu2 %4912  ;;  %v4880_v32 = vpop.permute.xlu0 %4879 }
 0xd26   :  { %v5408_v7 = vperm.slane %v4880_v32, %v10211_v33  ;;  %v4874_v62 = vpop.permute.xlu1 %4873  ;;  %v5411_v32 = vperm.slane %v10233_v12, %v10211_v33 }
 0xd27   :  { %v5405_v20 = vperm.slane %v4874_v62, %v10211_v33 }
 0xd28   :  { %v5409_v17 = vsel %vm5168_vm4, %v5408_v7, %v5407_v21  ;;  %v12050_v7 = vld [vmem:[#allocation97_spill] sm:$0xff] }
 0xd29   :  { %v5406_v23 = vsel %vm5168_vm4, %v5405_v20, %v5404_v55  ;;  %v4094_v62 = vmul.f32 %v12050_v7, %v10023_v25  ;;  %v12051_v55 = vld [vmem:[#allocation105_spill] sm:$0xff] }
 0xd2a   :  { %v10292_v8 = vsel %vm5563_vm11, %v5406_v23, %v5626_v18  ;;  %v4092_v20 = vmul.f32 %v12051_v55, %v10023_v25  ;;  %v5416_v23 = vperm.slane %v10244_v10, %v10206_v57 }
 0xd2b   :  { %5020 = vperm.xlu2 %6472, %v4091_v39   ;;  %5014 = vperm.xlu0 %6474, %v4089_v59   ;;  %v4090_v39 = vmul.f32 %v12052_v47, %v10023_v25 }
 0xd2c   :  { %5008 = vperm.xlu1 %6473, %v4087_v50  }
 0xd2d   :  { %v10294_v40 = vpop.permute.xlu2 %4921  ;;  %v4889_v2 = vpop.permute.xlu0 %4888 }
 0xd2e   :  { %v4883_v46 = vpop.permute.xlu1 %4882 }
 0xd2f   :  { %v5410_v21 = vperm.slane %v4883_v46, %v10206_v57  ;;  %v5413_v46 = vperm.slane %v4889_v2, %v10206_v57 }
 0xd31   :  { %v5412_v18 = vsel %vm5168_vm4, %v5411_v32, %v5410_v21  ;;  %v12053_v21 = vld [vmem:[#allocation124_spill] sm:$0xff] }
 0xd32   :  { %v5628_v14 = vsel %vm5551_vm5, %v5412_v18, %v5409_v17  ;;  %v4097_v7 = vmul.f32 %v12053_v21, %v10010_v37  ;;  %v12055_v18 = vld [vmem:[#allocation108_spill] sm:$0xff] }
 0xd33   :  { %5029 = vperm.xlu2 %6472, %v4094_v62   ;;  %5023 = vperm.xlu0 %6474, %v4092_v20   ;;  %v12054_v62 = vld [vmem:[#allocation109_spill] sm:$0xff]  ;;  %v4093_v10 = vmul.f32 %v12055_v18, %v10010_v37 }
 0xd34   :  { %5017 = vperm.xlu1 %6473, %v4090_v39   ;;  %v4095_v55 = vmul.f32 %v12054_v62, %v10010_v37 }
 0xd35   :  { %v10307_v59 = vpop.permute.xlu2 %4930  ;;  %v4898_v12 = vpop.permute.xlu0 %4897 }
 0xd36   :  { %v5417_v36 = vperm.slane %v4898_v12, %v10211_v33  ;;  %v4892_v50 = vpop.permute.xlu1 %4891 }
 0xd37   :  { %v5414_v32 = vperm.slane %v4892_v50, %v10211_v33 }
 0xd38   :  { %v5418_v17 = vsel %vm5168_vm4, %v5417_v36, %v5416_v23  ;;  %v5420_v23 = vperm.slane %v10263_v35, %v10211_v33 }
 0xd39   :  { %v5415_v20 = vsel %vm5168_vm4, %v5414_v32, %v5413_v46  ;;  %v12056_v46 = vld [vmem:[#allocation116_spill] sm:$0xff] }
 0xd3a   :  { %v5629_v47 = vsel %vm5553_vm6, %v5415_v20, %v5628_v14  ;;  %v4100_v32 = vmul.f32 %v12056_v46, %v10023_v25  ;;  %v4098_v14 = vmul.f32 %v11873_v43, %v10023_v25  ;;  %v5425_v20 = vperm.slane %v10276_v51, %v10206_v57 }
 0xd3b   :  { %5038 = vperm.xlu2 %6472, %v4097_v7   ;;  %5032 = vperm.xlu0 %6474, %v4095_v55   ;;  %v5630_v2 = vsel %vm5555_vm7, %v5418_v17, %v5629_v47  ;;  %v12057_v7 = vld [vmem:[#allocation103_spill] sm:$0xff] }
 0xd3c   :  { %5026 = vperm.xlu1 %6473, %v4093_v10   ;;  %v4096_v17 = vmul.f32 %v12057_v7, %v10023_v25 }
 0xd3d   :  { %v10324_v39 = vpop.permute.xlu2 %4939  ;;  %v4907_v12 = vpop.permute.xlu0 %4906 }
 0xd3e   :  { %v4901_v50 = vpop.permute.xlu1 %4900  ;;  %v5422_v43 = vperm.slane %v4907_v12, %v10206_v57 }
 0xd3f   :  { %v5419_v36 = vperm.slane %v4901_v50, %v10206_v57  ;;  %v12058_v50 = vld [vmem:[#allocation14_spill] sm:$0xff] }
 0xd41   :  { %v5421_v21 = vsel %vm5168_vm4, %v5420_v23, %v5419_v36  ;;  %v4103_v23 = vmul.f32 %v12058_v50, %v10010_v37  ;;  %v4101_v36 = vmul.f32 %v11879_v4, %v10010_v37 }
 0xd42   :  { %v5631_v62 = vsel %vm5557_vm8, %v5421_v21, %v5630_v2 }
 0xd43   :  { %5047 = vperm.xlu2 %6472, %v4100_v32   ;;  %5041 = vperm.xlu0 %6474, %v4098_v14   ;;  %v12059_v32 = vld [vmem:[#allocation113_spill] sm:$0xff] }
 0xd44   :  { %5035 = vperm.xlu1 %6473, %v4096_v17   ;;  %v4099_v51 = vmul.f32 %v12059_v32, %v10010_v37 }
 0xd45   :  { %v10337_v55 = vpop.permute.xlu2 %4948  ;;  %v4916_v35 = vpop.permute.xlu0 %4915 }
 0xd46   :  { %v5426_v18 = vperm.slane %v4916_v35, %v10211_v33  ;;  %v4910_v10 = vpop.permute.xlu1 %4909  ;;  %v5429_v35 = vperm.slane %v10294_v40, %v10211_v33 }
 0xd47   :  { %v5423_v47 = vperm.slane %v4910_v10, %v10211_v33  ;;  %v12061_v10 = vld [vmem:[#allocation19_spill] sm:$0xff] }
 0xd48   :  { %v5427_v2 = vsel %vm5168_vm4, %v5426_v18, %v5425_v20  ;;  %v12060_v20 = vld [vmem:[#allocation29_spill] sm:$0xff] }
 0xd49   :  { %v5424_v46 = vsel %vm5168_vm4, %v5423_v47, %v5422_v43  ;;  %v4106_v18 = vmul.f32 %v12060_v20, %v10023_v25  ;;  %v4104_v43 = vmul.f32 %v12061_v10, %v10023_v25  ;;  %v12062_v47 = vld [vmem:[#allocation112_spill] sm:$0xff] }
 0xd4a   :  { %v5632_v14 = vsel %vm5559_vm9, %v5424_v46, %v5631_v62  ;;  %v4102_v50 = vmul.f32 %v12062_v47, %v10023_v25 }
 0xd4b   :  { %5056 = vperm.xlu2 %6472, %v4103_v23   ;;  %5050 = vperm.xlu0 %6474, %v4101_v36   ;;  %v5633_v12 = vsel %vm5561_vm10, %v5427_v2, %v5632_v14  ;;  %v5434_v36 = vperm.slane %v10307_v59, %v10206_v57  ;;  %v4105_v59 = vmul.f32 %v11892_v16, %v10010_v37 }
 0xd4c   :  { %5044 = vperm.xlu1 %6473, %v4099_v51   ;;  %v4110_v16 = vmul.f32 %v9068_v28, %v10023_v25 }
 0xd4d   :  { %v10354_v21 = vpop.permute.xlu2 %4957  ;;  %v4925_v7 = vpop.permute.xlu0 %4924 }
 0xd4e   :  { %v4919_v17 = vpop.permute.xlu1 %4918  ;;  %v5431_v51 = vperm.slane %v4925_v7, %v10206_v57 }
 0xd4f   :  { %v5428_v4 = vperm.slane %v4919_v17, %v10206_v57  ;;  %v12063_v17 = vld [vmem:[#allocation28_spill] sm:$0xff] }
 0xd51   :  { %v5430_v62 = vsel %vm5168_vm4, %v5429_v35, %v5428_v4  ;;  %v4109_v35 = vmul.f32 %v12063_v17, %v10010_v37  ;;  %v4107_v4 = vmul.f32 %v9234_v45, %v10010_v37  ;;  %v12064_v45 = vld [vmem:[#allocation46_spill] sm:$0xff] }
 0xd52   :  { %v10367_v23 = vsel %vm5563_vm11, %v5430_v62, %v5633_v12  ;;  %v5438_v62 = vperm.slane %v10324_v39, %v10211_v33 }
 0xd53   :  { %5065 = vperm.xlu2 %6472, %v4106_v18   ;;  %5059 = vperm.xlu0 %6474, %v4104_v43  }
 0xd54   :  { %5053 = vperm.xlu1 %6473, %v4102_v50   ;;  %v4112_v50 = vmul.f32 %v12064_v45, %v10023_v25  ;;  %v5447_v45 = vperm.slane %v10354_v21, %v10211_v33 }
 0xd55   :  { %v10369_v40 = vpop.permute.xlu2 %4966  ;;  %v4934_v2 = vpop.permute.xlu0 %4933 }
 0xd56   :  { %v5435_v46 = vperm.slane %v4934_v2, %v10211_v33  ;;  %v4928_v32 = vpop.permute.xlu1 %4927  ;;  %v5452_v21 = vperm.slane %v10369_v40, %v10206_v57  ;;  %v4117_v40 = vmul.f32 %v9243_v60, %v10010_v37  ;;  %v4122_v60 = vmul.f32 %v9129_v38, %v10023_v25 }
 0xd57   :  { %v5432_v14 = vperm.slane %v4928_v32, %v10211_v33 }
 0xd58   :  { %v5436_v12 = vsel %vm5168_vm4, %v5435_v46, %v5434_v36  ;;  %v4108_v36 = vmul.f32 %v9061_v0, %v10023_v25  ;;  %v12065_v0 = vld [vmem:[#allocation15_spill] sm:$0xff] }
 0xd59   :  { %v5433_v20 = vsel %vm5168_vm4, %v5432_v14, %v5431_v51  ;;  %v5443_v51 = vperm.slane %v10337_v55, %v10206_v57  ;;  %v4111_v55 = vmul.f32 %v9072_v9, %v10010_v37  ;;  %v4116_v9 = vmul.f32 %v9137_v52, %v10023_v25 }
 0xd5a   :  { %v5635_v18 = vsel %vm5551_vm5, %v5436_v12, %v5433_v20  ;;  %v4115_v12 = vmul.f32 %v12065_v0, %v10010_v37  ;;  %v4113_v20 = vmul.f32 %v9117_v54, %v10010_v37 }
 0xd5b   :  { %5074 = vperm.xlu2 %6472, %v4109_v35   ;;  %5068 = vperm.xlu0 %6474, %v4107_v4  }
 0xd5c   :  { %5062 = vperm.xlu1 %6473, %v4105_v59  }
 0xd5d   :  { %v10385_v7 = vpop.permute.xlu2 %4975  ;;  %v4943_v10 = vpop.permute.xlu0 %4942 }
 0xd5e   :  { %v4937_v43 = vpop.permute.xlu1 %4936  ;;  %v5440_v28 = vperm.slane %v4943_v10, %v10206_v57 }
 0xd5f   :  { %v5437_v47 = vperm.slane %v4937_v43, %v10206_v57 }
 0xd61   :  { %v5439_v2 = vsel %vm5168_vm4, %v5438_v62, %v5437_v47 }
 0xd62   :  { %v5636_v46 = vsel %vm5553_vm6, %v5439_v2, %v5635_v18 }
 0xd63   :  { %5083 = vperm.xlu2 %6472, %v4112_v50   ;;  %5077 = vperm.xlu0 %6474, %v4110_v16   ;;  %v12066_v50 = vld [vmem:[#allocation115_spill] sm:$0xff] }
 0xd64   :  { %5071 = vperm.xlu1 %6473, %v4108_v36   ;;  %v4118_v16 = vmul.f32 %v12066_v50, %v10023_v25  ;;  %v4114_v36 = vmul.f32 %v9123_v44, %v10023_v25  ;;  %v12067_v44 = vld [vmem:[#allocation118_spill] sm:$0xff]  ;;  %v4120_v50 = vmul.f32 %v11907_v27, %v10023_v25  ;;  %v4125_v27 = vmul.f32 %v9262_v58, %v10010_v37 }
 0xd65   :  { %v10398_v32 = vpop.permute.xlu2 %4984  ;;  %v4952_v39 = vpop.permute.xlu0 %4951 }
 0xd66   :  { %v5444_v14 = vperm.slane %v4952_v39, %v10211_v33  ;;  %v4946_v17 = vpop.permute.xlu1 %4945 }
 0xd67   :  { %v5441_v35 = vperm.slane %v4946_v17, %v10211_v33 }
 0xd68   :  { %v5445_v4 = vsel %vm5168_vm4, %v5444_v14, %v5443_v51 }
 0xd69   :  { %v5442_v59 = vsel %vm5168_vm4, %v5441_v35, %v5440_v28  ;;  %v4121_v35 = vmul.f32 %v12067_v44, %v10010_v37 }
 0xd6a   :  { %v5637_v18 = vsel %vm5555_vm7, %v5442_v59, %v5636_v46 }
 0xd6b   :  { %5092 = vperm.xlu2 %6472, %v4115_v12   ;;  %5086 = vperm.xlu0 %6474, %v4113_v20   ;;  %v5638_v10 = vsel %vm5557_vm8, %v5445_v4, %v5637_v18  ;;  %v4119_v12 = vmul.f32 %v9190_v3, %v10010_v37 }
 0xd6c   :  { %5080 = vperm.xlu1 %6473, %v4111_v55  }
 0xd6d   :  { %v10415_v43 = vpop.permute.xlu2 %4993  ;;  %v4961_v62 = vpop.permute.xlu0 %4960 }
 0xd6e   :  { %v4955_v47 = vpop.permute.xlu1 %4954  ;;  %v5449_v17 = vperm.slane %v4961_v62, %v10206_v57  ;;  %v12068_v62 = vld [vmem:[#allocation121_spill] sm:$0xff] }
 0xd6f   :  { %v5446_v54 = vperm.slane %v4955_v47, %v10206_v57  ;;  %v4124_v47 = vmul.f32 %v12068_v62, %v10023_v25 }
 0xd71   :  { %v5448_v2 = vsel %vm5168_vm4, %v5447_v45, %v5446_v54 }
 0xd72   :  { %v5639_v46 = vsel %vm5559_vm9, %v5448_v2, %v5638_v10  ;;  %v5456_v10 = vperm.slane %v10385_v7, %v10211_v33  ;;  %v5461_v7 = vperm.slane %v10398_v32, %v10206_v57 }
 0xd73   :  { %5101 = vperm.xlu2 %6472, %v4118_v16   ;;  %5095 = vperm.xlu0 %6474, %v4116_v9  }
 0xd74   :  { %5089 = vperm.xlu1 %6473, %v4114_v36  }
 0xd75   :  { %v4970_v39 = vpop.permute.xlu0 %4969  ;;  %v10432_v52 = vpop.permute.xlu2 %5002 }
 0xd76   :  { %v5453_v51 = vperm.slane %v4970_v39, %v10211_v33  ;;  %v4964_v14 = vpop.permute.xlu1 %4963 }
 0xd77   :  { %v5450_v28 = vperm.slane %v4964_v14, %v10211_v33  ;;  %v12070_v14 = vld [vmem:[#allocation119_spill] sm:$0xff] }
 0xd78   :  { %v5454_v0 = vsel %vm5168_vm4, %v5453_v51, %v5452_v21  ;;  %v4123_v32 = vmul.f32 %v12070_v14, %v10010_v37  ;;  %v5470_v14 = vperm.slane %v10432_v52, %v10206_v57 }
 0xd79   :  { %v5451_v4 = vsel %vm5168_vm4, %v5450_v28, %v5449_v17 }
 0xd7a   :  { %v5640_v20 = vsel %vm5561_vm10, %v5451_v4, %v5639_v46  ;;  %v12069_v46 = vld [vmem:[#allocation125_spill] sm:$0xff]  ;;  %v12071_v4 = vld [vmem:[#allocation56_spill] sm:$0xff] }
 0xd7b   :  { %5110 = vperm.xlu2 %6472, %v4121_v35   ;;  %5104 = vperm.xlu0 %6474, %v4119_v12   ;;  %v10445_v59 = vsel %vm5563_vm11, %v5454_v0, %v5640_v20  ;;  %v4127_v39 = vmul.f32 %v12069_v46, %v10010_v37  ;;  %v5465_v12 = vperm.slane %v10415_v43, %v10211_v33  ;;  %v12072_v20 = vld [vmem:[#allocation111_spill] sm:$0xff]  ;;  %v12076_v43 = vld [vmem:[#allocation41_spill] sm:$0xff] }
 0xd7c   :  { %5098 = vperm.xlu1 %6473, %v4117_v40   ;;  %v5171_v40 = vperm.slane %v12071_v4, %v10211_v33 }
 0xd7d   :  { %v4979_v55 = vpop.permute.xlu0 %4978  ;;  %v10454_v45 = vpop.permute.xlu2 %5011 }
 0xd7e   :  { %v4973_v18 = vpop.permute.xlu1 %4972  ;;  %v5458_v36 = vperm.slane %v4979_v55, %v10206_v57  ;;  %v5167_v55 = vperm.slane %v12072_v20, %v10211_v33  ;;  %v12081_v20 = vld [vmem:[#allocation38_spill] sm:$0xff] }
 0xd7f   :  { %v5455_v3 = vperm.slane %v4973_v18, %v10206_v57  ;;  %v12073_v18 = vld [vmem:[#allocation104_spill] sm:$0xff] }
 0xd81   :  { %v5457_v54 = vsel %vm5168_vm4, %v5456_v10, %v5455_v3  ;;  %v4130_v10 = vmul.f32 %v12073_v18, %v10023_v25  ;;  %v12074_v3 = vld [vmem:[#allocation127_spill] sm:$0xff]  ;;  %v12082_v18 = vld [vmem:[#allocation20_spill] sm:$0xff] }
 0xd82   :  { %v4128_v62 = vmul.f32 %v12074_v3, %v10023_v25  ;;  %v4133_v52 = vmul.f32 %v12082_v18, %v10010_v37  ;;  %v12083_v3 = vld [vmem:[#allocation49_spill] sm:$0xff] }
 0xd83   :  { %5119 = vperm.xlu2 %6472, %v4124_v47   ;;  %5113 = vperm.xlu0 %6474, %v4122_v60   ;;  %v12075_v60 = vld [vmem:[#allocation52_spill] sm:$0xff] }
 0xd84   :  { %5107 = vperm.xlu1 %6473, %v4120_v50   ;;  %v5170_v50 = vperm.slane %v12076_v43, %v10206_v57 }
 0xd85   :  { %v4988_v16 = vpop.permute.xlu0 %4987  ;;  %v10473_v28 = vpop.permute.xlu2 %5020 }
 0xd86   :  { %v5462_v9 = vperm.slane %v4988_v16, %v10211_v33  ;;  %v4982_v2 = vpop.permute.xlu1 %4981  ;;  %v4126_v16 = vmul.f32 %v9256_v31, %v10023_v25  ;;  %v12079_v31 = vld [vmem:[#allocation30_spill] sm:$0xff] }
 0xd87   :  { %v5459_v38 = vperm.slane %v4982_v2, %v10211_v33 }
 0xd88   :  { %v5463_v21 = vsel %vm5168_vm4, %v5462_v9, %v5461_v7  ;;  %v5172_v9 = vsel %vm5168_vm4, %v5171_v40, %v5170_v50  ;;  %v12085_v50 = vld [vmem:[#allocation25_spill] sm:$0xff] }
 0xd89   :  { %v5460_v51 = vsel %vm5168_vm4, %v5459_v38, %v5458_v36  ;;  %v12077_v36 = vld [vmem:[#allocation32_spill] sm:$0xff] }
 0xd8a   :  { %v5642_v17 = vsel %vm5551_vm5, %v5460_v51, %v5457_v54  ;;  %v5165_v54 = vperm.slane %v12075_v60, %v10206_v57  ;;  %v5173_v38 = vperm.slane %v12077_v36, %v10206_v57  ;;  %v5176_v51 = vperm.slane %v12079_v31, %v10206_v57  ;;  %v12086_v36 = vld [vmem:[#allocation134_spill] sm:$0xff] }
 0xd8b   :  { %5128 = vperm.xlu2 %6472, %v4127_v39   ;;  %5122 = vperm.xlu0 %6474, %v4125_v27   ;;  %v5643_v44 = vsel %vm5553_vm6, %v5463_v21, %v5642_v17  ;;  %v12078_v21 = vld [vmem:[#allocation12_spill] sm:$0xff] }
 0xd8c   :  { %5116 = vperm.xlu1 %6473, %v4123_v32   ;;  %v5169_v2 = vsel %vm5168_vm4, %v5167_v55, %v5165_v54  ;;  %v5174_v27 = vperm.slane %v12078_v21, %v10211_v33  ;;  %v5180_v55 = vperm.slane %v12081_v20, %v10211_v33 }
 0xd8d   :  { %v4997_v35 = vpop.permute.xlu0 %4996  ;;  %v10499_v46 = vpop.permute.xlu2 %5029 }
 0xd8e   :  { %v4991_v0 = vpop.permute.xlu1 %4990  ;;  %v5175_v40 = vsel %vm5168_vm4, %v5174_v27, %v5173_v38  ;;  %v5182_v38 = vperm.slane %v12086_v36, %v10206_v57 }
 0xd8f   :  { %v5464_v58 = vperm.slane %v4991_v0, %v10206_v57 }
 0xd91   :  { %v5466_v47 = vsel %vm5168_vm4, %v5465_v12, %v5464_v58  ;;  %v5552_v12 = vsel %vm5551_vm5, %v5172_v9, %v5169_v2  ;;  %v5467_v58 = vperm.slane %v4997_v35, %v10206_v57  ;;  %v4131_v35 = vmul.f32 %v9278_v19, %v10010_v37  ;;  %v12087_v19 = vld [vmem:[#allocation128_spill] sm:$0xff] }
 0xd92   :  { %v5644_v7 = vsel %vm5555_vm7, %v5466_v47, %v5643_v44  ;;  %v12080_v44 = vld [vmem:[#allocation129_spill] sm:$0xff]  ;;  %v4129_v9 = vmul.f32 %v9267_v29, %v10010_v37  ;;  %v5198_v21 = vperm.slane %v12087_v19, %v10211_v33 }
 0xd93   :  { %5137 = vperm.xlu2 %6472, %v4130_v10   ;;  %5131 = vperm.xlu0 %6474, %v4128_v62   ;;  %v5177_v0 = vperm.slane %v12080_v44, %v10211_v33  ;;  %v5179_v62 = vperm.slane %v12083_v3, %v10206_v57  ;;  %v12084_v47 = vld [vmem:[#allocation33_spill] sm:$0xff]  ;;  %v12095_v3 = vld [vmem:[#allocation87_spill] sm:$0xff] }
 0xd94   :  { %5125 = vperm.xlu1 %6473, %v4126_v16   ;;  %v5183_v60 = vperm.slane %v12084_v47, %v10211_v33  ;;  %v5194_v16 = vperm.slane %v12085_v50, %v10206_v57  ;;  %v12089_v29 = vld [vmem:[#allocation141_spill] sm:$0xff] }
 0xd95   :  { %v5006_v39 = vpop.permute.xlu0 %5005  ;;  %v5178_v43 = vsel %vm5168_vm4, %v5177_v0, %v5176_v51  ;;  %v5181_v31 = vsel %vm5168_vm4, %v5180_v55, %v5179_v62  ;;  %v12088_v51 = vld [vmem:[#allocation48_spill] sm:$0xff]  ;;  %v12093_v55 = vld [vmem:[#allocation137_spill] sm:$0xff]  ;;  %v5191_v62 = vperm.slane %v12095_v3, %v10206_v57  ;;  %v10562_v50 = vpop.permute.xlu2 %5038 }
 0xd96   :  { %v5471_v32 = vperm.slane %v5006_v39, %v10211_v33  ;;  %v5000_v17 = vpop.permute.xlu1 %4999  ;;  %v5554_v39 = vsel %vm5553_vm6, %v5175_v40, %v5552_v12  ;;  %v5184_v44 = vsel %vm5168_vm4, %v5183_v60, %v5182_v38  ;;  %v12091_v12 = vld [vmem:[#allocation35_spill] sm:$0xff]  ;;  %v5186_v18 = vperm.slane %v12093_v55, %v10211_v33 }
 0xd97   :  { %v5468_v4 = vperm.slane %v5000_v17, %v10211_v33  ;;  %v5556_v0 = vsel %vm5555_vm7, %v5178_v43, %v5554_v39  ;;  %v5474_v43 = vperm.slane %v10454_v45, %v10211_v33  ;;  %v12096_v38 = vld [vmem:[#allocation47_spill] sm:$0xff] }
 0xd98   :  { %v5472_v10 = vsel %vm5168_vm4, %v5471_v32, %v5470_v14  ;;  %v5192_v14 = vperm.slane %v12088_v51, %v10211_v33  ;;  %v12090_v32 = vld [vmem:[#allocation45_spill] sm:$0xff]  ;;  %v5201_v39 = vperm.slane %v12096_v38, %v10211_v33  ;;  %v12097_v51 = vld [vmem:[#allocation146_spill] sm:$0xff]  ;;  %v12105_v38 = vld [vmem:[#allocation135_spill] sm:$0xff] }
 0xd99   :  { %v5469_v54 = vsel %vm5168_vm4, %v5468_v4, %v5467_v58  ;;  %v5185_v17 = vperm.slane %v12090_v32, %v10206_v57  ;;  %v5197_v58 = vperm.slane %v12091_v12, %v10206_v57  ;;  %v12092_v4 = vld [vmem:[#allocation53_spill] sm:$0xff] }
 0xd9a   :  { %v5645_v2 = vsel %vm5557_vm8, %v5469_v54, %v5644_v7  ;;  %v5195_v7 = vperm.slane %v12089_v29, %v10211_v33  ;;  %v5189_v40 = vperm.slane %v12092_v4, %v10211_v33 }
 0xd9b   :  { %5146 = vperm.xlu2 %6472, %v4133_v52   ;;  %5140 = vperm.xlu0 %6474, %v4131_v35   ;;  %v5646_v27 = vsel %vm5559_vm9, %v5472_v10, %v5645_v2  ;;  %v12094_v52 = vld [vmem:[#allocation42_spill] sm:$0xff]  ;;  %v5558_v35 = vsel %vm5557_vm8, %v5181_v31, %v5556_v0  ;;  %v5199_v54 = vsel %vm5168_vm4, %v5198_v21, %v5197_v58  ;;  %v12098_v0 = vld [vmem:[#allocation148_spill] sm:$0xff] }
 0xd9c   :  { %5134 = vperm.xlu1 %6473, %v4129_v9   ;;  %v5188_v10 = vperm.slane %v12094_v52, %v10206_v57  ;;  %v5196_v47 = vsel %vm5168_vm4, %v5195_v7, %v5194_v16  ;;  %v5193_v2 = vsel %vm5168_vm4, %v5192_v14, %v5191_v62  ;;  %v5187_v36 = vsel %vm5168_vm4, %v5186_v18, %v5185_v17  ;;  %v12099_v58 = vld [vmem:[#allocation76_spill] sm:$0xff]  ;;  %v12101_v18 = vld [vmem:[#allocation138_spill] sm:$0xff] }
 0xd9d   :  { %v5015_v20 = vpop.permute.xlu0 %5014  ;;  %v4136_v16 = vmul.f32 %v9313_v48, %v10023_v25  ;;  %v5565_v19 = vsel %vm5551_vm5, %v5196_v47, %v5193_v2  ;;  %v4134_v21 = vmul.f32 %v9311_v15, %v10023_v25  ;;  %v5200_v14 = vperm.slane %v12097_v51, %v10206_v57  ;;  %v12102_v47 = vld [vmem:[#allocation132_spill] sm:$0xff]  ;;  %v12104_v2 = vld [vmem:[#allocation133_spill] sm:$0xff] }
 0xd9e   :  { %v5009_v60 = vpop.permute.xlu1 %5008  ;;  %v5190_v31 = vsel %vm5168_vm4, %v5189_v40, %v5188_v10  ;;  %v5566_v29 = vsel %vm5553_vm6, %v5199_v54, %v5565_v19  ;;  %v4132_v7 = vmul.f32 %v11923_v11, %v10023_v25  ;;  %v5560_v32 = vsel %vm5559_vm9, %v5184_v44, %v5558_v35  ;;  %v12103_v35 = vld [vmem:[#allocation140_spill] sm:$0xff] }
 0xd9f   :  { %v5473_v9 = vperm.slane %v5009_v60, %v10206_v57  ;;  %v5202_v15 = vsel %vm5168_vm4, %v5201_v39, %v5200_v14  ;;  %v5562_v17 = vsel %vm5561_vm10, %v5187_v36, %v5560_v32  ;;  %v5204_v12 = vperm.slane %v12098_v0, %v10211_v33  ;;  %v10621_v14 = vpop.permute.xlu2 %5047 }
 0xda0   :  { %v5206_v4 = vperm.slane %v12099_v58, %v10206_v57  ;;  %v5567_v40 = vsel %vm5555_vm7, %v5202_v15, %v5566_v29  ;;  %v10591_v55 = vsel %vm5563_vm11, %v5190_v31, %v5562_v17  ;;  %v5216_v52 = vperm.slane %v12101_v18, %v10211_v33  ;;  %v12108_v31 = vld [vmem:[#allocation160_spill] sm:$0xff]  ;;  %v12110_v58 = vld [vmem:[#allocation150_spill] sm:$0xff] }
 0xda1   :  { %v5475_v45 = vsel %vm5168_vm4, %v5474_v43, %v5473_v9  ;;  %v5479_v10 = vperm.slane %v10473_v28, %v10206_v57  ;;  %v5215_v60 = vperm.slane %v12102_v47, %v10206_v57  ;;  %v5221_v54 = vperm.slane %v12103_v35, %v10206_v57  ;;  %v12106_v28 = vld [vmem:[#allocation143_spill] sm:$0xff]  ;;  %v12115_v35 = vld [vmem:[#allocation152_spill] sm:$0xff] }
 0xda2   :  { %v5647_v48 = vsel %vm5561_vm10, %v5475_v45, %v5646_v27  ;;  %v12100_v27 = vld [vmem:[#allocation131_spill] sm:$0xff]  ;;  %v5476_v43 = vperm.slane %v5015_v20, %v10206_v57  ;;  %v5207_v36 = vperm.slane %v12104_v2, %v10211_v33  ;;  %v5219_v39 = vperm.slane %v12105_v38, %v10211_v33 }
 0xda3   :  { %5155 = vperm.xlu2 %6472, %v4136_v16   ;;  %5149 = vperm.xlu0 %6474, %v4134_v21   ;;  %v5203_v44 = vperm.slane %v12100_v27, %v10206_v57  ;;  %v5225_v16 = vperm.slane %v12106_v28, %v10211_v33  ;;  %v12107_v21 = vld [vmem:[#allocation157_spill] sm:$0xff]  ;;  %v5222_v20 = vperm.slane %v12108_v31, %v10211_v33  ;;  %v12119_v31 = vld [vmem:[#allocation110_spill] sm:$0xff] }
 0xda4   :  { %5143 = vperm.xlu1 %6473, %v4132_v7   ;;  %v5218_v45 = vperm.slane %v12107_v21, %v10206_v57  ;;  %v4137_v51 = vmul.f32 %v11924_v13, %v10010_v37  ;;  %v12109_v7 = vld [vmem:[#allocation89_spill] sm:$0xff]  ;;  %v5217_v15 = vsel %vm5168_vm4, %v5216_v52, %v5215_v60  ;;  %v4135_v17 = vmul.f32 %v9330_v6, %v10010_v37  ;;  %v12111_v13 = vld [vmem:[#allocation130_spill] sm:$0xff]  ;;  %v12112_v52 = vld [vmem:[#allocation136_spill] sm:$0xff] }
 0xda5   :  { %v5024_v11 = vpop.permute.xlu0 %5023  ;;  %v5224_v32 = vperm.slane %v12109_v7, %v10206_v57  ;;  %v5210_v27 = vperm.slane %v12111_v13, %v10211_v33  ;;  %v5205_v18 = vsel %vm5168_vm4, %v5204_v12, %v5203_v44  ;;  %v12113_v6 = vld [vmem:[#allocation139_spill] sm:$0xff]  ;;  %v5208_v47 = vsel %vm5168_vm4, %v5207_v36, %v5206_v4  ;;  %v12114_v12 = vld [vmem:[#allocation145_spill] sm:$0xff] }
 0xda6   :  { %v5480_v3 = vperm.slane %v5024_v11, %v10211_v33  ;;  %v5018_v62 = vpop.permute.xlu1 %5017  ;;  %v5209_v11 = vperm.slane %v12110_v58, %v10206_v57  ;;  %v5228_v37 = vperm.slane %v12113_v6, %v10211_v33  ;;  %v5230_v44 = vperm.slane %v12114_v12, %v10206_v57  ;;  %v12121_v13 = vld [vmem:[#allocation147_spill] sm:$0xff]  ;;  %v12126_v12 = vld [vmem:[#allocation165_spill] sm:$0xff] }
 0xda7   :  { %v5477_v9 = vperm.slane %v5018_v62, %v10211_v33  ;;  %v5212_v62 = vperm.slane %v12112_v52, %v10206_v57  ;;  %v5568_v38 = vsel %vm5557_vm8, %v5205_v18, %v5567_v40  ;;  %v5234_v18 = vperm.slane %v12121_v13, %v10211_v33  ;;  %v12133_v13 = vld [vmem:[#allocation151_spill] sm:$0xff] }
 0xda8   :  { %v10613_v19 = vsel %vm5168_vm4, %v5480_v3, %v5479_v10  ;;  %v5223_v10 = vsel %vm5168_vm4, %v5222_v20, %v5221_v54  ;;  %v5220_v3 = vsel %vm5168_vm4, %v5219_v39, %v5218_v45  ;;  %v5243_v54 = vperm.slane %v12115_v35, %v10211_v33  ;;  %v12117_v39 = vld [vmem:[#allocation163_spill] sm:$0xff]  ;;  %v10697_v35 = vpop.permute.xlu2 %5056 }
 0xda9   :  { %v5478_v29 = vsel %vm5168_vm4, %v5477_v9, %v5476_v43  ;;  %v5572_v60 = vsel %vm5551_vm5, %v5220_v3, %v5217_v15  ;;  %v12116_v9 = vld [vmem:[#allocation153_spill] sm:$0xff]  ;;  %v5227_v28 = vperm.slane %v12117_v39, %v10206_v57  ;;  %v5242_v20 = vperm.slane %v12119_v31, %v10206_v57  ;;  %v12123_v3 = vld [vmem:[#allocation114_spill] sm:$0xff] }
 0xdaa   :  { %v10630_v0 = vsel %vm5563_vm11, %v5478_v29, %v5647_v48  ;;  %v5226_v48 = vsel %vm5168_vm4, %v5225_v16, %v5224_v32  ;;  %v5213_v2 = vperm.slane %v12116_v9, %v10211_v33  ;;  %v5573_v4 = vsel %vm5553_vm6, %v5223_v10, %v5572_v60  ;;  %v12118_v16 = vld [vmem:[#allocation166_spill] sm:$0xff]  ;;  %v12128_v9 = vld [vmem:[#allocation168_spill] sm:$0xff] }
 0xdab   :  { %5158 = vperm.xlu0 %6474, %v4137_v51   ;;  %v5231_v21 = vperm.slane %v12118_v16, %v10211_v33  ;;  %v5574_v45 = vsel %vm5555_vm7, %v5226_v48, %v5573_v4  ;;  %v12120_v51 = vld [vmem:[#allocation149_spill] sm:$0xff]  ;;  %v10668_v40 = vsel %vm5168_vm4, %v5210_v27, %v5209_v11  ;;  %v5229_v7 = vsel %vm5168_vm4, %v5228_v37, %v5227_v28  ;;  %v12122_v11 = vld [vmem:[#allocation142_spill] sm:$0xff]  ;;  %v12125_v48 = vld [vmem:[#allocation144_spill] sm:$0xff] }
 0xdac   :  { %5152 = vperm.xlu1 %6473, %v4135_v17   ;;  %v5239_v29 = vperm.slane %v12120_v51, %v10206_v57  ;;  %v10672_v32 = vsel %vm5168_vm4, %v5213_v2, %v5212_v62  ;;  %v10675_v15 = vsel %vm5559_vm9, %v5208_v47, %v5568_v38  ;;  %v5240_v17 = vperm.slane %v9889_v61, %v10211_v33  ;;  %v12124_v61 = vld [vmem:[#allocation172_spill] sm:$0xff]  ;;  %v12129_v28 = vld [vmem:[#allocation155_spill] sm:$0xff]  ;;  %v12130_v16 = vld [vmem:[#allocation158_spill] sm:$0xff] }
 0xdad   :  { %v10650_v43 = vpop.permute.xlu0 %5032  ;;  %v5232_v58 = vsel %vm5168_vm4, %v5231_v21, %v5230_v44  ;;  %v5244_v10 = vsel %vm5168_vm4, %v5243_v54, %v5242_v20  ;;  %v5233_v27 = vperm.slane %v12122_v11, %v10206_v57  ;;  %v5246_v52 = vperm.slane %v12123_v3, %v10211_v33  ;;  %v12127_v54 = vld [vmem:[#allocation11_spill] sm:$0xff]  ;;  %v12131_v51 = vld [vmem:[#allocation156_spill] sm:$0xff] }
 0xdae   :  { %v10658_v36 = vpop.permute.xlu1 %5026  ;;  %v4138_v62 = vmul.f32 %v9332_v24, %v10023_v25  ;;  %v5575_v6 = vsel %vm5557_vm8, %v5229_v7, %v5574_v45  ;;  %v5236_v37 = vperm.slane %v12124_v61, %v10206_v57  ;;  %v5237_v47 = vperm.slane %v12125_v48, %v10211_v33  ;;  %v12132_v7 = vld [vmem:[#allocation161_spill] sm:$0xff] }
 0xdaf   :  { %v5241_v60 = vsel %vm5168_vm4, %v5240_v17, %v5239_v29  ;;  %v5266_v44 = vperm.slane %v12126_v12, %v10206_v57  ;;  %v5245_v24 = vperm.slane %v9905_v56, %v10206_v57  ;;  %v5270_v2 = vperm.slane %v12128_v9, %v10211_v33  ;;  %v12148_v48 = vld [vmem:[#allocation201_spill] sm:$0xff] }
 0xdb0   :  { %v5579_v25 = vsel %vm5551_vm5, %v5244_v10, %v5241_v60  ;;  %v5576_v38 = vsel %vm5559_vm9, %v5232_v58, %v5575_v6  ;;  %v5235_v39 = vsel %vm5168_vm4, %v5234_v18, %v5233_v27  ;;  %v5248_v4 = vperm.slane %v12129_v28, %v10206_v57  ;;  %v12134_v27 = vld [vmem:[#allocation154_spill] sm:$0xff] }
 0xdb1   :  { %v5264_v21 = vperm.slane %v12130_v16, %v10211_v33  ;;  %v5267_v45 = vperm.slane %v9946_v26, %v10211_v33  ;;  %v5247_v31 = vsel %vm5168_vm4, %v5246_v52, %v5245_v24  ;;  %v5249_v20 = vperm.slane %v9915_v30, %v10211_v33  ;;  %v12136_v24 = vld [vmem:[#allocation164_spill] sm:$0xff]  ;;  %v12138_v16 = vld [vmem:[#allocation162_spill] sm:$0xff] }
 0xdb2   :  { %v5252_v29 = vperm.slane %v12131_v51, %v10211_v33  ;;  %v5269_v17 = vperm.slane %v12132_v7, %v10206_v57  ;;  %v5251_v18 = vperm.slane %v12133_v13, %v10206_v57  ;;  %v5580_v26 = vsel %vm5553_vm6, %v5247_v31, %v5579_v25  ;;  %v12137_v25 = vld [vmem:[#allocation159_spill] sm:$0xff] }
 0xdb3   :  { %6475 = vset.pattern.permute.xlu0 %v12127_v54  ;;  %v5263_v10 = vperm.slane %v9939_v41, %v10206_v57  ;;  %v5268_v11 = vsel %vm5168_vm4, %v5267_v45, %v5266_v44  ;;  %v5254_v30 = vperm.slane %v9923_v22, %v10206_v57  ;;  %v5255_v3 = vperm.slane %v12134_v27, %v10211_v33  ;;  %v12139_v45 = vld [vmem:[#allocation167_spill] sm:$0xff]  ;;  %v10768_v27 = vpop.permute.xlu2 %5065 }
 0xdb4   :  { %5161 = vperm.xlu1 %6473, %v4138_v62   ;;  %v5271_v52 = vsel %vm5168_vm4, %v5270_v2, %v5269_v17  ;;  %v12135_v62 = vld [vmem:[#allocation169_spill] sm:$0xff]  ;;  %v5250_v60 = vsel %vm5168_vm4, %v5249_v20, %v5248_v4  ;;  %v5273_v41 = vperm.slane %v12136_v24, %v10211_v33  ;;  %v5279_v44 = vperm.slane %v9880_v34, %v10211_v33 }
 0xdb5   :  { %v10713_v56 = vpop.permute.xlu0 %5041  ;;  %v5275_v6 = vperm.slane %v12135_v62, %v10206_v57  ;;  %v5265_v12 = vsel %vm5168_vm4, %v5264_v21, %v5263_v10  ;;  %v5253_v22 = vsel %vm5168_vm4, %v5252_v29, %v5251_v18  ;;  %v5257_v9 = vperm.slane %v12137_v25, %v10206_v57  ;;  %v12141_v17 = vld [vmem:[#allocation13_spill] sm:$0xff]  ;;  %v12142_v10 = vld [vmem:[#allocation180_spill] sm:$0xff] }
 0xdb6   :  { %v10722_v58 = vpop.permute.xlu1 %5035  ;;  %v5276_v2 = vperm.slane %v9959_v49, %v10211_v33  ;;  %v5586_v28 = vsel %vm5551_vm5, %v5268_v11, %v5265_v12  ;;  %v5272_v4 = vperm.slane %v9953_v5, %v10206_v57  ;;  %v5261_v21 = vperm.slane %v12138_v16, %v10211_v33  ;;  %v12140_v49 = vld [vmem:[#allocation39_spill] sm:$0xff] }
 0xdb7   :  { %v5278_v31 = vperm.slane %v12139_v45, %v10206_v57  ;;  %v5587_v34 = vsel %vm5553_vm6, %v5271_v52, %v5586_v28  ;;  %v5258_v20 = vperm.slane %v9932_v1, %v10211_v33  ;;  %v5581_v51 = vsel %vm5555_vm7, %v5250_v60, %v5580_v26  ;;  %v12143_v52 = vld [vmem:[#allocation173_spill] sm:$0xff] }
 0xdb8   :  { %v5260_v29 = vperm.slane %v12140_v49, %v10206_v57  ;;  %v5277_v7 = vsel %vm5168_vm4, %v5276_v2, %v5275_v6  ;;  %v5582_v5 = vsel %vm5557_vm8, %v5253_v22, %v5581_v51  ;;  %v5274_v13 = vsel %vm5168_vm4, %v5273_v41, %v5272_v4  ;;  %v12144_v41 = vld [vmem:[#allocation198_spill] sm:$0xff] }
 0xdb9   :  { %v5280_v18 = vsel %vm5168_vm4, %v5279_v44, %v5278_v31  ;;  %v5284_v11 = vperm.slane %v12142_v10, %v10206_v57  ;;  %v5259_v26 = vsel %vm5168_vm4, %v5258_v20, %v5257_v9  ;;  %v5282_v62 = vperm.slane %v12143_v52, %v10211_v33  ;;  %v12145_v9 = vld [vmem:[#allocation195_spill] sm:$0xff] }
 0xdba   :  { %v5588_v6 = vsel %vm5555_vm7, %v5274_v13, %v5587_v34  ;;  %v5577_v12 = vsel %vm5561_vm10, %v5235_v39, %v5576_v38  ;;  %v5256_v24 = vsel %vm5168_vm4, %v5255_v3, %v5254_v30  ;;  %v5285_v44 = vperm.slane %v12144_v41, %v10211_v33 }
 0xdbb   :  { %v5589_v22 = vsel %vm5557_vm8, %v5277_v7, %v5588_v6  ;;  %v5262_v25 = vsel %vm5168_vm4, %v5261_v21, %v5260_v29  ;;  %v5281_v2 = vperm.slane %v12145_v9, %v10206_v57  ;;  %v5583_v28 = vsel %vm5559_vm9, %v5256_v24, %v5582_v5  ;;  %v12150_v7 = vld [vmem:[#allocation179_spill] sm:$0xff]  ;;  %v12151_v5 = vld [vmem:[#allocation182_spill] sm:$0xff] }
 0xdbc   :  { %6476 = vset.pattern.permute.xlu1 %v12141_v17  ;;  %v5570_v4 = vsel %vm5561_vm10, %v10668_v40, %v10675_v15  ;;  %v5590_v38 = vsel %vm5559_vm9, %v5280_v18, %v5589_v22  ;;  %v5584_v39 = vsel %vm5561_vm10, %v5259_v26, %v5583_v28  ;;  %v5286_v3 = vsel %vm5168_vm4, %v5285_v44, %v5284_v11  ;;  %v12146_v40 = vld [vmem:[#allocation181_spill] sm:$0xff]  ;;  %v12152_v26 = vld [vmem:[#allocation184_spill] sm:$0xff]  ;;  %v12156_v9 = vld [vmem:[#allocation183_spill] sm:$0xff]  ;;  %v10846_v28 = vpop.permute.xlu2 %5074 }
 0xdbd   :  { %v10770_v1 = vpop.permute.xlu0 %5050  ;;  %v5571_v30 = vsel %vm5563_vm11, %v10672_v32, %v5570_v4  ;;  %v5238_v16 = vsel %vm5168_vm4, %v5237_v47, %v5236_v37  ;;  %v5283_v21 = vsel %vm5168_vm4, %v5282_v62, %v5281_v2  ;;  %v5291_v15 = vperm.slane %v12146_v40, %v10211_v33  ;;  %v12147_v32 = vld [vmem:[#allocation61_spill] sm:$0xff]  ;;  %v12149_v47 = vld [vmem:[#allocation192_spill] sm:$0xff]  ;;  %v12159_v40 = vld [vmem:[#allocation207_spill] sm:$0xff] }
 0xdbe   :  { %v10776_v60 = vpop.permute.xlu1 %5044  ;;  %v5585_v45 = vsel %vm5563_vm11, %v5262_v25, %v5584_v39  ;;  %v5578_v31 = vsel %vm5563_vm11, %v5238_v16, %v5577_v12  ;;  %v5288_v34 = vperm.slane %v12147_v32, %v10211_v33  ;;  %v5686_v61 = vsel %vm744_vm1, %v10591_v55, 0.0  ;;  %v12153_v62 = vld [vmem:[#allocation189_spill] sm:$0xff]  ;;  %v12154_v12 = vld [vmem:[#allocation190_spill] sm:$0xff]  ;;  %v12155_v44 = vld [vmem:[#allocation204_spill] sm:$0xff] }
 0xdbf   :  { %v5591_v20 = vsel %vm5561_vm10, %v5283_v21, %v5590_v38  ;;  %v5290_v37 = vperm.slane %v12148_v48, %v10206_v57  ;;  %v5315_v51 = vperm.slane %v12149_v47, %v10211_v33  ;;  %v10817_v49 = vsel %vm744_vm1, %v5571_v30, 0.0  ;;  %v12157_v38 = vld [vmem:[#allocation126_spill] sm:$0xff] }
 0xdc0   :  { %v5592_v29 = vsel %vm5563_vm11, %v5286_v3, %v5591_v20  ;;  %v5287_v17 = vperm.slane %v12150_v7, %v10206_v57  ;;  %v5293_v13 = vperm.slane %v12151_v5, %v10206_v57  ;;  %v10827_v18 = vsel %vm744_vm1, %v5585_v45, 0.0  ;;  %v12158_v16 = vld [vmem:[#allocation194_spill] sm:$0xff]  ;;  %v12162_v7 = vld [vmem:[#allocation193_spill] sm:$0xff] }
 0xdc1   :  { %v10830_v10 = vsel %vm744_vm1, %v5578_v31, 0.0  ;;  %v5292_v11 = vsel %vm5168_vm4, %v5291_v15, %v5290_v37  ;;  %v5297_v52 = vperm.slane %v12152_v26, %v10211_v33  ;;  %v5314_v6 = vperm.slane %v12153_v62, %v10206_v57  ;;  %v12160_v31 = vld [vmem:[#allocation191_spill] sm:$0xff] }
 0xdc2   :  { %v5311_v24 = vperm.slane %v12154_v12, %v10206_v57  ;;  %v5294_v22 = vperm.slane %v12155_v44, %v10211_v33  ;;  %v5289_v25 = vsel %vm5168_vm4, %v5288_v34, %v5287_v17  ;;  %v5300_v2 = vperm.slane %v12156_v9, %v10211_v33  ;;  %v12161_v34 = vld [vmem:[#allocation197_spill] sm:$0xff]  ;;  %v12167_v9 = vld [vmem:[#allocation196_spill] sm:$0xff] }
 0xdc3   :  { %v10849_v4 = vsel %vm744_vm1, %v5592_v29, 0.0  ;;  %v5296_v39 = vperm.slane %v12157_v38, %v10206_v57  ;;  %v5312_v30 = vperm.slane %v10007_v42, %v10211_v33  ;;  %v5316_v3 = vsel %vm5168_vm4, %v5315_v51, %v5314_v6 }
 0xdc4   :  { %v5320_v21 = vperm.slane %v12158_v16, %v10206_v57  ;;  %v5299_v15 = vperm.slane %v12159_v40, %v10206_v57  ;;  %v5295_v45 = vsel %vm5168_vm4, %v5294_v22, %v5293_v13  ;;  %v5318_v32 = vperm.slane %v12160_v31, %v10211_v33  ;;  %v12163_v13 = vld [vmem:[#allocation210_spill] sm:$0xff]  ;;  %v12169_v16 = vld [vmem:[#allocation188_spill] sm:$0xff] }
 0xdc5   :  { %v10824_v55 = vpop.permute.xlu0 %5059  ;;  %v5324_v20 = vperm.slane %v12161_v34, %v10211_v33  ;;  %v5593_v48 = vsel %vm5551_vm5, %v5292_v11, %v5289_v25  ;;  %v5298_v42 = vsel %vm5168_vm4, %v5297_v52, %v5296_v39  ;;  %v5321_v37 = vperm.slane %v10020_v53, %v10211_v33  ;;  %v12164_v53 = vld [vmem:[#allocation185_spill] sm:$0xff]  ;;  %v12166_v22 = vld [vmem:[#allocation186_spill] sm:$0xff]  ;;  %v12168_v39 = vld [vmem:[#allocation203_spill] sm:$0xff] }
 0xdc6   :  { %v10839_v41 = vpop.permute.xlu1 %5053  ;;  %v5313_v47 = vsel %vm5168_vm4, %v5312_v30, %v5311_v24  ;;  %v5301_v51 = vsel %vm5168_vm4, %v5300_v2, %v5299_v15  ;;  %v5317_v29 = vperm.slane %v10018_v63, %v10206_v57  ;;  %v5323_v17 = vperm.slane %v12162_v7, %v10206_v57  ;;  %v12165_v24 = vld [vmem:[#allocation200_spill] sm:$0xff]  ;;  %v12170_v40 = vld [vmem:[#allocation218_spill] sm:$0xff]  ;;  %v12172_v34 = vld [vmem:[#allocation217_spill] sm:$0xff] }
 0xdc7   :  { %v5600_v5 = vsel %vm5551_vm5, %v5316_v3, %v5313_v47  ;;  %v5303_v11 = vperm.slane %v12163_v13, %v10211_v33  ;;  %v5594_v26 = vsel %vm5553_vm6, %v5295_v45, %v5593_v48  ;;  %v5305_v52 = vperm.slane %v12164_v53, %v10206_v57  ;;  %v12171_v31 = vld [vmem:[#allocation206_spill] sm:$0xff]  ;;  %v12173_v48 = vld [vmem:[#allocation199_spill] sm:$0xff]  ;;  %v12174_v47 = vld [vmem:[#allocation209_spill] sm:$0xff] }
 0xdc8   :  { %v5322_v62 = vsel %vm5168_vm4, %v5321_v37, %v5320_v21  ;;  %v5595_v6 = vsel %vm5555_vm7, %v5298_v42, %v5594_v26  ;;  %v5319_v63 = vsel %vm5168_vm4, %v5318_v32, %v5317_v29  ;;  %v5325_v12 = vsel %vm5168_vm4, %v5324_v20, %v5323_v17  ;;  %v12175_v7 = vld [vmem:[#allocation213_spill] sm:$0xff]  ;;  %v12177_v26 = vld [vmem:[#allocation55_spill] sm:$0xff] }
 0xdc9   :  { %v5329_v44 = vperm.slane %v12165_v24, %v10206_v57  ;;  %v5302_v25 = vperm.slane %v12166_v22, %v10206_v57  ;;  %v5327_v2 = vperm.slane %v12167_v9, %v10211_v33  ;;  %v5601_v38 = vsel %vm5553_vm6, %v5319_v63, %v5600_v5  ;;  %v12176_v5 = vld [vmem:[#allocation202_spill] sm:$0xff]  ;;  %v10919_v63 = vpop.permute.xlu2 %5083  ;;  %v12178_v24 = vld [vmem:[#allocation187_spill] sm:$0xff]  ;;  %v12179_v9 = vld [vmem:[#allocation205_spill] sm:$0xff] }
 0xdca   :  { %v5333_v30 = vperm.slane %v12168_v39, %v10211_v33  ;;  %v5306_v21 = vperm.slane %v12169_v16, %v10211_v33  ;;  %v5330_v15 = vperm.slane %v12170_v40, %v10211_v33  ;;  %v5602_v45 = vsel %vm5555_vm7, %v5322_v62, %v5601_v38  ;;  %v12180_v40 = vld [vmem:[#allocation51_spill] sm:$0xff] }
 0xdcb   :  { %v5338_v32 = vperm.slane %v12171_v31, %v10206_v57  ;;  %v5326_v20 = vperm.slane %v12172_v34, %v10206_v57  ;;  %v5332_v42 = vperm.slane %v12173_v48, %v10206_v57  ;;  %v5603_v37 = vsel %vm5557_vm8, %v5325_v12, %v5602_v45  ;;  %v12181_v34 = vld [vmem:[#allocation212_spill] sm:$0xff] }
 0xdcc   :  { %5687 = vadd.xlane.f32.xlu2 %v5686_v61  ;;  %v5342_v29 = vperm.slane %v12174_v47, %v10211_v33  ;;  %v5308_v17 = vperm.slane %v12175_v7, %v10206_v57  ;;  %v5336_v13 = vperm.slane %v12176_v5, %v10211_v33  ;;  %v5339_v53 = vperm.slane %v12177_v26, %v10211_v33 }
 0xdcd   :  { %v10887_v61 = vpop.permute.xlu0 %5068  ;;  %v5331_v62 = vsel %vm5168_vm4, %v5330_v15, %v5329_v44  ;;  %v5309_v22 = vperm.slane %v12178_v24, %v10211_v33  ;;  %v5328_v12 = vsel %vm5168_vm4, %v5327_v2, %v5326_v20  ;;  %v5341_v38 = vperm.slane %v12179_v9, %v10206_v57  ;;  %v12187_v9 = vld [vmem:[#allocation216_spill] sm:$0xff] }
 0xdce   :  { %v10896_v3 = vpop.permute.xlu1 %5062  ;;  %v5334_v39 = vsel %vm5168_vm4, %v5333_v30, %v5332_v42  ;;  %v5304_v16 = vsel %vm5168_vm4, %v5303_v11, %v5302_v25  ;;  %v5335_v45 = vperm.slane %v12180_v40, %v10206_v57  ;;  %v5340_v31 = vsel %vm5168_vm4, %v5339_v53, %v5338_v32  ;;  %v12182_v25 = vld [vmem:[#allocation208_spill] sm:$0xff]  ;;  %v12183_v32 = vld [vmem:[#allocation215_spill] sm:$0xff] }
 0xdcf   :  { %v5604_v44 = vsel %vm5559_vm9, %v5328_v12, %v5603_v37  ;;  %v5307_v15 = vsel %vm5168_vm4, %v5306_v21, %v5305_v52  ;;  %v5343_v2 = vsel %vm5168_vm4, %v5342_v29, %v5341_v38  ;;  %v5347_v20 = vperm.slane %v12181_v34, %v10206_v57  ;;  %v12184_v21 = vld [vmem:[#allocation59_spill] sm:$0xff] }
 0xdd0   :  { %v5605_v30 = vsel %vm5561_vm10, %v5331_v62, %v5604_v44  ;;  %v5337_v11 = vsel %vm5168_vm4, %v5336_v13, %v5335_v45  ;;  %v5345_v48 = vperm.slane %v12182_v25, %v10211_v33  ;;  %v5351_v42 = vperm.slane %v12183_v32, %v10211_v33  ;;  %v12185_v13 = vld [vmem:[#allocation54_spill] sm:$0xff]  ;;  %v12189_v45 = vld [vmem:[#allocation63_spill] sm:$0xff]  ;;  %v12194_v32 = vld [vmem:[#allocation60_spill] sm:$0xff] }
 0xdd1   :  { %v5606_v52 = vsel %vm5563_vm11, %v5334_v39, %v5605_v30  ;;  %v5348_v37 = vperm.slane %v12184_v21, %v10211_v33  ;;  %v5607_v47 = vsel %vm5551_vm5, %v5340_v31, %v5337_v11  ;;  %v5310_v7 = vsel %vm5168_vm4, %v5309_v22, %v5308_v17  ;;  %v12188_v22 = vld [vmem:[#allocation66_spill] sm:$0xff] }
 0xdd2   :  { %v5596_v5 = vsel %vm5557_vm8, %v5301_v51, %v5595_v6  ;;  %v5344_v26 = vperm.slane %v12185_v13, %v10206_v57  ;;  %v5608_v62 = vsel %vm5553_vm6, %v5343_v2, %v5607_v47  ;;  %v5356_v38 = vperm.slane %v12187_v9, %v10206_v57  ;;  %v12191_v2 = vld [vmem:[#allocation64_spill] sm:$0xff]  ;;  %v12193_v25 = vld [vmem:[#allocation58_spill] sm:$0xff] }
 0xdd3   :  { %v5597_v24 = vsel %vm5559_vm9, %v5304_v16, %v5596_v5  ;;  %v5349_v12 = vsel %vm5168_vm4, %v5348_v37, %v5347_v20  ;;  %v5704_v39 = vsel %vm744_vm1, %v5606_v52, 0.0  ;;  %v5363_v40 = vperm.slane %v12188_v22, %v10211_v33  ;;  %v12190_v16 = vld [vmem:[#allocation214_spill] sm:$0xff]  ;;  %v12195_v52 = vld [vmem:[#allocation7_spill] sm:$0xff]  ;;  %v10985_v37 = vpop.permute.xlu2 %5092  ;;  %v12196_v47 = vld [vmem:[#allocation44_spill] sm:$0xff] }
 0xdd4   :  { %5696 = vadd.xlane.f32.xlu2 %v10827_v18  ;;  %v5598_v17 = vsel %vm5561_vm10, %v5307_v15, %v5597_v24  ;;  %v5346_v51 = vsel %vm5168_vm4, %v5345_v48, %v5344_v26  ;;  %v5360_v31 = vperm.slane %v12189_v45, %v10211_v33  ;;  %v5354_v44 = vperm.slane %v12190_v16, %v10211_v33  ;;  %v12192_v15 = vld [vmem:[#allocation68_spill] sm:$0xff] }
 0xdd5   :  { %5690 = vadd.xlane.f32.xlu0 %v10817_v49  ;;  %v10944_v18 = vpop.permute.xlu0 %5077  ;;  %v12186_v49 = vld [vmem:[#allocation211_spill] sm:$0xff]  ;;  %v5357_v34 = vperm.slane %v12191_v2, %v10211_v33  ;;  %v5609_v20 = vsel %vm5555_vm7, %v5346_v51, %v5608_v62  ;;  %v5365_v30 = vperm.slane %v12192_v15, %v10206_v57  ;;  %v5362_v48 = vperm.slane %v12193_v25, %v10206_v57  ;;  %v12197_v13 = vld [vmem:[#allocation8_spill] sm:$0xff] }
 0xdd6   :  { %v10950_v29 = vpop.permute.xlu1 %5071  ;;  %v5350_v53 = vperm.slane %v12186_v49, %v10206_v57  ;;  %v5610_v11 = vsel %vm5557_vm8, %v5349_v12, %v5609_v20  ;;  %v5369_v21 = vperm.slane %v12195_v52, %v10211_v33  ;;  %v5353_v5 = vperm.slane %v12196_v47, %v10206_v57  ;;  %v12198_v12 = vld [vmem:[#allocation6_spill] sm:$0xff]  ;;  %v12199_v51 = vld [vmem:[#allocation67_spill] sm:$0xff]  ;;  %v12204_v52 = vld [vmem:[#allocation17_spill] sm:$0xff] }
 0xdd7   :  { %v5366_v26 = vperm.slane %v12197_v13, %v10211_v33  ;;  %v5358_v49 = vsel %vm5168_vm4, %v5357_v34, %v5356_v38  ;;  %v5364_v62 = vsel %vm5168_vm4, %v5363_v40, %v5362_v48  ;;  %v5368_v9 = vperm.slane %v12198_v12, %v10206_v57  ;;  %v12201_v34 = vld [vmem:[#allocation69_spill] sm:$0xff]  ;;  %v12202_v15 = vld [vmem:[#allocation43_spill] sm:$0xff] }
 0xdd8   :  { %v5352_v6 = vsel %vm5168_vm4, %v5351_v42, %v5350_v53  ;;  %v5359_v42 = vperm.slane %v12194_v32, %v10206_v57  ;;  %v5355_v45 = vsel %vm5168_vm4, %v5354_v44, %v5353_v5  ;;  %v5599_v40 = vsel %vm5563_vm11, %v5310_v7, %v5598_v17  ;;  %v12203_v17 = vld [vmem:[#allocation62_spill] sm:$0xff]  ;;  %v12205_v13 = vld [vmem:[#allocation27_spill] sm:$0xff] }
 0xdd9   :  { %v5611_v53 = vsel %vm5559_vm9, %v5352_v6, %v5610_v11  ;;  %v5367_v38 = vsel %vm5168_vm4, %v5366_v26, %v5365_v30  ;;  %v5370_v2 = vsel %vm5168_vm4, %v5369_v21, %v5368_v9  ;;  %v5378_v30 = vperm.slane %v12202_v15, %v10211_v33 }
 0xdda   :  { %v5361_v24 = vsel %vm5168_vm4, %v5360_v31, %v5359_v42  ;;  %v12200_v31 = vld [vmem:[#allocation65_spill] sm:$0xff]  ;;  %v5612_v20 = vsel %vm5561_vm10, %v5355_v45, %v5611_v53  ;;  %v5375_v11 = vperm.slane %v12203_v17, %v10211_v33  ;;  %v5486_v32 = vperm.slane %v10722_v58, %v10211_v33 }
 0xddb   :  { %v5371_v16 = vperm.slane %v12200_v31, %v10206_v57  ;;  %v5614_v44 = vsel %vm5551_vm5, %v5364_v62, %v5361_v24  ;;  %v5613_v7 = vsel %vm5563_vm11, %v5358_v49, %v5612_v20  ;;  %v5377_v21 = vperm.slane %v12204_v52, %v10206_v57  ;;  %v12206_v24 = vld [vmem:[#allocation9_spill] sm:$0xff] }
 0xddc   :  { %5705 = vadd.xlane.f32.xlu2 %v5704_v39  ;;  %v5372_v39 = vperm.slane %v12199_v51, %v10211_v33  ;;  %v5615_v25 = vsel %vm5553_vm6, %v5367_v38, %v5614_v44  ;;  %v5713_v47 = vsel %vm744_vm1, %v10292_v8, 0.0  ;;  %v5381_v26 = vperm.slane %v12205_v13, %v10211_v33  ;;  %v11049_v51 = vpop.permute.xlu2 %5101 }
 0xddd   :  { %5699 = vadd.xlane.f32.xlu0 %v10849_v4  ;;  %v11000_v22 = vpop.permute.xlu0 %5086  ;;  %v5374_v4 = vperm.slane %v12201_v34, %v10206_v57  ;;  %v5616_v42 = vsel %vm5555_vm7, %v5370_v2, %v5615_v25  ;;  %v5485_v49 = vperm.slane %v10650_v43, %v10206_v57  ;;  %v5701_v58 = vsel %vm744_vm1, %v5599_v40, 0.0 }
 0xdde   :  { %5693 = vadd.xlane.f32.xlu1 %v10830_v10  ;;  %v11005_v6 = vpop.permute.xlu1 %5080  ;;  %v5482_v10 = vperm.slane %v10658_v36, %v10206_v57  ;;  %v5373_v48 = vsel %vm5168_vm4, %v5372_v39, %v5371_v16  ;;  %v5483_v36 = vperm.slane %v10499_v46, %v10211_v33  ;;  %v5379_v53 = vsel %vm5168_vm4, %v5378_v30, %v5377_v21 }
 0xddf   :  { %v5376_v5 = vsel %vm5168_vm4, %v5375_v11, %v5374_v4  ;;  %v5489_v46 = vperm.slane %v10713_v56, %v10211_v33  ;;  %v5707_v8 = vsel %vm744_vm1, %v5613_v7, 0.0  ;;  %v5380_v12 = vperm.slane %v12206_v24, %v10206_v57 }
 0xde0   :  { %v5484_v62 = vsel %vm5168_vm4, %v5483_v36, %v5482_v10  ;;  %v5487_v9 = vsel %vm5168_vm4, %v5486_v32, %v5485_v49  ;;  %v5491_v43 = vperm.slane %v10776_v60, %v10206_v57  ;;  %v5617_v45 = vsel %vm5557_vm8, %v5373_v48, %v5616_v42 }
 0xde1   :  { %v5488_v38 = vperm.slane %v10562_v50, %v10206_v57  ;;  %v5495_v56 = vperm.slane %v10839_v41, %v10211_v33  ;;  %v5618_v31 = vsel %vm5559_vm9, %v5376_v5, %v5617_v45  ;;  %v5492_v16 = vperm.slane %v10621_v14, %v10211_v33 }
 0xde2   :  { %v5649_v60 = vsel %vm5551_vm5, %v5484_v62, %v10613_v19  ;;  %v5382_v2 = vsel %vm5168_vm4, %v5381_v26, %v5380_v12  ;;  %v5619_v34 = vsel %vm5561_vm10, %v5379_v53, %v5618_v31  ;;  %v5494_v41 = vperm.slane %v10770_v1, %v10206_v57 }
 0xde3   :  { %v5490_v4 = vsel %vm5168_vm4, %v5489_v46, %v5488_v38  ;;  %v5650_v50 = vsel %vm5553_vm6, %v5487_v9, %v5649_v60  ;;  %v5493_v20 = vsel %vm5168_vm4, %v5492_v16, %v5491_v43  ;;  %v5498_v44 = vperm.slane %v10824_v55, %v10211_v33 }
 0xde4   :  { %5714 = vadd.xlane.f32.xlu2 %v5713_v47  ;;  %v5496_v14 = vsel %vm5168_vm4, %v5495_v56, %v5494_v41  ;;  %v5500_v19 = vperm.slane %v10896_v3, %v10206_v57  ;;  %v5722_v15 = vsel %vm744_vm1, %v10630_v0, 0.0  ;;  %v5620_v30 = vsel %vm5563_vm11, %v5382_v2, %v5619_v34  ;;  %v5111_v52 = vpop.permute.xlu2 %5110  ;;  %v11137_v41 = vld [vmem:[%s11335_s10] ss:$0 sm:$0xff]  ;;  %s5997_s10 = sshll.u32 %s6838_s15, 4  ;;  %s5998_s10 = int_to_ptr.vmem [resolvable:$true] %s5997_s10 }
 0xde5   :  { %5708 = vadd.xlane.f32.xlu0 %v5707_v8  ;;  %v5096_v39 = vpop.permute.xlu0 %5095  ;;  %v5497_v10 = vperm.slane %v10697_v35, %v10206_v57  ;;  %v5651_v1 = vsel %vm5555_vm7, %v5490_v4, %v5650_v50  ;;  %v5716_v7 = vsel %vm744_vm1, %v10367_v23, 0.0  ;;  %v5501_v55 = vperm.slane %v10768_v27, %v10211_v33 }
 0xde6   :  { %5702 = vadd.xlane.f32.xlu1 %v5701_v58  ;;  %v5090_v40 = vpop.permute.xlu1 %5089  ;;  %v5652_v17 = vsel %vm5557_vm8, %v5493_v20, %v5651_v1  ;;  %v5507_v3 = vperm.slane %v10944_v18, %v10211_v33  ;;  %v5504_v0 = vperm.slane %v10950_v29, %v10211_v33  ;;  %v5509_v35 = vperm.slane %v11005_v6, %v10206_v57 }
 0xde7   :  { %v5499_v11 = vsel %vm5168_vm4, %v5498_v44, %v5497_v10  ;;  %v5710_v48 = vsel %vm744_vm1, %v5620_v30, 0.0  ;;  %v5653_v23 = vsel %vm5559_vm9, %v5496_v14, %v5652_v17  ;;  %v5506_v27 = vperm.slane %v10846_v28, %v10206_v57 }
 0xde8   :  { %v5503_v18 = vperm.slane %v10887_v61, %v10206_v57  ;;  %v5513_v32 = vperm.slane %v5090_v40, %v10211_v33  ;;  %v5502_v42 = vsel %vm5168_vm4, %v5501_v55, %v5500_v19  ;;  %v5510_v6 = vperm.slane %v10919_v63, %v10211_v33 }
 0xde9   :  { %v5508_v21 = vsel %vm5168_vm4, %v5507_v3, %v5506_v27  ;;  %v5512_v28 = vperm.slane %v11000_v22, %v10206_v57  ;;  %v5654_v47 = vsel %vm5561_vm10, %v5499_v11, %v5653_v23  ;;  %v5516_v5 = vperm.slane %v5096_v39, %v10211_v33 }
 0xdea   :  { %v5505_v36 = vsel %vm5168_vm4, %v5504_v0, %v5503_v18  ;;  %v5511_v61 = vsel %vm5168_vm4, %v5510_v6, %v5509_v35  ;;  %v5655_v13 = vsel %vm5563_vm11, %v5502_v42, %v5654_v47  ;;  %v5515_v49 = vperm.slane %v10985_v37, %v10206_v57 }
 0xdeb   :  { %v5514_v26 = vsel %vm5168_vm4, %v5513_v32, %v5512_v28  ;;  %v5656_v58 = vsel %vm5551_vm5, %v5508_v21, %v5505_v36  ;;  %v5519_v22 = vperm.slane %v11049_v51, %v10211_v33  ;;  %v5725_v62 = vsel %vm744_vm1, %v5655_v13, 0.0 }
 0xdec   :  { %5723 = vadd.xlane.f32.xlu2 %v5722_v15  ;;  %v5657_v53 = vsel %vm5553_vm6, %v5511_v61, %v5656_v58  ;;  %v5517_v46 = vsel %vm5168_vm4, %v5516_v5, %v5515_v49  ;;  %v5719_v12 = vsel %vm744_vm1, %v10445_v59, 0.0  ;;  %v5524_v37 = vperm.slane %v5111_v52, %v10206_v57  ;;  %v5120_v40 = vpop.permute.xlu2 %5119 }
 0xded   :  { %v5105_v25 = vpop.permute.xlu0 %5104  ;;  %5717 = vadd.xlane.f32.xlu0 %v5716_v7  ;;  %v5658_v8 = vsel %vm5555_vm7, %v5514_v26, %v5657_v53  ;;  %v5781_v19 = vadd.s32 56, %v12127_v54  ;;  %v5751_v7 = vadd.s32 16, %v12127_v54  ;;  %v5757_v11 = vadd.s32 24, %v12127_v54 }
 0xdee   :  { %5711 = vadd.xlane.f32.xlu1 %v5710_v48  ;;  %v5099_v29 = vpop.permute.xlu1 %5098  ;;  %v5521_v39 = vperm.slane %v5105_v25, %v10206_v57  ;;  %v5659_v56 = vsel %vm5557_vm8, %v5517_v46, %v5658_v8  ;;  %v5528_v25 = vperm.slane %v5120_v40, %v10211_v33  ;;  %v12207_v61 = vmov 0  }
 0xdef   :  { %v5518_v63 = vperm.slane %v5099_v29, %v10206_v57  ;;  %6477 = vset.pattern.permute.xlu2 %v5751_v7 }
 0xdf1   :  { %v5520_v9 = vsel %vm5168_vm4, %v5519_v22, %v5518_v63 }
 0xdf2   :  { %v5660_v31 = vsel %vm5559_vm9, %v5520_v9, %v5659_v56 }
 0xdf4   :  { %v5129_v50 = vpop.permute.xlu2 %5128 }
 0xdf5   :  { %v5114_v24 = vpop.permute.xlu0 %5113  ;;  %5726 = vadd.xlane.f32.xlu0 %v5725_v62  ;;  %v5533_v27 = vperm.slane %v5129_v50, %v10206_v57 }
 0xdf6   :  { %v5525_v43 = vperm.slane %v5114_v24, %v10211_v33  ;;  %5720 = vadd.xlane.f32.xlu1 %v5719_v12  ;;  %v5108_v51 = vpop.permute.xlu1 %5107 }
 0xdf7   :  { %v5522_v45 = vperm.slane %v5108_v51, %v10211_v33 }
 0xdf8   :  { %v5526_v38 = vsel %vm5168_vm4, %v5525_v43, %v5524_v37 }
 0xdf9   :  { %v5523_v59 = vsel %vm5168_vm4, %v5522_v45, %v5521_v39  ;;  %v5769_v45 = vadd.s32 40, %v12127_v54 }
 0xdfa   :  { %v5661_v16 = vsel %vm5561_vm10, %v5523_v59, %v5660_v31  ;;  %v5775_v59 = vadd.s32 48, %v12127_v54 }
 0xdfb   :  { %v5662_v60 = vsel %vm5563_vm11, %v5526_v38, %v5661_v16  ;;  %v5763_v38 = vadd.s32 32, %v12127_v54 }
 0xdfc   :  { %v5728_v2 = vsel %vm744_vm1, %v5662_v60, 0.0  ;;  %v5138_v14 = vpop.permute.xlu2 %5137 }
 0xdfd   :  { %v5123_v34 = vpop.permute.xlu0 %5122  ;;  %v5537_v29 = vperm.slane %v5138_v14, %v10211_v33 }
 0xdfe   :  { %5729 = vadd.xlane.f32.xlu1 %v5728_v2  ;;  %v5117_v4 = vpop.permute.xlu1 %5116  ;;  %v5530_v3 = vperm.slane %v5123_v34, %v10206_v57 }
 0xdff   :  { %v5527_v0 = vperm.slane %v5117_v4, %v10206_v57 }
 0xe01   :  { %v5529_v42 = vsel %vm5168_vm4, %v5528_v25, %v5527_v0 }
 0xe04   :  { %v5147_v1 = vpop.permute.xlu2 %5146 }
 0xe05   :  { %v5132_v20 = vpop.permute.xlu0 %5131  ;;  %v5542_v26 = vperm.slane %v5147_v1, %v10206_v57 }
 0xe06   :  { %v5126_v44 = vpop.permute.xlu1 %5125  ;;  %v5534_v35 = vperm.slane %v5132_v20, %v10211_v33 }
 0xe07   :  { %v5531_v55 = vperm.slane %v5126_v44, %v10211_v33 }
 0xe08   :  { %v5535_v6 = vsel %vm5168_vm4, %v5534_v35, %v5533_v27 }
 0xe09   :  { %5741 = vperm.xlu0 %6475, %v11137_v41   ;;  %v5532_v48 = vsel %vm5168_vm4, %v5531_v55, %v5530_v3 }
 0xe0a   :  { %v5663_v52 = vsel %vm5551_vm5, %v5532_v48, %v5529_v42 }
 0xe0b   :  { %v5664_v63 = vsel %vm5553_vm6, %v5535_v6, %v5663_v52 }
 0xe0c   :  { %v5156_v36 = vpop.permute.xlu2 %5155 }
 0xe0d   :  { %v5141_v30 = vpop.permute.xlu0 %5140  ;;  %v5546_v49 = vperm.slane %v5156_v36, %v10211_v33 }
 0xe0e   :  { %v5135_v15 = vpop.permute.xlu1 %5134  ;;  %v5539_v21 = vperm.slane %v5141_v30, %v10206_v57 }
 0xe0f   :  { %v5536_v23 = vperm.slane %v5135_v15, %v10206_v57 }
 0xe11   :  { %6482 = vset.pattern.permute.xlu0 %v5781_v19  ;;  %v5538_v28 = vsel %vm5168_vm4, %v5537_v29, %v5536_v23 }
 0xe12   :  { %v5665_v58 = vsel %vm5555_vm7, %v5538_v28, %v5664_v63 }
 0xe15   :  { %v5150_v17 = vpop.permute.xlu0 %5149 }
 0xe16   :  { %v5144_v10 = vpop.permute.xlu1 %5143  ;;  %v5543_v47 = vperm.slane %v5150_v17, %v10211_v33 }
 0xe17   :  { %5747 = vperm.xlu1 %6476, %v11137_v41   ;;  %v5540_v18 = vperm.slane %v5144_v10, %v10211_v33 }
 0xe18   :  { %v5544_v53 = vsel %vm5168_vm4, %v5543_v47, %v5542_v26 }
 0xe19   :  { %5783 = vperm.xlu0 %6482, %v11137_v41   ;;  %v5541_v5 = vsel %vm5168_vm4, %v5540_v18, %v5539_v21 }
 0xe1a   :  { %v5666_v62 = vsel %vm5557_vm8, %v5541_v5, %v5665_v58 }
 0xe1b   :  { %v5667_v37 = vsel %vm5559_vm9, %v5544_v53, %v5666_v62 }
 0xe1d   :  { %v5159_v22 = vpop.permute.xlu0 %5158 }
 0xe1e   :  { %v5153_v32 = vpop.permute.xlu1 %5152  ;;  %v5548_v24 = vperm.slane %v5159_v22, %v10206_v57 }
 0xe1f   :  { %6478 = vset.pattern.permute.xlu1 %v5757_v11  ;;  %v5545_v13 = vperm.slane %v5153_v32, %v10206_v57 }
 0xe21   :  { %6485 = vset.pattern.permute.xlu0 %v12207_v61  ;;  %v5547_v46 = vsel %vm5168_vm4, %v5546_v49, %v5545_v13 }
 0xe22   :  { %v5668_v43 = vsel %vm5561_vm10, %v5547_v46, %v5667_v37 }
 0xe26   :  { %v5162_v8 = vpop.permute.xlu1 %5161 }
 0xe27   :  { %v5549_v12 = vperm.slane %v5162_v8, %v10211_v33  ;;  %5759 = vperm.xlu1 %6478, %v11137_v41  }
 0xe29   :  { %v5550_v9 = vsel %vm5168_vm4, %v5549_v12, %v5548_v24 }
 0xe2a   :  { %v5669_v51 = vsel %vm5563_vm11, %v5550_v9, %v5668_v43 }
 0xe2b   :  { %v5731_v39 = vsel %vm744_vm1, %v5669_v51, 0.0  ;;  %vm5910_vm1 = vcmask 458112  }
 0xe2c   :  { %5732 = vadd.xlane.f32.xlu2 %v5731_v39 }
 0xe2f   :  { %6480 = vset.pattern.permute.xlu1 %v5769_v45  ;;  %v11195_v45 = vadd.s32 4294967280, %v10206_v57 }
 0xe37   :  { %5771 = vperm.xlu1 %6480, %v11137_v41  }
 0xe3f   :  { %6483 = vset.pattern.permute.xlu1 %v12207_v61  ;;  %v5688_v4 = vpop.xlane.xlu2 %5687 }
 0xe44   :  { %5753 = vperm.xlu2 %6477, %v11137_v41  }
 0xe47   :  { %v5697_v44 = vpop.xlane.xlu2 %5696 }
 0xe48   :  { %v5691_v56 = vpop.xlane.xlu0 %5690 }
 0xe4c   :  { %6479 = vset.pattern.permute.xlu2 %v5763_v38 }
 0xe4f   :  { %v5706_v30 = vpop.xlane.xlu2 %5705 }
 0xe50   :  { %v5700_v40 = vpop.xlane.xlu0 %5699 }
 0xe51   :  { %v5694_v31 = vpop.xlane.xlu1 %5693 }
 0xe54   :  { %5765 = vperm.xlu2 %6479, %v11137_v41  }
 0xe57   :  { %v5715_v7 = vpop.xlane.xlu2 %5714 }
 0xe58   :  { %v5709_v16 = vpop.xlane.xlu0 %5708 }
 0xe59   :  { %v5703_v60 = vpop.xlane.xlu1 %5702 }
 0xe5c   :  { %6481 = vset.pattern.permute.xlu2 %v5775_v59 }
 0xe5f   :  { %v5724_v17 = vpop.xlane.xlu2 %5723 }
 0xe60   :  { %v5718_v2 = vpop.xlane.xlu0 %5717 }
 0xe61   :  { %v5712_v34 = vpop.xlane.xlu1 %5711 }
 0xe64   :  { %5777 = vperm.xlu2 %6481, %v11137_v41  }
 0xe68   :  { %v5727_v50 = vpop.xlane.xlu0 %5726 }
 0xe69   :  { %v11188_v20 = vpop.xlane.xlu1 %5720 }
 0xe6c   :  { %6484 = vset.pattern.permute.xlu2 %v12207_v61 }
 0xe71   :  { %v11190_v54 = vpop.xlane.xlu1 %5729 }
 0xe7b   :  { %v5742_v14 = vpop.permute.xlu0 %5741 }
 0xe7c   :  { %v5793_v19 = vadd.f32 %v5742_v14, %v5688_v4  ;;  %v5801_v15 = vadd.f32 %v5742_v14, %v5712_v34  ;;  %v11208_v34 = vadd.s32 4294967256, %v10206_v57 }
 0xe7e   :  { %6755 = vtanh.f32 %v5793_v19 }
 0xe84   :  { %v6756_v10 = vpop.eup %6755 }
 0xe85   :  { %5842 = vperm.xlu1 %6483, %v6756_v10  }
 0xe89   :  { %v5748_v1 = vpop.permute.xlu1 %5747 }
 0xe8a   :  { %v5794_v41 = vadd.f32 %v5748_v1, %v5691_v56  ;;  %v5802_v6 = vadd.f32 %v5748_v1, %v5715_v7  ;;  %v11220_v1 = vadd.s32 4294967240, %v10206_v57 }
 0xe8b   :  { %v5784_v42 = vpop.permute.xlu0 %5783 }
 0xe8c   :  { %6757 = vtanh.f32 %v5794_v41  ;;  %v5800_v52 = vadd.f32 %v5784_v42, %v5709_v16  ;;  %v11201_v16 = vadd.s32 4294967272, %v10206_v57 }
 0xe92   :  { %v6758_v55 = vpop.eup %6757 }
 0xe93   :  { %5845 = vperm.xlu2 %6484, %v6758_v55  }
 0xe99   :  { %v5760_v3 = vpop.permute.xlu1 %5759 }
 0xe9a   :  { %v5796_v0 = vadd.f32 %v5760_v3, %v5697_v44  ;;  %v5804_v62 = vadd.f32 %v5760_v3, %v11188_v20 }
 0xe9c   :  { %6759 = vtanh.f32 %v5796_v0 }
 0xe9f   :  { %v5733_v11 = vpop.xlane.xlu2 %5732 }
 0xea0   :  { %v5808_v63 = vadd.f32 %v5784_v42, %v5733_v11 }
 0xea2   :  { %v6760_v35 = vpop.eup %6759 }
 0xea3   :  { %5851 = vperm.xlu2 %6484, %v6760_v35   ;;  %v12208_v35 = vld [vmem:[#allocation106_spill] sm:$0xff] }
 0xea7   :  { %v5754_v25 = vpop.permute.xlu2 %5753 }
 0xea8   :  { %v5795_v48 = vadd.f32 %v5754_v25, %v5694_v31  ;;  %v5803_v28 = vadd.f32 %v5754_v25, %v5718_v2 }
 0xea9   :  { %v5772_v23 = vpop.permute.xlu1 %5771 }
 0xeaa   :  { %6761 = vtanh.f32 %v5795_v48  ;;  %v5798_v27 = vadd.f32 %v5772_v23, %v5703_v60  ;;  %v5806_v58 = vadd.f32 %v5772_v23, %v5727_v50  ;;  %v11204_v60 = vadd.s32 4294967264, %v10206_v57  ;;  %v12209_v48 = vld [vmem:[#allocation70_spill] sm:$0xff] }
 0xeac   :  { %6763 = vtanh.f32 %v5798_v27  ;;  %v12210_v27 = vld [vmem:[#allocation50_spill] sm:$0xff] }
 0xeaf   :  { %v5766_v18 = vpop.permute.xlu2 %5765 }
 0xeb0   :  { %v6762_v32 = vpop.eup %6761  ;;  %v5797_v29 = vadd.f32 %v5766_v18, %v5700_v40  ;;  %v5805_v47 = vadd.f32 %v5766_v18, %v5724_v17 }
 0xeb1   :  { %5848 = vperm.xlu1 %6483, %v6762_v32   ;;  %v12211_v32 = vld [vmem:[#allocation5_spill] sm:$0xff] }
 0xeb2   :  { %6765 = vtanh.f32 %v5797_v29  ;;  %v6764_v21 = vpop.eup %6763 }
 0xeb3   :  { %6767 = vtanh.f32 %v5802_v6  ;;  %v12212_v6 = vld [vmem:[#allocation18_spill] sm:$0xff] }
 0xeb4   :  { %6769 = vtanh.f32 %v5800_v52 }
 0xeb5   :  { %6771 = vtanh.f32 %v5803_v28  ;;  %v12214_v28 = vld [vmem:[#allocation100_spill] sm:$0xff] }
 0xeb8   :  { %v6766_v36 = vpop.eup %6765 }
 0xeb9   :  { %5854 = vperm.xlu0 %6485, %v6766_v36   ;;  %5857 = vperm.xlu1 %6483, %v6764_v21   ;;  %v6768_v5 = vpop.eup %6767  ;;  %v12213_v21 = vld [vmem:[#allocation23_spill] sm:$0xff] }
 0xeba   :  { %v6770_v26 = vpop.eup %6769 }
 0xebb   :  { %v6772_v49 = vpop.eup %6771 }
 0xebe   :  { %v5778_v61 = vpop.permute.xlu2 %5777 }
 0xebf   :  { %v5799_v13 = vadd.f32 %v5778_v61, %v5706_v30  ;;  %v5807_v12 = vadd.f32 %v5778_v61, %v11190_v54  ;;  %v11216_v30 = vadd.s32 4294967248, %v10206_v57  ;;  %v6788_v61 = vld [vmem:[%s11325_s0 + $0x11] sm:$0xff] }
 0xec1   :  { %6773 = vtanh.f32 %v5799_v13  ;;  %5869 = vperm.xlu0 %6485, %v6768_v5   ;;  %5863 = vperm.xlu1 %6483, %v6770_v26   ;;  %v6789_v13 = vld [vmem:[%s11325_s0 + $0x21] sm:$0xff] }
 0xec2   :  { %6775 = vtanh.f32 %v5805_v47 }
 0xec3   :  { %6777 = vtanh.f32 %v5801_v15 }
 0xec4   :  { %6779 = vtanh.f32 %v5808_v63  ;;  %v6790_v63 = vld [vmem:[%s11325_s0 + $0x31] sm:$0xff] }
 0xec5   :  { %6781 = vtanh.f32 %v5806_v58 }
 0xec6   :  { %6783 = vtanh.f32 %v5804_v62  ;;  %v6791_v62 = vld [vmem:[%s11325_s0 + $0x41] sm:$0xff] }
 0xec7   :  { %v6774_v22 = vpop.eup %6773  ;;  %6785 = vtanh.f32 %v5807_v12 }
 0xec8   :  { %v6776_v53 = vpop.eup %6775  ;;  %5860 = vperm.xlu2 %6484, %v6774_v22   ;;  %v12215_v22 = vld [vmem:[#allocation10_spill] sm:$0xff] }
 0xec9   :  { %5878 = vperm.xlu0 %6485, %v6776_v53   ;;  %5872 = vperm.xlu1 %6483, %v6772_v49   ;;  %v6778_v46 = vpop.eup %6777 }
 0xeca   :  { %v6780_v8 = vpop.eup %6779 }
 0xecb   :  { %v6782_v24 = vpop.eup %6781 }
 0xecc   :  { %v6784_v37 = vpop.eup %6783 }
 0xecd   :  { %v6786_v9 = vpop.eup %6785 }
 0xed0   :  { %5866 = vperm.xlu2 %6484, %v6778_v46  }
 0xed1   :  { %5887 = vperm.xlu0 %6485, %v6780_v8   ;;  %5881 = vperm.xlu1 %6483, %v6782_v24   ;;  %v6792_v8 = vld [vmem:[%s11325_s0 + $0x51] sm:$0xff] }
 0xed8   :  { %5875 = vperm.xlu2 %6484, %v6784_v37  }
 0xee0   :  { %5884 = vperm.xlu2 %6484, %v6786_v9  }
 0xeed   :  { %v5846_v43 = vpop.permute.xlu2 %5845 }
 0xeee   :  { %v5890_v31 = vperm.slane %v5846_v43, %v10211_v33 }
 0xef7   :  { %v5843_v51 = vpop.permute.xlu1 %5842 }
 0xef8   :  { %v5889_v40 = vperm.slane %v5843_v51, %v10206_v57 }
 0xefa   :  { %v5891_v2 = vsel %vm5168_vm4, %v5890_v31, %v5889_v40 }
 0xefd   :  { %v5852_v39 = vpop.permute.xlu2 %5851 }
 0xefe   :  { %v5897_v44 = vperm.slane %v5852_v39, %v11201_v16  ;;  %v6794_v39 = vld [vmem:[%s11325_s0 + $0x71] sm:$0xff] }
 0xf22   :  { %v5861_v56 = vpop.permute.xlu2 %5860 }
 0xf23   :  { %v5849_v38 = vpop.permute.xlu1 %5848  ;;  %v5909_v7 = vperm.slane %v5861_v56, %v11216_v30 }
 0xf24   :  { %v5893_v59 = vperm.slane %v5849_v38, %v11195_v45 }
 0xf26   :  { %v5895_v4 = vsel %vm5894_vm12, %v5893_v59, %v5891_v2 }
 0xf27   :  { %v5899_v15 = vsel %vm5898_vm13, %v5897_v44, %v5895_v4 }
 0xf2a   :  { %v5867_v19 = vpop.permute.xlu2 %5866 }
 0xf2b   :  { %v5855_v50 = vpop.permute.xlu0 %5854  ;;  %v5858_v20 = vpop.permute.xlu1 %5857  ;;  %v5916_v9 = vperm.slane %v5867_v19, %v10206_v57  ;;  %v6795_v57 = vld [vmem:[%s11325_s0 + $0x81] sm:$0xff] }
 0xf2c   :  { %v5901_v14 = vperm.slane %v5855_v50, %v11204_v60  ;;  %v5905_v54 = vperm.slane %v5858_v20, %v11208_v34 }
 0xf2e   :  { %v5903_v10 = vsel %vm5902_vm14, %v5901_v14, %v5899_v15 }
 0xf2f   :  { %v5907_v41 = vsel %vm5906_vm15, %v5905_v54, %v5903_v10 }
 0xf30   :  { %v5911_v0 = vsel %vm5910_vm1, %v5909_v7, %v5907_v41  ;;  %v12216_v41 = vld [vmem:[#allocation170_spill] sm:$0xff] }
 0xf32   :  { %v5876_v42 = vpop.permute.xlu2 %5875 }
 0xf33   :  { %v5870_v55 = vpop.permute.xlu0 %5869  ;;  %v5864_v17 = vpop.permute.xlu1 %5863  ;;  %v5921_v59 = vperm.slane %v5876_v42, %v11201_v16 }
 0xf34   :  { %v5913_v3 = vperm.slane %v5864_v17, %v11220_v1  ;;  %v5917_v58 = vperm.slane %v5870_v55, %v10211_v33  ;;  %v6793_v33 = vld [vmem:[%s11325_s0 + $0x61] sm:$0xff]  ;;  %v12217_v55 = vld [vmem:[#allocation31_spill] sm:$0xff] }
 0xf35   :  { %v12218_v17 = vld [vmem:[#allocation171_spill] sm:$0xff] }
 0xf36   :  { %v5915_v11 = vsel %vm5914_vm2, %v5913_v3, %v5911_v0  ;;  %v5918_v56 = vsel %vm5168_vm4, %v5917_v58, %v5916_v9  ;;  %v12219_v0 = vld [vmem:[#allocation174_spill] sm:$0xff] }
 0xf37   :  { %v5945_v25 = vmul.f32 %v5915_v11, %v12208_v35  ;;  %v5946_v23 = vmul.f32 %v5915_v11, %v12209_v48  ;;  %v5947_v18 = vmul.f32 %v5915_v11, %v12210_v27  ;;  %v5948_v29 = vmul.f32 %v5915_v11, %v12211_v32  ;;  %v12221_v35 = vld [vmem:[#allocation176_spill] sm:$0xff]  ;;  %v12222_v48 = vld [vmem:[#allocation177_spill] sm:$0xff] }
 0xf38   :  { %v5949_v52 = vmul.f32 %v5915_v11, %v12212_v6  ;;  %v5950_v36 = vmul.f32 %v5915_v11, %v12213_v21  ;;  %v5951_v47 = vmul.f32 %v5915_v11, %v12214_v28  ;;  %v5952_v53 = vmul.f32 %v5915_v11, %v12215_v22  ;;  %v12220_v11 = vld [vmem:[#allocation175_spill] sm:$0xff]  ;;  %v12223_v6 = vld [vmem:[#allocation178_spill] sm:$0xff] }
 0xf39   :  { %v5961_v5 = vadd.f32 %v6788_v61, %v5945_v25  ;;  %v5962_v26 = vadd.f32 %v6789_v13, %v5946_v23  ;;  %v5963_v49 = vadd.f32 %v6790_v63, %v5947_v18  ;;  %v5964_v46 = vadd.f32 %v6791_v62, %v5948_v29  ;;  %v6796_v23 = vld [vmem:[%s11325_s0 + $0xb1] sm:$0xff]  ;;  %v6797_v18 = vld [vmem:[%s11325_s0 + $0xc1] sm:$0xff] }
 0xf3a   :  { %v5965_v24 = vadd.f32 %v6792_v8, %v5949_v52  ;;  %v5966_v43 = vadd.f32 %v6793_v33, %v5950_v36  ;;  %v5967_v38 = vadd.f32 %v6794_v39, %v5951_v47  ;;  %v5968_v40 = vadd.f32 %v6795_v57, %v5952_v53  ;;  %v5885_v31 = vpop.permute.xlu2 %5884  ;;  %v6798_v29 = vld [vmem:[%s11325_s0 + $0xd1] sm:$0xff]  ;;  %v6799_v21 = vld [vmem:[%s11325_s0 + $0xe1] sm:$0xff] }
 0xf3b   :  { %5977 = vst.msk [vmem:[#allocation2] sm:$0xff] %vm577_vm0, %v5961_v5  ;;  %v5879_v12 = vpop.permute.xlu0 %5878  ;;  %v5873_v37 = vpop.permute.xlu1 %5872  ;;  %v5927_v14 = vperm.slane %v5885_v31, %v11216_v30  ;;  %v6800_v28 = vld [vmem:[%s11325_s0 + $0xf1] sm:$0xff]  ;;  %v6801_v61 = vld [vmem:[%s11325_s0 + $0x101] sm:$0xff] }
 0xf3c   :  { %5978 = vst.msk [vmem:[#allocation2 + $0x8] sm:$0xff] %vm577_vm0, %v5962_v26  ;;  %v5919_v51 = vperm.slane %v5873_v37, %v11195_v45  ;;  %v5923_v4 = vperm.slane %v5879_v12, %v11204_v60  ;;  %v6802_v13 = vld [vmem:[%s11325_s0 + $0x111] sm:$0xff]  ;;  %v6803_v63 = vld [vmem:[%s11325_s0 + $0x121] sm:$0xff] }
 0xf3d   :  { %5979 = vst.msk [vmem:[#allocation2 + $0x10] sm:$0xff] %vm577_vm0, %v5963_v49 }
 0xf3e   :  { %5980 = vst.msk [vmem:[#allocation2 + $0x18] sm:$0xff] %vm577_vm0, %v5964_v46  ;;  %v5920_v45 = vsel %vm5894_vm12, %v5919_v51, %v5918_v56 }
 0xf3f   :  { %5981 = vst.msk [vmem:[#allocation2 + $0x20] sm:$0xff] %vm577_vm0, %v5965_v24  ;;  %v5922_v2 = vsel %vm5898_vm13, %v5921_v59, %v5920_v45 }
 0xf40   :  { %5982 = vst.msk [vmem:[#allocation2 + $0x28] sm:$0xff] %vm577_vm0, %v5966_v43  ;;  %v5924_v19 = vsel %vm5902_vm14, %v5923_v4, %v5922_v2 }
 0xf41   :  { %5983 = vst.msk [vmem:[#allocation2 + $0x30] sm:$0xff] %vm577_vm0, %v5967_v38 }
 0xf42   :  { %5984 = vst.msk [vmem:[#allocation2 + $0x38] sm:$0xff] %vm577_vm0, %v5968_v40 }
 0xf43   :  { %v5888_v50 = vpop.permute.xlu0 %5887  ;;  %v5882_v20 = vpop.permute.xlu1 %5881 }
 0xf44   :  { %v5925_v44 = vperm.slane %v5882_v20, %v11208_v34  ;;  %v5929_v16 = vperm.slane %v5888_v50, %v11220_v1 }
 0xf46   :  { %v5926_v15 = vsel %vm5906_vm15, %v5925_v44, %v5924_v19 }
 0xf47   :  { %v5928_v54 = vsel %vm5910_vm1, %v5927_v14, %v5926_v15 }
 0xf48   :  { %v5930_v10 = vsel %vm5914_vm2, %v5929_v16, %v5928_v54 }
 0xf49   :  { %v5953_v7 = vmul.f32 %v5930_v10, %v12216_v41  ;;  %v5954_v60 = vmul.f32 %v5930_v10, %v12217_v55  ;;  %v5955_v3 = vmul.f32 %v5930_v10, %v12218_v17  ;;  %v5956_v34 = vmul.f32 %v5930_v10, %v12219_v0 }
 0xf4a   :  { %v5957_v30 = vmul.f32 %v5930_v10, %v12220_v11  ;;  %v5958_v25 = vmul.f32 %v5930_v10, %v12221_v35  ;;  %v5959_v1 = vmul.f32 %v5930_v10, %v12222_v48  ;;  %v5960_v52 = vmul.f32 %v5930_v10, %v12223_v6 }
 0xf4b   :  { %v5969_v27 = vadd.f32 %v6796_v23, %v5953_v7  ;;  %v5970_v32 = vadd.f32 %v6797_v18, %v5954_v60  ;;  %v5971_v42 = vadd.f32 %v6798_v29, %v5955_v3  ;;  %v5972_v36 = vadd.f32 %v6799_v21, %v5956_v34 }
 0xf4c   :  { %v5973_v47 = vadd.f32 %v6800_v28, %v5957_v30  ;;  %v5974_v5 = vadd.f32 %v6801_v61, %v5958_v25  ;;  %v5975_v26 = vadd.f32 %v6802_v13, %v5959_v1  ;;  %v5976_v49 = vadd.f32 %v6803_v63, %v5960_v52 }
 0xf4d   :  { %5985 = vst.msk [vmem:[#allocation2 + $0x40] sm:$0xff] %vm577_vm0, %v5969_v27 }
 0xf4e   :  { %5986 = vst.msk [vmem:[#allocation2 + $0x48] sm:$0xff] %vm577_vm0, %v5970_v32 }
 0xf4f   :  { %5987 = vst.msk [vmem:[#allocation2 + $0x50] sm:$0xff] %vm577_vm0, %v5971_v42 }
 0xf50   :  { %5988 = vst.msk [vmem:[#allocation2 + $0x58] sm:$0xff] %vm577_vm0, %v5972_v36 }
 0xf51   :  { %5989 = vst.msk [vmem:[#allocation2 + $0x60] sm:$0xff] %vm577_vm0, %v5973_v47 }
 0xf52   :  { %5990 = vst.msk [vmem:[#allocation2 + $0x68] sm:$0xff] %vm577_vm0, %v5974_v5 }
 0xf53   :  { %5991 = vst.msk [vmem:[#allocation2 + $0x70] sm:$0xff] %vm577_vm0, %v5975_v26 }
 0xf54   :  { %5992 = vst.msk [vmem:[#allocation2 + $0x78] sm:$0xff] %vm577_vm0, %v5976_v49 }
 0xf55   :  { %6005 = dma.vmem_to_hbm [thread:$0]  %s5998_s10, 2048, %s6000_s17, [#allocation3], %s6839_s11, %s6839_s11, %s6840_s21  }
 0xf56   :  { %6828 = dma.done.wait [#allocation3], 2048  }
 0xf57   :  { %6829 = vsyncadd [#allocation3], 4294965248 }
 0xf58   :  { %6010 = vsyncpa [#allocation3], 1 }

</bundles_post_ra>
